<compile_context>
chip_gen: v7x
topology: tpu7x:2x2x1
jax: 0.10.0
libtpu: 0.0.40
codegen_flags: <defaults>
</compile_context>

<pallas_src>
import functools
import math

import jax
import jax.numpy as jnp
from jax.experimental import pallas as pl
from jax.experimental.pallas import tpu as pltpu


def _round_up(x, m):
    return (x + m - 1) // m * m


def _dense_block_kernel(nb_layers, in_planes, growth, cin_pads,
                        x_ref, sb_ref, w_ref, o_ref, act_pad):
    """Fused DenseBlock forward for one batch tile.

    x_ref   : (Bt, H, W, in_planes)        f32   input block
    sb_ref  : (L, 2, cin_max_pad)          f32   folded-BN scale/bias, zero-padded
    w_ref   : (L, 9, cin_max_pad, growth)  bf16  conv weights (tap, cin, cout), zero-padded
    o_ref   : (Bt, H, W, c_total)          f32   output block == resident concat buffer
    act_pad : (Bt, H+2, W+2, cin_max_pad)  bf16  zero-halo, lane-padded BN+ReLU activation
    """
    L = nb_layers
    Bt, H, W, _ = o_ref.shape
    M = Bt * H * W

    # Seed channels [0, in_planes) of the output block.  The output block doubles
    # as the VMEM-resident concat buffer (no separate scratch, no final copy).
    o_ref[:, :, :, 0:in_planes] = x_ref[...]

    # One memset of the padded activation scratch per grid step: the halo ring and
    # every channel >= cin_i stay zero forever (valid interior channels are always
    # rewritten before they are read), so padded lanes contribute exactly zero to
    # the contraction (weight rows there are zero as well).
    act_pad[...] = jnp.zeros_like(act_pad)

    for i in range(L):                       # static unroll; shapes known at trace time
        cin = in_planes + i * growth
        kpad = cin_pads[i]                   # round_up(cin, 128): this layer's K dim

        sb_i = sb_ref[i]                     # (2, cin_max_pad) f32, VMEM-resident
        scale = sb_i[0, 0:cin].reshape(1, 1, 1, cin)
        bias = sb_i[1, 0:cin].reshape(1, 1, 1, cin)

        # Folded BN (per-channel affine) + ReLU in f32 on the VPU; stored bf16.
        act = jnp.maximum(o_ref[:, :, :, 0:cin] * scale + bias, 0.0)
        act_pad[:, 1:H + 1, 1:W + 1, 0:cin] = act.astype(act_pad.dtype)

        # 3x3 conv as 9 shifted (M, kpad) @ (kpad, growth) matmuls, bf16 operands,
        # f32 accumulation.  No patch-matrix materialization, no lane concat, and
        # K is 128-aligned by construction.
        acc = None
        for dy in range(3):
            for dx in range(3):
                t = dy * 3 + dx
                lhs = act_pad[:, dy:dy + H, dx:dx + W, 0:kpad].reshape(M, kpad)
                w_it = w_ref[i, t][0:kpad, :]            # (kpad, growth) bf16
                d = jnp.dot(lhs, w_it, preferred_element_type=jnp.float32)
                acc = d if acc is None else acc + d

        # Dense concatenation, in place in the output block.
        o_ref[:, :, :, cin:cin + growth] = (
            acc.reshape(Bt, H, W, growth).astype(o_ref.dtype))


def dense_block_forward(x_nhwc, params, batch_tile=None, eps=1e-5):
    """Fused DenseBlock forward. x: (N,H,W,in_planes) f32; params: list of layer dicts."""
    N, H, W, in_planes = x_nhwc.shape
    L = len(params)
    growth = params[0]["w"].shape[0]
    c_total = in_planes + L * growth
    cin_max = in_planes + (L - 1) * growth
    cin_max_pad = _round_up(cin_max, 128)
    cin_pads = tuple(_round_up(in_planes + i * growth, 128) for i in range(L))

    # Batch tile: grow M = Bt*H*W toward >= 256 rows (MXU fill) while dividing N.
    # (On v7x with many batch elements this still leaves a multi-step parallel grid.)
    if batch_tile is None:
        batch_tile = min(N, max(1, -(-256 // (H * W))))
        while N % batch_tile:
            batch_tile -= 1
    bt = batch_tile
    grid = (N // bt,)

    # Pack per-layer folded-BN params and per-tap conv weights into two lane-padded,
    # zero-padded arrays: one DMA each, resident in VMEM across the whole grid.
    sb = jnp.zeros((L, 2, cin_max_pad), jnp.float32)
    wp = jnp.zeros((L, 9, cin_max_pad, growth), jnp.float32)
    for i, p in enumerate(params):
        cin = in_planes + i * growth
        scale = p["gamma"] / jnp.sqrt(p["var"] + eps)
        bias = p["beta"] - p["mean"] * scale
        # (Cout,Cin,3,3) -> (ky,kx,Cin,Cout) -> (9, Cin, Cout); tap t = ky*3 + kx.
        w_tap = jnp.transpose(p["w"], (2, 3, 1, 0)).reshape(9, cin, growth)
        sb = sb.at[i, 0, :cin].set(scale)
        sb = sb.at[i, 1, :cin].set(bias)
        wp = wp.at[i, :, :cin, :].set(w_tap)
    wp = wp.astype(jnp.bfloat16)            # bf16 MXU operands, f32 accumulation

    # Rough VMEM budget (double-buffered I/O blocks + resident params + scratch +
    # matmul transients), so real DenseNet shapes don't silently spill on v7x.
    def _tile_bytes(shape, itemsize):
        s = list(shape)
        s[-1] = _round_up(s[-1], 128)
        s[-2] = _round_up(s[-2], 8)
        return int(math.prod(s)) * itemsize

    est = (2 * _tile_bytes((bt, H, W, in_planes), 4)
           + 2 * _tile_bytes((bt, H, W, c_total), 4)
           + _tile_bytes((L, 2, cin_max_pad), 4)
           + _tile_bytes((L, 9, cin_max_pad, growth), 2)
           + _tile_bytes((bt, H + 2, W + 2, cin_max_pad), 2)
           + 4 * _tile_bytes((bt * H * W, cin_max_pad), 4))
    vmem_limit = int(min(48 << 20, max(32 << 20, 2 * est)))

    kernel = functools.partial(_dense_block_kernel, L, in_planes, growth, cin_pads)

    return pl.pallas_call(
        kernel,
        out_shape=jax.ShapeDtypeStruct((N, H, W, c_total), x_nhwc.dtype),
        grid_spec=pltpu.PrefetchScalarGridSpec(
            num_scalar_prefetch=0,
            grid=grid,
            in_specs=[
                pl.BlockSpec((bt, H, W, in_planes), lambda n: (n, 0, 0, 0)),
                pl.BlockSpec((L, 2, cin_max_pad), lambda n: (0, 0, 0)),
                pl.BlockSpec((L, 9, cin_max_pad, growth), lambda n: (0, 0, 0, 0)),
            ],
            out_specs=pl.BlockSpec((bt, H, W, c_total), lambda n: (n, 0, 0, 0)),
            scratch_shapes=[
                pltpu.VMEM((bt, H + 2, W + 2, cin_max_pad), jnp.bfloat16),
            ],
        ),
        compiler_params=pltpu.CompilerParams(
            dimension_semantics=("parallel",),
            vmem_limit_bytes=vmem_limit),
    )(x_nhwc, sb, wp)


def make_dense_block_params(key, nb_layers, in_planes, growth_rate):
    """Deterministic synthetic parameters; PyTorch-equivalent shapes."""
    params = []
    for i in range(nb_layers):
        cin = in_planes + i * growth_rate
        cout = growth_rate
        key, k1, k2, k3 = jax.random.split(key, 4)
        gamma = 1.0 + 0.1 * jax.random.normal(k1, (cin,), jnp.float32)
        beta = 0.1 * jax.random.normal(k2, (cin,), jnp.float32)
        run_mean = 0.05 * jax.random.normal(k3, (cin,), jnp.float32)
        run_var = jnp.ones((cin,), jnp.float32)
        # PyTorch conv weight layout (Cout, Cin, 3, 3); kaiming-ish scale.
        key, kw = jax.random.split(key)
        w = jax.random.normal(kw, (cout, cin, 3, 3), jnp.float32) * (
            (2.0 / (9.0 * cin)) ** 0.5)
        params.append(dict(gamma=gamma, beta=beta, mean=run_mean, var=run_var, w=w))
    return params


def dense_block_forward_ref(x_nhwc, params, eps=1e-5):
    """Pure-JAX reference (f32 lax conv) for numerical verification."""
    x = x_nhwc
    for p in params:
        xn = (x - p["mean"]) / jnp.sqrt(p["var"] + eps)
        a = jnp.maximum(xn * p["gamma"] + p["beta"], 0.0)
        w_hwio = jnp.transpose(p["w"], (2, 3, 1, 0))  # (3,3,Cin,Cout)
        out = jax.lax.conv_general_dilated(
            a, w_hwio, window_strides=(1, 1), padding="SAME",
            dimension_numbers=("NHWC", "HWIO", "NHWC"))
        x = jnp.concatenate([x, out], axis=-1)
    return x


if __name__ == "__main__":
    # Small shapes: nb_layers=3, in_planes=8, growth_rate=4, N=2, H=W=8.
    nb_layers, in_planes, growth_rate = 3, 8, 4
    N, H, W = 2, 8, 8

    key = jax.random.PRNGKey(0)
    key, kx = jax.random.split(key)
    # Input built directly in NHWC (equivalent to PyTorch's NCHW input).
    x = jax.random.normal(kx, (N, H, W, in_planes), jnp.float32)

    params = make_dense_block_params(key, nb_layers, in_planes, growth_rate)

    # TODO(synk): dropout path (dropRate > 0) not implemented; module default is 0.0.
    y = dense_block_forward(x, params)
    y = jax.block_until_ready(y)

    y_ref = dense_block_forward_ref(x, params)
    assert y.shape == (N, H, W, in_planes + nb_layers * growth_rate), y.shape
    # Tolerance loosened for bf16 MXU operands (f32 accumulation).
    assert jnp.allclose(y, y_ref, atol=1e-1, rtol=1e-1), (
        float(jnp.max(jnp.abs(y - y_ref))))

    print("KERNEL_OK")
</pallas_src>

<mosaic_0001>
module attributes {stable_mosaic.version = 11 : i64} {
  func.func @_dense_block_kernel(%arg0: i32, %arg1: memref<2x8x8x8xf32, #tpu.memory_space<vmem>>, %arg2: memref<3x2x128xf32, #tpu.memory_space<vmem>>, %arg3: memref<3x9x128x4xbf16, #tpu.memory_space<vmem>>, %arg4: memref<2x8x8x20xf32, #tpu.memory_space<vmem>>, %arg5: memref<2x10x10x128xbf16, #tpu.memory_space<vmem>>) attributes {dimension_semantics = [#tpu.dimension_semantics<parallel>], iteration_bounds = array<i64: 1>, scalar_prefetch = 0 : i64, scratch_operands = 1 : i64, tpu.core_type = #tpu.core_type<tc>, window_params = [{transform_indices = @transform_0, window_bounds = array<i64: 2, 8, 8, 8>}, {pipeline_mode = #tpu.pipeline_mode<synchronous>, transform_indices = @transform_1, window_bounds = array<i64: 3, 2, 128>}, {pipeline_mode = #tpu.pipeline_mode<synchronous>, transform_indices = @transform_2, window_bounds = array<i64: 3, 9, 128, 4>}, {transform_indices = @transform_3, window_bounds = array<i64: 2, 8, 8, 20>}]} {
    %c0 = arith.constant 0 : index
    %c0_0 = arith.constant 0 : index
    %c0_1 = arith.constant 0 : index
    %c0_2 = arith.constant 0 : index
    %0 = vector.load %arg1[%c0, %c0_0, %c0_1, %c0_2] : memref<2x8x8x8xf32, #tpu.memory_space<vmem>>, vector<2x8x8x8xf32>
    %c0_3 = arith.constant 0 : index
    %c0_4 = arith.constant 0 : index
    %c0_5 = arith.constant 0 : index
    %c0_6 = arith.constant 0 : index
    %1 = vector.load %arg4[%c0_3, %c0_4, %c0_5, %c0_6] : memref<2x8x8x20xf32, #tpu.memory_space<vmem>>, vector<2x8x8x8xf32>
    tpu.vector_store %arg4[%c0_3, %c0_4, %c0_5, %c0_6], %0 {strides = array<i32>} : memref<2x8x8x20xf32, #tpu.memory_space<vmem>>, vector<2x8x8x8xf32>,
    %cst = arith.constant 0.000000e+00 : bf16
    %2 = vector.broadcast %cst : bf16 to vector<2x10x10x128xbf16>
    %c0_7 = arith.constant 0 : index
    %c0_8 = arith.constant 0 : index
    %c0_9 = arith.constant 0 : index
    %c0_10 = arith.constant 0 : index
    %3 = vector.load %arg5[%c0_7, %c0_8, %c0_9, %c0_10] : memref<2x10x10x128xbf16, #tpu.memory_space<vmem>>, vector<2x10x10x128xbf16>
    tpu.vector_store %arg5[%c0_7, %c0_8, %c0_9, %c0_10], %2 {strides = array<i32>} : memref<2x10x10x128xbf16, #tpu.memory_space<vmem>>, vector<2x10x10x128xbf16>,
    %c0_11 = arith.constant 0 : index
    %c0_12 = arith.constant 0 : index
    %c0_13 = arith.constant 0 : index
    %4 = vector.load %arg2[%c0_11, %c0_12, %c0_13] : memref<3x2x128xf32, #tpu.memory_space<vmem>>, vector<1x2x128xf32>
    %5 = vector.shape_cast %4 : vector<1x2x128xf32> to vector<2x128xf32>
    %6 = vector.extract_strided_slice %5 {offsets = [0, 0], sizes = [1, 8], strides = [1, 1]} : vector<2x128xf32> to vector<1x8xf32>
    %7 = vector.shape_cast %6 : vector<1x8xf32> to vector<8xf32>
    %8 = vector.shape_cast %7 : vector<8xf32> to vector<1x1x1x8xf32>
    %9 = vector.extract_strided_slice %5 {offsets = [1, 0], sizes = [1, 8], strides = [1, 1]} : vector<2x128xf32> to vector<1x8xf32>
    %10 = vector.shape_cast %9 : vector<1x8xf32> to vector<8xf32>
    %11 = vector.shape_cast %10 : vector<8xf32> to vector<1x1x1x8xf32>
    %c0_14 = arith.constant 0 : index
    %c0_15 = arith.constant 0 : index
    %c0_16 = arith.constant 0 : index
    %c0_17 = arith.constant 0 : index
    %12 = vector.load %arg4[%c0_14, %c0_15, %c0_16, %c0_17] : memref<2x8x8x20xf32, #tpu.memory_space<vmem>>, vector<2x8x8x8xf32>
    %13 = vector.broadcast %8 : vector<1x1x1x8xf32> to vector<2x8x8x8xf32>
    %14 = arith.mulf %12, %13 : vector<2x8x8x8xf32>
    %15 = vector.broadcast %11 : vector<1x1x1x8xf32> to vector<2x8x8x8xf32>
    %16 = arith.addf %14, %15 : vector<2x8x8x8xf32>
    %cst_18 = arith.constant 0.000000e+00 : f32
    %17 = vector.broadcast %cst_18 : f32 to vector<2x8x8x8xf32>
    %18 = arith.maximumf %16, %17 : vector<2x8x8x8xf32>
    %19 = arith.truncf %18 : vector<2x8x8x8xf32> to vector<2x8x8x8xbf16>
    %c0_19 = arith.constant 0 : index
    %c1 = arith.constant 1 : index
    %c1_20 = arith.constant 1 : index
    %c0_21 = arith.constant 0 : index
    %20 = vector.load %arg5[%c0_19, %c1, %c1_20, %c0_21] : memref<2x10x10x128xbf16, #tpu.memory_space<vmem>>, vector<2x8x8x8xbf16>
    tpu.vector_store %arg5[%c0_19, %c1, %c1_20, %c0_21], %19 {strides = array<i32>} : memref<2x10x10x128xbf16, #tpu.memory_space<vmem>>, vector<2x8x8x8xbf16>,
    %c0_22 = arith.constant 0 : index
    %c0_23 = arith.constant 0 : index
    %c0_24 = arith.constant 0 : index
    %c0_25 = arith.constant 0 : index
    %21 = vector.load %arg5[%c0_22, %c0_23, %c0_24, %c0_25] : memref<2x10x10x128xbf16, #tpu.memory_space<vmem>>, vector<2x8x8x128xbf16>
    %22 = vector.shape_cast %21 : vector<2x8x8x128xbf16> to vector<128x128xbf16>
    %c0_26 = arith.constant 0 : index
    %c0_27 = arith.constant 0 : index
    %c0_28 = arith.constant 0 : index
    %c0_29 = arith.constant 0 : index
    %23 = vector.load %arg3[%c0_26, %c0_27, %c0_28, %c0_29] : memref<3x9x128x4xbf16, #tpu.memory_space<vmem>>, vector<1x1x128x4xbf16>
    %24 = vector.shape_cast %23 : vector<1x1x128x4xbf16> to vector<128x4xbf16>
    %cst_30 = arith.constant dense<0.000000e+00> : vector<128x4xf32>
    %25 = tpu.matmul %22, %24, %cst_30 {dimension_numbers = #tpu.dot_dimension_numbers<[1], [0], [0], [1], [0, 0, 1, 1], [], []>} : vector<128x128xbf16>, vector<128x4xbf16>, vector<128x4xf32> -> vector<128x4xf32>
    %c0_31 = arith.constant 0 : index
    %c0_32 = arith.constant 0 : index
    %c1_33 = arith.constant 1 : index
    %c0_34 = arith.constant 0 : index
    %26 = vector.load %arg5[%c0_31, %c0_32, %c1_33, %c0_34] : memref<2x10x10x128xbf16, #tpu.memory_space<vmem>>, vector<2x8x8x128xbf16>
    %27 = vector.shape_cast %26 : vector<2x8x8x128xbf16> to vector<128x128xbf16>
    %c0_35 = arith.constant 0 : index
    %c1_36 = arith.constant 1 : index
    %c0_37 = arith.constant 0 : index
    %c0_38 = arith.constant 0 : index
    %28 = vector.load %arg3[%c0_35, %c1_36, %c0_37, %c0_38] : memref<3x9x128x4xbf16, #tpu.memory_space<vmem>>, vector<1x1x128x4xbf16>
    %29 = vector.shape_cast %28 : vector<1x1x128x4xbf16> to vector<128x4xbf16>
    %cst_39 = arith.constant dense<0.000000e+00> : vector<128x4xf32>
    %30 = tpu.matmul %27, %29, %cst_39 {dimension_numbers = #tpu.dot_dimension_numbers<[1], [0], [0], [1], [0, 0, 1, 1], [], []>} : vector<128x128xbf16>, vector<128x4xbf16>, vector<128x4xf32> -> vector<128x4xf32>
    %31 = arith.addf %25, %30 : vector<128x4xf32>
    %c0_40 = arith.constant 0 : index
    %c0_41 = arith.constant 0 : index
    %c2 = arith.constant 2 : index
    %c0_42 = arith.constant 0 : index
    %32 = vector.load %arg5[%c0_40, %c0_41, %c2, %c0_42] : memref<2x10x10x128xbf16, #tpu.memory_space<vmem>>, vector<2x8x8x128xbf16>
    %33 = vector.shape_cast %32 : vector<2x8x8x128xbf16> to vector<128x128xbf16>
    %c0_43 = arith.constant 0 : index
    %c2_44 = arith.constant 2 : index
    %c0_45 = arith.constant 0 : index
    %c0_46 = arith.constant 0 : index
    %34 = vector.load %arg3[%c0_43, %c2_44, %c0_45, %c0_46] : memref<3x9x128x4xbf16, #tpu.memory_space<vmem>>, vector<1x1x128x4xbf16>
    %35 = vector.shape_cast %34 : vector<1x1x128x4xbf16> to vector<128x4xbf16>
    %cst_47 = arith.constant dense<0.000000e+00> : vector<128x4xf32>
    %36 = tpu.matmul %33, %35, %cst_47 {dimension_numbers = #tpu.dot_dimension_numbers<[1], [0], [0], [1], [0, 0, 1, 1], [], []>} : vector<128x128xbf16>, vector<128x4xbf16>, vector<128x4xf32> -> vector<128x4xf32>
    %37 = arith.addf %31, %36 : vector<128x4xf32>
    %c0_48 = arith.constant 0 : index
    %c1_49 = arith.constant 1 : index
    %c0_50 = arith.constant 0 : index
    %c0_51 = arith.constant 0 : index
    %38 = vector.load %arg5[%c0_48, %c1_49, %c0_50, %c0_51] : memref<2x10x10x128xbf16, #tpu.memory_space<vmem>>, vector<2x8x8x128xbf16>
    %39 = vector.shape_cast %38 : vector<2x8x8x128xbf16> to vector<128x128xbf16>
    %c0_52 = arith.constant 0 : index
    %c3 = arith.constant 3 : index
    %c0_53 = arith.constant 0 : index
    %c0_54 = arith.constant 0 : index
    %40 = vector.load %arg3[%c0_52, %c3, %c0_53, %c0_54] : memref<3x9x128x4xbf16, #tpu.memory_space<vmem>>, vector<1x1x128x4xbf16>
    %41 = vector.shape_cast %40 : vector<1x1x128x4xbf16> to vector<128x4xbf16>
    %cst_55 = arith.constant dense<0.000000e+00> : vector<128x4xf32>
    %42 = tpu.matmul %39, %41, %cst_55 {dimension_numbers = #tpu.dot_dimension_numbers<[1], [0], [0], [1], [0, 0, 1, 1], [], []>} : vector<128x128xbf16>, vector<128x4xbf16>, vector<128x4xf32> -> vector<128x4xf32>
    %43 = arith.addf %37, %42 : vector<128x4xf32>
    %c0_56 = arith.constant 0 : index
    %c1_57 = arith.constant 1 : index
    %c1_58 = arith.constant 1 : index
    %c0_59 = arith.constant 0 : index
    %44 = vector.load %arg5[%c0_56, %c1_57, %c1_58, %c0_59] : memref<2x10x10x128xbf16, #tpu.memory_space<vmem>>, vector<2x8x8x128xbf16>
    %45 = vector.shape_cast %44 : vector<2x8x8x128xbf16> to vector<128x128xbf16>
    %c0_60 = arith.constant 0 : index
    %c4 = arith.constant 4 : index
    %c0_61 = arith.constant 0 : index
    %c0_62 = arith.constant 0 : index
    %46 = vector.load %arg3[%c0_60, %c4, %c0_61, %c0_62] : memref<3x9x128x4xbf16, #tpu.memory_space<vmem>>, vector<1x1x128x4xbf16>
    %47 = vector.shape_cast %46 : vector<1x1x128x4xbf16> to vector<128x4xbf16>
    %cst_63 = arith.constant dense<0.000000e+00> : vector<128x4xf32>
    %48 = tpu.matmul %45, %47, %cst_63 {dimension_numbers = #tpu.dot_dimension_numbers<[1], [0], [0], [1], [0, 0, 1, 1], [], []>} : vector<128x128xbf16>, vector<128x4xbf16>, vector<128x4xf32> -> vector<128x4xf32>
    %49 = arith.addf %43, %48 : vector<128x4xf32>
    %c0_64 = arith.constant 0 : index
    %c1_65 = arith.constant 1 : index
    %c2_66 = arith.constant 2 : index
    %c0_67 = arith.constant 0 : index
    %50 = vector.load %arg5[%c0_64, %c1_65, %c2_66, %c0_67] : memref<2x10x10x128xbf16, #tpu.memory_space<vmem>>, vector<2x8x8x128xbf16>
    %51 = vector.shape_cast %50 : vector<2x8x8x128xbf16> to vector<128x128xbf16>
    %c0_68 = arith.constant 0 : index
    %c5 = arith.constant 5 : index
    %c0_69 = arith.constant 0 : index
    %c0_70 = arith.constant 0 : index
    %52 = vector.load %arg3[%c0_68, %c5, %c0_69, %c0_70] : memref<3x9x128x4xbf16, #tpu.memory_space<vmem>>, vector<1x1x128x4xbf16>
    %53 = vector.shape_cast %52 : vector<1x1x128x4xbf16> to vector<128x4xbf16>
    %cst_71 = arith.constant dense<0.000000e+00> : vector<128x4xf32>
    %54 = tpu.matmul %51, %53, %cst_71 {dimension_numbers = #tpu.dot_dimension_numbers<[1], [0], [0], [1], [0, 0, 1, 1], [], []>} : vector<128x128xbf16>, vector<128x4xbf16>, vector<128x4xf32> -> vector<128x4xf32>
    %55 = arith.addf %49, %54 : vector<128x4xf32>
    %c0_72 = arith.constant 0 : index
    %c2_73 = arith.constant 2 : index
    %c0_74 = arith.constant 0 : index
    %c0_75 = arith.constant 0 : index
    %56 = vector.load %arg5[%c0_72, %c2_73, %c0_74, %c0_75] : memref<2x10x10x128xbf16, #tpu.memory_space<vmem>>, vector<2x8x8x128xbf16>
    %57 = vector.shape_cast %56 : vector<2x8x8x128xbf16> to vector<128x128xbf16>
    %c0_76 = arith.constant 0 : index
    %c6 = arith.constant 6 : index
    %c0_77 = arith.constant 0 : index
    %c0_78 = arith.constant 0 : index
    %58 = vector.load %arg3[%c0_76, %c6, %c0_77, %c0_78] : memref<3x9x128x4xbf16, #tpu.memory_space<vmem>>, vector<1x1x128x4xbf16>
    %59 = vector.shape_cast %58 : vector<1x1x128x4xbf16> to vector<128x4xbf16>
    %cst_79 = arith.constant dense<0.000000e+00> : vector<128x4xf32>
    %60 = tpu.matmul %57, %59, %cst_79 {dimension_numbers = #tpu.dot_dimension_numbers<[1], [0], [0], [1], [0, 0, 1, 1], [], []>} : vector<128x128xbf16>, vector<128x4xbf16>, vector<128x4xf32> -> vector<128x4xf32>
    %61 = arith.addf %55, %60 : vector<128x4xf32>
    %c0_80 = arith.constant 0 : index
    %c2_81 = arith.constant 2 : index
    %c1_82 = arith.constant 1 : index
    %c0_83 = arith.constant 0 : index
    %62 = vector.load %arg5[%c0_80, %c2_81, %c1_82, %c0_83] : memref<2x10x10x128xbf16, #tpu.memory_space<vmem>>, vector<2x8x8x128xbf16>
    %63 = vector.shape_cast %62 : vector<2x8x8x128xbf16> to vector<128x128xbf16>
    %c0_84 = arith.constant 0 : index
    %c7 = arith.constant 7 : index
    %c0_85 = arith.constant 0 : index
    %c0_86 = arith.constant 0 : index
    %64 = vector.load %arg3[%c0_84, %c7, %c0_85, %c0_86] : memref<3x9x128x4xbf16, #tpu.memory_space<vmem>>, vector<1x1x128x4xbf16>
    %65 = vector.shape_cast %64 : vector<1x1x128x4xbf16> to vector<128x4xbf16>
    %cst_87 = arith.constant dense<0.000000e+00> : vector<128x4xf32>
    %66 = tpu.matmul %63, %65, %cst_87 {dimension_numbers = #tpu.dot_dimension_numbers<[1], [0], [0], [1], [0, 0, 1, 1], [], []>} : vector<128x128xbf16>, vector<128x4xbf16>, vector<128x4xf32> -> vector<128x4xf32>
    %67 = arith.addf %61, %66 : vector<128x4xf32>
    %c0_88 = arith.constant 0 : index
    %c2_89 = arith.constant 2 : index
    %c2_90 = arith.constant 2 : index
    %c0_91 = arith.constant 0 : index
    %68 = vector.load %arg5[%c0_88, %c2_89, %c2_90, %c0_91] : memref<2x10x10x128xbf16, #tpu.memory_space<vmem>>, vector<2x8x8x128xbf16>
    %69 = vector.shape_cast %68 : vector<2x8x8x128xbf16> to vector<128x128xbf16>
    %c0_92 = arith.constant 0 : index
    %c8 = arith.constant 8 : index
    %c0_93 = arith.constant 0 : index
    %c0_94 = arith.constant 0 : index
    %70 = vector.load %arg3[%c0_92, %c8, %c0_93, %c0_94] : memref<3x9x128x4xbf16, #tpu.memory_space<vmem>>, vector<1x1x128x4xbf16>
    %71 = vector.shape_cast %70 : vector<1x1x128x4xbf16> to vector<128x4xbf16>
    %cst_95 = arith.constant dense<0.000000e+00> : vector<128x4xf32>
    %72 = tpu.matmul %69, %71, %cst_95 {dimension_numbers = #tpu.dot_dimension_numbers<[1], [0], [0], [1], [0, 0, 1, 1], [], []>} : vector<128x128xbf16>, vector<128x4xbf16>, vector<128x4xf32> -> vector<128x4xf32>
    %73 = arith.addf %67, %72 : vector<128x4xf32>
    %74 = vector.shape_cast %73 : vector<128x4xf32> to vector<2x8x8x4xf32>
    %c0_96 = arith.constant 0 : index
    %c0_97 = arith.constant 0 : index
    %c0_98 = arith.constant 0 : index
    %c8_99 = arith.constant 8 : index
    %75 = vector.load %arg4[%c0_96, %c0_97, %c0_98, %c8_99] : memref<2x8x8x20xf32, #tpu.memory_space<vmem>>, vector<2x8x8x4xf32>
    tpu.vector_store %arg4[%c0_96, %c0_97, %c0_98, %c8_99], %74 {strides = array<i32>} : memref<2x8x8x20xf32, #tpu.memory_space<vmem>>, vector<2x8x8x4xf32>,
    %c1_100 = arith.constant 1 : index
    %c0_101 = arith.constant 0 : index
    %c0_102 = arith.constant 0 : index
    %76 = vector.load %arg2[%c1_100, %c0_101, %c0_102] : memref<3x2x128xf32, #tpu.memory_space<vmem>>, vector<1x2x128xf32>
    %77 = vector.shape_cast %76 : vector<1x2x128xf32> to vector<2x128xf32>
    %78 = vector.extract_strided_slice %77 {offsets = [0, 0], sizes = [1, 12], strides = [1, 1]} : vector<2x128xf32> to vector<1x12xf32>
    %79 = vector.shape_cast %78 : vector<1x12xf32> to vector<12xf32>
    %80 = vector.shape_cast %79 : vector<12xf32> to vector<1x1x1x12xf32>
    %81 = vector.extract_strided_slice %77 {offsets = [1, 0], sizes = [1, 12], strides = [1, 1]} : vector<2x128xf32> to vector<1x12xf32>
    %82 = vector.shape_cast %81 : vector<1x12xf32> to vector<12xf32>
    %83 = vector.shape_cast %82 : vector<12xf32> to vector<1x1x1x12xf32>
    %c0_103 = arith.constant 0 : index
    %c0_104 = arith.constant 0 : index
    %c0_105 = arith.constant 0 : index
    %c0_106 = arith.constant 0 : index
    %84 = vector.load %arg4[%c0_103, %c0_104, %c0_105, %c0_106] : memref<2x8x8x20xf32, #tpu.memory_space<vmem>>, vector<2x8x8x12xf32>
    %85 = vector.broadcast %80 : vector<1x1x1x12xf32> to vector<2x8x8x12xf32>
    %86 = arith.mulf %84, %85 : vector<2x8x8x12xf32>
    %87 = vector.broadcast %83 : vector<1x1x1x12xf32> to vector<2x8x8x12xf32>
    %88 = arith.addf %86, %87 : vector<2x8x8x12xf32>
    %cst_107 = arith.constant 0.000000e+00 : f32
    %89 = vector.broadcast %cst_107 : f32 to vector<2x8x8x12xf32>
    %90 = arith.maximumf %88, %89 : vector<2x8x8x12xf32>
    %91 = arith.truncf %90 : vector<2x8x8x12xf32> to vector<2x8x8x12xbf16>
    %c0_108 = arith.constant 0 : index
    %c1_109 = arith.constant 1 : index
    %c1_110 = arith.constant 1 : index
    %c0_111 = arith.constant 0 : index
    %92 = vector.load %arg5[%c0_108, %c1_109, %c1_110, %c0_111] : memref<2x10x10x128xbf16, #tpu.memory_space<vmem>>, vector<2x8x8x12xbf16>
    tpu.vector_store %arg5[%c0_108, %c1_109, %c1_110, %c0_111], %91 {strides = array<i32>} : memref<2x10x10x128xbf16, #tpu.memory_space<vmem>>, vector<2x8x8x12xbf16>,
    %c0_112 = arith.constant 0 : index
    %c0_113 = arith.constant 0 : index
    %c0_114 = arith.constant 0 : index
    %c0_115 = arith.constant 0 : index
    %93 = vector.load %arg5[%c0_112, %c0_113, %c0_114, %c0_115] : memref<2x10x10x128xbf16, #tpu.memory_space<vmem>>, vector<2x8x8x128xbf16>
    %94 = vector.shape_cast %93 : vector<2x8x8x128xbf16> to vector<128x128xbf16>
    %c1_116 = arith.constant 1 : index
    %c0_117 = arith.constant 0 : index
    %c0_118 = arith.constant 0 : index
    %c0_119 = arith.constant 0 : index
    %95 = vector.load %arg3[%c1_116, %c0_117, %c0_118, %c0_119] : memref<3x9x128x4xbf16, #tpu.memory_space<vmem>>, vector<1x1x128x4xbf16>
    %96 = vector.shape_cast %95 : vector<1x1x128x4xbf16> to vector<128x4xbf16>
    %cst_120 = arith.constant dense<0.000000e+00> : vector<128x4xf32>
    %97 = tpu.matmul %94, %96, %cst_120 {dimension_numbers = #tpu.dot_dimension_numbers<[1], [0], [0], [1], [0, 0, 1, 1], [], []>} : vector<128x128xbf16>, vector<128x4xbf16>, vector<128x4xf32> -> vector<128x4xf32>
    %c0_121 = arith.constant 0 : index
    %c0_122 = arith.constant 0 : index
    %c1_123 = arith.constant 1 : index
    %c0_124 = arith.constant 0 : index
    %98 = vector.load %arg5[%c0_121, %c0_122, %c1_123, %c0_124] : memref<2x10x10x128xbf16, #tpu.memory_space<vmem>>, vector<2x8x8x128xbf16>
    %99 = vector.shape_cast %98 : vector<2x8x8x128xbf16> to vector<128x128xbf16>
    %c1_125 = arith.constant 1 : index
    %c1_126 = arith.constant 1 : index
    %c0_127 = arith.constant 0 : index
    %c0_128 = arith.constant 0 : index
    %100 = vector.load %arg3[%c1_125, %c1_126, %c0_127, %c0_128] : memref<3x9x128x4xbf16, #tpu.memory_space<vmem>>, vector<1x1x128x4xbf16>
    %101 = vector.shape_cast %100 : vector<1x1x128x4xbf16> to vector<128x4xbf16>
    %cst_129 = arith.constant dense<0.000000e+00> : vector<128x4xf32>
    %102 = tpu.matmul %99, %101, %cst_129 {dimension_numbers = #tpu.dot_dimension_numbers<[1], [0], [0], [1], [0, 0, 1, 1], [], []>} : vector<128x128xbf16>, vector<128x4xbf16>, vector<128x4xf32> -> vector<128x4xf32>
    %103 = arith.addf %97, %102 : vector<128x4xf32>
    %c0_130 = arith.constant 0 : index
    %c0_131 = arith.constant 0 : index
    %c2_132 = arith.constant 2 : index
    %c0_133 = arith.constant 0 : index
    %104 = vector.load %arg5[%c0_130, %c0_131, %c2_132, %c0_133] : memref<2x10x10x128xbf16, #tpu.memory_space<vmem>>, vector<2x8x8x128xbf16>
    %105 = vector.shape_cast %104 : vector<2x8x8x128xbf16> to vector<128x128xbf16>
    %c1_134 = arith.constant 1 : index
    %c2_135 = arith.constant 2 : index
    %c0_136 = arith.constant 0 : index
    %c0_137 = arith.constant 0 : index
    %106 = vector.load %arg3[%c1_134, %c2_135, %c0_136, %c0_137] : memref<3x9x128x4xbf16, #tpu.memory_space<vmem>>, vector<1x1x128x4xbf16>
    %107 = vector.shape_cast %106 : vector<1x1x128x4xbf16> to vector<128x4xbf16>
    %cst_138 = arith.constant dense<0.000000e+00> : vector<128x4xf32>
    %108 = tpu.matmul %105, %107, %cst_138 {dimension_numbers = #tpu.dot_dimension_numbers<[1], [0], [0], [1], [0, 0, 1, 1], [], []>} : vector<128x128xbf16>, vector<128x4xbf16>, vector<128x4xf32> -> vector<128x4xf32>
    %109 = arith.addf %103, %108 : vector<128x4xf32>
    %c0_139 = arith.constant 0 : index
    %c1_140 = arith.constant 1 : index
    %c0_141 = arith.constant 0 : index
    %c0_142 = arith.constant 0 : index
    %110 = vector.load %arg5[%c0_139, %c1_140, %c0_141, %c0_142] : memref<2x10x10x128xbf16, #tpu.memory_space<vmem>>, vector<2x8x8x128xbf16>
    %111 = vector.shape_cast %110 : vector<2x8x8x128xbf16> to vector<128x128xbf16>
    %c1_143 = arith.constant 1 : index
    %c3_144 = arith.constant 3 : index
    %c0_145 = arith.constant 0 : index
    %c0_146 = arith.constant 0 : index
    %112 = vector.load %arg3[%c1_143, %c3_144, %c0_145, %c0_146] : memref<3x9x128x4xbf16, #tpu.memory_space<vmem>>, vector<1x1x128x4xbf16>
    %113 = vector.shape_cast %112 : vector<1x1x128x4xbf16> to vector<128x4xbf16>
    %cst_147 = arith.constant dense<0.000000e+00> : vector<128x4xf32>
    %114 = tpu.matmul %111, %113, %cst_147 {dimension_numbers = #tpu.dot_dimension_numbers<[1], [0], [0], [1], [0, 0, 1, 1], [], []>} : vector<128x128xbf16>, vector<128x4xbf16>, vector<128x4xf32> -> vector<128x4xf32>
    %115 = arith.addf %109, %114 : vector<128x4xf32>
    %c0_148 = arith.constant 0 : index
    %c1_149 = arith.constant 1 : index
    %c1_150 = arith.constant 1 : index
    %c0_151 = arith.constant 0 : index
    %116 = vector.load %arg5[%c0_148, %c1_149, %c1_150, %c0_151] : memref<2x10x10x128xbf16, #tpu.memory_space<vmem>>, vector<2x8x8x128xbf16>
    %117 = vector.shape_cast %116 : vector<2x8x8x128xbf16> to vector<128x128xbf16>
    %c1_152 = arith.constant 1 : index
    %c4_153 = arith.constant 4 : index
    %c0_154 = arith.constant 0 : index
    %c0_155 = arith.constant 0 : index
    %118 = vector.load %arg3[%c1_152, %c4_153, %c0_154, %c0_155] : memref<3x9x128x4xbf16, #tpu.memory_space<vmem>>, vector<1x1x128x4xbf16>
    %119 = vector.shape_cast %118 : vector<1x1x128x4xbf16> to vector<128x4xbf16>
    %cst_156 = arith.constant dense<0.000000e+00> : vector<128x4xf32>
    %120 = tpu.matmul %117, %119, %cst_156 {dimension_numbers = #tpu.dot_dimension_numbers<[1], [0], [0], [1], [0, 0, 1, 1], [], []>} : vector<128x128xbf16>, vector<128x4xbf16>, vector<128x4xf32> -> vector<128x4xf32>
    %121 = arith.addf %115, %120 : vector<128x4xf32>
    %c0_157 = arith.constant 0 : index
    %c1_158 = arith.constant 1 : index
    %c2_159 = arith.constant 2 : index
    %c0_160 = arith.constant 0 : index
    %122 = vector.load %arg5[%c0_157, %c1_158, %c2_159, %c0_160] : memref<2x10x10x128xbf16, #tpu.memory_space<vmem>>, vector<2x8x8x128xbf16>
    %123 = vector.shape_cast %122 : vector<2x8x8x128xbf16> to vector<128x128xbf16>
    %c1_161 = arith.constant 1 : index
    %c5_162 = arith.constant 5 : index
    %c0_163 = arith.constant 0 : index
    %c0_164 = arith.constant 0 : index
    %124 = vector.load %arg3[%c1_161, %c5_162, %c0_163, %c0_164] : memref<3x9x128x4xbf16, #tpu.memory_space<vmem>>, vector<1x1x128x4xbf16>
    %125 = vector.shape_cast %124 : vector<1x1x128x4xbf16> to vector<128x4xbf16>
    %cst_165 = arith.constant dense<0.000000e+00> : vector<128x4xf32>
    %126 = tpu.matmul %123, %125, %cst_165 {dimension_numbers = #tpu.dot_dimension_numbers<[1], [0], [0], [1], [0, 0, 1, 1], [], []>} : vector<128x128xbf16>, vector<128x4xbf16>, vector<128x4xf32> -> vector<128x4xf32>
    %127 = arith.addf %121, %126 : vector<128x4xf32>
    %c0_166 = arith.constant 0 : index
    %c2_167 = arith.constant 2 : index
    %c0_168 = arith.constant 0 : index
    %c0_169 = arith.constant 0 : index
    %128 = vector.load %arg5[%c0_166, %c2_167, %c0_168, %c0_169] : memref<2x10x10x128xbf16, #tpu.memory_space<vmem>>, vector<2x8x8x128xbf16>
    %129 = vector.shape_cast %128 : vector<2x8x8x128xbf16> to vector<128x128xbf16>
    %c1_170 = arith.constant 1 : index
    %c6_171 = arith.constant 6 : index
    %c0_172 = arith.constant 0 : index
    %c0_173 = arith.constant 0 : index
    %130 = vector.load %arg3[%c1_170, %c6_171, %c0_172, %c0_173] : memref<3x9x128x4xbf16, #tpu.memory_space<vmem>>, vector<1x1x128x4xbf16>
    %131 = vector.shape_cast %130 : vector<1x1x128x4xbf16> to vector<128x4xbf16>
    %cst_174 = arith.constant dense<0.000000e+00> : vector<128x4xf32>
    %132 = tpu.matmul %129, %131, %cst_174 {dimension_numbers = #tpu.dot_dimension_numbers<[1], [0], [0], [1], [0, 0, 1, 1], [], []>} : vector<128x128xbf16>, vector<128x4xbf16>, vector<128x4xf32> -> vector<128x4xf32>
    %133 = arith.addf %127, %132 : vector<128x4xf32>
    %c0_175 = arith.constant 0 : index
    %c2_176 = arith.constant 2 : index
    %c1_177 = arith.constant 1 : index
    %c0_178 = arith.constant 0 : index
    %134 = vector.load %arg5[%c0_175, %c2_176, %c1_177, %c0_178] : memref<2x10x10x128xbf16, #tpu.memory_space<vmem>>, vector<2x8x8x128xbf16>
    %135 = vector.shape_cast %134 : vector<2x8x8x128xbf16> to vector<128x128xbf16>
    %c1_179 = arith.constant 1 : index
    %c7_180 = arith.constant 7 : index
    %c0_181 = arith.constant 0 : index
    %c0_182 = arith.constant 0 : index
    %136 = vector.load %arg3[%c1_179, %c7_180, %c0_181, %c0_182] : memref<3x9x128x4xbf16, #tpu.memory_space<vmem>>, vector<1x1x128x4xbf16>
    %137 = vector.shape_cast %136 : vector<1x1x128x4xbf16> to vector<128x4xbf16>
    %cst_183 = arith.constant dense<0.000000e+00> : vector<128x4xf32>
    %138 = tpu.matmul %135, %137, %cst_183 {dimension_numbers = #tpu.dot_dimension_numbers<[1], [0], [0], [1], [0, 0, 1, 1], [], []>} : vector<128x128xbf16>, vector<128x4xbf16>, vector<128x4xf32> -> vector<128x4xf32>
    %139 = arith.addf %133, %138 : vector<128x4xf32>
    %c0_184 = arith.constant 0 : index
    %c2_185 = arith.constant 2 : index
    %c2_186 = arith.constant 2 : index
    %c0_187 = arith.constant 0 : index
    %140 = vector.load %arg5[%c0_184, %c2_185, %c2_186, %c0_187] : memref<2x10x10x128xbf16, #tpu.memory_space<vmem>>, vector<2x8x8x128xbf16>
    %141 = vector.shape_cast %140 : vector<2x8x8x128xbf16> to vector<128x128xbf16>
    %c1_188 = arith.constant 1 : index
    %c8_189 = arith.constant 8 : index
    %c0_190 = arith.constant 0 : index
    %c0_191 = arith.constant 0 : index
    %142 = vector.load %arg3[%c1_188, %c8_189, %c0_190, %c0_191] : memref<3x9x128x4xbf16, #tpu.memory_space<vmem>>, vector<1x1x128x4xbf16>
    %143 = vector.shape_cast %142 : vector<1x1x128x4xbf16> to vector<128x4xbf16>
    %cst_192 = arith.constant dense<0.000000e+00> : vector<128x4xf32>
    %144 = tpu.matmul %141, %143, %cst_192 {dimension_numbers = #tpu.dot_dimension_numbers<[1], [0], [0], [1], [0, 0, 1, 1], [], []>} : vector<128x128xbf16>, vector<128x4xbf16>, vector<128x4xf32> -> vector<128x4xf32>
    %145 = arith.addf %139, %144 : vector<128x4xf32>
    %146 = vector.shape_cast %145 : vector<128x4xf32> to vector<2x8x8x4xf32>
    %c0_193 = arith.constant 0 : index
    %c0_194 = arith.constant 0 : index
    %c0_195 = arith.constant 0 : index
    %c12 = arith.constant 12 : index
    %147 = vector.load %arg4[%c0_193, %c0_194, %c0_195, %c12] : memref<2x8x8x20xf32, #tpu.memory_space<vmem>>, vector<2x8x8x4xf32>
    tpu.vector_store %arg4[%c0_193, %c0_194, %c0_195, %c12], %146 {strides = array<i32>} : memref<2x8x8x20xf32, #tpu.memory_space<vmem>>, vector<2x8x8x4xf32>,
    %c2_196 = arith.constant 2 : index
    %c0_197 = arith.constant 0 : index
    %c0_198 = arith.constant 0 : index
    %148 = vector.load %arg2[%c2_196, %c0_197, %c0_198] : memref<3x2x128xf32, #tpu.memory_space<vmem>>, vector<1x2x128xf32>
    %149 = vector.shape_cast %148 : vector<1x2x128xf32> to vector<2x128xf32>
    %150 = vector.extract_strided_slice %149 {offsets = [0, 0], sizes = [1, 16], strides = [1, 1]} : vector<2x128xf32> to vector<1x16xf32>
    %151 = vector.shape_cast %150 : vector<1x16xf32> to vector<16xf32>
    %152 = vector.shape_cast %151 : vector<16xf32> to vector<1x1x1x16xf32>
    %153 = vector.extract_strided_slice %149 {offsets = [1, 0], sizes = [1, 16], strides = [1, 1]} : vector<2x128xf32> to vector<1x16xf32>
    %154 = vector.shape_cast %153 : vector<1x16xf32> to vector<16xf32>
    %155 = vector.shape_cast %154 : vector<16xf32> to vector<1x1x1x16xf32>
    %c0_199 = arith.constant 0 : index
    %c0_200 = arith.constant 0 : index
    %c0_201 = arith.constant 0 : index
    %c0_202 = arith.constant 0 : index
    %156 = vector.load %arg4[%c0_199, %c0_200, %c0_201, %c0_202] : memref<2x8x8x20xf32, #tpu.memory_space<vmem>>, vector<2x8x8x16xf32>
    %157 = vector.broadcast %152 : vector<1x1x1x16xf32> to vector<2x8x8x16xf32>
    %158 = arith.mulf %156, %157 : vector<2x8x8x16xf32>
    %159 = vector.broadcast %155 : vector<1x1x1x16xf32> to vector<2x8x8x16xf32>
    %160 = arith.addf %158, %159 : vector<2x8x8x16xf32>
    %cst_203 = arith.constant 0.000000e+00 : f32
    %161 = vector.broadcast %cst_203 : f32 to vector<2x8x8x16xf32>
    %162 = arith.maximumf %160, %161 : vector<2x8x8x16xf32>
    %163 = arith.truncf %162 : vector<2x8x8x16xf32> to vector<2x8x8x16xbf16>
    %c0_204 = arith.constant 0 : index
    %c1_205 = arith.constant 1 : index
    %c1_206 = arith.constant 1 : index
    %c0_207 = arith.constant 0 : index
    %164 = vector.load %arg5[%c0_204, %c1_205, %c1_206, %c0_207] : memref<2x10x10x128xbf16, #tpu.memory_space<vmem>>, vector<2x8x8x16xbf16>
    tpu.vector_store %arg5[%c0_204, %c1_205, %c1_206, %c0_207], %163 {strides = array<i32>} : memref<2x10x10x128xbf16, #tpu.memory_space<vmem>>, vector<2x8x8x16xbf16>,
    %c0_208 = arith.constant 0 : index
    %c0_209 = arith.constant 0 : index
    %c0_210 = arith.constant 0 : index
    %c0_211 = arith.constant 0 : index
    %165 = vector.load %arg5[%c0_208, %c0_209, %c0_210, %c0_211] : memref<2x10x10x128xbf16, #tpu.memory_space<vmem>>, vector<2x8x8x128xbf16>
    %166 = vector.shape_cast %165 : vector<2x8x8x128xbf16> to vector<128x128xbf16>
    %c2_212 = arith.constant 2 : index
    %c0_213 = arith.constant 0 : index
    %c0_214 = arith.constant 0 : index
    %c0_215 = arith.constant 0 : index
    %167 = vector.load %arg3[%c2_212, %c0_213, %c0_214, %c0_215] : memref<3x9x128x4xbf16, #tpu.memory_space<vmem>>, vector<1x1x128x4xbf16>
    %168 = vector.shape_cast %167 : vector<1x1x128x4xbf16> to vector<128x4xbf16>
    %cst_216 = arith.constant dense<0.000000e+00> : vector<128x4xf32>
    %169 = tpu.matmul %166, %168, %cst_216 {dimension_numbers = #tpu.dot_dimension_numbers<[1], [0], [0], [1], [0, 0, 1, 1], [], []>} : vector<128x128xbf16>, vector<128x4xbf16>, vector<128x4xf32> -> vector<128x4xf32>
    %c0_217 = arith.constant 0 : index
    %c0_218 = arith.constant 0 : index
    %c1_219 = arith.constant 1 : index
    %c0_220 = arith.constant 0 : index
    %170 = vector.load %arg5[%c0_217, %c0_218, %c1_219, %c0_220] : memref<2x10x10x128xbf16, #tpu.memory_space<vmem>>, vector<2x8x8x128xbf16>
    %171 = vector.shape_cast %170 : vector<2x8x8x128xbf16> to vector<128x128xbf16>
    %c2_221 = arith.constant 2 : index
    %c1_222 = arith.constant 1 : index
    %c0_223 = arith.constant 0 : index
    %c0_224 = arith.constant 0 : index
    %172 = vector.load %arg3[%c2_221, %c1_222, %c0_223, %c0_224] : memref<3x9x128x4xbf16, #tpu.memory_space<vmem>>, vector<1x1x128x4xbf16>
    %173 = vector.shape_cast %172 : vector<1x1x128x4xbf16> to vector<128x4xbf16>
    %cst_225 = arith.constant dense<0.000000e+00> : vector<128x4xf32>
    %174 = tpu.matmul %171, %173, %cst_225 {dimension_numbers = #tpu.dot_dimension_numbers<[1], [0], [0], [1], [0, 0, 1, 1], [], []>} : vector<128x128xbf16>, vector<128x4xbf16>, vector<128x4xf32> -> vector<128x4xf32>
    %175 = arith.addf %169, %174 : vector<128x4xf32>
    %c0_226 = arith.constant 0 : index
    %c0_227 = arith.constant 0 : index
    %c2_228 = arith.constant 2 : index
    %c0_229 = arith.constant 0 : index
    %176 = vector.load %arg5[%c0_226, %c0_227, %c2_228, %c0_229] : memref<2x10x10x128xbf16, #tpu.memory_space<vmem>>, vector<2x8x8x128xbf16>
    %177 = vector.shape_cast %176 : vector<2x8x8x128xbf16> to vector<128x128xbf16>
    %c2_230 = arith.constant 2 : index
    %c2_231 = arith.constant 2 : index
    %c0_232 = arith.constant 0 : index
    %c0_233 = arith.constant 0 : index
    %178 = vector.load %arg3[%c2_230, %c2_231, %c0_232, %c0_233] : memref<3x9x128x4xbf16, #tpu.memory_space<vmem>>, vector<1x1x128x4xbf16>
    %179 = vector.shape_cast %178 : vector<1x1x128x4xbf16> to vector<128x4xbf16>
    %cst_234 = arith.constant dense<0.000000e+00> : vector<128x4xf32>
    %180 = tpu.matmul %177, %179, %cst_234 {dimension_numbers = #tpu.dot_dimension_numbers<[1], [0], [0], [1], [0, 0, 1, 1], [], []>} : vector<128x128xbf16>, vector<128x4xbf16>, vector<128x4xf32> -> vector<128x4xf32>
    %181 = arith.addf %175, %180 : vector<128x4xf32>
    %c0_235 = arith.constant 0 : index
    %c1_236 = arith.constant 1 : index
    %c0_237 = arith.constant 0 : index
    %c0_238 = arith.constant 0 : index
    %182 = vector.load %arg5[%c0_235, %c1_236, %c0_237, %c0_238] : memref<2x10x10x128xbf16, #tpu.memory_space<vmem>>, vector<2x8x8x128xbf16>
    %183 = vector.shape_cast %182 : vector<2x8x8x128xbf16> to vector<128x128xbf16>
    %c2_239 = arith.constant 2 : index
    %c3_240 = arith.constant 3 : index
    %c0_241 = arith.constant 0 : index
    %c0_242 = arith.constant 0 : index
    %184 = vector.load %arg3[%c2_239, %c3_240, %c0_241, %c0_242] : memref<3x9x128x4xbf16, #tpu.memory_space<vmem>>, vector<1x1x128x4xbf16>
    %185 = vector.shape_cast %184 : vector<1x1x128x4xbf16> to vector<128x4xbf16>
    %cst_243 = arith.constant dense<0.000000e+00> : vector<128x4xf32>
    %186 = tpu.matmul %183, %185, %cst_243 {dimension_numbers = #tpu.dot_dimension_numbers<[1], [0], [0], [1], [0, 0, 1, 1], [], []>} : vector<128x128xbf16>, vector<128x4xbf16>, vector<128x4xf32> -> vector<128x4xf32>
    %187 = arith.addf %181, %186 : vector<128x4xf32>
    %c0_244 = arith.constant 0 : index
    %c1_245 = arith.constant 1 : index
    %c1_246 = arith.constant 1 : index
    %c0_247 = arith.constant 0 : index
    %188 = vector.load %arg5[%c0_244, %c1_245, %c1_246, %c0_247] : memref<2x10x10x128xbf16, #tpu.memory_space<vmem>>, vector<2x8x8x128xbf16>
    %189 = vector.shape_cast %188 : vector<2x8x8x128xbf16> to vector<128x128xbf16>
    %c2_248 = arith.constant 2 : index
    %c4_249 = arith.constant 4 : index
    %c0_250 = arith.constant 0 : index
    %c0_251 = arith.constant 0 : index
    %190 = vector.load %arg3[%c2_248, %c4_249, %c0_250, %c0_251] : memref<3x9x128x4xbf16, #tpu.memory_space<vmem>>, vector<1x1x128x4xbf16>
    %191 = vector.shape_cast %190 : vector<1x1x128x4xbf16> to vector<128x4xbf16>
    %cst_252 = arith.constant dense<0.000000e+00> : vector<128x4xf32>
    %192 = tpu.matmul %189, %191, %cst_252 {dimension_numbers = #tpu.dot_dimension_numbers<[1], [0], [0], [1], [0, 0, 1, 1], [], []>} : vector<128x128xbf16>, vector<128x4xbf16>, vector<128x4xf32> -> vector<128x4xf32>
    %193 = arith.addf %187, %192 : vector<128x4xf32>
    %c0_253 = arith.constant 0 : index
    %c1_254 = arith.constant 1 : index
    %c2_255 = arith.constant 2 : index
    %c0_256 = arith.constant 0 : index
    %194 = vector.load %arg5[%c0_253, %c1_254, %c2_255, %c0_256] : memref<2x10x10x128xbf16, #tpu.memory_space<vmem>>, vector<2x8x8x128xbf16>
    %195 = vector.shape_cast %194 : vector<2x8x8x128xbf16> to vector<128x128xbf16>
    %c2_257 = arith.constant 2 : index
    %c5_258 = arith.constant 5 : index
    %c0_259 = arith.constant 0 : index
    %c0_260 = arith.constant 0 : index
    %196 = vector.load %arg3[%c2_257, %c5_258, %c0_259, %c0_260] : memref<3x9x128x4xbf16, #tpu.memory_space<vmem>>, vector<1x1x128x4xbf16>
    %197 = vector.shape_cast %196 : vector<1x1x128x4xbf16> to vector<128x4xbf16>
    %cst_261 = arith.constant dense<0.000000e+00> : vector<128x4xf32>
    %198 = tpu.matmul %195, %197, %cst_261 {dimension_numbers = #tpu.dot_dimension_numbers<[1], [0], [0], [1], [0, 0, 1, 1], [], []>} : vector<128x128xbf16>, vector<128x4xbf16>, vector<128x4xf32> -> vector<128x4xf32>
    %199 = arith.addf %193, %198 : vector<128x4xf32>
    %c0_262 = arith.constant 0 : index
    %c2_263 = arith.constant 2 : index
    %c0_264 = arith.constant 0 : index
    %c0_265 = arith.constant 0 : index
    %200 = vector.load %arg5[%c0_262, %c2_263, %c0_264, %c0_265] : memref<2x10x10x128xbf16, #tpu.memory_space<vmem>>, vector<2x8x8x128xbf16>
    %201 = vector.shape_cast %200 : vector<2x8x8x128xbf16> to vector<128x128xbf16>
    %c2_266 = arith.constant 2 : index
    %c6_267 = arith.constant 6 : index
    %c0_268 = arith.constant 0 : index
    %c0_269 = arith.constant 0 : index
    %202 = vector.load %arg3[%c2_266, %c6_267, %c0_268, %c0_269] : memref<3x9x128x4xbf16, #tpu.memory_space<vmem>>, vector<1x1x128x4xbf16>
    %203 = vector.shape_cast %202 : vector<1x1x128x4xbf16> to vector<128x4xbf16>
    %cst_270 = arith.constant dense<0.000000e+00> : vector<128x4xf32>
    %204 = tpu.matmul %201, %203, %cst_270 {dimension_numbers = #tpu.dot_dimension_numbers<[1], [0], [0], [1], [0, 0, 1, 1], [], []>} : vector<128x128xbf16>, vector<128x4xbf16>, vector<128x4xf32> -> vector<128x4xf32>
    %205 = arith.addf %199, %204 : vector<128x4xf32>
    %c0_271 = arith.constant 0 : index
    %c2_272 = arith.constant 2 : index
    %c1_273 = arith.constant 1 : index
    %c0_274 = arith.constant 0 : index
    %206 = vector.load %arg5[%c0_271, %c2_272, %c1_273, %c0_274] : memref<2x10x10x128xbf16, #tpu.memory_space<vmem>>, vector<2x8x8x128xbf16>
    %207 = vector.shape_cast %206 : vector<2x8x8x128xbf16> to vector<128x128xbf16>
    %c2_275 = arith.constant 2 : index
    %c7_276 = arith.constant 7 : index
    %c0_277 = arith.constant 0 : index
    %c0_278 = arith.constant 0 : index
    %208 = vector.load %arg3[%c2_275, %c7_276, %c0_277, %c0_278] : memref<3x9x128x4xbf16, #tpu.memory_space<vmem>>, vector<1x1x128x4xbf16>
    %209 = vector.shape_cast %208 : vector<1x1x128x4xbf16> to vector<128x4xbf16>
    %cst_279 = arith.constant dense<0.000000e+00> : vector<128x4xf32>
    %210 = tpu.matmul %207, %209, %cst_279 {dimension_numbers = #tpu.dot_dimension_numbers<[1], [0], [0], [1], [0, 0, 1, 1], [], []>} : vector<128x128xbf16>, vector<128x4xbf16>, vector<128x4xf32> -> vector<128x4xf32>
    %211 = arith.addf %205, %210 : vector<128x4xf32>
    %c0_280 = arith.constant 0 : index
    %c2_281 = arith.constant 2 : index
    %c2_282 = arith.constant 2 : index
    %c0_283 = arith.constant 0 : index
    %212 = vector.load %arg5[%c0_280, %c2_281, %c2_282, %c0_283] : memref<2x10x10x128xbf16, #tpu.memory_space<vmem>>, vector<2x8x8x128xbf16>
    %213 = vector.shape_cast %212 : vector<2x8x8x128xbf16> to vector<128x128xbf16>
    %c2_284 = arith.constant 2 : index
    %c8_285 = arith.constant 8 : index
    %c0_286 = arith.constant 0 : index
    %c0_287 = arith.constant 0 : index
    %214 = vector.load %arg3[%c2_284, %c8_285, %c0_286, %c0_287] : memref<3x9x128x4xbf16, #tpu.memory_space<vmem>>, vector<1x1x128x4xbf16>
    %215 = vector.shape_cast %214 : vector<1x1x128x4xbf16> to vector<128x4xbf16>
    %cst_288 = arith.constant dense<0.000000e+00> : vector<128x4xf32>
    %216 = tpu.matmul %213, %215, %cst_288 {dimension_numbers = #tpu.dot_dimension_numbers<[1], [0], [0], [1], [0, 0, 1, 1], [], []>} : vector<128x128xbf16>, vector<128x4xbf16>, vector<128x4xf32> -> vector<128x4xf32>
    %217 = arith.addf %211, %216 : vector<128x4xf32>
    %218 = vector.shape_cast %217 : vector<128x4xf32> to vector<2x8x8x4xf32>
    %c0_289 = arith.constant 0 : index
    %c0_290 = arith.constant 0 : index
    %c0_291 = arith.constant 0 : index
    %c16 = arith.constant 16 : index
    %219 = vector.load %arg4[%c0_289, %c0_290, %c0_291, %c16] : memref<2x8x8x20xf32, #tpu.memory_space<vmem>>, vector<2x8x8x4xf32>
    tpu.vector_store %arg4[%c0_289, %c0_290, %c0_291, %c16], %218 {strides = array<i32>} : memref<2x8x8x20xf32, #tpu.memory_space<vmem>>, vector<2x8x8x4xf32>,
    return
  }
  func.func @transform_0(%arg0: i32) -> (i32, i32, i32, i32) {
    %c0_i32 = arith.constant 0 : i32
    %c0_i32_0 = arith.constant 0 : i32
    %c0_i32_1 = arith.constant 0 : i32
    %c0_i32_2 = arith.constant 0 : i32
    return %arg0, %c0_i32, %c0_i32_0, %c0_i32_1 : i32, i32, i32, i32
  }
  func.func @transform_1(%arg0: i32) -> (i32, i32, i32) {
    %c0_i32 = arith.constant 0 : i32
    %c0_i32_0 = arith.constant 0 : i32
    %c0_i32_1 = arith.constant 0 : i32
    %c0_i32_2 = arith.constant 0 : i32
    return %c0_i32, %c0_i32_0, %c0_i32_1 : i32, i32, i32
  }
  func.func @transform_2(%arg0: i32) -> (i32, i32, i32, i32) {
    %c0_i32 = arith.constant 0 : i32
    %c0_i32_0 = arith.constant 0 : i32
    %c0_i32_1 = arith.constant 0 : i32
    %c0_i32_2 = arith.constant 0 : i32
    %c0_i32_3 = arith.constant 0 : i32
    return %c0_i32, %c0_i32_0, %c0_i32_1, %c0_i32_2 : i32, i32, i32, i32
  }
  func.func @transform_3(%arg0: i32) -> (i32, i32, i32, i32) {
    %c0_i32 = arith.constant 0 : i32
    %c0_i32_0 = arith.constant 0 : i32
    %c0_i32_1 = arith.constant 0 : i32
    %c0_i32_2 = arith.constant 0 : i32
    return %arg0, %c0_i32, %c0_i32_0, %c0_i32_1 : i32, i32, i32, i32
  }
}

</mosaic_0001>

<bundles_post_ra>
// kernel: tpu_custom_call.1
= control target key start
LH: loop header
LB: loop body
LE: loop exit
PB: predicated region body
PF: predicated region fallthrough
CT: control target
= control target key end

     0   :  { %v13817_v3 = vmov 0   ;;  %v106_v9 = vlaneseq  ;;  %vm32_vm0 = vcmask 64512   ;;  %vm387_vm1 = vcmask 60416   ;;  %s17045_s0 = inlined_call_operand.vmem [shape: f32[2,8,8,8], index: 0, kind: input, shape index: {}]   ;;  %s17046_s1 = inlined_call_operand.vmem [shape: f32[3,2,128], index: 1, kind: input, shape index: {}]   ;;  %s17047_s2 = inlined_call_operand.vmem [shape: bf16[3,9,128,4], index: 2, kind: input, shape index: {}]   ;;  %s17048_s3 = inlined_call_operand.hbm [shape: f32[2,8,8,20], index: 3, kind: output, shape index: {}]  }
   0x1   :  { %v13468_v0 = vld [vmem:[%s17047_s2 + $0x100] sm:$0xff]   ;;  %v13470_v2 = vld [vmem:[%s17047_s2 + $0x108] sm:$0xff]   ;;  %49 = vst [vmem:[#allocation2] sm:$0xf] %v13817_v3  ;;  %50 = vst [vmem:[#allocation2 + $0x4] sm:$0x1] %v13817_v3 }
   0x2   :  { %v13469_v1 = vld [vmem:[%s17047_s2 + $0x40] sm:$0xff]   ;;  %12326 = vmatprep.subr.bf16.mxu0 %v13468_v0  ;;  %51 = vst [vmem:[#allocation2 + $0x8] sm:$0xf] %v13817_v3  ;;  %52 = vst [vmem:[#allocation2 + $0xc] sm:$0x1] %v13817_v3  ;;  %v13471_v4 = vld [vmem:[%s17047_s2 + $0x48] sm:$0xff]  }
   0x3   :  { %53 = vst [vmem:[#allocation2 + $0x10] sm:$0xf] %v13817_v3  ;;  %54 = vst [vmem:[#allocation2 + $0x14] sm:$0x1] %v13817_v3  ;;  %12198 = vmatprep.subr.bf16.mxu1 %v13469_v1  ;;  %12327 = vmatpush3.bf16.msra.mxu0 %v13468_v0  ;;  %v13472_v5 = vld [vmem:[%s17047_s2 + $0x110] sm:$0xff]   ;;  %v13474_v7 = vld [vmem:[%s17047_s2 + $0x118] sm:$0xff]  }
   0x4   :  { %55 = vst [vmem:[#allocation2 + $0x18] sm:$0xf] %v13817_v3  ;;  %56 = vst [vmem:[#allocation2 + $0x1c] sm:$0x1] %v13817_v3  ;;  %12199 = vmatpush3.bf16.msra.mxu1 %v13469_v1  ;;  %12328 = vmatprep.subr.bf16.mxu0 %v13470_v2  ;;  %v13473_v6 = vld [vmem:[%s17047_s2 + $0x50] sm:$0xff]   ;;  %v13475_v8 = vld [vmem:[%s17047_s2 + $0x58] sm:$0xff]  }
   0x5   :  { %57 = vst [vmem:[#allocation2 + $0x20] sm:$0xf] %v13817_v3  ;;  %58 = vst [vmem:[#allocation2 + $0x24] sm:$0x1] %v13817_v3  ;;  %12200 = vmatprep.subr.bf16.mxu1 %v13471_v4  ;;  %v13476_v10 = vld [vmem:[%s17047_s2 + $0x120] sm:$0xff]   ;;  %v107_v12 = vshrl.u32 %v106_v9, 7 }
   0x6   :  { %59 = vst [vmem:[#allocation2 + $0x28] sm:$0xf] %v13817_v3  ;;  %60 = vst [vmem:[#allocation2 + $0x2c] sm:$0x1] %v13817_v3  ;;  %v13477_v11 = vld [vmem:[%s17047_s2 + $0x60] sm:$0xff]   ;;  %v13478_v13 = vld [vmem:[%s17047_s2 + $0x128] sm:$0xff]  }
   0x7   :  { %61 = vst [vmem:[#allocation2 + $0x30] sm:$0xf] %v13817_v3  ;;  %62 = vst [vmem:[#allocation2 + $0x34] sm:$0x1] %v13817_v3  ;;  %12329 = vmatpush3.bf16.msra.mxu0 %v13470_v2  ;;  %v16_v14 = vld [vmem:[%s17045_s0] sm:$0xff]  ;;  %v17_v15 = vld [vmem:[%s17045_s0 + $0x8] sm:$0xff] }
   0x8   :  { %63 = vst [vmem:[#allocation2 + $0x38] sm:$0xf] %v13817_v3  ;;  %64 = vst [vmem:[#allocation2 + $0x3c] sm:$0x1] %v13817_v3  ;;  %12201 = vmatpush3.bf16.msra.mxu1 %v13471_v4  ;;  %12330 = vmatprep.subr.bf16.mxu0 %v13472_v5  ;;  %v13479_v16 = vld [vmem:[%s17047_s2 + $0x68] sm:$0xff]   ;;  %v13886_v17 = vsub.s32 0, %v107_v12 }
   0x9   :  { %65 = vst [vmem:[#allocation2 + $0x40] sm:$0xf] %v13817_v3  ;;  %66 = vst [vmem:[#allocation2 + $0x44] sm:$0x1] %v13817_v3  ;;  %12202 = vmatprep.subr.bf16.mxu1 %v13473_v6  ;;  %v89_v18 = vld [vmem:[%s17046_s1] sm:$0x3] }
   0xa   :  { %67 = vst [vmem:[#allocation2 + $0x48] sm:$0xf] %v13817_v3  ;;  %68 = vst [vmem:[#allocation2 + $0x4c] sm:$0x1] %v13817_v3  ;;  %v13892_v19 = vsub.s32 1, %v107_v12  ;;  %v13480_v20 = vld [vmem:[%s17047_s2 + $0x130] sm:$0xff]   ;;  %v13901_v22 = vrot.slane %v89_v18, %v13886_v17 }
   0xb   :  { %69 = vst [vmem:[#allocation2 + $0x50] sm:$0xf] %v13817_v3  ;;  %70 = vst [vmem:[#allocation2 + $0x54] sm:$0x1] %v13817_v3  ;;  %12331 = vmatpush3.bf16.msra.mxu0 %v13472_v5  ;;  %v13481_v21 = vld [vmem:[%s17047_s2 + $0x70] sm:$0xff]   ;;  %v13482_v25 = vld [vmem:[%s17047_s2 + $0x138] sm:$0xff]  }
   0xc   :  { %71 = vst [vmem:[#allocation2 + $0x58] sm:$0xf] %v13817_v3  ;;  %72 = vst [vmem:[#allocation2 + $0x5c] sm:$0x1] %v13817_v3  ;;  %12203 = vmatpush3.bf16.msra.mxu1 %v13473_v6  ;;  %12332 = vmatprep.subr.bf16.mxu0 %v13474_v7  ;;  %v489_v23 = vld [vmem:[#allocation2] sm:$0xf]  ;;  %v13911_v26 = vrot.slane %v89_v18, %v13892_v19 }
   0xd   :  { %73 = vst [vmem:[#allocation2 + $0x60] sm:$0xf] %v13817_v3  ;;  %74 = vst [vmem:[#allocation2 + $0x64] sm:$0x1] %v13817_v3  ;;  %12204 = vmatprep.subr.bf16.mxu1 %v13475_v8  ;;  %v18_v24 = vld [vmem:[%s17045_s0 + $0x10] sm:$0xff]  ;;  %v541_v28 = vshrl.u32 %v489_v23, 16 }
   0xe   :  { %75 = vst [vmem:[#allocation2 + $0x68] sm:$0xf] %v13817_v3  ;;  %76 = vst [vmem:[#allocation2 + $0x6c] sm:$0x1] %v13817_v3  ;;  %v544_v29 = vshll.u32 %v489_v23, 16  ;;  %v19_v31 = vld [vmem:[%s17045_s0 + $0x18] sm:$0xff] }
   0xf   :  { %77 = vst [vmem:[#allocation2 + $0x70] sm:$0xf] %v13817_v3  ;;  %78 = vst [vmem:[#allocation2 + $0x74] sm:$0x1] %v13817_v3  ;;  %12333 = vmatpush3.bf16.msra.mxu0 %v13474_v7  ;;  %v13483_v32 = vld [vmem:[%s17047_s2 + $0x78] sm:$0xff]   ;;  %v20_v37 = vld [vmem:[%s17045_s0 + $0x20] sm:$0xff] }
  0x10   :  { %79 = vst [vmem:[#allocation2 + $0x78] sm:$0xf] %v13817_v3  ;;  %80 = vst [vmem:[#allocation2 + $0x7c] sm:$0x1] %v13817_v3  ;;  %12205 = vmatpush3.bf16.msra.mxu1 %v13475_v8  ;;  %12334 = vmatprep.subr.bf16.mxu0 %v13476_v10  ;;  %vm388_vm2 = vsmask.f32 7938 }
  0x11   :  { %81 = vst [vmem:[#allocation2 + $0x80] sm:$0xf] %v13817_v3  ;;  %82 = vst [vmem:[#allocation2 + $0x84] sm:$0x1] %v13817_v3  ;;  %12206 = vmatprep.subr.bf16.mxu1 %v13477_v11  ;;  %v521_v38 = vld [vmem:[#allocation2 + $0x4] sm:$0x1] }
  0x12   :  { %83 = vst [vmem:[#allocation2 + $0x88] sm:$0xf] %v13817_v3  ;;  %84 = vst [vmem:[#allocation2 + $0x8c] sm:$0x1] %v13817_v3  ;;  %v543_v39 = vrot.slane %v541_v28, 4  ;;  %v546_v40 = vrot.slane %v544_v29, 5 }
  0x13   :  { %85 = vst [vmem:[#allocation2 + $0x90] sm:$0xf] %v13817_v3  ;;  %86 = vst [vmem:[#allocation2 + $0x94] sm:$0x1] %v13817_v3  ;;  %12335 = vmatpush3.bf16.msra.mxu0 %v13476_v10  ;;  %v13930_v41 = vld [vmem:[%s17047_s2 + $0x140] sm:$0xff]   ;;  %v21_v42 = vld [vmem:[%s17045_s0 + $0x28] sm:$0xff] }
  0x14   :  { %87 = vst [vmem:[#allocation2 + $0x98] sm:$0xf] %v13817_v3  ;;  %88 = vst [vmem:[#allocation2 + $0x9c] sm:$0x1] %v13817_v3  ;;  %12207 = vmatpush3.bf16.msra.mxu1 %v13477_v11  ;;  %12336 = vmatprep.subr.bf16.mxu0 %v13478_v13  ;;  %vm394_vm3 = vsmask.f32 256  ;;  %v547_v52 = vor.u32 %v546_v40, %v543_v39 }
  0x15   :  { %33 = vst.msk [vmem:[#allocation3] sm:$0xff] %vm32_vm0, %v16_v14  ;;  %17060 = vst [vmem:[#allocation6_spill] sm:$0xff] %v13886_v17  ;;  %12208 = vmatprep.subr.bf16.mxu1 %v13479_v16  ;;  %v13939_v46 = vld [vmem:[%s17047_s2] sm:$0xff]   ;;  %vm537_vm4 = vsmask.f32 3328  ;;  %v550_v49 = vshll.u32 %v521_v38, 16 }
  0x16   :  { %34 = vst.msk [vmem:[#allocation3 + $0x8] sm:$0xff] %vm32_vm0, %v17_v15  ;;  %17061 = vst [vmem:[#allocation7_spill] sm:$0xff] %v13892_v19  ;;  %vm538_vm5 = vsmask.f32 7440  ;;  %v22_v51 = vld [vmem:[%s17045_s0 + $0x30] sm:$0xff]  ;;  %vm393_vm6 = vcmask 57344  }
  0x17   :  { %35 = vst.msk [vmem:[#allocation3 + $0x10] sm:$0xff] %vm32_vm0, %v18_v24  ;;  %12337 = vmatpush3.bf16.msra.mxu0 %v13478_v13  ;;  %36 = vst.msk [vmem:[#allocation3 + $0x18] sm:$0xff] %vm32_vm0, %v19_v31  ;;  %v23_v59 = vld [vmem:[%s17045_s0 + $0x38] sm:$0xff]  ;;  %v390_v61 = vld [vmem:[#allocation2 + $0x8] sm:$0xf]  ;;  %v13967_v5 = vrot.slane %v550_v49, 5 }
  0x18   :  { %12209 = vmatpush3.bf16.msra.mxu1 %v13479_v16  ;;  %12338 = vmatprep.subr.bf16.mxu0 %v13480_v20  ;;  %37 = vst.msk [vmem:[#allocation3 + $0x20] sm:$0xff] %vm32_vm0, %v20_v37  ;;  %38 = vst.msk [vmem:[#allocation3 + $0x28] sm:$0xff] %vm32_vm0, %v21_v42  ;;  %v396_v62 = vld [vmem:[#allocation2 + $0xc] sm:$0x1]  ;;  %v399_v63 = vld [vmem:[#allocation2 + $0x10] sm:$0xf] }
  0x19   :  { %12210 = vmatprep.subr.bf16.mxu1 %v13481_v21  ;;  %39 = vst.msk [vmem:[#allocation3 + $0x30] sm:$0xff] %vm32_vm0, %v22_v51  ;;  %vm13955_vm7 = vmand %vm387_vm1, %vm388_vm2  ;;  %v402_v0 = vld [vmem:[#allocation2 + $0x14] sm:$0x1]  ;;  %v13969_v8 = vrot.slane %v547_v52, 4  ;;  %v24_v18 = vld [vmem:[%s17045_s0 + $0x40] sm:$0xff]  ;;  %vm1199_vm10 = vcmask 1042432  }
  0x1a   :  { %40 = vst.msk [vmem:[#allocation3 + $0x38] sm:$0xff] %vm32_vm0, %v23_v59  ;;  %vm13963_vm8 = vmand %vm393_vm6, %vm394_vm3  ;;  %v408_v40 = vld [vmem:[#allocation2 + $0x1c] sm:$0x1]  ;;  %v26_v51 = vld [vmem:[%s17045_s0 + $0x50] sm:$0xff]  ;;  %vm1200_vm11 = vcmask 1046532  }
  0x1b   :  { %12339 = vmatpush3.bf16.msra.mxu0 %v13480_v20  ;;  %v25_v20 = vld [vmem:[%s17045_s0 + $0x48] sm:$0xff]  ;;  %vm13981_vm9 = vmor %vm537_vm4, %vm538_vm5  ;;  %41 = vst.msk [vmem:[#allocation3 + $0x40] sm:$0xff] %vm32_vm0, %v24_v18  ;;  %v411_v59 = vld [vmem:[#allocation2 + $0x20] sm:$0xf] }
  0x1c   :  { %v90_v27 = vld [vmem:[#allocation3] sm:$0xff]  ;;  %12211 = vmatpush3.bf16.msra.mxu1 %v13481_v21  ;;  %12340 = vmatprep.subr.bf16.mxu0 %v13482_v25  ;;  %42 = vst.msk [vmem:[#allocation3 + $0x48] sm:$0xff] %vm32_vm0, %v25_v20  ;;  %v553_v39 = vsel %vm13981_vm9, %v13969_v8, %v13967_v5  ;;  %43 = vst.msk [vmem:[#allocation3 + $0x50] sm:$0xff] %vm32_vm0, %v26_v51 }
  0x1d   :  { %v91_v30 = vld [vmem:[#allocation3 + $0x8] sm:$0xff]  ;;  %v110_v33 = vmul.f32 %v13901_v22, %v90_v27  ;;  %12212 = vmatprep.subr.bf16.mxu1 %v13483_v32  ;;  %v28_v8 = vld [vmem:[%s17045_s0 + $0x60] sm:$0xff]  ;;  %vm14412_vm12 = vmor %vm1199_vm10, %vm1200_vm11 }
  0x1e   :  { %v111_v34 = vmul.f32 %v13901_v22, %v91_v30  ;;  %v92_v45 = vld [vmem:[#allocation3 + $0x10] sm:$0xff]  ;;  %v93_v54 = vld [vmem:[#allocation3 + $0x18] sm:$0xff]  ;;  %45 = vst.msk [vmem:[#allocation3 + $0x60] sm:$0xff] %vm32_vm0, %v28_v8 }
  0x1f   :  { %v130_v35 = vadd.f32 %v13911_v26, %v110_v33  ;;  %v112_v47 = vmul.f32 %v13901_v22, %v92_v45  ;;  %12341 = vmatpush3.bf16.msra.mxu0 %v13482_v25  ;;  %v113_v2 = vmul.f32 %v13901_v22, %v93_v54  ;;  %v94_v7 = vld [vmem:[#allocation3 + $0x20] sm:$0xff]  ;;  %v95_v12 = vld [vmem:[#allocation3 + $0x28] sm:$0xff]  ;;  %v13996_v33 = vld [vmem:[#allocation2 + $0x50] sm:$0xf] }
  0x20   :  { %v131_v36 = vadd.f32 %v13911_v26, %v111_v34  ;;  %12213 = vmatpush3.bf16.msra.mxu1 %v13483_v32  ;;  %12358 = vmatprep.subr.bf16.mxu0 %v13930_v41  ;;  %v114_v11 = vmul.f32 %v13901_v22, %v94_v7  ;;  %v96_v32 = vld [vmem:[#allocation3 + $0x30] sm:$0xff]  ;;  %v115_v38 = vmul.f32 %v13901_v22, %v95_v12  ;;  %v653_v45 = vshrl.u32 %v13996_v33, 16  ;;  %v414_v7 = vld [vmem:[#allocation2 + $0x24] sm:$0x1]  ;;  %v31_v8 = vld [vmem:[%s17045_s0 + $0x78] sm:$0xff] }
  0x21   :  { %v146_v43 = vmax.f32 %v130_v35, 0.0  ;;  %v132_v53 = vadd.f32 %v13911_v26, %v112_v47  ;;  %12230 = vmatprep.subr.bf16.mxu1 %v13939_v46  ;;  %v133_v10 = vadd.f32 %v13911_v26, %v113_v2  ;;  %v405_v35 = vld [vmem:[#allocation2 + $0x18] sm:$0xf]  ;;  %v116_v42 = vmul.f32 %v13901_v22, %v96_v32  ;;  %48 = vst.msk [vmem:[#allocation3 + $0x78] sm:$0xff] %vm32_vm0, %v31_v8 }
  0x22   :  { %v147_v44 = vmax.f32 %v131_v36, 0.0  ;;  %v134_v27 = vadd.f32 %v13911_v26, %v114_v11  ;;  %v27_v11 = vld [vmem:[%s17045_s0 + $0x58] sm:$0xff] }
  0x23   :  { %v11718_v48 = vpack.c.bf16 %v146_v43, %v146_v43  ;;  %v148_v1 = vmax.f32 %v132_v53, 0.0  ;;  %v149_v25 = vmax.f32 %v133_v10, 0.0  ;;  %v97_v43 = vld [vmem:[#allocation3 + $0x38] sm:$0xff]  ;;  %v135_v53 = vadd.f32 %v13911_v26, %v115_v38  ;;  %44 = vst.msk [vmem:[#allocation3 + $0x58] sm:$0xff] %vm32_vm0, %v27_v11 }
  0x24   :  { %v11719_v50 = vpack.c.bf16 %v147_v44, %v147_v44  ;;  %v150_v37 = vmax.f32 %v134_v27, 0.0  ;;  %v14004_v44 = vld [vmem:[#allocation2 + $0x54] sm:$0x1]  ;;  %v136_v54 = vadd.f32 %v13911_v26, %v116_v42 }
  0x25   :  { %v227_v55 = vshrl.u32 %v11718_v48, 16  ;;  %v230_v56 = vshll.u32 %v11718_v48, 16  ;;  %v11720_v9 = vpack.c.bf16 %v148_v1, %v148_v1  ;;  %v11721_v36 = vpack.c.bf16 %v149_v25, %v149_v25 }
  0x26   :  { %v235_v57 = vshrl.u32 %v11719_v50, 16  ;;  %v238_v58 = vshll.u32 %v11719_v50, 16  ;;  %v14010_v52 = vpack.c.bf16 %v150_v37, %v150_v37  ;;  %v14021_v1 = vrot.slane %v653_v45, 4 }
  0x27   :  { %v229_v3 = vrot.slane %v227_v55, 7  ;;  %v243_v23 = vshrl.u32 %v11720_v9, 16  ;;  %v246_v24 = vshll.u32 %v11720_v9, 16  ;;  %v251_v49 = vshrl.u32 %v11721_v36, 16 }
  0x28   :  { %v237_v6 = vrot.slane %v235_v57, 7  ;;  %v254_v50 = vshll.u32 %v11721_v36, 16  ;;  %v117_v55 = vmul.f32 %v13901_v22, %v97_v43  ;;  %v662_v2 = vshll.u32 %v14004_v44, 16 }
  0x29   :  { %v232_v13 = vor.u32 %v230_v56, %v229_v3  ;;  %v233_v14 = vrot.slane %v229_v3, 4  ;;  %v245_v34 = vrot.slane %v243_v23, 7  ;;  %v259_v9 = vshrl.u32 %v14010_v52, 16 }
  0x2a   :  { %v240_v15 = vor.u32 %v238_v58, %v237_v6  ;;  %v241_v16 = vrot.slane %v237_v6, 4  ;;  %v253_v58 = vrot.slane %v251_v49, 7  ;;  %v262_v10 = vshll.u32 %v14010_v52, 16 }
  0x2b   :  { %v391_v28 = vsel %vm13955_vm7, %v232_v13, %v390_v61  ;;  %v397_v29 = vsel %vm13963_vm8, %v233_v14, %v396_v62  ;;  %v248_v47 = vor.u32 %v246_v24, %v245_v34  ;;  %v249_v48 = vrot.slane %v245_v34, 4 }
  0x2c   :  { %v400_v30 = vsel %vm13955_vm7, %v240_v15, %v399_v63  ;;  %v403_v31 = vsel %vm13963_vm8, %v241_v16, %v402_v0  ;;  %392 = vst [vmem:[#allocation2 + $0x8] sm:$0xf] %v391_v28  ;;  %398 = vst [vmem:[#allocation2 + $0xc] sm:$0x1] %v397_v29  ;;  %v656_v61 = vshll.u32 %v13996_v33, 16  ;;  %v151_v62 = vmax.f32 %v135_v53, 0.0 }
  0x2d   :  { %401 = vst [vmem:[#allocation2 + $0x10] sm:$0xf] %v400_v30  ;;  %404 = vst [vmem:[#allocation2 + $0x14] sm:$0x1] %v403_v31  ;;  %v406_v56 = vsel %vm13955_vm7, %v248_v47, %v405_v35  ;;  %v409_v57 = vsel %vm13963_vm8, %v249_v48, %v408_v40  ;;  %v152_v63 = vmax.f32 %v136_v54, 0.0  ;;  %v98_v0 = vld [vmem:[#allocation3 + $0x40] sm:$0xff]  ;;  %v256_v3 = vor.u32 %v254_v50, %v253_v58 }
  0x2e   :  { %407 = vst [vmem:[#allocation2 + $0x18] sm:$0xf] %v406_v56  ;;  %410 = vst [vmem:[#allocation2 + $0x1c] sm:$0x1] %v409_v57  ;;  %v257_v6 = vrot.slane %v253_v58, 4  ;;  %v14029_v15 = vpack.c.bf16 %v151_v62, %v151_v62  ;;  %v14034_v18 = vadd.f32 %v13911_v26, %v117_v55  ;;  %v118_v20 = vmul.f32 %v13901_v22, %v98_v0 }
  0x2f   :  { %v14031_v16 = vpack.c.bf16 %v152_v63, %v152_v63  ;;  %v412_v34 = vsel %vm13955_vm7, %v256_v3, %v411_v59 }
  0x30   :  { %v415_v35 = vsel %vm13963_vm8, %v257_v6, %v414_v7  ;;  %413 = vst [vmem:[#allocation2 + $0x20] sm:$0xf] %v412_v34  ;;  %v14043_v55 = vadd.f32 %v13911_v26, %v118_v20 }
  0x31   :  { %416 = vst [vmem:[#allocation2 + $0x24] sm:$0x1] %v415_v35 }
  0x33   :  { %v490_v12 = vld [vmem:[#allocation2 + $0x8] sm:$0xf]  ;;  %v522_v13 = vld [vmem:[#allocation2 + $0xc] sm:$0x1] }
  0x34   :  { %v1718_v14 = vld [vmem:[#allocation2 + $0x8] sm:$0xf]  ;;  %v555_v23 = vshrl.u32 %v490_v12, 16  ;;  %v558_v24 = vshll.u32 %v490_v12, 16  ;;  %v564_v25 = vshll.u32 %v522_v13, 16 }
  0x35   :  { %v1719_v27 = vld [vmem:[#allocation2 + $0xc] sm:$0x1]  ;;  %v1751_v28 = vshrl.u32 %v1718_v14, 16  ;;  %v1720_v29 = vld [vmem:[#allocation2 + $0x10] sm:$0xf]  ;;  %v1754_v31 = vshll.u32 %v1718_v14, 16 }
  0x36   :  { %v1721_v30 = vld [vmem:[#allocation2 + $0x14] sm:$0x1]  ;;  %v1760_v32 = vshll.u32 %v1719_v27, 16  ;;  %v557_v36 = vrot.slane %v555_v23, 4  ;;  %v560_v37 = vrot.slane %v558_v24, 5  ;;  %v566_v38 = vrot.slane %v564_v25, 5 }
  0x37   :  { %v1753_v40 = vrot.slane %v1751_v28, 4  ;;  %v491_v42 = vld [vmem:[#allocation2 + $0x10] sm:$0xf]  ;;  %v1756_v43 = vrot.slane %v1754_v31, 5  ;;  %v1765_v47 = vshrl.u32 %v1720_v29, 16  ;;  %v1768_v48 = vshll.u32 %v1720_v29, 16 }
  0x38   :  { %v1762_v45 = vrot.slane %v1760_v32, 5  ;;  %v523_v49 = vld [vmem:[#allocation2 + $0x14] sm:$0x1]  ;;  %v561_v50 = vor.u32 %v560_v37, %v557_v36  ;;  %v1774_v51 = vshll.u32 %v1721_v30, 16  ;;  %v492_v53 = vld [vmem:[#allocation2 + $0x18] sm:$0xf] }
  0x39   :  { %v569_v54 = vshrl.u32 %v491_v42, 16  ;;  %v1757_v56 = vor.u32 %v1756_v43, %v1753_v40  ;;  %v1767_v57 = vrot.slane %v1765_v47, 4  ;;  %v1770_v58 = vrot.slane %v1768_v48, 5  ;;  %v524_v59 = vld [vmem:[#allocation2 + $0x1c] sm:$0x1] }
  0x3a   :  { %v572_v62 = vshll.u32 %v491_v42, 16  ;;  %v562_v63 = vrot.slane %v561_v50, 4  ;;  %v1776_v0 = vrot.slane %v1774_v51, 5  ;;  %v578_v6 = vshll.u32 %v523_v49, 16  ;;  %v1722_v7 = vld [vmem:[#allocation2 + $0x18] sm:$0xf] }
  0x3b   :  { %v571_v3 = vrot.slane %v569_v54, 4  ;;  %v1758_v11 = vrot.slane %v1757_v56, 4  ;;  %v1771_v12 = vor.u32 %v1770_v58, %v1767_v57  ;;  %v583_v14 = vshrl.u32 %v492_v53, 16  ;;  %v1723_v23 = vld [vmem:[#allocation2 + $0x1c] sm:$0x1]  ;;  %v29_v57 = vld [vmem:[%s17045_s0 + $0x68] sm:$0xff] }
  0x3c   :  { %v574_v13 = vrot.slane %v572_v62, 5  ;;  %v567_v24 = vsel %vm13981_vm9, %v562_v63, %v566_v38  ;;  %v580_v20 = vrot.slane %v578_v6, 5  ;;  %v586_v25 = vshll.u32 %v492_v53, 16  ;;  %v1724_v32 = vld [vmem:[#allocation2 + $0x20] sm:$0xf]  ;;  %46 = vst.msk [vmem:[#allocation3 + $0x68] sm:$0xff] %vm32_vm0, %v29_v57 }
  0x3d   :  { %v592_v27 = vshll.u32 %v524_v59, 16  ;;  %v10708_v28 = vcombine.low %v553_v39, %v567_v24  ;;  %v1763_v29 = vsel %vm13981_vm9, %v1758_v11, %v1762_v45  ;;  %v1772_v30 = vrot.slane %v1771_v12, 4  ;;  %v1725_v37 = vld [vmem:[#allocation2 + $0x24] sm:$0x1]  ;;  %v493_v5 = vld [vmem:[#allocation2 + $0x20] sm:$0xf] }
  0x3e   :  { %v575_v31 = vor.u32 %v574_v13, %v571_v3  ;;  %v585_v34 = vrot.slane %v583_v14, 4  ;;  %v588_v35 = vrot.slane %v586_v25, 5  ;;  %v1779_v38 = vshrl.u32 %v1722_v7, 16  ;;  %v417_v56 = vld [vmem:[#allocation2 + $0x28] sm:$0xf] }
  0x3f   :  { %v594_v36 = vrot.slane %v592_v27, 5  ;;  %12214 = vmatprep.mubr.bf16.mxu1 %v10708_v28  ;;  %v1777_v40 = vsel %vm13981_vm9, %v1772_v30, %v1776_v0  ;;  %v1782_v43 = vshll.u32 %v1722_v7, 16  ;;  %v1788_v47 = vshll.u32 %v1723_v23, 16  ;;  %v420_v0 = vld [vmem:[#allocation2 + $0x2c] sm:$0x1] }
  0x40   :  { %v576_v42 = vrot.slane %v575_v31, 4  ;;  %v10836_v39 = vcombine.low %v1763_v29, %v1777_v40  ;;  %v589_v45 = vor.u32 %v588_v35, %v585_v34  ;;  %v1781_v48 = vrot.slane %v1779_v38, 4  ;;  %v525_v7 = vld [vmem:[#allocation2 + $0x24] sm:$0x1]  ;;  %v13487_v23 = vld [vmem:[%s17047_s2 + $0x8] sm:$0xff]   ;;  %v30_v34 = vld [vmem:[%s17045_s0 + $0x70] sm:$0xff] }
  0x41   :  { %v1793_v49 = vshrl.u32 %v1724_v32, 16  ;;  %v1784_v51 = vrot.slane %v1782_v43, 5  ;;  %v1790_v53 = vrot.slane %v1788_v47, 5  ;;  %v1796_v54 = vshll.u32 %v1724_v32, 16  ;;  %47 = vst.msk [vmem:[#allocation3 + $0x70] sm:$0xff] %vm32_vm0, %v30_v34 }
  0x42   :  { %v581_v50 = vsel %vm13981_vm9, %v576_v42, %v580_v20  ;;  %12342 = vmatprep.mubr.bf16.mxu0 %v10836_v39  ;;  %v590_v58 = vrot.slane %v589_v45, 4  ;;  %v1802_v62 = vshll.u32 %v1725_v37, 16  ;;  %v261_v63 = vrot.slane %v259_v9, 7  ;;  %v99_v37 = vld [vmem:[#allocation3 + $0x48] sm:$0xff]  ;;  %v423_v42 = vld [vmem:[#allocation2 + $0x30] sm:$0xf] }
  0x43   :  { %v1795_v59 = vrot.slane %v1793_v49, 4  ;;  %v1785_v3 = vor.u32 %v1784_v51, %v1781_v48  ;;  %v1798_v6 = vrot.slane %v1796_v54, 5  ;;  %v597_v11 = vshrl.u32 %v493_v5, 16  ;;  %v426_v43 = vld [vmem:[#allocation2 + $0x34] sm:$0x1]  ;;  %v13486_v49 = vld [vmem:[%s17047_s2 + $0x148] sm:$0xff]  }
  0x44   :  { %v600_v12 = vshll.u32 %v493_v5, 16  ;;  %v595_v13 = vsel %vm13981_vm9, %v590_v58, %v594_v36  ;;  %v1804_v14 = vrot.slane %v1802_v62, 5  ;;  %v264_v24 = vor.u32 %v262_v10, %v261_v63 }
  0x45   :  { %v265_v9 = vrot.slane %v261_v63, 4  ;;  %v10709_v20 = vcombine.low %v581_v50, %v595_v13  ;;  %v1786_v25 = vrot.slane %v1785_v3, 4  ;;  %v1799_v27 = vor.u32 %v1798_v6, %v1795_v59  ;;  %v100_v59 = vld [vmem:[#allocation3 + $0x50] sm:$0xff] }
  0x46   :  { %v599_v28 = vrot.slane %v597_v11, 4  ;;  %v418_v29 = vsel %vm13955_vm7, %v264_v24, %v417_v56  ;;  %v602_v31 = vrot.slane %v600_v12, 5  ;;  %v606_v32 = vshll.u32 %v525_v7, 16  ;;  %v13488_v6 = vld [vmem:[%s17047_s2 + $0x150] sm:$0xff]   ;;  %v13491_v12 = vld [vmem:[%s17047_s2 + $0x18] sm:$0xff]  }
  0x47   :  { %v421_v30 = vsel %vm13963_vm8, %v265_v9, %v420_v0  ;;  %12215 = vmatmul.mubr.bf16.vlgmr.msra.gmra.mrb[0].mxu1 %v10709_v20  ;;  %v1791_v52 = vsel %vm13981_vm9, %v1786_v25, %v1790_v53  ;;  %v1800_v10 = vrot.slane %v1799_v27, 4  ;;  %419 = vst [vmem:[#allocation2 + $0x28] sm:$0xf] %v418_v29  ;;  %v267_v35 = vshrl.u32 %v14029_v15, 16  ;;  %v429_v53 = vld [vmem:[#allocation2 + $0x38] sm:$0xf] }
  0x48   :  { %422 = vst [vmem:[#allocation2 + $0x2c] sm:$0x1] %v421_v30  ;;  %v270_v36 = vshll.u32 %v14029_v15, 16  ;;  %12231 = vmatpush3.bf16.msra.mxu1 %v13939_v46  ;;  %v603_v38 = vor.u32 %v602_v31, %v599_v28  ;;  %v14088_v40 = vrot.slane %v606_v32, 5  ;;  %v275_v47 = vshrl.u32 %v14031_v16, 16  ;;  %v13489_v46 = vld [vmem:[%s17047_s2 + $0x10] sm:$0xff]  }
  0x49   :  { %v278_v5 = vshll.u32 %v14031_v16, 16  ;;  %v1805_v15 = vsel %vm13981_vm9, %v1800_v10, %v1804_v14  ;;  %12232 = vmatprep.subr.bf16.mxu1 %v13487_v23  ;;  %v269_v39 = vrot.slane %v267_v35, 7  ;;  %v153_v45 = vmax.f32 %v14034_v18, 0.0  ;;  %v432_v18 = vld [vmem:[#allocation2 + $0x3c] sm:$0x1] }
  0x4a   :  { %v154_v48 = vmax.f32 %v14043_v55, 0.0  ;;  %v10837_v16 = vcombine.low %v1791_v52, %v1805_v15  ;;  %v14106_v50 = vrot.slane %v603_v38, 4  ;;  %v277_v51 = vrot.slane %v275_v47, 7  ;;  %v435_v31 = vld [vmem:[#allocation2 + $0x40] sm:$0xf]  ;;  %v13490_v15 = vld [vmem:[%s17047_s2 + $0x158] sm:$0xff]  }
  0x4b   :  { %v14110_v54 = vrot.slane %v656_v61, 5  ;;  %v272_v56 = vor.u32 %v270_v36, %v269_v39  ;;  %v273_v57 = vrot.slane %v269_v39, 4  ;;  %v11725_v58 = vpack.c.bf16 %v153_v45, %v153_v45  ;;  %v438_v10 = vld [vmem:[#allocation2 + $0x44] sm:$0x1]  ;;  %v441_v39 = vld [vmem:[#allocation2 + $0x58] sm:$0xf] }
  0x4c   :  { %v14113_v55 = vmul.f32 %v13901_v22, %v99_v37  ;;  %12343 = vmatmul.mubr.bf16.vlgmr.msra.gmra.mrb[0].mxu0 %v10837_v16  ;;  %12233 = vmatpush3.bf16.msra.mxu1 %v13487_v23  ;;  %v609_v62 = vsel %vm13981_vm9, %v14106_v50, %v14088_v40  ;;  %v280_v63 = vor.u32 %v278_v5, %v277_v51  ;;  %v281_v0 = vrot.slane %v277_v51, 4  ;;  %v13497_v40 = vld [vmem:[%s17047_s2 + $0x30] sm:$0xff]  }
  0x4d   :  { %v14119_v33 = vpack.c.bf16 %v154_v48, %v154_v48  ;;  %12359 = vmatpush3.bf16.msra.mxu0 %v13930_v41  ;;  %v424_v61 = vsel %vm13955_vm7, %v272_v56, %v423_v42  ;;  %v427_v3 = vsel %vm13963_vm8, %v273_v57, %v426_v43  ;;  %12234 = vmatprep.subr.bf16.mxu1 %v13489_v46  ;;  %v283_v7 = vshrl.u32 %v11725_v58, 16  ;;  %v13493_v42 = vld [vmem:[%s17047_s2 + $0x20] sm:$0xff]  }
  0x4e   :  { %v286_v11 = vshll.u32 %v11725_v58, 16  ;;  %12360 = vmatprep.subr.bf16.mxu0 %v13486_v49  ;;  %v494_v13 = vld [vmem:[#allocation2 + $0x28] sm:$0xf]  ;;  %425 = vst [vmem:[#allocation2 + $0x30] sm:$0xf] %v424_v61  ;;  %v430_v23 = vsel %vm13955_vm7, %v280_v63, %v429_v53  ;;  %v433_v24 = vsel %vm13963_vm8, %v281_v0, %v432_v18  ;;  %v659_v9 = vor.u32 %v14110_v54, %v14021_v1  ;;  %v14167_v57 = vld [vmem:[%s17047_s2 + $0x160] sm:$0xff]  }
  0x4f   :  { %v526_v41 = vld [vmem:[#allocation2 + $0x2c] sm:$0x1]  ;;  %428 = vst [vmem:[#allocation2 + $0x34] sm:$0x1] %v427_v3  ;;  %v1726_v14 = vld [vmem:[#allocation2 + $0x28] sm:$0xf]  ;;  %v14139_v20 = vmul.f32 %v13901_v22, %v100_v59 }
  0x50   :  { %v611_v25 = vshrl.u32 %v494_v13, 16  ;;  %v614_v27 = vshll.u32 %v494_v13, 16  ;;  %v620_v28 = vshll.u32 %v526_v41, 16  ;;  %v14141_v29 = vld [vmem:[#allocation2 + $0x2c] sm:$0x1]  ;;  %v1807_v30 = vshrl.u32 %v1726_v14, 16  ;;  %12235 = vmatpush3.bf16.msra.mxu1 %v13489_v46 }
  0x51   :  { %431 = vst [vmem:[#allocation2 + $0x38] sm:$0xf] %v430_v23  ;;  %434 = vst [vmem:[#allocation2 + $0x3c] sm:$0x1] %v433_v24  ;;  %v1810_v32 = vshll.u32 %v1726_v14, 16  ;;  %v1816_v34 = vshll.u32 %v14141_v29, 16  ;;  %12361 = vmatpush3.bf16.msra.mxu0 %v13486_v49  ;;  %12236 = vmatprep.subr.bf16.mxu1 %v13491_v12  ;;  %v14191_v23 = vadd.f32 %v13911_v26, %v14139_v20 }
  0x52   :  { %v285_v52 = vrot.slane %v283_v7, 7  ;;  %v291_v1 = vshrl.u32 %v14119_v33, 16  ;;  %v613_v35 = vrot.slane %v611_v25, 4  ;;  %v616_v36 = vrot.slane %v614_v27, 5  ;;  %12362 = vmatprep.subr.bf16.mxu0 %v13488_v6  ;;  %v444_v46 = vld [vmem:[#allocation2 + $0x5c] sm:$0x1] }
  0x53   :  { %v622_v37 = vrot.slane %v620_v28, 5  ;;  %v1809_v38 = vrot.slane %v1807_v30, 4  ;;  %v1812_v43 = vrot.slane %v1810_v32, 5  ;;  %v14148_v47 = vrot.slane %v1816_v34, 5  ;;  %v13495_v18 = vld [vmem:[%s17047_s2 + $0x28] sm:$0xff]  }
  0x54   :  { %v288_v5 = vor.u32 %v286_v11, %v285_v52  ;;  %v289_v8 = vrot.slane %v285_v52, 4  ;;  %v617_v45 = vor.u32 %v616_v36, %v613_v35  ;;  %v293_v48 = vrot.slane %v291_v1, 7  ;;  %12237 = vmatpush3.bf16.msra.mxu1 %v13491_v12  ;;  %v13494_v1 = vld [vmem:[%s17047_s2 + $0x168] sm:$0xff]  }
  0x55   :  { %v294_v16 = vshll.u32 %v14119_v33, 16  ;;  %v14154_v49 = vrot.slane %v659_v9, 4  ;;  %v1813_v51 = vor.u32 %v1812_v43, %v1809_v38  ;;  %v14162_v56 = vrot.slane %v662_v2, 5  ;;  %v1728_v59 = vld [vmem:[#allocation2 + $0x30] sm:$0xf]  ;;  %12363 = vmatpush3.bf16.msra.mxu0 %v13488_v6  ;;  %12238 = vmatprep.subr.bf16.mxu1 %v13493_v42 }
  0x56   :  { %v436_v53 = vsel %vm13955_vm7, %v288_v5, %v435_v31  ;;  %v439_v54 = vsel %vm13963_vm8, %v289_v8, %v438_v10  ;;  %v618_v58 = vrot.slane %v617_v45, 4  ;;  %v14172_v63 = vld [vmem:[#allocation2 + $0x34] sm:$0x1]  ;;  %v297_v44 = vrot.slane %v293_v48, 4  ;;  %v14179_v11 = vld [vmem:[#allocation2 + $0x30] sm:$0xf]  ;;  %12364 = vmatprep.subr.bf16.mxu0 %v13490_v15 }
  0x57   :  { %437 = vst [vmem:[#allocation2 + $0x40] sm:$0xf] %v436_v53  ;;  %440 = vst [vmem:[#allocation2 + $0x44] sm:$0x1] %v439_v54  ;;  %v296_v0 = vor.u32 %v294_v16, %v293_v48  ;;  %v14176_v2 = vadd.f32 %v13911_v26, %v14113_v55  ;;  %v1814_v33 = vrot.slane %v1813_v51, 4  ;;  %v1821_v61 = vshrl.u32 %v1728_v59, 16 }
  0x58   :  { %v1824_v3 = vshll.u32 %v1728_v59, 16  ;;  %v1830_v7 = vshll.u32 %v14172_v63, 16  ;;  %v623_v12 = vsel %vm13981_vm9, %v618_v58, %v622_v37  ;;  %v14183_v13 = vld [vmem:[#allocation2 + $0x38] sm:$0xf]  ;;  %v527_v6 = vld [vmem:[#allocation2 + $0x34] sm:$0x1]  ;;  %v445_v14 = vsel %vm13963_vm8, %v297_v44, %v444_v46  ;;  %12239 = vmatpush3.bf16.msra.mxu1 %v13493_v42 }
  0x59   :  { %v528_v41 = vld [vmem:[#allocation2 + $0x3c] sm:$0x1]  ;;  %v442_v55 = vsel %vm13955_vm7, %v296_v0, %v441_v39  ;;  %v10710_v24 = vcombine.low %v609_v62, %v623_v12  ;;  %v1819_v9 = vsel %vm13981_vm9, %v1814_v33, %v14148_v47  ;;  %v1823_v25 = vrot.slane %v1821_v61, 4  ;;  %v1730_v28 = vld [vmem:[#allocation2 + $0x38] sm:$0xf]  ;;  %12365 = vmatpush3.bf16.msra.mxu0 %v13490_v15  ;;  %12240 = vmatprep.subr.bf16.mxu1 %v13495_v18  ;;  %v13496_v15 = vld [vmem:[%s17047_s2 + $0x170] sm:$0xff]  }
  0x5a   :  { %v1826_v27 = vrot.slane %v1824_v3, 5  ;;  %443 = vst [vmem:[#allocation2 + $0x58] sm:$0xf] %v442_v55  ;;  %446 = vst [vmem:[#allocation2 + $0x5c] sm:$0x1] %v445_v14  ;;  %v1832_v30 = vrot.slane %v1830_v7, 5  ;;  %12366 = vmatprep.subr.bf16.mxu0 %v14167_v57 }
  0x5b   :  { %v625_v20 = vshrl.u32 %v14179_v11, 16  ;;  %v628_v31 = vshll.u32 %v14179_v11, 16  ;;  %v634_v32 = vshll.u32 %v527_v6, 16  ;;  %12218 = vmatprep.mubr.bf16.mxu1 %v10710_v24  ;;  %v639_v62 = vshrl.u32 %v14183_v13, 16  ;;  %v14208_v10 = vld [vmem:[#allocation2 + $0x3c] sm:$0x1] }
  0x5c   :  { %v1827_v50 = vor.u32 %v1826_v27, %v1823_v25  ;;  %v642_v34 = vshll.u32 %v14183_v13, 16  ;;  %v648_v52 = vshll.u32 %v528_v41, 16  ;;  %v1835_v38 = vshrl.u32 %v1730_v28, 16  ;;  %12241 = vmatpush3.bf16.msra.mxu1 %v13495_v18  ;;  %v13499_v51 = vld [vmem:[%s17047_s2 + $0x38] sm:$0xff]  }
  0x5d   :  { %v627_v35 = vrot.slane %v625_v20, 4  ;;  %v630_v36 = vrot.slane %v628_v31, 5  ;;  %v636_v37 = vrot.slane %v634_v32, 5  ;;  %v641_v43 = vrot.slane %v639_v62, 4  ;;  %12367 = vmatpush3.bf16.msra.mxu0 %v14167_v57  ;;  %12242 = vmatprep.subr.bf16.mxu1 %v13497_v40  ;;  %v13498_v20 = vld [vmem:[%s17047_s2 + $0x178] sm:$0xff]   ;;  %v14241_v31 = vld [vmem:[%s17047_s2 + $0x80] sm:$0xff]  }
  0x5e   :  { %v1828_v42 = vrot.slane %v1827_v50, 4  ;;  %v644_v47 = vrot.slane %v642_v34, 5  ;;  %v650_v5 = vrot.slane %v648_v52, 5  ;;  %v1732_v8 = vld [vmem:[#allocation2 + $0x40] sm:$0xf]  ;;  %v1837_v45 = vrot.slane %v1835_v38, 4  ;;  %12368 = vmatprep.subr.bf16.mxu0 %v13494_v1 }
  0x5f   :  { %v631_v39 = vor.u32 %v630_v36, %v627_v35  ;;  %v14217_v46 = vld [vmem:[#allocation2 + $0x44] sm:$0x1]  ;;  %v1838_v48 = vshll.u32 %v1730_v28, 16  ;;  %v1844_v16 = vshll.u32 %v14208_v10, 16  ;;  %v1849_v18 = vshrl.u32 %v1732_v8, 16  ;;  %v101_v34 = vld [vmem:[#allocation3 + $0x58] sm:$0xff] }
  0x60   :  { %v1833_v53 = vsel %vm13981_vm9, %v1828_v42, %v1832_v30  ;;  %v645_v54 = vor.u32 %v644_v47, %v641_v43  ;;  %v1852_v58 = vshll.u32 %v1732_v8, 16  ;;  %v1858_v12 = vshll.u32 %v14217_v46, 16  ;;  %12243 = vmatpush3.bf16.msra.mxu1 %v13497_v40  ;;  %v102_v36 = vld [vmem:[#allocation3 + $0x60] sm:$0xff] }
  0x61   :  { %v10838_v59 = vcombine.low %v1819_v9, %v1833_v53  ;;  %v632_v0 = vrot.slane %v631_v39, 4  ;;  %v1840_v44 = vrot.slane %v1838_v48, 5  ;;  %v1846_v33 = vrot.slane %v1844_v16, 5  ;;  %v14226_v61 = vld [vmem:[#allocation2 + $0x58] sm:$0xf]  ;;  %12369 = vmatpush3.bf16.msra.mxu0 %v13494_v1  ;;  %12244 = vmatprep.subr.bf16.mxu1 %v13499_v51  ;;  %v14259_v53 = vld [vmem:[%s17047_s2 + $0x180] sm:$0xff]  }
  0x62   :  { %v646_v3 = vrot.slane %v645_v54, 4  ;;  %v1851_v57 = vrot.slane %v1849_v18, 4  ;;  %v1854_v7 = vrot.slane %v1852_v58, 5  ;;  %v530_v6 = vld [vmem:[#allocation2 + $0x5c] sm:$0x1]  ;;  %v667_v14 = vshrl.u32 %v14226_v61, 16  ;;  %12370 = vmatprep.subr.bf16.mxu0 %v13496_v15 }
  0x63   :  { %12346 = vmatprep.mubr.bf16.mxu0 %v10838_v59  ;;  %v637_v41 = vsel %vm13981_vm9, %v632_v0, %v636_v37  ;;  %v1841_v55 = vor.u32 %v1840_v44, %v1837_v45  ;;  %v670_v24 = vshll.u32 %v14226_v61, 16  ;;  %v1734_v9 = vld [vmem:[#allocation2 + $0x58] sm:$0xf]  ;;  %v1860_v28 = vrot.slane %v1858_v12, 5  ;;  %v14252_v8 = vld [vmem:[#allocation2 + $0x5c] sm:$0x1] }
  0x64   :  { %v651_v25 = vsel %vm13981_vm9, %v646_v3, %v650_v5  ;;  %v1855_v27 = vor.u32 %v1854_v7, %v1851_v57  ;;  %v676_v30 = vshll.u32 %v530_v6, 16  ;;  %v669_v50 = vrot.slane %v667_v14, 4  ;;  %12245 = vmatpush3.bf16.msra.mxu1 %v13499_v51  ;;  %v103_v45 = vld [vmem:[#allocation3 + $0x68] sm:$0xff]  ;;  %v447_v58 = vld [vmem:[#allocation2 + $0x60] sm:$0xf]  ;;  %v104_v3 = vld [vmem:[#allocation3 + $0x70] sm:$0xff] }
  0x65   :  { %v10711_v32 = vcombine.low %v637_v41, %v651_v25  ;;  %v1842_v40 = vrot.slane %v1841_v55, 4  ;;  %v672_v62 = vrot.slane %v670_v24, 5  ;;  %v155_v1 = vmax.f32 %v14176_v2, 0.0  ;;  %12371 = vmatpush3.bf16.msra.mxu0 %v13496_v15  ;;  %12262 = vmatprep.subr.bf16.mxu1 %v14241_v31  ;;  %v450_v59 = vld [vmem:[#allocation2 + $0x64] sm:$0x1] }
  0x66   :  { %v1856_v52 = vrot.slane %v1855_v27, 4  ;;  %v1863_v35 = vshrl.u32 %v1734_v9, 16  ;;  %v678_v42 = vrot.slane %v676_v30, 5  ;;  %v1866_v43 = vshll.u32 %v1734_v9, 16  ;;  %12372 = vmatprep.subr.bf16.mxu0 %v13498_v20  ;;  %v453_v55 = vld [vmem:[#allocation2 + $0x68] sm:$0xf] }
  0x67   :  { %12219 = vmatmul.mubr.bf16.gmra.mrb[4].mxu1 %v10711_v32  ;;  %v1847_v37 = vsel %vm13981_vm9, %v1842_v40, %v1846_v33  ;;  %v673_v38 = vor.u32 %v672_v62, %v669_v50  ;;  %v665_v5 = vsel %vm13981_vm9, %v14154_v49, %v14162_v56  ;;  %v11727_v2 = vpack.c.bf16 %v155_v1, %v155_v1  ;;  %v456_v14 = vld [vmem:[#allocation2 + $0x6c] sm:$0x1]  ;;  %v105_v27 = vld [vmem:[#allocation3 + $0x78] sm:$0xff] }
  0x68   :  { %v1861_v47 = vsel %vm13981_vm9, %v1856_v52, %v1860_v28  ;;  %v156_v39 = vmax.f32 %v14191_v23, 0.0  ;;  %v1865_v15 = vrot.slane %v1863_v35, 4  ;;  %v1868_v51 = vrot.slane %v1866_v43, 5 }
  0x69   :  { %v10839_v48 = vcombine.low %v1847_v37, %v1861_v47  ;;  %v674_v16 = vrot.slane %v673_v38, 4  ;;  %v299_v54 = vshrl.u32 %v11727_v2, 16  ;;  %v302_v49 = vshll.u32 %v11727_v2, 16  ;;  %12373 = vmatpush3.bf16.msra.mxu0 %v13498_v20 }
  0x6a   :  { %v11728_v56 = vpack.c.bf16 %v156_v39, %v156_v39  ;;  %v121_v18 = vmul.f32 %v13901_v22, %v101_v34  ;;  %v1872_v0 = vshll.u32 %v14252_v8, 16  ;;  %v122_v44 = vmul.f32 %v13901_v22, %v102_v36  ;;  %12390 = vmatprep.subr.bf16.mxu0 %v14259_v53 }
  0x6b   :  { %12347 = vmatmul.mubr.bf16.gmra.mrb[4].mxu0 %v10839_v48  ;;  %v679_v23 = vsel %vm13981_vm9, %v674_v16, %v678_v42  ;;  %v123_v33 = vmul.f32 %v13901_v22, %v103_v45  ;;  %v301_v7 = vrot.slane %v299_v54, 7  ;;  %v1869_v41 = vor.u32 %v1868_v51, %v1865_v15 }
  0x6c   :  { %v10712_v57 = vcombine.low %v665_v5, %v679_v23  ;;  %v307_v12 = vshrl.u32 %v11728_v56, 16  ;;  %v310_v6 = vshll.u32 %v11728_v56, 16  ;;  %v141_v24 = vadd.f32 %v13911_v26, %v121_v18 }
  0x6d   :  { %v142_v9 = vadd.f32 %v13911_v26, %v122_v44  ;;  %v143_v25 = vadd.f32 %v13911_v26, %v123_v33  ;;  %v304_v28 = vor.u32 %v302_v49, %v301_v7  ;;  %v305_v30 = vrot.slane %v301_v7, 4 }
  0x6e   :  { %12222 = vmatprep.mubr.bf16.mxu1 %v10712_v57  ;;  %v309_v32 = vrot.slane %v307_v12, 7  ;;  %v124_v40 = vmul.f32 %v13901_v22, %v104_v3  ;;  %v14272_v50 = vrot.slane %v1872_v0, 5  ;;  %v157_v20 = vmax.f32 %v141_v24, 0.0  ;;  %v462_v3 = vld [vmem:[#allocation2 + $0x74] sm:$0x1] }
  0x6f   :  { %v158_v62 = vmax.f32 %v142_v9, 0.0  ;;  %v159_v34 = vmax.f32 %v143_v25, 0.0  ;;  %v448_v52 = vsel %vm13955_vm7, %v304_v28, %v447_v58  ;;  %v451_v1 = vsel %vm13963_vm8, %v305_v30, %v450_v59  ;;  %v459_v58 = vld [vmem:[#allocation2 + $0x70] sm:$0xf] }
  0x70   :  { %v312_v35 = vor.u32 %v310_v6, %v309_v32  ;;  %v313_v36 = vrot.slane %v309_v32, 4  ;;  %449 = vst [vmem:[#allocation2 + $0x60] sm:$0xf] %v448_v52  ;;  %452 = vst [vmem:[#allocation2 + $0x64] sm:$0x1] %v451_v1  ;;  %v11729_v37 = vpack.c.bf16 %v157_v20, %v157_v20  ;;  %v144_v43 = vadd.f32 %v13911_v26, %v124_v40 }
  0x71   :  { %v11730_v38 = vpack.c.bf16 %v158_v62, %v158_v62  ;;  %v11731_v42 = vpack.c.bf16 %v159_v34, %v159_v34  ;;  %v14279_v47 = vrot.slane %v1869_v41, 4  ;;  %v125_v39 = vmul.f32 %v13901_v22, %v105_v27 }
  0x72   :  { %v454_v5 = vsel %vm13955_vm7, %v312_v35, %v453_v55  ;;  %v457_v2 = vsel %vm13963_vm8, %v313_v36, %v456_v14  ;;  %v315_v45 = vshrl.u32 %v11729_v37, 16  ;;  %v318_v48 = vshll.u32 %v11729_v37, 16  ;;  %v465_v37 = vld [vmem:[#allocation2 + $0x78] sm:$0xf] }
  0x73   :  { %455 = vst [vmem:[#allocation2 + $0x68] sm:$0xf] %v454_v5  ;;  %458 = vst [vmem:[#allocation2 + $0x6c] sm:$0x1] %v457_v2  ;;  %v323_v16 = vshrl.u32 %v11730_v38, 16  ;;  %v326_v15 = vshll.u32 %v11730_v38, 16  ;;  %v145_v56 = vadd.f32 %v13911_v26, %v125_v39  ;;  %v1875_v22 = vsel %vm13981_vm9, %v14279_v47, %v14272_v50 }
  0x74   :  { %v331_v51 = vshrl.u32 %v11731_v42, 16  ;;  %v334_v54 = vshll.u32 %v11731_v42, 16  ;;  %v160_v49 = vmax.f32 %v144_v43, 0.0  ;;  %v317_v18 = vrot.slane %v315_v45, 7 }
  0x75   :  { %v14287_v23 = vrot.slane %v323_v16, 7  ;;  %v161_v0 = vmax.f32 %v145_v56, 0.0  ;;  %v468_v16 = vld [vmem:[#allocation2 + $0x7c] sm:$0x1]  ;;  %v471_v56 = vld [vmem:[#allocation2 + $0x80] sm:$0xf] }
  0x76   :  { %v14289_v59 = vrot.slane %v331_v51, 7  ;;  %v320_v44 = vor.u32 %v318_v48, %v317_v18  ;;  %v321_v33 = vrot.slane %v317_v18, 4  ;;  %v14304_v55 = vpack.c.bf16 %v160_v49, %v160_v49 }
  0x77   :  { %v329_v57 = vrot.slane %v14287_v23, 4  ;;  %v1736_v7 = vld [vmem:[#allocation2 + $0x60] sm:$0xf]  ;;  %v14296_v12 = vld [vmem:[#allocation2 + $0x64] sm:$0x1]  ;;  %v328_v6 = vor.u32 %v326_v15, %v14287_v23  ;;  %v14306_v14 = vpack.c.bf16 %v161_v0, %v161_v0 }
  0x78   :  { %v14298_v26 = vld [vmem:[#allocation2 + $0x60] sm:$0xf]  ;;  %v14302_v41 = vor.u32 %v334_v54, %v14289_v59  ;;  %v1877_v24 = vshrl.u32 %v1736_v7, 16  ;;  %v1880_v9 = vshll.u32 %v1736_v7, 16  ;;  %v1886_v25 = vshll.u32 %v14296_v12, 16 }
  0x79   :  { %v14309_v27 = vld [vmem:[#allocation2 + $0x64] sm:$0x1]  ;;  %v681_v28 = vshrl.u32 %v14298_v26, 16  ;;  %v684_v40 = vshll.u32 %v14298_v26, 16  ;;  %v460_v20 = vsel %vm13955_vm7, %v320_v44, %v459_v58  ;;  %v463_v62 = vsel %vm13963_vm8, %v321_v33, %v462_v3 }
  0x7a   :  { %v14312_v30 = vld [vmem:[#allocation2 + $0x68] sm:$0xf]  ;;  %v14314_v32 = vld [vmem:[#allocation2 + $0x6c] sm:$0x1]  ;;  %v690_v50 = vshll.u32 %v14309_v27, 16  ;;  %v1879_v34 = vrot.slane %v1877_v24, 4  ;;  %v466_v7 = vsel %vm13955_vm7, %v328_v6, %v465_v37  ;;  %v472_v6 = vsel %vm13955_vm7, %v14302_v41, %v471_v56 }
  0x7b   :  { %v1882_v52 = vrot.slane %v1880_v9, 5  ;;  %v1888_v1 = vrot.slane %v1886_v25, 5  ;;  %v683_v35 = vrot.slane %v681_v28, 4  ;;  %461 = vst [vmem:[#allocation2 + $0x70] sm:$0xf] %v460_v20  ;;  %v686_v38 = vrot.slane %v684_v40, 5 }
  0x7c   :  { %464 = vst [vmem:[#allocation2 + $0x74] sm:$0x1] %v463_v62  ;;  %v1738_v36 = vld [vmem:[#allocation2 + $0x68] sm:$0xf]  ;;  %v692_v42 = vrot.slane %v690_v50, 5  ;;  %v695_v43 = vshrl.u32 %v14312_v30, 16  ;;  %v469_v25 = vsel %vm13963_vm8, %v329_v57, %v468_v16 }
  0x7d   :  { %v698_v47 = vshll.u32 %v14312_v30, 16  ;;  %v14324_v5 = vld [vmem:[#allocation2 + $0x6c] sm:$0x1]  ;;  %v1883_v2 = vor.u32 %v1882_v52, %v1879_v34  ;;  %v704_v39 = vshll.u32 %v14314_v32, 16  ;;  %v1891_v45 = vshrl.u32 %v1738_v36, 16 }
  0x7e   :  { %v1894_v48 = vshll.u32 %v1738_v36, 16  ;;  %v687_v15 = vor.u32 %v686_v38, %v683_v35  ;;  %v697_v51 = vrot.slane %v695_v43, 4  ;;  %v1900_v49 = vshll.u32 %v14324_v5, 16  ;;  %467 = vst [vmem:[#allocation2 + $0x78] sm:$0xf] %v466_v7 }
  0x7f   :  { %v700_v54 = vrot.slane %v698_v47, 5  ;;  %v1884_v18 = vrot.slane %v1883_v2, 4  ;;  %v706_v23 = vrot.slane %v704_v39, 5  ;;  %v1893_v58 = vrot.slane %v1891_v45, 4  ;;  %v474_v40 = vld [vmem:[#allocation2 + $0x84] sm:$0x1] }
  0x80   :  { %v1896_v0 = vrot.slane %v1894_v48, 5  ;;  %v688_v44 = vrot.slane %v687_v15, 4  ;;  %v1902_v3 = vrot.slane %v1900_v49, 5  ;;  %v337_v28 = vrot.slane %v14289_v59, 4  ;;  %470 = vst [vmem:[#allocation2 + $0x7c] sm:$0x1] %v469_v25 }
  0x81   :  { %v701_v33 = vor.u32 %v700_v54, %v697_v51  ;;  %v1889_v24 = vsel %vm13981_vm9, %v1884_v18, %v1888_v1  ;;  %473 = vst [vmem:[#allocation2 + $0x80] sm:$0xf] %v472_v6  ;;  %v339_v51 = vshrl.u32 %v14304_v55, 16  ;;  %v342_v54 = vshll.u32 %v14304_v55, 16 }
  0x82   :  { %v1897_v9 = vor.u32 %v1896_v0, %v1893_v58  ;;  %v10840_v50 = vcombine.low %v1875_v22, %v1889_v24  ;;  %v693_v20 = vsel %vm13981_vm9, %v688_v44, %v692_v42  ;;  %v1740_v34 = vld [vmem:[#allocation2 + $0x70] sm:$0xf]  ;;  %v475_v41 = vsel %vm13963_vm8, %v337_v28, %v474_v40 }
  0x83   :  { %v702_v62 = vrot.slane %v701_v33, 4  ;;  %v14337_v52 = vld [vmem:[#allocation2 + $0x74] sm:$0x1]  ;;  %v1905_v35 = vshrl.u32 %v1740_v34, 16  ;;  %v1908_v36 = vshll.u32 %v1740_v34, 16  ;;  %v347_v49 = vshrl.u32 %v14306_v14, 16 }
  0x84   :  { %v1898_v1 = vrot.slane %v1897_v9, 4  ;;  %v1914_v57 = vshll.u32 %v14337_v52, 16  ;;  %v14343_v59 = vld [vmem:[#allocation2 + $0x70] sm:$0xf]  ;;  %12350 = vmatprep.mubr.bf16.mxu0 %v10840_v50  ;;  %v14347_v37 = vld [vmem:[#allocation2 + $0x74] sm:$0x1] }
  0x85   :  { %v707_v22 = vsel %vm13981_vm9, %v702_v62, %v706_v23  ;;  %v709_v38 = vshrl.u32 %v14343_v59, 16  ;;  %v712_v42 = vshll.u32 %v14343_v59, 16  ;;  %v1907_v47 = vrot.slane %v1905_v35, 4  ;;  %476 = vst [vmem:[#allocation2 + $0x84] sm:$0x1] %v475_v41 }
  0x86   :  { %v10713_v43 = vcombine.low %v693_v20, %v707_v22  ;;  %v1910_v2 = vrot.slane %v1908_v36, 5  ;;  %v1916_v39 = vrot.slane %v1914_v57, 5  ;;  %v718_v16 = vshll.u32 %v14347_v37, 16  ;;  %v14359_v18 = vld [vmem:[#allocation2 + $0x78] sm:$0xf] }
  0x87   :  { %v711_v45 = vrot.slane %v709_v38, 4  ;;  %v714_v48 = vrot.slane %v712_v42, 5  ;;  %v1903_v56 = vsel %vm13981_vm9, %v1898_v1, %v1902_v3  ;;  %v1742_v0 = vld [vmem:[#allocation2 + $0x78] sm:$0xf]  ;;  %v350_v44 = vshll.u32 %v14306_v14, 16 }
  0x88   :  { %12223 = vmatmul.mubr.bf16.gmra.mrb[8].mxu1 %v10713_v43  ;;  %v1911_v15 = vor.u32 %v1910_v2, %v1907_v47  ;;  %v720_v58 = vrot.slane %v718_v16, 5  ;;  %v14362_v7 = vld [vmem:[#allocation2 + $0x7c] sm:$0x1]  ;;  %v723_v24 = vshrl.u32 %v14359_v18, 16  ;;  %v726_v9 = vshll.u32 %v14359_v18, 16 }
  0x89   :  { %v715_v23 = vor.u32 %v714_v48, %v711_v45  ;;  %v1919_v55 = vshrl.u32 %v1742_v0, 16  ;;  %v732_v28 = vshll.u32 %v14362_v7, 16  ;;  %v14367_v40 = vld [vmem:[#allocation2 + $0x7c] sm:$0x1]  ;;  %v1744_v3 = vld [vmem:[#allocation2 + $0x80] sm:$0xf] }
  0x8a   :  { %v1912_v33 = vrot.slane %v1911_v15, 4  ;;  %v725_v20 = vrot.slane %v723_v24, 4  ;;  %v728_v62 = vrot.slane %v726_v9, 5  ;;  %v1922_v35 = vshll.u32 %v1742_v0, 16  ;;  %v14373_v36 = vld [vmem:[#allocation2 + $0x80] sm:$0xf] }
  0x8b   :  { %v716_v25 = vrot.slane %v715_v23, 4  ;;  %v1921_v14 = vrot.slane %v1919_v55, 4  ;;  %v734_v6 = vrot.slane %v732_v28, 5  ;;  %v1928_v22 = vshll.u32 %v14367_v40, 16  ;;  %v477_v41 = vld [vmem:[#allocation2 + $0x88] sm:$0xf] }
  0x8c   :  { %v1917_v50 = vsel %vm13981_vm9, %v1912_v33, %v1916_v39  ;;  %v14371_v1 = vld [vmem:[#allocation2 + $0x84] sm:$0x1]  ;;  %v729_v57 = vor.u32 %v728_v62, %v725_v20  ;;  %v1933_v38 = vshrl.u32 %v1744_v3, 16  ;;  %v1936_v42 = vshll.u32 %v1744_v3, 16  ;;  %v480_v45 = vld [vmem:[#allocation2 + $0x8c] sm:$0x1] }
  0x8d   :  { %v10841_v34 = vcombine.low %v1903_v56, %v1917_v50  ;;  %v721_v43 = vsel %vm13981_vm9, %v716_v25, %v720_v58  ;;  %v1924_v47 = vrot.slane %v1922_v35, 5  ;;  %v1942_v2 = vshll.u32 %v14371_v1, 16  ;;  %v14391_v35 = vld [vmem:[#allocation2 + $0x84] sm:$0x1] }
  0x8e   :  { %v341_v39 = vrot.slane %v339_v51, 7  ;;  %v730_v48 = vrot.slane %v729_v57, 4  ;;  %v1935_v16 = vrot.slane %v1933_v38, 4  ;;  %v1938_v15 = vrot.slane %v1936_v42, 5 }
  0x8f   :  { %12351 = vmatmul.mubr.bf16.gmra.mrb[8].mxu0 %v10841_v34  ;;  %v737_v56 = vshrl.u32 %v14373_v36, 16  ;;  %v1925_v23 = vor.u32 %v1924_v47, %v1921_v14  ;;  %v1930_v0 = vrot.slane %v1928_v22, 5  ;;  %v1944_v28 = vrot.slane %v1942_v2, 5  ;;  %v483_v14 = vld [vmem:[#allocation2 + $0x90] sm:$0xf] }
  0x90   :  { %v344_v33 = vor.u32 %v342_v54, %v341_v39  ;;  %v345_v24 = vrot.slane %v341_v39, 4  ;;  %v735_v9 = vsel %vm13981_vm9, %v730_v48, %v734_v6  ;;  %v1939_v55 = vor.u32 %v1938_v15, %v1935_v16  ;;  %v486_v34 = vld [vmem:[#allocation2 + $0x94] sm:$0x1]  ;;  %v2184_v39 = vld [vmem:[#allocation2 + $0x8] sm:$0xe] }
  0x91   :  { %v740_v58 = vshll.u32 %v14373_v36, 16  ;;  %v10714_v25 = vcombine.low %v721_v43, %v735_v9  ;;  %v1926_v3 = vrot.slane %v1925_v23, 4  ;;  %v349_v54 = vrot.slane %v347_v49, 7  ;;  %v2185_v16 = vld [vmem:[#allocation2 + $0x10] sm:$0xe] }
  0x92   :  { %v478_v51 = vsel %vm13955_vm7, %v344_v33, %v477_v41  ;;  %v481_v50 = vsel %vm13963_vm8, %v345_v24, %v480_v45  ;;  %v1940_v20 = vrot.slane %v1939_v55, 4  ;;  %v739_v57 = vrot.slane %v737_v56, 4 }
  0x93   :  { %479 = vst [vmem:[#allocation2 + $0x88] sm:$0xf] %v478_v51  ;;  %482 = vst [vmem:[#allocation2 + $0x8c] sm:$0x1] %v481_v50  ;;  %12226 = vmatprep.mubr.bf16.mxu1 %v10714_v25  ;;  %v1931_v62 = vsel %vm13981_vm9, %v1926_v3, %v1930_v0  ;;  %v742_v22 = vrot.slane %v740_v58, 5  ;;  %v352_v38 = vor.u32 %v350_v44, %v349_v54  ;;  %v353_v41 = vrot.slane %v349_v54, 4 }
  0x94   :  { %v1945_v6 = vsel %vm13981_vm9, %v1940_v20, %v1944_v28  ;;  %v746_v49 = vshll.u32 %v14391_v35, 16  ;;  %v10852_v3 = vrot.slane %v2184_v39, 9  ;;  %v13748_v54 = vld [vmem:[#allocation2 + $0xc] sm:$0x1] }
  0x95   :  { %v10842_v42 = vcombine.low %v1931_v62, %v1945_v6  ;;  %v484_v43 = vsel %vm13955_vm7, %v352_v38, %v483_v14  ;;  %v487_v47 = vsel %vm13963_vm8, %v353_v41, %v486_v34  ;;  %v743_v2 = vor.u32 %v742_v22, %v739_v57 }
  0x96   :  { %485 = vst [vmem:[#allocation2 + $0x90] sm:$0xf] %v484_v43  ;;  %488 = vst [vmem:[#allocation2 + $0x94] sm:$0x1] %v487_v47  ;;  %v748_v4 = vrot.slane %v746_v49, 5  ;;  %v2234_v62 = vrot.slane %v13748_v54, 5 }
  0x97   :  { %12354 = vmatprep.mubr.bf16.mxu0 %v10842_v42  ;;  %v744_v24 = vrot.slane %v743_v2, 4  ;;  %v10853_v14 = vrot.slane %v2185_v16, 9  ;;  %v17068_v38 = vmov 0  ;;  %v13749_v42 = vld [vmem:[#allocation2 + $0x14] sm:$0x1] }
  0x98   :  { %v17069_v38 = vsel %vm14412_vm12, 4294967295, %v17068_v38  ;;  %v2238_v41 = vrot.slane %v13749_v42, 5  ;;  %v2186_v43 = vld [vmem:[#allocation2 + $0x18] sm:$0xe]  ;;  %v2187_v49 = vld [vmem:[#allocation2 + $0x20] sm:$0xe] }
  0x99   :  { %17070 = vst [vmem:[#allocation8_spill] sm:$0xff] %v17069_v38  ;;  %v749_v47 = vsel %vm13981_vm9, %v744_v24, %v748_v4  ;;  %v13752_v54 = vld [vmem:[#allocation2 + $0x1c] sm:$0x1]  ;;  %v2190_v42 = vld [vmem:[#allocation2 + $0x38] sm:$0xe] }
  0x9a   :  { %v14398_v45 = vld [vmem:[#allocation2 + $0x88] sm:$0xf]  ;;  %v14400_v48 = vld [vmem:[#allocation2 + $0x8c] sm:$0x1]  ;;  %v2239_v24 = vsel %vm14412_vm12, %v10853_v14, %v2238_v41  ;;  %v2254_v14 = vrot.slane %v14172_v63, 5  ;;  %v2262_v63 = vrot.slane %v14217_v46, 5 }
  0x9b   :  { %v1746_v44 = vld [vmem:[#allocation2 + $0x88] sm:$0xf]  ;;  %v751_v15 = vshrl.u32 %v14398_v45, 16  ;;  %v754_v60 = vshll.u32 %v14398_v45, 16  ;;  %v760_v56 = vshll.u32 %v14400_v48, 16 }
  0x9c   :  { %v14405_v23 = vld [vmem:[#allocation2 + $0x8c] sm:$0x1]  ;;  %v1947_v0 = vshrl.u32 %v1746_v44, 16  ;;  %v1950_v33 = vshll.u32 %v1746_v44, 16  ;;  %v2193_v46 = vld [vmem:[#allocation2 + $0x60] sm:$0xe] }
  0x9d   :  { %v753_v9 = vrot.slane %v751_v15, 4  ;;  %v756_v55 = vrot.slane %v754_v60, 5  ;;  %v1956_v25 = vshll.u32 %v14405_v23, 16  ;;  %v762_v50 = vrot.slane %v760_v56, 5  ;;  %v1748_v20 = vld [vmem:[#allocation2 + $0x90] sm:$0xf] }
  0x9e   :  { %v1949_v28 = vrot.slane %v1947_v0, 4  ;;  %v1952_v58 = vrot.slane %v1950_v33, 5  ;;  %v14408_v34 = vld [vmem:[#allocation2 + $0x94] sm:$0x1]  ;;  %v1961_v57 = vshrl.u32 %v1748_v20, 16  ;;  %v1964_v22 = vshll.u32 %v1748_v20, 16 }
  0x9f   :  { %v757_v51 = vor.u32 %v756_v55, %v753_v9  ;;  %v1970_v39 = vshll.u32 %v14408_v34, 16  ;;  %v1958_v16 = vrot.slane %v1956_v25, 5  ;;  %v13750_v0 = vld [vmem:[#allocation2] sm:$0xf]  ;;  %v13751_v33 = vld [vmem:[#allocation2 + $0x8] sm:$0xf]  ;;  %v2235_v55 = vsel %vm14412_vm12, %v10852_v3, %v2234_v62 }
  0xa0   :  { %v1953_v6 = vor.u32 %v1952_v58, %v1949_v28  ;;  %v1963_v15 = vrot.slane %v1961_v57, 4  ;;  %v1966_v60 = vrot.slane %v1964_v22, 5  ;;  %v10724_v9 = vcombine.low %v13750_v0, %v13751_v33  ;;  %v2188_v28 = vld [vmem:[#allocation2 + $0x28] sm:$0xe]  ;;  %v13753_v22 = vld [vmem:[#allocation2 + $0x24] sm:$0x1] }
  0xa1   :  { %v758_v2 = vrot.slane %v757_v51, 4  ;;  %v1972_v4 = vrot.slane %v1970_v39, 5  ;;  %v2189_v51 = vld [vmem:[#allocation2 + $0x30] sm:$0xe]  ;;  %v10854_v25 = vrot.slane %v2186_v43, 9  ;;  %v10855_v57 = vrot.slane %v2187_v49, 9 }
  0xa2   :  { %v1954_v44 = vrot.slane %v1953_v6, 4  ;;  %v1967_v20 = vor.u32 %v1966_v60, %v1963_v15  ;;  %v2242_v6 = vrot.slane %v13752_v54, 5  ;;  %v10856_v62 = vrot.slane %v2188_v28, 9  ;;  %v2191_v39 = vld [vmem:[#allocation2 + $0x40] sm:$0xe] }
  0xa3   :  { %v763_v56 = vsel %vm13981_vm9, %v758_v2, %v762_v50  ;;  %v2246_v50 = vrot.slane %v13753_v22, 5  ;;  %v10857_v15 = vrot.slane %v2189_v51, 9  ;;  %v10884_v43 = vcombine.low %v2235_v55, %v2239_v24  ;;  %v14431_v49 = vld [vmem:[#allocation2 + $0x4] sm:$0x1]  ;;  %v13755_v0 = vld [vmem:[#allocation2 + $0x10] sm:$0xf] }
  0xa4   :  { %v10715_v58 = vcombine.low %v749_v47, %v763_v56  ;;  %v1959_v2 = vsel %vm13981_vm9, %v1954_v44, %v1958_v16  ;;  %v1968_v3 = vrot.slane %v1967_v20, 4  ;;  %v2250_v47 = vrot.slane %v14141_v29, 5  ;;  %v13756_v44 = vld [vmem:[#allocation2 + $0x18] sm:$0xf]  ;;  %v13757_v33 = vld [vmem:[#allocation2 + $0x20] sm:$0xf] }
  0xa5   :  { %v1204_v60 = vrot.slane %v14431_v49, 5  ;;  %v10725_v16 = vcombine.low %v13755_v0, %v13756_v44  ;;  %v13758_v28 = vld [vmem:[#allocation2 + $0x28] sm:$0xf]  ;;  %v10859_v20 = vrot.slane %v2191_v39, 9  ;;  %v2243_v55 = vsel %vm14412_vm12, %v10854_v25, %v2242_v6  ;;  %v2192_v54 = vld [vmem:[#allocation2 + $0x58] sm:$0xe] }
  0xa6   :  { %12227 = vmatmul.mubr.bf16.gmra.mrb[12].mxu1 %v10715_v58  ;;  %v1973_v41 = vsel %vm13981_vm9, %v1968_v3, %v1972_v4  ;;  %v10726_v29 = vcombine.low %v13757_v33, %v13758_v28  ;;  %v10858_v58 = vrot.slane %v2190_v42, 9  ;;  %v2247_v4 = vsel %vm14412_vm12, %v10855_v57, %v2246_v50  ;;  %v13503_v24 = vld [vmem:[%s17047_s2 + $0x88] sm:$0xff]   ;;  %v2195_v42 = vld [vmem:[#allocation2 + $0x70] sm:$0xe]  ;;  %v14472_v44 = vld [vmem:[#allocation2 + $0x80] sm:$0xe] }
  0xa7   :  { %12246 = vmatprep.mubr.bf16.mxu1 %v10724_v9  ;;  %v10843_v56 = vcombine.low %v1959_v2, %v1973_v41  ;;  %v2258_v9 = vrot.slane %v14208_v10, 5  ;;  %v2251_v51 = vsel %vm14412_vm12, %v10856_v62, %v2250_v47  ;;  %v2255_v10 = vsel %vm14412_vm12, %v10857_v15, %v2254_v14  ;;  %v2194_v22 = vld [vmem:[#allocation2 + $0x68] sm:$0xe]  ;;  %v14455_v2 = vld [vmem:[#allocation2 + $0x78] sm:$0xe]  ;;  %v13505_v62 = vld [vmem:[%s17047_s2 + $0x90] sm:$0xff]  }
  0xa8   :  { %v10885_v25 = vcombine.low %v2243_v55, %v2247_v4  ;;  %v10886_v6 = vcombine.low %v2251_v51, %v2255_v10  ;;  %v14453_v50 = vsel %vm14412_vm12, %v10859_v20, %v2262_v63  ;;  %v14461_v3 = vld [vmem:[%s17047_s2 + $0x188] sm:$0xff]   ;;  %v10860_v47 = vrot.slane %v2192_v54, 9  ;;  %v14498_v20 = vld [vmem:[#allocation2 + $0x20] sm:$0xe]  ;;  %v14693_v49 = vld [vmem:[#allocation2 + $0x14] sm:$0x1] }
  0xa9   :  { %12355 = vmatmul.mubr.bf16.gmra.mrb[12].mxu0 %v10843_v56  ;;  %v14449_v57 = vsel %vm14412_vm12, %v10858_v58, %v2258_v9  ;;  %v2266_v39 = vrot.slane %v14252_v8, 5  ;;  %v10861_v15 = vrot.slane %v2193_v46, 9  ;;  %v2270_v14 = vrot.slane %v14296_v12, 5  ;;  %v14476_v33 = vld [vmem:[#allocation2 + $0x8] sm:$0xe]  ;;  %17075 = vst [vmem:[#allocation9_spill] sm:$0xff] %v14693_v49 }
  0xaa   :  { %12374 = vmatprep.mubr.bf16.mxu0 %v10884_v43  ;;  %v10862_v41 = vrot.slane %v2194_v22, 9  ;;  %v10863_v43 = vrot.slane %v2195_v42, 9  ;;  %v2278_v56 = vrot.slane %v14337_v52, 5  ;;  %v10727_v0 = vcombine.low %v14179_v11, %v14183_v13  ;;  %v14478_v8 = vld [vmem:[#allocation2 + $0x10] sm:$0xe] }
  0xab   :  { %v10887_v12 = vcombine.low %v14449_v57, %v14453_v50  ;;  %v13759_v52 = vld [vmem:[#allocation2 + $0x50] sm:$0xf]  ;;  %v10729_v11 = vcombine.low %v14298_v26, %v14312_v30  ;;  %v10730_v13 = vcombine.low %v14343_v59, %v14359_v18  ;;  %v14496_v9 = vld [vmem:[#allocation2 + $0x18] sm:$0xe]  ;;  %v14507_v63 = vsel %vm14412_vm12, %v10860_v47, %v2266_v39  ;;  %v14515_v10 = vld [vmem:[#allocation2 + $0x28] sm:$0xe] }
  0xac   :  { %v10728_v28 = vcombine.low %v13759_v52, %v14226_v61  ;;  %v14494_v58 = vld [vmem:[#allocation2 + $0x90] sm:$0xe]  ;;  %v14511_v55 = vsel %vm14412_vm12, %v10861_v15, %v2270_v14  ;;  %v10864_v4 = vrot.slane %v14455_v2, 9  ;;  %v2282_v51 = vrot.slane %v14367_v40, 5  ;;  %v14535_v2 = vld [vmem:[#allocation2 + $0x38] sm:$0xe] }
  0xad   :  { %v14503_v61 = vld [vmem:[%s17047_s2 + $0x190] sm:$0xff]   ;;  %v14524_v54 = vsel %vm14412_vm12, %v10863_v43, %v2278_v56  ;;  %v10865_v46 = vrot.slane %v14472_v44, 9  ;;  %v2286_v22 = vrot.slane %v14371_v1, 5  ;;  %v2290_v40 = vrot.slane %v14405_v23, 5  ;;  %v13760_v15 = vld [vmem:[#allocation2 + $0xc] sm:$0x1] }
  0xae   :  { %12247 = vmatmul.mubr.bf16.vlgmr.msra.gmra.mrb[0].mxu1 %v10725_v16  ;;  %v14474_v16 = vld [vmem:[#allocation2] sm:$0xe]  ;;  %v14528_v42 = vld [vmem:[#allocation2 + $0x30] sm:$0xe]  ;;  %v10741_v39 = vrot.slane %v14476_v33, 9  ;;  %v1208_v14 = vrot.slane %v13760_v15, 5  ;;  %v10731_v30 = vcombine.low %v14373_v36, %v14398_v45 }
  0xaf   :  { %12263 = vmatpush3.bf16.msra.mxu1 %v14241_v31  ;;  %12250 = vmatprep.mubr.bf16.mxu1 %v10726_v29  ;;  %v2274_v31 = vrot.slane %v14324_v5, 5  ;;  %v14485_v5 = vld [vmem:[%s17047_s2 + $0x98] sm:$0xff]   ;;  %v14492_v29 = vld [vmem:[#allocation2 + $0x88] sm:$0xe]  ;;  %v14537_v47 = vld [vmem:[#allocation2 + $0x50] sm:$0xe] }
  0xb0   :  { %12264 = vmatprep.subr.bf16.mxu1 %v13503_v24  ;;  %v10740_v1 = vrot.slane %v14474_v16, 9  ;;  %v14547_v23 = vld [vmem:[%s17047_s2 + $0x198] sm:$0xff]   ;;  %v14552_v43 = vld [vmem:[#allocation2 + $0x14] sm:$0x1]  ;;  %v14560_v33 = vld [vmem:[#allocation2 + $0x60] sm:$0xe] }
  0xb1   :  { %12375 = vmatmul.mubr.bf16.vlgmr.msra.gmra.mrb[0].mxu0 %v10885_v25  ;;  %v10867_v25 = vrot.slane %v14494_v58, 9  ;;  %v14556_v44 = vld [vmem:[#allocation2 + $0x1c] sm:$0x1]  ;;  %v14562_v52 = vld [vmem:[#allocation2 + $0x68] sm:$0xe] }
  0xb2   :  { %12391 = vmatpush3.bf16.msra.mxu0 %v14259_v53  ;;  %12378 = vmatprep.mubr.bf16.mxu0 %v10886_v6  ;;  %v10866_v53 = vrot.slane %v14492_v29, 9  ;;  %v2294_v6 = vrot.slane %v14408_v34, 5  ;;  %v13509_v34 = vld [vmem:[%s17047_s2 + $0xa0] sm:$0xff]   ;;  %v14594_v16 = vld [vmem:[%s17047_s2 + $0xa8] sm:$0xff]   ;;  %v14621_v29 = vld [vmem:[#allocation2 + $0x54] sm:$0x1]  ;;  %v14639_v57 = vsel %vm14412_vm12, %v10740_v1, %v1204_v60 }
  0xb3   :  { %12265 = vmatpush3.bf16.msra.mxu1 %v13503_v24  ;;  %v14520_v24 = vsel %vm14412_vm12, %v10862_v41, %v2274_v31  ;;  %12392 = vmatprep.subr.bf16.mxu0 %v14461_v3  ;;  %v14542_v31 = vld [vmem:[#allocation2 + $0x58] sm:$0xe]  ;;  %v14570_v58 = vld [vmem:[#allocation2 + $0x24] sm:$0x1]  ;;  %v14596_v41 = vld [vmem:[#allocation2 + $0x34] sm:$0x1] }
  0xb4   :  { %12266 = vmatprep.subr.bf16.mxu1 %v13505_v62  ;;  %v14604_v15 = vld [vmem:[#allocation2 + $0x80] sm:$0xe]  ;;  %v1236_v56 = vrot.slane %v14621_v29, 5  ;;  %v14625_v50 = vld [vmem:[#allocation2 + $0x88] sm:$0xe]  ;;  %v17073_v18 = vrot.slane %v14556_v44, 5  ;;  %v17077_v44 = vcombine.low %v14520_v24, %v14524_v54 }
  0xb5   :  { %v14655_v1 = vld [vmem:[%s17047_s2 + $0x1a8] sm:$0xff]   ;;  %v14723_v54 = vld [vmem:[#allocation2 + $0x24] sm:$0x1] }
  0xb6   :  { %12251 = vmatmul.mubr.bf16.gmra.mrb[4].mxu1 %v10727_v0  ;;  %12393 = vmatpush3.bf16.msra.mxu0 %v14461_v3  ;;  %v14574_v0 = vld [vmem:[#allocation2 + $0x70] sm:$0xe]  ;;  %v14579_v3 = vsel %vm14412_vm12, %v10864_v4, %v2282_v51  ;;  %v13508_v4 = vld [vmem:[%s17047_s2 + $0x1a0] sm:$0xff]   ;;  %v14615_v51 = vsel %vm14412_vm12, %v10866_v53, %v2290_v40  ;;  %v2755_v36 = vld [vmem:[#allocation2 + $0x28] sm:$0xf]  ;;  %17082 = vst [vmem:[#allocation11_spill] sm:$0xff] %v14723_v54 }
  0xb7   :  { %12267 = vmatpush3.bf16.msra.mxu1 %v13505_v62  ;;  %12254 = vmatprep.mubr.bf16.mxu1 %v10728_v28  ;;  %v10888_v28 = vcombine.low %v14507_v63, %v14511_v55  ;;  %v14583_v63 = vsel %vm14412_vm12, %v10865_v46, %v2286_v22  ;;  %v14585_v55 = vld [vmem:[#allocation2 + $0x2c] sm:$0x1]  ;;  %v14589_v62 = vld [vmem:[#allocation2 + $0x78] sm:$0xe]  ;;  %v14600_v46 = vld [vmem:[#allocation2 + $0x3c] sm:$0x1]  ;;  %v14619_v22 = vsel %vm14412_vm12, %v10867_v25, %v2294_v6 }
  0xb8   :  { %12268 = vmatprep.subr.bf16.mxu1 %v14485_v5  ;;  %12394 = vmatprep.subr.bf16.mxu0 %v14503_v61  ;;  %v2751_v25 = vld [vmem:[#allocation2 + $0x18] sm:$0xf]  ;;  %v10890_v26 = vcombine.low %v14579_v3, %v14583_v63  ;;  %v10891_v45 = vcombine.low %v14615_v51, %v14619_v22  ;;  %v13517_v51 = vld [vmem:[%s17047_s2 + $0x1c0] sm:$0xff]  }
  0xb9   :  { %12379 = vmatmul.mubr.bf16.gmra.mrb[4].mxu0 %v10887_v12  ;;  %v2749_v12 = vld [vmem:[#allocation2 + $0x10] sm:$0xf]  ;;  %v2799_v3 = vshll.u32 %v2751_v25, 16 }
  0xba   :  { %12395 = vmatpush3.bf16.msra.mxu0 %v14503_v61  ;;  %12382 = vmatprep.mubr.bf16.mxu0 %v10888_v28  ;;  %v14643_v61 = vsel %vm14412_vm12, %v10741_v39, %v1208_v14  ;;  %v1248_v28 = vrot.slane %v14314_v32, 5  ;;  %v2782_v53 = vshrl.u32 %v2749_v12, 16  ;;  %v2785_v60 = vshll.u32 %v2749_v12, 16  ;;  %v14695_v39 = vld [vmem:[#allocation2 + $0x1c] sm:$0x1] }
  0xbb   :  { %12269 = vmatpush3.bf16.msra.mxu1 %v14485_v5  ;;  %v14628_v5 = vld [vmem:[#allocation2 + $0x5c] sm:$0x1]  ;;  %12396 = vmatprep.subr.bf16.mxu0 %v14547_v23  ;;  %v10772_v63 = vcombine.low %v14639_v57, %v14643_v61  ;;  %v17071_v12 = vrot.slane %v14552_v43, 5  ;;  %17076 = vst [vmem:[#allocation10_spill] sm:$0xff] %v14695_v39 }
  0xbc   :  { %12270 = vmatprep.subr.bf16.mxu1 %v13509_v34  ;;  %v2784_v43 = vrot.slane %v2782_v53, 4  ;;  %v2787_v57 = vrot.slane %v2785_v60, 5  ;;  %v17080_v60 = vrot.slane %v14585_v55, 5  ;;  %v17084_v55 = vrot.slane %v14528_v42, 9  ;;  %v13516_v42 = vld [vmem:[#allocation2 + $0x10] ss:$8 sps:$4 sm:$0xff]  }
  0xbd   :  { %v13527_v32 = vld [vmem:[%s17047_s2 + $0xd8] sm:$0xff]  }
  0xbe   :  { %12255 = vmatmul.mubr.bf16.gmra.mrb[8].mxu1 %v10729_v11  ;;  %v13513_v11 = vld [vmem:[%s17047_s2 + $0xb0] sm:$0xff]   ;;  %12397 = vmatpush3.bf16.msra.mxu0 %v14547_v23  ;;  %v17072_v23 = vrot.slane %v14478_v8, 9  ;;  %v13515_v8 = vld [vmem:[%s17047_s2 + $0xb8] sm:$0xff]  }
  0xbf   :  { %12271 = vmatpush3.bf16.msra.mxu1 %v13509_v34  ;;  %12258 = vmatprep.mubr.bf16.mxu1 %v10730_v13  ;;  %v2753_v34 = vld [vmem:[#allocation2 + $0x20] sm:$0xf]  ;;  %v2796_v13 = vshrl.u32 %v2751_v25, 16  ;;  %v17074_v25 = vrot.slane %v14496_v9, 9  ;;  %v13512_v9 = vld [vmem:[%s17047_s2 + $0x1b0] sm:$0xff]  }
  0xc0   :  { %12272 = vmatprep.subr.bf16.mxu1 %v14594_v16  ;;  %12398 = vmatprep.subr.bf16.mxu0 %v13508_v4  ;;  %v14683_v14 = vsel %vm14412_vm12, %v17072_v23, %v17071_v12  ;;  %v2810_v61 = vshrl.u32 %v2753_v34, 16  ;;  %v2813_v12 = vshll.u32 %v2753_v34, 16  ;;  %v17079_v23 = vrot.slane %v14498_v20, 9  ;;  %v2759_v20 = vld [vmem:[#allocation2 + $0x38] sm:$0xf] }
  0xc1   :  { %v14691_v59 = vsel %vm14412_vm12, %v17074_v25, %v17073_v18  ;;  %12383 = vmatmul.mubr.bf16.gmra.mrb[8].mxu0 %v17077_v44  ;;  %v17078_v18 = vrot.slane %v14570_v58, 5  ;;  %v17081_v34 = vrot.slane %v14515_v10, 9  ;;  %v2827_v25 = vshll.u32 %v2755_v36, 16 }
  0xc2   :  { %12399 = vmatpush3.bf16.msra.mxu0 %v13508_v4  ;;  %12386 = vmatprep.mubr.bf16.mxu0 %v10890_v26  ;;  %v2791_v58 = vshll.u32 %v14693_v49, 16  ;;  %v2798_v44 = vrot.slane %v2796_v13, 4  ;;  %v17083_v10 = vrot.slane %v14596_v41, 5  ;;  %v17085_v4 = vrot.slane %v14600_v46, 5  ;;  %v14986_v49 = vld [vmem:[#allocation2 + $0x20] sm:$0xe] }
  0xc3   :  { %12273 = vmatpush3.bf16.msra.mxu1 %v14594_v16  ;;  %v14713_v53 = vsel %vm14412_vm12, %v17079_v23, %v17078_v18  ;;  %v14721_v24 = vsel %vm14412_vm12, %v17081_v34, %v17080_v60  ;;  %v2824_v16 = vshrl.u32 %v2755_v36, 16  ;;  %v2801_v18 = vrot.slane %v2799_v3, 5  ;;  %12400 = vmatprep.subr.bf16.mxu0 %v14655_v1  ;;  %v14745_v3 = vld [vmem:[#allocation2 + $0x2c] sm:$0x1]  ;;  %v2757_v60 = vld [vmem:[#allocation2 + $0x30] sm:$0xf] }
  0xc4   :  { %12274 = vmatprep.subr.bf16.mxu1 %v13513_v11  ;;  %v14734_v23 = vsel %vm14412_vm12, %v17084_v55, %v17083_v10  ;;  %v17086_v26 = vrot.slane %v14535_v2, 9  ;;  %v2805_v13 = vshll.u32 %v14695_v39, 16  ;;  %17087 = vst [vmem:[#allocation12_spill] sm:$0xff] %v14745_v3  ;;  %v2788_v34 = vor.u32 %v2787_v57, %v2784_v43  ;;  %v13514_v2 = vld [vmem:[%s17047_s2 + $0x1b8] sm:$0xff]  }
  0xc5   :  { %v2812_v10 = vrot.slane %v2810_v61, 4  ;;  %v2815_v55 = vrot.slane %v2813_v12, 5  ;;  %v2819_v46 = vshll.u32 %v14723_v54, 16  ;;  %v10774_v43 = vcombine.low %v14713_v53, %v14721_v24  ;;  %v14759_v12 = vld [vmem:[#allocation2 + $0x34] sm:$0x1] }
  0xc6   :  { %v14742_v36 = vsel %vm14412_vm12, %v17086_v26, %v17085_v4  ;;  %12259 = vmatmul.mubr.bf16.gmra.mrb[12].mxu1 %v10731_v30  ;;  %v10773_v4 = vcombine.low %v14683_v14, %v14691_v59  ;;  %v13518_v30 = vld [vmem:[%s17047_s2 + $0xc0] sm:$0xff]   ;;  %v2826_v57 = vrot.slane %v2824_v16, 4  ;;  %v2829_v61 = vrot.slane %v2827_v25, 5  ;;  %12401 = vmatpush3.bf16.msra.mxu0 %v14655_v1  ;;  %v14764_v26 = vld [vmem:[#allocation2 + $0x3c] sm:$0x1] }
  0xc7   :  { %12275 = vmatpush3.bf16.msra.mxu1 %v13513_v11  ;;  %12278 = vmatprep.mubr.bf16.mxu1 %v10772_v63  ;;  %v10775_v11 = vcombine.low %v14734_v23, %v14742_v36  ;;  %v2802_v63 = vor.u32 %v2801_v18, %v2798_v44  ;;  %v2838_v14 = vshrl.u32 %v2757_v60, 16  ;;  %v2841_v59 = vshll.u32 %v2757_v60, 16  ;;  %v2761_v60 = vld [vmem:[#allocation2 + $0x40] sm:$0xf] }
  0xc8   :  { %12276 = vmatprep.subr.bf16.mxu1 %v13515_v8  ;;  %12402 = vmatprep.subr.bf16.mxu0 %v13512_v9  ;;  %v14766_v41 = vrot.slane %v2791_v58, 5  ;;  %v2852_v40 = vshrl.u32 %v2759_v20, 16  ;;  %v2855_v53 = vshll.u32 %v2759_v20, 16  ;;  %v14769_v16 = vrot.slane %v2788_v34, 4  ;;  %v2763_v34 = vld [vmem:[#allocation2 + $0x48] sm:$0xf] }
  0xc9   :  { %v14771_v25 = vrot.slane %v2805_v13, 5  ;;  %v2816_v1 = vor.u32 %v2815_v55, %v2812_v10  ;;  %v2833_v6 = vshll.u32 %v14745_v3, 16  ;;  %12387 = vmatmul.mubr.bf16.gmra.mrb[12].mxu0 %v10891_v45  ;;  %v17088_v58 = vrot.slane %v14537_v47, 9  ;;  %v13521_v47 = vld [vmem:[%s17047_s2 + $0xc8] sm:$0xff]  }
  0xca   :  { %v2830_v44 = vor.u32 %v2829_v61, %v2826_v57  ;;  %v2847_v18 = vshll.u32 %v14759_v12, 16  ;;  %v2861_v13 = vshll.u32 %v14764_v26, 16  ;;  %12403 = vmatpush3.bf16.msra.mxu0 %v13512_v9  ;;  %12406 = vmatprep.mubr.bf16.mxu0 %v13516_v42  ;;  %v14793_v29 = vrot.slane %v2802_v63, 4  ;;  %v13522_v57 = vld [vmem:[#allocation2 + $0x30] ss:$8 sps:$4 sm:$0xff]  }
  0xcb   :  { %12277 = vmatpush3.bf16.msra.mxu1 %v13515_v8  ;;  %v14783_v20 = vsel %vm14412_vm12, %v17088_v58, %v1236_v56  ;;  %v14795_v56 = vrot.slane %v2819_v46, 5  ;;  %v2840_v22 = vrot.slane %v2838_v14, 4  ;;  %v2843_v45 = vrot.slane %v2841_v59, 5  ;;  %12404 = vmatprep.subr.bf16.mxu0 %v13514_v2  ;;  %v13519_v8 = vld [vmem:[#allocation2 + $0x20] ss:$8 sps:$4 sm:$0xff]  }
  0xcc   :  { %12294 = vmatprep.subr.bf16.mxu1 %v13518_v30  ;;  %v2854_v10 = vrot.slane %v2852_v40, 4  ;;  %v2857_v9 = vrot.slane %v2855_v53, 5  ;;  %v2866_v42 = vshrl.u32 %v2761_v60, 16  ;;  %v2869_v55 = vshll.u32 %v2761_v60, 16  ;;  %v14804_v46 = vld [vmem:[%s17047_s2 + $0x1c8] sm:$0xff]   ;;  %v13524_v40 = vld [vmem:[%s17047_s2 + $0xd0] sm:$0xff]  }
  0xcd   :  { %v14797_v61 = vrot.slane %v2816_v1, 4  ;;  %v14799_v58 = vrot.slane %v2833_v6, 5  ;;  %v2880_v24 = vshrl.u32 %v2763_v34, 16  ;;  %v2883_v63 = vshll.u32 %v2763_v34, 16  ;;  %v14840_v34 = vld [vmem:[#allocation2 + $0x4c] sm:$0x1] }
  0xce   :  { %12279 = vmatmul.mubr.bf16.vlgmr.msra.gmra.mrb[0].mxu1 %v10773_v4  ;;  %v14809_v14 = vrot.slane %v2830_v44, 4  ;;  %v14811_v4 = vrot.slane %v2847_v18, 5  ;;  %v14813_v59 = vrot.slane %v2861_v13, 5  ;;  %12405 = vmatpush3.bf16.msra.mxu0 %v13514_v2  ;;  %v17090_v53 = vrot.slane %v14542_v31, 9  ;;  %v14838_v31 = vld [vmem:[#allocation2 + $0x44] sm:$0x1] }
  0xcf   :  { %12295 = vmatpush3.bf16.msra.mxu1 %v13518_v30  ;;  %12282 = vmatprep.mubr.bf16.mxu1 %v10774_v43  ;;  %v17089_v30 = vrot.slane %v14628_v5, 5  ;;  %v17091_v1 = vrot.slane %v14309_v27, 5  ;;  %v17092_v44 = vrot.slane %v14560_v33, 9  ;;  %v17093_v2 = vrot.slane %v14562_v52, 9  ;;  %v2765_v13 = vld [vmem:[#allocation2 + $0x60] sm:$0xf] }
  0xd0   :  { %12296 = vmatprep.subr.bf16.mxu1 %v13521_v47  ;;  %12422 = vmatprep.subr.bf16.mxu0 %v13517_v51  ;;  %v2844_v60 = vor.u32 %v2843_v45, %v2840_v22  ;;  %v2858_v27 = vor.u32 %v2857_v9, %v2854_v10  ;;  %v2868_v33 = vrot.slane %v2866_v42, 4  ;;  %v2882_v52 = vrot.slane %v2880_v24, 4  ;;  %v13523_v22 = vld [vmem:[%s17047_s2 + $0x1d0] sm:$0xff]   ;;  %v14851_v9 = vld [vmem:[#allocation2 + $0x64] sm:$0x1] }
  0xd1   :  { %v1241_v43 = vsel %vm14412_vm12, %v17090_v53, %v17089_v30  ;;  %v14828_v18 = vsel %vm14412_vm12, %v17092_v44, %v17091_v1  ;;  %v14836_v5 = vsel %vm14412_vm12, %v17093_v2, %v1248_v28  ;;  %v2871_v30 = vrot.slane %v2869_v55, 5  ;;  %v2767_v53 = vld [vmem:[#allocation2 + $0x68] sm:$0xf]  ;;  %12407 = vmatmul.mubr.bf16.vlgmr.msra.gmra.mrb[0].mxu0 %v13519_v8  ;;  %v14869_v2 = vld [vmem:[#allocation2 + $0x6c] sm:$0x1] }
  0xd2   :  { %v2885_v1 = vrot.slane %v2883_v63, 5  ;;  %v2894_v44 = vshrl.u32 %v2765_v13, 16  ;;  %v2897_v28 = vshll.u32 %v2765_v13, 16  ;;  %v10776_v45 = vcombine.low %v14783_v20, %v1241_v43  ;;  %12423 = vmatpush3.bf16.msra.mxu0 %v13517_v51  ;;  %12410 = vmatprep.mubr.bf16.mxu0 %v13522_v57 }
  0xd3   :  { %12297 = vmatpush3.bf16.msra.mxu1 %v13521_v47  ;;  %v2908_v42 = vshrl.u32 %v2767_v53, 16  ;;  %v2911_v55 = vshll.u32 %v2767_v53, 16  ;;  %v17094_v24 = vrot.slane %v14347_v37, 5  ;;  %v17095_v8 = vrot.slane %v14574_v0, 9  ;;  %12424 = vmatprep.subr.bf16.mxu0 %v14804_v46  ;;  %v13525_v37 = vld [vmem:[#allocation2 + $0x40] ss:$8 sps:$4 sm:$0xff]  }
  0xd4   :  { %v17096_v63 = vrot.slane %v14362_v7, 5  ;;  %v17097_v20 = vrot.slane %v14589_v62, 9  ;;  %v2896_v51 = vrot.slane %v2894_v44, 4  ;;  %v2899_v57 = vrot.slane %v2897_v28, 5  ;;  %12298 = vmatprep.subr.bf16.mxu1 %v13524_v40  ;;  %v13528_v62 = vld [vmem:[#allocation2 + $0x60] ss:$8 sps:$4 sm:$0xff]  }
  0xd5   :  { %v14859_v47 = vsel %vm14412_vm12, %v17095_v8, %v17094_v24  ;;  %v14872_v0 = vrot.slane %v2844_v60, 4  ;;  %v2875_v13 = vshll.u32 %v14838_v31, 16  ;;  %v2910_v53 = vrot.slane %v2908_v42, 4  ;;  %v13526_v60 = vld [vmem:[%s17047_s2 + $0x1d8] sm:$0xff]   ;;  %v13530_v42 = vld [vmem:[%s17047_s2 + $0xe0] sm:$0xff]  }
  0xd6   :  { %v14867_v43 = vsel %vm14412_vm12, %v17097_v20, %v17096_v63  ;;  %v2913_v7 = vrot.slane %v2911_v55, 5  ;;  %12283 = vmatmul.mubr.bf16.gmra.mrb[4].mxu1 %v10775_v11  ;;  %v14878_v24 = vrot.slane %v2858_v27, 4  ;;  %v2872_v8 = vor.u32 %v2871_v30, %v2868_v33  ;;  %v2769_v63 = vld [vmem:[#allocation2 + $0x70] sm:$0xf]  ;;  %v2771_v11 = vld [vmem:[#allocation2 + $0x78] sm:$0xf]  ;;  %12425 = vmatpush3.bf16.msra.mxu0 %v14804_v46 }
  0xd7   :  { %v2886_v44 = vor.u32 %v2885_v1, %v2882_v52  ;;  %v2889_v28 = vshll.u32 %v14840_v34, 16  ;;  %12299 = vmatpush3.bf16.msra.mxu1 %v13524_v40  ;;  %12286 = vmatprep.mubr.bf16.mxu1 %v10776_v45  ;;  %v2903_v23 = vshll.u32 %v14851_v9, 16  ;;  %v2917_v36 = vshll.u32 %v14869_v2, 16  ;;  %v14892_v1 = vld [vmem:[#allocation2 + $0x74] sm:$0x1] }
  0xd8   :  { %v2922_v27 = vshrl.u32 %v2769_v63, 16  ;;  %v2925_v33 = vshll.u32 %v2769_v63, 16  ;;  %12300 = vmatprep.subr.bf16.mxu1 %v13527_v32  ;;  %v10778_v40 = vcombine.low %v14859_v47, %v14867_v43  ;;  %v2900_v30 = vor.u32 %v2899_v57, %v2896_v51  ;;  %v14894_v45 = vld [vmem:[#allocation2 + $0x7c] sm:$0x1]  ;;  %12426 = vmatprep.subr.bf16.mxu0 %v13523_v22  ;;  %v13533_v63 = vld [vmem:[%s17047_s2 + $0xe8] sm:$0xff]   ;;  %v13529_v51 = vld [vmem:[%s17047_s2 + $0x1e0] sm:$0xff]  }
  0xd9   :  { %v2914_v52 = vor.u32 %v2913_v7, %v2910_v53  ;;  %v2936_v6 = vshrl.u32 %v2771_v11, 16  ;;  %v2939_v10 = vshll.u32 %v2771_v11, 16  ;;  %v14899_v46 = vrot.slane %v2872_v8, 4  ;;  %12411 = vmatmul.mubr.bf16.gmra.mrb[4].mxu0 %v13525_v37  ;;  %v13531_v11 = vld [vmem:[#allocation2 + $0x70] ss:$8 sps:$4 sm:$0xff]  }
  0xda   :  { %v2924_v55 = vrot.slane %v2922_v27, 4  ;;  %v2927_v20 = vrot.slane %v2925_v33, 5  ;;  %v14901_v19 = vrot.slane %v2875_v13, 5  ;;  %v14903_v47 = vrot.slane %v2886_v44, 4  ;;  %12427 = vmatpush3.bf16.msra.mxu0 %v13523_v22  ;;  %12414 = vmatprep.mubr.bf16.mxu0 %v13528_v62  ;;  %v13534_v62 = vld [vmem:[#allocation2 + $0x80] ss:$8 sps:$4 sm:$0xff]  }
  0xdb   :  { %v14905_v43 = vrot.slane %v2889_v28, 5  ;;  %12301 = vmatpush3.bf16.msra.mxu1 %v13527_v32  ;;  %v14910_v57 = vrot.slane %v2903_v23, 5  ;;  %v14912_v53 = vrot.slane %v2917_v36, 5  ;;  %v2931_v7 = vshll.u32 %v14892_v1, 16  ;;  %v2773_v32 = vld [vmem:[#allocation2 + $0x80] sm:$0xf]  ;;  %12428 = vmatprep.subr.bf16.mxu0 %v13526_v60 }
  0xdc   :  { %v2945_v8 = vshll.u32 %v14894_v45, 16  ;;  %v14916_v13 = vrot.slane %v2900_v30, 4  ;;  %v14918_v44 = vrot.slane %v2914_v52, 4  ;;  %v2928_v37 = vor.u32 %v2927_v20, %v2924_v55  ;;  %v2775_v28 = vld [vmem:[#allocation2 + $0x88] sm:$0xf]  ;;  %12302 = vmatprep.subr.bf16.mxu1 %v13530_v42 }
  0xdd   :  { %v2938_v23 = vrot.slane %v2936_v6, 4  ;;  %v2941_v27 = vrot.slane %v2939_v10, 5  ;;  %v14920_v36 = vld [vmem:[#allocation2 + $0x84] sm:$0x1]  ;;  %v2950_v33 = vshrl.u32 %v2773_v32, 16  ;;  %v2953_v17 = vshll.u32 %v2773_v32, 16 }
  0xde   :  { %v17098_v22 = vcombine.low %v14828_v18, %v14836_v5  ;;  %v17099_v30 = vrot.slane %v14391_v35, 5  ;;  %v17100_v52 = vrot.slane %v14604_v15, 9  ;;  %v17101_v20 = vrot.slane %v14400_v48, 5  ;;  %v14937_v32 = vld [vmem:[#allocation2 + $0x8c] sm:$0x1]  ;;  %v13536_v15 = vld [vmem:[%s17047_s2 + $0xf0] sm:$0xff]   ;;  %12429 = vmatpush3.bf16.msra.mxu0 %v13526_v60 }
  0xdf   :  { %v17102_v6 = vrot.slane %v14625_v50, 9  ;;  %v2964_v54 = vshrl.u32 %v2775_v28, 16  ;;  %v2967_v18 = vshll.u32 %v2775_v28, 16  ;;  %12303 = vmatpush3.bf16.msra.mxu1 %v13530_v42  ;;  %v13532_v35 = vld [vmem:[%s17047_s2 + $0x1e8] sm:$0xff]   ;;  %v14945_v48 = vrot.slane %v2931_v7, 5  ;;  %12430 = vmatprep.subr.bf16.mxu0 %v13529_v51 }
  0xe0   :  { %12287 = vmatmul.mubr.bf16.gmra.mrb[8].mxu1 %v17098_v22  ;;  %v1261_v55 = vsel %vm14412_vm12, %v17100_v52, %v17099_v30  ;;  %v14947_v50 = vrot.slane %v2945_v8, 5  ;;  %v2952_v5 = vrot.slane %v2950_v33, 4  ;;  %v2955_v22 = vrot.slane %v2953_v17, 5  ;;  %12304 = vmatprep.subr.bf16.mxu1 %v13533_v63  ;;  %v2777_v7 = vld [vmem:[#allocation2 + $0x90] sm:$0xf]  ;;  %v13539_v17 = vld [vmem:[%s17047_s2 + $0xf8] sm:$0xff]  }
  0xe1   :  { %v1265_v10 = vsel %vm14412_vm12, %v17102_v6, %v17101_v20  ;;  %12290 = vmatprep.mubr.bf16.mxu1 %v10778_v40  ;;  %v14949_v30 = vrot.slane %v2928_v37, 4  ;;  %v2966_v42 = vrot.slane %v2964_v54, 4  ;;  %v2969_v28 = vrot.slane %v2967_v18, 5  ;;  %v14965_v8 = vld [vmem:[#allocation2 + $0x94] sm:$0x1]  ;;  %12415 = vmatmul.mubr.bf16.gmra.mrb[8].mxu0 %v13531_v11 }
  0xe2   :  { %v2942_v40 = vor.u32 %v2941_v27, %v2938_v23  ;;  %v2959_v20 = vshll.u32 %v14920_v36, 16  ;;  %v2973_v6 = vshll.u32 %v14937_v32, 16  ;;  %v10779_v39 = vcombine.low %v1261_v55, %v1265_v10  ;;  %v2779_v37 = vld [vmem:[#allocation2 + $0x98] sm:$0xf]  ;;  %v14967_v23 = vld [vmem:[#allocation2 + $0x9c] sm:$0x1]  ;;  %12431 = vmatpush3.bf16.msra.mxu0 %v13529_v51  ;;  %12418 = vmatprep.mubr.bf16.mxu0 %v13534_v62 }
  0xe3   :  { %v2794_v54 = vsel %vm13981_vm9, %v14769_v16, %v14766_v41  ;;  %v2808_v60 = vsel %vm13981_vm9, %v14793_v29, %v14771_v25  ;;  %12305 = vmatpush3.bf16.msra.mxu1 %v13533_v63  ;;  %v13535_v27 = vld [vmem:[%s17047_s2 + $0x1f0] sm:$0xff]   ;;  %v2956_v55 = vor.u32 %v2955_v22, %v2952_v5  ;;  %v2970_v10 = vor.u32 %v2969_v28, %v2966_v42  ;;  %v14980_v62 = vld [vmem:[#allocation2 + $0x18] sm:$0xe] }
  0xe4   :  { %v13540_v33 = vld [vmem:[#allocation2 + $0x8] ss:$8 sps:$4 sm:$0xff]   ;;  %v2978_v41 = vshrl.u32 %v2777_v7, 16  ;;  %v2981_v16 = vshll.u32 %v2777_v7, 16  ;;  %v2987_v25 = vshll.u32 %v14965_v8, 16  ;;  %v2992_v29 = vshrl.u32 %v2779_v37, 16  ;;  %12432 = vmatprep.subr.bf16.mxu0 %v13532_v35  ;;  %12306 = vmatprep.subr.bf16.mxu1 %v13536_v15 }
  0xe5   :  { %v2995_v18 = vshll.u32 %v2779_v37, 16  ;;  %v3001_v52 = vshll.u32 %v14967_v23, 16  ;;  %v13537_v63 = vld [vmem:[#allocation2 + $0x90] ss:$8 sps:$4 sm:$0xff]   ;;  %v14974_v11 = vrot.slane %v2942_v40, 4  ;;  %v14976_v3 = vrot.slane %v2959_v20, 5 }
  0xe6   :  { %v2980_v38 = vrot.slane %v2978_v41, 4  ;;  %v2983_v5 = vrot.slane %v2981_v16, 5  ;;  %v2994_v22 = vrot.slane %v2992_v29, 4  ;;  %v14978_v51 = vld [vmem:[#allocation2 + $0x10] sm:$0xe]  ;;  %v10948_v28 = vcombine.low %v2794_v54, %v2808_v60  ;;  %12433 = vmatpush3.bf16.msra.mxu0 %v13532_v35 }
  0xe7   :  { %v2997_v42 = vrot.slane %v2995_v18, 5  ;;  %12307 = vmatpush3.bf16.msra.mxu1 %v13536_v15  ;;  %v14982_v7 = vrot.slane %v2956_v55, 4  ;;  %v14984_v37 = vrot.slane %v2973_v6, 5  ;;  %v14988_v20 = vld [vmem:[#allocation2 + $0x28] sm:$0xe]  ;;  %v14993_v16 = vrot.slane %v2970_v10, 4  ;;  %12434 = vmatprep.subr.bf16.mxu0 %v13535_v27 }
  0xe8   :  { %12291 = vmatmul.mubr.bf16.gmra.mrb[12].mxu1 %v10779_v39  ;;  %v2984_v40 = vor.u32 %v2983_v5, %v2980_v38  ;;  %v13538_v39 = vld [vmem:[%s17047_s2 + $0x1f8] sm:$0xff]   ;;  %12308 = vmatprep.subr.bf16.mxu1 %v13539_v17  ;;  %v14995_v15 = vrot.slane %v2987_v25, 5  ;;  %v14997_v60 = vrot.slane %v3001_v52, 5  ;;  %v14999_v6 = vld [vmem:[#allocation2 + $0x30] sm:$0xe] }
  0xe9   :  { %12310 = vmatprep.mubr.bf16.mxu1 %v13540_v33  ;;  %v13542_v41 = vld [vmem:[#allocation2 + $0x18] ss:$8 sps:$4 sm:$0xff]   ;;  %v2998_v54 = vor.u32 %v2997_v42, %v2994_v22  ;;  %v13544_v38 = vld [vmem:[#allocation2 + $0x28] ss:$8 sps:$4 sm:$0xff]   ;;  %12419 = vmatmul.mubr.bf16.gmra.mrb[12].mxu0 %v13537_v63  ;;  %v2822_v42 = vsel %vm13981_vm9, %v14797_v61, %v14795_v56  ;;  %v2850_v56 = vsel %vm13981_vm9, %v14872_v0, %v14811_v4 }
  0xea   :  { %v15005_v18 = vld [vmem:[#allocation2 + $0x38] sm:$0xe]  ;;  %v15007_v10 = vrot.slane %v2984_v40, 4  ;;  %v15010_v52 = vld [vmem:[#allocation2 + $0x40] sm:$0xe]  ;;  %v2836_v40 = vsel %vm13981_vm9, %v14809_v14, %v14799_v58  ;;  %12435 = vmatpush3.bf16.msra.mxu0 %v13535_v27  ;;  %12438 = vmatprep.mubr.bf16.mxu0 %v10948_v28  ;;  %v2864_v61 = vsel %vm13981_vm9, %v14878_v24, %v14813_v59  ;;  %v13543_v27 = vld [vmem:[%s17047_s2 + $0x208] sm:$0xff]  }
  0xeb   :  { %v15012_v5 = vld [vmem:[#allocation2 + $0x48] sm:$0xe]  ;;  %12309 = vmatpush3.bf16.msra.mxu1 %v13539_v17  ;;  %v13541_v22 = vld [vmem:[%s17047_s2 + $0x200] sm:$0xff]   ;;  %v15025_v25 = vrot.slane %v2998_v54, 4  ;;  %v15042_v54 = vld [vmem:[#allocation2 + $0x70] sm:$0xe]  ;;  %12436 = vmatprep.subr.bf16.mxu0 %v13538_v39  ;;  %v10949_v35 = vcombine.low %v2822_v42, %v2836_v40  ;;  %v10950_v0 = vcombine.low %v2850_v56, %v2864_v61 }
  0xec   :  { %v15028_v63 = vld [vmem:[#allocation2 + $0x60] sm:$0xe]  ;;  %v15030_v17 = vld [vmem:[#allocation2 + $0x68] sm:$0xe]  ;;  %v15044_v29 = vld [vmem:[#allocation2 + $0x78] sm:$0xe] }
  0xed   :  { %17103 = vst [vmem:[#allocation13_spill] sm:$0xff] %v15028_v63  ;;  %v15050_v55 = vld [vmem:[#allocation2 + $0x80] sm:$0xe]  ;;  %v15054_v58 = vld [vmem:[#allocation2 + $0x88] sm:$0xe]  ;;  %v3301_v59 = vrot.slane %v14869_v2, 5 }
  0xee   :  { %v15056_v14 = vld [vmem:[#allocation2 + $0x90] sm:$0xe]  ;;  %v15061_v4 = vld [vmem:[#allocation2 + $0x98] sm:$0xe]  ;;  %12437 = vmatpush3.bf16.msra.mxu0 %v13538_v39  ;;  %v10975_v40 = vrot.slane %v15044_v29, 9  ;;  %v3309_v63 = vrot.slane %v14894_v45, 5 }
  0xef   :  { %v13546_v28 = vld [vmem:[#allocation2 + $0x38] ss:$8 sps:$4 sm:$0xff]   ;;  %12454 = vmatprep.subr.bf16.mxu0 %v13541_v22  ;;  %v3313_v39 = vrot.slane %v14920_v36, 5  ;;  %v13545_v56 = vld [vmem:[%s17047_s2 + $0x210] sm:$0xff]   ;;  %v10978_v33 = vrot.slane %v15056_v14, 9  ;;  %v3321_v42 = vrot.slane %v14965_v8, 5 }
  0xf0   :  { %12311 = vmatmul.mubr.bf16.vlgmr.msra.gmra.mrb[0].mxu1 %v13542_v41  ;;  %v13548_v24 = vld [vmem:[#allocation2 + $0x58] ss:$8 sps:$4 sm:$0xff]   ;;  %v3325_v41 = vrot.slane %v14967_v23, 5  ;;  %v3310_v2 = vsel %vm14412_vm12, %v10975_v40, %v3309_v63 }
  0xf1   :  { %12314 = vmatprep.mubr.bf16.mxu1 %v13544_v38  ;;  %12439 = vmatmul.mubr.bf16.vlgmr.msra.gmra.mrb[0].mxu0 %v10949_v35  ;;  %v2878_v38 = vsel %vm13981_vm9, %v14899_v46, %v14901_v19  ;;  %v2892_v35 = vsel %vm13981_vm9, %v14903_v47, %v14905_v43  ;;  %v2920_v19 = vsel %vm13981_vm9, %v14918_v44, %v14912_v53  ;;  %v13547_v47 = vld [vmem:[%s17047_s2 + $0x218] sm:$0xff]  }
  0xf2   :  { %12455 = vmatpush3.bf16.msra.mxu0 %v13541_v22  ;;  %12442 = vmatprep.mubr.bf16.mxu0 %v10950_v0  ;;  %v2906_v22 = vsel %vm13981_vm9, %v14916_v13, %v14910_v57  ;;  %v10951_v46 = vcombine.low %v2878_v38, %v2892_v35  ;;  %v13550_v0 = vld [vmem:[#allocation2 + $0x68] ss:$8 sps:$4 sm:$0xff]   ;;  %v13552_v61 = vld [vmem:[#allocation2 + $0x78] ss:$8 sps:$4 sm:$0xff]   ;;  %v2934_v53 = vsel %vm13981_vm9, %v14949_v30, %v14945_v48 }
  0xf3   :  { %12456 = vmatprep.subr.bf16.mxu0 %v13543_v27  ;;  %v10952_v43 = vcombine.low %v2906_v22, %v2920_v19  ;;  %v13549_v57 = vld [vmem:[%s17047_s2 + $0x220] sm:$0xff]   ;;  %v2948_v13 = vsel %vm13981_vm9, %v14974_v11, %v14947_v50  ;;  %v2962_v44 = vsel %vm13981_vm9, %v14982_v7, %v14976_v3  ;;  %v13551_v48 = vld [vmem:[%s17047_s2 + $0x228] sm:$0xff]   ;;  %v13553_v3 = vld [vmem:[%s17047_s2 + $0x230] sm:$0xff]   ;;  %v2990_v11 = vsel %vm13981_vm9, %v15007_v10, %v14995_v15 }
  0xf4   :  { %v13554_v30 = vld [vmem:[#allocation2 + $0x88] ss:$8 sps:$4 sm:$0xff]   ;;  %v3004_v7 = vsel %vm13981_vm9, %v15025_v25, %v14997_v60  ;;  %v17110_v22 = vrot.slane %v14980_v62, 9  ;;  %v13555_v60 = vld [vmem:[%s17047_s2 + $0x238] sm:$0xff]   ;;  %v3322_v36 = vsel %vm14412_vm12, %v10978_v33, %v3321_v42 }
  0xf5   :  { %v10955_v10 = vcombine.low %v2990_v11, %v3004_v7  ;;  %v17126_v11 = vld [vmem:[#allocation13_spill] sm:$0xff] }
  0xf6   :  { %12457 = vmatpush3.bf16.msra.mxu0 %v13543_v27  ;;  %v2976_v27 = vsel %vm13981_vm9, %v14993_v16, %v14984_v37  ;;  %v17104_v37 = vld [vmem:[#allocation9_spill] sm:$0xff]  ;;  %v17127_v7 = vrot.slane %v17126_v11, 9 }
  0xf7   :  { %12458 = vmatprep.subr.bf16.mxu0 %v13545_v56  ;;  %v10954_v50 = vcombine.low %v2962_v44, %v2976_v27  ;;  %v17105_v16 = vrot.slane %v17104_v37, 5  ;;  %v17120_v27 = vrot.slane %v15005_v18, 9 }
  0xf8   :  { %12315 = vmatmul.mubr.bf16.gmra.mrb[4].mxu1 %v13546_v28  ;;  %v10953_v28 = vcombine.low %v2934_v53, %v2948_v13  ;;  %v17117_v53 = vrot.slane %v14759_v12, 5  ;;  %v17118_v13 = vrot.slane %v14999_v6, 9  ;;  %v17122_v12 = vrot.slane %v15010_v52, 9 }
  0xf9   :  { %12318 = vmatprep.mubr.bf16.mxu1 %v13548_v24  ;;  %12443 = vmatmul.mubr.bf16.gmra.mrb[4].mxu0 %v10951_v46  ;;  %v17106_v24 = vrot.slane %v14978_v51, 9  ;;  %v17111_v51 = vld [vmem:[#allocation11_spill] sm:$0xff]  ;;  %v17113_v46 = vrot.slane %v14986_v49, 9  ;;  %v17119_v49 = vrot.slane %v14764_v26, 5  ;;  %v17124_v26 = vrot.slane %v15012_v5, 9 }
  0xfa   :  { %12459 = vmatpush3.bf16.msra.mxu0 %v13545_v56  ;;  %12446 = vmatprep.mubr.bf16.mxu0 %v10952_v43  ;;  %v17112_v19 = vrot.slane %v17111_v51, 5  ;;  %v3282_v44 = vsel %vm14412_vm12, %v17118_v13, %v17117_v53  ;;  %v17129_v5 = vrot.slane %v14892_v1, 5  ;;  %v17132_v1 = vrot.slane %v14937_v32, 5 }
  0xfb   :  { %12460 = vmatprep.subr.bf16.mxu0 %v13547_v47  ;;  %v3266_v56 = vsel %vm14412_vm12, %v17106_v24, %v17105_v16  ;;  %v17134_v32 = vrot.slane %v15061_v4, 9 }
  0xfc   :  { %v3274_v62 = vsel %vm14412_vm12, %v17113_v46, %v17112_v19 }
  0xfe   :  { %12461 = vmatpush3.bf16.msra.mxu0 %v13547_v47  ;;  %v17114_v47 = vld [vmem:[#allocation12_spill] sm:$0xff] }
  0xff   :  { %12462 = vmatprep.subr.bf16.mxu0 %v13549_v57  ;;  %v17115_v43 = vrot.slane %v17114_v47, 5 }
 0x100   :  { %12319 = vmatmul.mubr.bf16.gmra.mrb[8].mxu1 %v13550_v0  ;;  %v17116_v0 = vrot.slane %v14988_v20, 9 }
 0x101   :  { %12322 = vmatprep.mubr.bf16.mxu1 %v13552_v61  ;;  %12447 = vmatmul.mubr.bf16.gmra.mrb[8].mxu0 %v10953_v28  ;;  %v17108_v61 = vld [vmem:[#allocation10_spill] sm:$0xff]  ;;  %v3286_v28 = vsel %vm14412_vm12, %v17120_v27, %v17119_v49 }
 0x102   :  { %12463 = vmatpush3.bf16.msra.mxu0 %v13549_v57  ;;  %12450 = vmatprep.mubr.bf16.mxu0 %v10954_v50  ;;  %v17109_v35 = vrot.slane %v17108_v61, 5  ;;  %v3278_v57 = vsel %vm14412_vm12, %v17116_v0, %v17115_v43  ;;  %v10998_v20 = vcombine.low %v3282_v44, %v3286_v28  ;;  %v17121_v50 = vrot.slane %v14838_v31, 5 }
 0x103   :  { %12464 = vmatprep.subr.bf16.mxu0 %v13551_v48  ;;  %v17128_v31 = vrot.slane %v15030_v17, 9  ;;  %v17131_v17 = vrot.slane %v15050_v55, 9  ;;  %v3326_v55 = vsel %vm14412_vm12, %v17134_v32, %v3325_v41 }
 0x104   :  { %v3270_v15 = vsel %vm14412_vm12, %v17110_v22, %v17109_v35  ;;  %v3290_v6 = vsel %vm14412_vm12, %v17122_v12, %v17121_v50  ;;  %v11003_v29 = vcombine.low %v3322_v36, %v3326_v55 }
 0x105   :  { %v10996_v25 = vcombine.low %v3266_v56, %v3270_v15  ;;  %v3302_v52 = vsel %vm14412_vm12, %v17128_v31, %v3301_v59  ;;  %v3314_v59 = vsel %vm14412_vm12, %v17131_v17, %v3313_v39 }
 0x106   :  { %12465 = vmatpush3.bf16.msra.mxu0 %v13551_v48  ;;  %v10997_v48 = vcombine.low %v3274_v62, %v3278_v57 }
 0x107   :  { %12466 = vmatprep.subr.bf16.mxu0 %v13553_v3 }
 0x108   :  { %12323 = vmatmul.mubr.bf16.gmra.mrb[12].mxu1 %v13554_v30  ;;  %v17123_v30 = vrot.slane %v14840_v34, 5 }
 0x109   :  { %12451 = vmatmul.mubr.bf16.gmra.mrb[12].mxu0 %v10955_v10 }
 0x10a   :  { %12467 = vmatpush3.bf16.msra.mxu0 %v13553_v3  ;;  %12470 = vmatprep.mubr.bf16.mxu0 %v10996_v25  ;;  %v3294_v18 = vsel %vm14412_vm12, %v17124_v26, %v17123_v30  ;;  %v17125_v3 = vrot.slane %v14851_v9, 5  ;;  %v17130_v9 = vrot.slane %v15042_v54, 9  ;;  %v17133_v54 = vrot.slane %v15054_v58, 9 }
 0x10b   :  { %12468 = vmatprep.subr.bf16.mxu0 %v13555_v60  ;;  %v10999_v34 = vcombine.low %v3290_v6, %v3294_v18 }
 0x10c   :  { %v3298_v37 = vsel %vm14412_vm12, %v17127_v7, %v17125_v3  ;;  %v3306_v24 = vsel %vm14412_vm12, %v17130_v9, %v17129_v5  ;;  %v3318_v56 = vsel %vm14412_vm12, %v17133_v54, %v17132_v1 }
 0x10d   :  { %v11000_v16 = vcombine.low %v3298_v37, %v3302_v52  ;;  %v11001_v45 = vcombine.low %v3306_v24, %v3310_v2  ;;  %v11002_v61 = vcombine.low %v3314_v59, %v3318_v56 }
 0x10e   :  { %12469 = vmatpush3.bf16.msra.mxu0 %v13555_v60 }
 0x111   :  { %12471 = vmatmul.mubr.bf16.vlgmr.msra.gmra.mrb[0].mxu0 %v10997_v48 }
 0x112   :  { %12474 = vmatprep.mubr.bf16.mxu0 %v10998_v20 }
 0x119   :  { %12475 = vmatmul.mubr.bf16.gmra.mrb[4].mxu0 %v10999_v34 }
 0x11a   :  { %12478 = vmatprep.mubr.bf16.mxu0 %v11000_v16 }
 0x121   :  { %12479 = vmatmul.mubr.bf16.gmra.mrb[8].mxu0 %v11001_v45 }
 0x122   :  { %12482 = vmatprep.mubr.bf16.mxu0 %v11002_v61 }
 0x129   :  { %12483 = vmatmul.mubr.bf16.gmra.mrb[12].mxu0 %v11003_v29 }
 0x12a   :  { %8 = vsyncpa [#allocation4], 0  ;;  %s13818_s24 = smov 8   ;;  %v13556_v57 = vld [vmem:[%s17047_s2 + $0x280] sm:$0xff]   ;;  %v13557_v20 = vld [vmem:[%s17047_s2 + $0x288] sm:$0xff]   ;;  %vm3601_vm13 = vcmask 97344  }
 0x12b   :  { %12486 = vmatprep.subr.bf16.mxu1 %v13556_v57  ;;  %v13558_v12 = vld [vmem:[%s17047_s2 + $0x290] sm:$0xff]   ;;  %v13559_v31 = vld [vmem:[%s17047_s2 + $0x298] sm:$0xff]   ;;  %v13560_v24 = vld [vmem:[%s17047_s2 + $0x2a0] sm:$0xff]   ;;  %vm3916_vm14 = vcmask 93184   ;;  %vm3921_vm15 = vcmask 90112   ;;  %s13819_s8 = smov 12  }
 0x12c   :  { %12487 = vmatpush3.bf16.msra.mxu1 %v13556_v57  ;;  %v13561_v1 = vld [vmem:[%s17047_s2 + $0x2a8] sm:$0xff]   ;;  %v13562_v54 = vld [vmem:[%s17047_s2 + $0x2b0] sm:$0xff]   ;;  %v13563_v56 = vld [vmem:[%s17047_s2 + $0x2b8] sm:$0xff]   ;;  %vm7122_vm4 = vcmask 130144   ;;  %vm7437_vm5 = vcmask 125952   ;;  %vm7442_vm6 = vcmask 122880  }
 0x12d   :  { %12488 = vmatprep.subr.bf16.mxu1 %v13557_v20  ;;  %v15274_v45 = vld [vmem:[%s17047_s2 + $0x240] sm:$0xff]   ;;  %vm15318_vm0 = vmand %vm3916_vm14, %vm388_vm2  ;;  %s13821_s5 = smov [#allocation3]  }
 0x12e   :  { %v4016_v61 = vld [vmem:[#allocation2] sm:$0xf]  ;;  %vm15324_vm1 = vmand %vm3921_vm15, %vm394_vm3  ;;  %s10665_s6 = sshll.u32 %s13821_s5, 4  ;;  %s10666_s6 = int_to_ptr.vmem [resolvable:$true] %s10665_s6 }
 0x12f   :  { %v4066_v55 = vshrl.u32 %v4016_v61, 16  ;;  %v4069_v29 = vshll.u32 %v4016_v61, 16  ;;  %vm16193_vm7 = vmand %vm7437_vm5, %vm388_vm2  ;;  %vm10643_vm2 = vcmask 162944   ;;  %s13793_s0 = scalar_lea.vmem %s10666_s6, 2048  ;;  %p13798_p1 = scmp.lt.s32.totalorder %s10666_s6, %s10666_s6 }
 0x130   :  { %12489 = vmatpush3.bf16.msra.mxu1 %v13557_v20  ;;  %vm16200_vm8 = vmand %vm7442_vm6, %vm394_vm3  ;;  %p13794_p0 = scmp.ne.s32.totalorder %s10666_s6, %s13793_s0  ;;  %p13799_p2 = scmp.lt.s32.totalorder %s13793_s0, %s13793_s0 }
 0x131   :  { %12490 = vmatprep.subr.bf16.mxu1 %v13558_v12 }
 0x132   :  { %p13800_p3 = por %p13799_p2, %p13798_p1 }
 0x134   :  { %12491 = vmatpush3.bf16.msra.mxu1 %v13558_v12  ;;  %p13801_p4 = pnand %p13800_p3, %p13794_p0 }
 0x135   :  { %12492 = vmatprep.subr.bf16.mxu1 %v13559_v31 }
 0x138   :  { %12493 = vmatpush3.bf16.msra.mxu1 %v13559_v31 }
 0x139   :  { %12494 = vmatprep.subr.bf16.mxu1 %v13560_v24 }
 0x13c   :  { %12495 = vmatpush3.bf16.msra.mxu1 %v13560_v24 }
 0x13d   :  { %12496 = vmatprep.subr.bf16.mxu1 %v13561_v1 }
 0x140   :  { %12497 = vmatpush3.bf16.msra.mxu1 %v13561_v1 }
 0x141   :  { %12498 = vmatprep.subr.bf16.mxu1 %v13562_v54 }
 0x144   :  { %12499 = vmatpush3.bf16.msra.mxu1 %v13562_v54 }
 0x145   :  { %12500 = vmatprep.subr.bf16.mxu1 %v13563_v56 }
 0x148   :  { %12501 = vmatpush3.bf16.msra.mxu1 %v13563_v56 }
 0x149   :  { %12518 = vmatprep.subr.bf16.mxu1 %v15274_v45 }
 0x1c3   :  { %v12312_v63 = vpop.f32.mrb[0].mxu1 }
 0x1c4   :  { %v1639_v58 = vpop.f32.mrb[1].mxu1 }
 0x1c5   :  { %v12313_v40 = vpop.f32.mrb[2].mxu1 }
 0x1c6   :  { %v1642_v39 = vpop.f32.mrb[3].mxu1 }
 0x1cb   :  { %v12316_v8 = vpop.f32.mrb[4].mxu1 }
 0x1cc   :  { %v1655_v35 = vpop.f32.mrb[5].mxu1 }
 0x1cd   :  { %v12317_v14 = vpop.f32.mrb[6].mxu1 }
 0x1ce   :  { %v1658_v22 = vpop.f32.mrb[7].mxu1 }
 0x1d3   :  { %v12320_v15 = vpop.f32.mrb[8].mxu1 }
 0x1d4   :  { %v1671_v33 = vpop.f32.mrb[9].mxu1 }
 0x1d5   :  { %v12321_v42 = vpop.f32.mrb[10].mxu1 }
 0x1d6   :  { %v1674_v23 = vpop.f32.mrb[11].mxu1 }
 0x1db   :  { %v12324_v10 = vpop.f32.mrb[12].mxu1 }
 0x1dc   :  { %v1687_v4 = vpop.f32.mrb[13].mxu1 }
 0x1dd   :  { %v12325_v60 = vpop.f32.mrb[14].mxu1 }
 0x1de   :  { %v1690_v25 = vpop.f32.mrb[15].mxu1 }
 0x1e4   :  { %v12472_v41 = vpop.f32.mrb[0].mxu0 }
 0x1e5   :  { %v13078_v51 = vadd.f32 %v12472_v41, %v12312_v63  ;;  %v3458_v19 = vpop.f32.mrb[1].mxu0  ;;  %v11012_v63 = vld [vmem:[%s17046_s1 + $0x2] sm:$0x3] }
 0x1e6   :  { %v13079_v46 = vadd.f32 %v3458_v19, %v1639_v58  ;;  %v12473_v62 = vpop.f32.mrb[2].mxu0  ;;  %v4024_v58 = vld [vmem:[#allocation2 + $0x50] sm:$0xf] }
 0x1e7   :  { %v13080_v47 = vadd.f32 %v12473_v62, %v12313_v40  ;;  %v3461_v43 = vpop.f32.mrb[3].mxu0  ;;  %3557 = vrot.lane.b32.xlu1 %v13078_v51, %s13818_s24 }
 0x1e8   :  { %v13081_v0 = vadd.f32 %v3461_v43, %v1642_v39  ;;  %3553 = vrot.lane.b32.xlu0 %v13079_v46, %s13818_s24  ;;  %v17135_v39 = vld [vmem:[#allocation6_spill] sm:$0xff] }
 0x1eb   :  { %3559 = vrot.lane.b32.xlu1 %v13080_v47, %s13818_s24 }
 0x1ec   :  { %v12476_v53 = vpop.f32.mrb[4].mxu0  ;;  %3555 = vrot.lane.b32.xlu0 %v13081_v0, %s13818_s24 }
 0x1ed   :  { %v13082_v13 = vadd.f32 %v12476_v53, %v12316_v8  ;;  %v3474_v44 = vpop.f32.mrb[5].mxu0  ;;  %v15283_v8 = vrot.slane %v11012_v63, %v17135_v39 }
 0x1ee   :  { %v13083_v49 = vadd.f32 %v3474_v44, %v1655_v35  ;;  %v12477_v27 = vpop.f32.mrb[6].mxu0 }
 0x1ef   :  { %v13084_v28 = vadd.f32 %v12477_v27, %v12317_v14  ;;  %v3477_v48 = vpop.f32.mrb[7].mxu0  ;;  %v4068_v14 = vrot.slane %v4066_v55, 4  ;;  %v3935_v55 = vld [vmem:[#allocation2 + $0x1c] sm:$0x1] }
 0x1f0   :  { %v13085_v50 = vadd.f32 %v3477_v48, %v1658_v22  ;;  %3561 = vrot.lane.b32.xlu0 %v13083_v49, %s13818_s24  ;;  %v4071_v22 = vrot.slane %v4069_v29, 5  ;;  %v3918_v29 = vld [vmem:[#allocation2 + $0x8] sm:$0xf] }
 0x1f2   :  { %3563 = vrot.lane.b32.xlu1 %v13085_v50, %s13818_s24  ;;  %v4072_v51 = vor.u32 %v4071_v22, %v4068_v14 }
 0x1f4   :  { %v12480_v6 = vpop.f32.mrb[8].mxu0  ;;  %3565 = vrot.lane.b32.xlu0 %v13082_v13, %s13818_s24 }
 0x1f5   :  { %v13086_v30 = vadd.f32 %v12480_v6, %v12320_v15  ;;  %v3490_v26 = vpop.f32.mrb[9].mxu0  ;;  %v4178_v15 = vshrl.u32 %v4024_v58, 16 }
 0x1f6   :  { %v13087_v18 = vadd.f32 %v3490_v26, %v1671_v33  ;;  %v12481_v3 = vpop.f32.mrb[10].mxu0  ;;  %v4181_v33 = vshll.u32 %v4024_v58, 16 }
 0x1f7   :  { %v13088_v11 = vadd.f32 %v12481_v3, %v12321_v42  ;;  %v3493_v7 = vpop.f32.mrb[11].mxu0  ;;  %v17136_v42 = vld [vmem:[#allocation7_spill] sm:$0xff]  ;;  %v4180_v62 = vrot.slane %v4178_v15, 4  ;;  %v15305_v3 = vld [vmem:[#allocation2 + $0x54] sm:$0x1] }
 0x1f8   :  { %v13089_v37 = vadd.f32 %v3493_v7, %v1674_v23  ;;  %3569 = vrot.lane.b32.xlu1 %v13087_v18, %s13818_s24  ;;  %v15288_v23 = vrot.slane %v11012_v63, %v17136_v42  ;;  %v4183_v47 = vrot.slane %v4181_v33, 5  ;;  %v3923_v15 = vld [vmem:[#allocation2 + $0xc] sm:$0x1] }
 0x1fa   :  { %3571 = vrot.lane.b32.xlu0 %v13089_v37, %s13818_s24  ;;  %v4184_v12 = vor.u32 %v4183_v47, %v4180_v62 }
 0x1fc   :  { %v12484_v52 = vpop.f32.mrb[12].mxu0  ;;  %3573 = vrot.lane.b32.xlu1 %v13086_v30, %s13818_s24  ;;  %v15314_v24 = vrot.slane %v4184_v12, 4  ;;  %v3926_v12 = vld [vmem:[#allocation2 + $0x10] sm:$0xf] }
 0x1fd   :  { %v13090_v34 = vadd.f32 %v12484_v52, %v12324_v10  ;;  %v3506_v16 = vpop.f32.mrb[13].mxu0 }
 0x1fe   :  { %v13091_v5 = vadd.f32 %v3506_v16, %v1687_v4  ;;  %v12485_v9 = vpop.f32.mrb[14].mxu0  ;;  %3575 = vrot.lane.b32.xlu0 %v13088_v11, %s13818_s24  ;;  %v4049_v4 = vld [vmem:[#allocation2 + $0x4] sm:$0x1] }
 0x1ff   :  { %v13092_v2 = vadd.f32 %v12485_v9, %v12325_v60  ;;  %v3509_v17 = vpop.f32.mrb[15].mxu0  ;;  %v4075_v19 = vshll.u32 %v4049_v4, 16 }
 0x200   :  { %v13093_v59 = vadd.f32 %v3509_v17, %v1690_v25  ;;  %3577 = vrot.lane.b32.xlu1 %v13091_v5, %s13818_s24  ;;  %v3932_v17 = vld [vmem:[#allocation2 + $0x18] sm:$0xf] }
 0x201   :  { %v15299_v48 = vrot.slane %v4075_v19, 5 }
 0x202   :  { %3579 = vrot.lane.b32.xlu0 %v13093_v59, %s13818_s24 }
 0x204   :  { %3581 = vrot.lane.b32.xlu1 %v13090_v34, %s13818_s24  ;;  %v4187_v34 = vshll.u32 %v15305_v3, 16 }
 0x206   :  { %3567 = vrot.lane.b32.xlu0 %v13084_v28, %s13818_s24  ;;  %v15297_v28 = vrot.slane %v4072_v51, 4 }
 0x208   :  { %3583 = vrot.lane.b32.xlu1 %v13092_v2, %s13818_s24  ;;  %v4078_v52 = vsel %vm13981_vm9, %v15297_v28, %v15299_v48 }
 0x259   :  { %v3558_v36 = vpop.permute.xlu1 %3557 }
 0x25a   :  { %3604 = vst.msk [vmem:[#allocation3 + $0x10] sm:$0xff] %vm3601_vm13, %v3558_v36  ;;  %v3554_v32 = vpop.permute.xlu0 %3553 }
 0x25b   :  { %3602 = vst.msk [vmem:[#allocation3] sm:$0xff] %vm3601_vm13, %v3554_v32 }
 0x25d   :  { %v3560_v40 = vpop.permute.xlu1 %3559 }
 0x25e   :  { %3605 = vst.msk [vmem:[#allocation3 + $0x18] sm:$0xff] %vm3601_vm13, %v3560_v40  ;;  %v3556_v35 = vpop.permute.xlu0 %3555 }
 0x25f   :  { %3603 = vst.msk [vmem:[#allocation3 + $0x8] sm:$0xff] %vm3601_vm13, %v3556_v35 }
 0x261   :  { %v3622_v10 = vld [vmem:[#allocation3 + $0x10] sm:$0xff] }
 0x262   :  { %v3642_v60 = vmul.f32 %v15283_v8, %v3622_v10  ;;  %v3620_v25 = vld [vmem:[#allocation3] sm:$0xff]  ;;  %v3562_v41 = vpop.permute.xlu0 %3561 }
 0x263   :  { %v3640_v46 = vmul.f32 %v15283_v8, %v3620_v25  ;;  %3606 = vst.msk [vmem:[#allocation3 + $0x20] sm:$0xff] %vm3601_vm13, %v3562_v41 }
 0x264   :  { %v3662_v43 = vadd.f32 %v15288_v23, %v3642_v60  ;;  %v3564_v0 = vpop.permute.xlu1 %3563 }
 0x265   :  { %v3660_v57 = vadd.f32 %v15288_v23, %v3640_v46  ;;  %v3623_v53 = vld [vmem:[#allocation3 + $0x18] sm:$0xff]  ;;  %3607 = vst.msk [vmem:[#allocation3 + $0x28] sm:$0xff] %vm3601_vm13, %v3564_v0 }
 0x266   :  { %v3678_v13 = vmax.f32 %v3662_v43, 0.0  ;;  %v3643_v44 = vmul.f32 %v15283_v8, %v3623_v53  ;;  %v3621_v49 = vld [vmem:[#allocation3 + $0x8] sm:$0xff]  ;;  %v3566_v27 = vpop.permute.xlu0 %3565 }
 0x267   :  { %v3676_v20 = vmax.f32 %v3660_v57, 0.0  ;;  %v3641_v50 = vmul.f32 %v15283_v8, %v3621_v49  ;;  %3608 = vst.msk [vmem:[#allocation3 + $0x30] sm:$0xff] %vm3601_vm13, %v3566_v27 }
 0x268   :  { %v11736_v6 = vpack.c.bf16 %v3678_v13, %v3678_v13  ;;  %v3663_v30 = vadd.f32 %v15288_v23, %v3643_v44  ;;  %v3938_v13 = vld [vmem:[#allocation2 + $0x20] sm:$0xf]  ;;  %v3941_v44 = vld [vmem:[#allocation2 + $0x24] sm:$0x1] }
 0x269   :  { %v11734_v26 = vpack.c.bf16 %v3676_v20, %v3676_v20  ;;  %v3661_v18 = vadd.f32 %v15288_v23, %v3641_v50 }
 0x26a   :  { %v3773_v11 = vshrl.u32 %v11736_v6, 16  ;;  %v3679_v7 = vmax.f32 %v3663_v30, 0.0  ;;  %v3624_v37 = vld [vmem:[#allocation3 + $0x20] sm:$0xff]  ;;  %v3570_v31 = vpop.permute.xlu1 %3569  ;;  %v3776_v1 = vshll.u32 %v11736_v6, 16  ;;  %v3929_v6 = vld [vmem:[#allocation2 + $0x14] sm:$0x1] }
 0x26b   :  { %v3757_v16 = vshrl.u32 %v11734_v26, 16  ;;  %v3677_v5 = vmax.f32 %v3661_v18, 0.0  ;;  %v3644_v9 = vmul.f32 %v15283_v8, %v3624_v37  ;;  %3610 = vst.msk [vmem:[#allocation3 + $0x40] sm:$0xff] %vm3601_vm13, %v3570_v31  ;;  %v3760_v54 = vshll.u32 %v11734_v26, 16 }
 0x26c   :  { %v3775_v59 = vrot.slane %v3773_v11, 7  ;;  %v11737_v56 = vpack.c.bf16 %v3679_v7, %v3679_v7  ;;  %v3625_v61 = vld [vmem:[#allocation3 + $0x28] sm:$0xff]  ;;  %v3572_v36 = vpop.permute.xlu0 %3571 }
 0x26d   :  { %v3759_v63 = vrot.slane %v3757_v16, 7  ;;  %v11735_v58 = vpack.c.bf16 %v3677_v5, %v3677_v5  ;;  %v3664_v40 = vadd.f32 %v15288_v23, %v3644_v9  ;;  %v3645_v35 = vmul.f32 %v15283_v8, %v3625_v61  ;;  %3611 = vst.msk [vmem:[#allocation3 + $0x48] sm:$0xff] %vm3601_vm13, %v3572_v36 }
 0x26e   :  { %v3778_v14 = vor.u32 %v3776_v1, %v3775_v59  ;;  %v3779_v22 = vrot.slane %v3775_v59, 4  ;;  %v3781_v33 = vshrl.u32 %v11737_v56, 16  ;;  %v3784_v10 = vshll.u32 %v11737_v56, 16  ;;  %v3574_v4 = vpop.permute.xlu1 %3573  ;;  %v3626_v19 = vld [vmem:[#allocation3 + $0x30] sm:$0xff] }
 0x26f   :  { %v3762_v60 = vor.u32 %v3760_v54, %v3759_v63  ;;  %v3763_v25 = vrot.slane %v3759_v63, 4  ;;  %v3765_v41 = vshrl.u32 %v11735_v58, 16  ;;  %v3768_v51 = vshll.u32 %v11735_v58, 16  ;;  %3612 = vst.msk [vmem:[#allocation3 + $0x50] sm:$0xff] %vm3601_vm13, %v3574_v4 }
 0x270   :  { %v3933_v46 = vsel %vm15318_vm0, %v3778_v14, %v3932_v17  ;;  %v3936_v62 = vsel %vm15324_vm1, %v3779_v22, %v3935_v55  ;;  %v3783_v47 = vrot.slane %v3781_v33, 7  ;;  %v3680_v43 = vmax.f32 %v3664_v40, 0.0  ;;  %v3576_v0 = vpop.permute.xlu0 %3575  ;;  %v3947_v14 = vld [vmem:[#allocation2 + $0x2c] sm:$0x1] }
 0x271   :  { %3934 = vst [vmem:[#allocation2 + $0x18] sm:$0xf] %v3933_v46  ;;  %3937 = vst [vmem:[#allocation2 + $0x1c] sm:$0x1] %v3936_v62  ;;  %v3919_v57 = vsel %vm15318_vm0, %v3762_v60, %v3918_v29  ;;  %v3924_v53 = vsel %vm15324_vm1, %v3763_v25, %v3923_v15  ;;  %v3767_v49 = vrot.slane %v3765_v41, 7  ;;  %v3665_v27 = vadd.f32 %v15288_v23, %v3645_v35 }
 0x272   :  { %3613 = vst.msk [vmem:[#allocation3 + $0x58] sm:$0xff] %vm3601_vm13, %v3576_v0  ;;  %3920 = vst [vmem:[#allocation2 + $0x8] sm:$0xf] %v3919_v57  ;;  %v3786_v20 = vor.u32 %v3784_v10, %v3783_v47  ;;  %v3787_v50 = vrot.slane %v3783_v47, 4  ;;  %v11738_v30 = vpack.c.bf16 %v3680_v43, %v3680_v43  ;;  %v3646_v26 = vmul.f32 %v15283_v8, %v3626_v19  ;;  %v3628_v18 = vld [vmem:[#allocation3 + $0x40] sm:$0xff]  ;;  %v3578_v11 = vpop.permute.xlu1 %3577 }
 0x273   :  { %3925 = vst [vmem:[#allocation2 + $0xc] sm:$0x1] %v3924_v53  ;;  %v3770_v7 = vor.u32 %v3768_v51, %v3767_v49  ;;  %v3771_v37 = vrot.slane %v3767_v49, 4  ;;  %v3681_v31 = vmax.f32 %v3665_v27, 0.0  ;;  %v3648_v16 = vmul.f32 %v15283_v8, %v3628_v18  ;;  %3614 = vst.msk [vmem:[#allocation3 + $0x60] sm:$0xff] %vm3601_vm13, %v3578_v11 }
 0x274   :  { %v3939_v5 = vsel %vm15318_vm0, %v3786_v20, %v3938_v13  ;;  %v3942_v9 = vsel %vm15324_vm1, %v3787_v50, %v3941_v44  ;;  %v3789_v17 = vshrl.u32 %v11738_v30, 16  ;;  %v3629_v59 = vld [vmem:[#allocation3 + $0x48] sm:$0xff]  ;;  %v3580_v1 = vpop.permute.xlu0 %3579  ;;  %v15351_v54 = vrot.slane %v4187_v34, 5  ;;  %v3950_v53 = vld [vmem:[#allocation2 + $0x30] sm:$0xf] }
 0x275   :  { %3940 = vst [vmem:[#allocation2 + $0x20] sm:$0xf] %v3939_v5  ;;  %3943 = vst [vmem:[#allocation2 + $0x24] sm:$0x1] %v3942_v9  ;;  %v3927_v56 = vsel %vm15318_vm0, %v3770_v7, %v3926_v12  ;;  %v3930_v61 = vsel %vm15324_vm1, %v3771_v37, %v3929_v6  ;;  %v11739_v36 = vpack.c.bf16 %v3681_v31, %v3681_v31  ;;  %v3944_v29 = vld [vmem:[#allocation2 + $0x28] sm:$0xf] }
 0x276   :  { %v3666_v55 = vadd.f32 %v15288_v23, %v3646_v26  ;;  %3615 = vst.msk [vmem:[#allocation3 + $0x68] sm:$0xff] %vm3601_vm13, %v3580_v1  ;;  %3928 = vst [vmem:[#allocation2 + $0x10] sm:$0xf] %v3927_v56  ;;  %v3791_v63 = vrot.slane %v3789_v17, 7  ;;  %v3792_v3 = vshll.u32 %v11738_v30, 16  ;;  %v3668_v34 = vadd.f32 %v15288_v23, %v3648_v16  ;;  %v3630_v40 = vld [vmem:[#allocation3 + $0x50] sm:$0xff]  ;;  %v3582_v35 = vpop.permute.xlu1 %3581 }
 0x277   :  { %3931 = vst [vmem:[#allocation2 + $0x14] sm:$0x1] %v3930_v61  ;;  %v3649_v58 = vmul.f32 %v15283_v8, %v3629_v59  ;;  %v3797_v22 = vshrl.u32 %v11739_v36, 16  ;;  %v3800_v15 = vshll.u32 %v11739_v36, 16  ;;  %v3650_v10 = vmul.f32 %v15283_v8, %v3630_v40  ;;  %3616 = vst.msk [vmem:[#allocation3 + $0x70] sm:$0xff] %vm3601_vm13, %v3582_v35 }
 0x278   :  { %v3682_v33 = vmax.f32 %v3666_v55, 0.0  ;;  %v3794_v4 = vor.u32 %v3792_v3, %v3791_v63  ;;  %v3795_v60 = vrot.slane %v3791_v63, 4  ;;  %v3684_v25 = vmax.f32 %v3668_v34, 0.0  ;;  %v3568_v19 = vpop.permute.xlu0 %3567  ;;  %v3953_v13 = vld [vmem:[#allocation2 + $0x34] sm:$0x1] }
 0x279   :  { %v3669_v41 = vadd.f32 %v15288_v23, %v3649_v58  ;;  %v3631_v51 = vld [vmem:[#allocation3 + $0x58] sm:$0xff]  ;;  %v3799_v46 = vrot.slane %v3797_v22, 7  ;;  %v3670_v47 = vadd.f32 %v15288_v23, %v3650_v10  ;;  %3609 = vst.msk [vmem:[#allocation3 + $0x38] sm:$0xff] %vm3601_vm13, %v3568_v19  ;;  %v3974_v3 = vld [vmem:[#allocation2 + $0x60] sm:$0xf]  ;;  %v4190_v28 = vsel %vm13981_vm9, %v15314_v24, %v15351_v54 }
 0x27a   :  { %v11740_v62 = vpack.c.bf16 %v3682_v33, %v3682_v33  ;;  %v3651_v43 = vmul.f32 %v15283_v8, %v3631_v51  ;;  %v3945_v0 = vsel %vm15318_vm0, %v3794_v4, %v3944_v29  ;;  %v3948_v57 = vsel %vm15324_vm1, %v3795_v60, %v3947_v14  ;;  %v3584_v27 = vpop.permute.xlu1 %3583  ;;  %v3956_v30 = vld [vmem:[#allocation2 + $0x38] sm:$0xf]  ;;  %v3632_v37 = vld [vmem:[#allocation3 + $0x60] sm:$0xff]  ;;  %v3959_v5 = vld [vmem:[#allocation2 + $0x3c] sm:$0x1] }
 0x27b   :  { %v11742_v44 = vpack.c.bf16 %v3684_v25, %v3684_v25  ;;  %v3685_v49 = vmax.f32 %v3669_v41, 0.0  ;;  %3946 = vst [vmem:[#allocation2 + $0x28] sm:$0xf] %v3945_v0  ;;  %3949 = vst [vmem:[#allocation2 + $0x2c] sm:$0x1] %v3948_v57  ;;  %v3802_v20 = vor.u32 %v3800_v15, %v3799_v46  ;;  %v3803_v50 = vrot.slane %v3799_v46, 4 }
 0x27c   :  { %v3805_v12 = vshrl.u32 %v11740_v62, 16  ;;  %v3808_v6 = vshll.u32 %v11740_v62, 16  ;;  %3617 = vst.msk [vmem:[#allocation3 + $0x78] sm:$0xff] %vm3601_vm13, %v3584_v27  ;;  %v3686_v7 = vmax.f32 %v3670_v47, 0.0  ;;  %v3968_v17 = vld [vmem:[#allocation2 + $0x58] sm:$0xf]  ;;  %v3671_v59 = vadd.f32 %v15288_v23, %v3651_v43 }
 0x27d   :  { %v3821_v26 = vshrl.u32 %v11742_v44, 16  ;;  %v3824_v18 = vshll.u32 %v11742_v44, 16  ;;  %v11743_v11 = vpack.c.bf16 %v3685_v49, %v3685_v49  ;;  %v3951_v31 = vsel %vm15318_vm0, %v3802_v20, %v3950_v53  ;;  %v3971_v1 = vld [vmem:[#allocation2 + $0x5c] sm:$0x1]  ;;  %v3977_v34 = vld [vmem:[#allocation2 + $0x64] sm:$0x1] }
 0x27e   :  { %v3954_v16 = vsel %vm15324_vm1, %v3803_v50, %v3953_v13  ;;  %v3807_v9 = vrot.slane %v3805_v12, 7  ;;  %3952 = vst [vmem:[#allocation2 + $0x30] sm:$0xf] %v3951_v31  ;;  %v11744_v55 = vpack.c.bf16 %v3686_v7, %v3686_v7  ;;  %v3687_v58 = vmax.f32 %v3671_v59, 0.0  ;;  %v3633_v25 = vld [vmem:[#allocation3 + $0x68] sm:$0xff]  ;;  %v3634_v41 = vld [vmem:[#allocation3 + $0x70] sm:$0xff] }
 0x27f   :  { %3955 = vst [vmem:[#allocation2 + $0x34] sm:$0x1] %v3954_v16  ;;  %v3823_v56 = vrot.slane %v3821_v26, 7  ;;  %v3829_v61 = vshrl.u32 %v11743_v11, 16  ;;  %v3832_v36 = vshll.u32 %v11743_v11, 16  ;;  %v3652_v40 = vmul.f32 %v15283_v8, %v3632_v37 }
 0x280   :  { %v3810_v29 = vor.u32 %v3808_v6, %v3807_v9  ;;  %v3811_v63 = vrot.slane %v3807_v9, 4  ;;  %v3837_v15 = vshrl.u32 %v11744_v55, 16  ;;  %v3840_v4 = vshll.u32 %v11744_v55, 16  ;;  %v3980_v47 = vld [vmem:[#allocation2 + $0x68] sm:$0xf]  ;;  %v3627_v13 = vld [vmem:[#allocation3 + $0x38] sm:$0xff] }
 0x281   :  { %v3826_v35 = vor.u32 %v3824_v18, %v3823_v56  ;;  %v3827_v14 = vrot.slane %v3823_v56, 4  ;;  %v3831_v22 = vrot.slane %v3829_v61, 7  ;;  %v11745_v60 = vpack.c.bf16 %v3687_v58, %v3687_v58  ;;  %v3983_v20 = vld [vmem:[#allocation2 + $0x6c] sm:$0x1]  ;;  %v3986_v26 = vld [vmem:[#allocation2 + $0x70] sm:$0xf] }
 0x282   :  { %v3957_v33 = vsel %vm15318_vm0, %v3810_v29, %v3956_v30  ;;  %v3960_v10 = vsel %vm15324_vm1, %v3811_v63, %v3959_v5  ;;  %v3839_v43 = vrot.slane %v3837_v15, 7  ;;  %v3672_v53 = vadd.f32 %v15288_v23, %v3652_v40  ;;  %v3989_v7 = vld [vmem:[#allocation2 + $0x74] sm:$0x1]  ;;  %v15397_v9 = vld [vmem:[#allocation2 + $0x8] sm:$0xf] }
 0x283   :  { %3958 = vst [vmem:[#allocation2 + $0x38] sm:$0xf] %v3957_v33  ;;  %3961 = vst [vmem:[#allocation2 + $0x3c] sm:$0x1] %v3960_v10  ;;  %v3969_v51 = vsel %vm15318_vm0, %v3826_v35, %v3968_v17  ;;  %v3972_v19 = vsel %vm15324_vm1, %v3827_v14, %v3971_v1  ;;  %v3834_v46 = vor.u32 %v3832_v36, %v3831_v22  ;;  %v3835_v62 = vrot.slane %v3831_v22, 4  ;;  %v3635_v44 = vld [vmem:[#allocation3 + $0x78] sm:$0xff] }
 0x284   :  { %3970 = vst [vmem:[#allocation2 + $0x58] sm:$0xf] %v3969_v51  ;;  %3973 = vst [vmem:[#allocation2 + $0x5c] sm:$0x1] %v3972_v19  ;;  %v3845_v0 = vshrl.u32 %v11745_v60, 16  ;;  %v3848_v57 = vshll.u32 %v11745_v60, 16  ;;  %v3653_v50 = vmul.f32 %v15283_v8, %v3633_v25  ;;  %v3654_v12 = vmul.f32 %v15283_v8, %v3634_v41 }
 0x285   :  { %v3975_v49 = vsel %vm15318_vm0, %v3834_v46, %v3974_v3  ;;  %v3978_v27 = vsel %vm15324_vm1, %v3835_v62, %v3977_v34  ;;  %v3842_v6 = vor.u32 %v3840_v4, %v3839_v43  ;;  %v3843_v30 = vrot.slane %v3839_v43, 4  ;;  %v3992_v22 = vld [vmem:[#allocation2 + $0x78] sm:$0xf]  ;;  %v3995_v60 = vld [vmem:[#allocation2 + $0x7c] sm:$0x1] }
 0x286   :  { %3976 = vst [vmem:[#allocation2 + $0x60] sm:$0xf] %v3975_v49  ;;  %3979 = vst [vmem:[#allocation2 + $0x64] sm:$0x1] %v3978_v27  ;;  %v3847_v18 = vrot.slane %v3845_v0, 7  ;;  %v3688_v11 = vmax.f32 %v3672_v53, 0.0  ;;  %v3673_v37 = vadd.f32 %v15288_v23, %v3653_v50  ;;  %v3674_v31 = vadd.f32 %v15288_v23, %v3654_v12 }
 0x287   :  { %v3647_v16 = vmul.f32 %v15283_v8, %v3627_v13  ;;  %v3655_v5 = vmul.f32 %v15283_v8, %v3635_v44  ;;  %v3981_v17 = vsel %vm15318_vm0, %v3842_v6, %v3980_v47  ;;  %v3984_v59 = vsel %vm15324_vm1, %v3843_v30, %v3983_v20  ;;  %v4001_v46 = vld [vmem:[#allocation2 + $0x84] sm:$0x1]  ;;  %v4004_v44 = vld [vmem:[#allocation2 + $0x88] sm:$0xf]  ;;  %v4007_v49 = vld [vmem:[#allocation2 + $0x8c] sm:$0x1] }
 0x288   :  { %v3850_v1 = vor.u32 %v3848_v57, %v3847_v18  ;;  %v3851_v56 = vrot.slane %v3847_v18, 4  ;;  %3982 = vst [vmem:[#allocation2 + $0x68] sm:$0xf] %v3981_v17  ;;  %3985 = vst [vmem:[#allocation2 + $0x6c] sm:$0x1] %v3984_v59  ;;  %v11746_v61 = vpack.c.bf16 %v3688_v11, %v3688_v11  ;;  %v3689_v36 = vmax.f32 %v3673_v37, 0.0 }
 0x289   :  { %v3690_v55 = vmax.f32 %v3674_v31, 0.0  ;;  %v3667_v29 = vadd.f32 %v15288_v23, %v3647_v16  ;;  %v3675_v3 = vadd.f32 %v15288_v23, %v3655_v5  ;;  %v4080_v34 = vshrl.u32 %v15397_v9, 16  ;;  %v3998_v23 = vld [vmem:[#allocation2 + $0x80] sm:$0xf]  ;;  %v15411_v30 = vld [vmem:[#allocation2 + $0xc] sm:$0x1] }
 0x28a   :  { %v3987_v8 = vsel %vm15318_vm0, %v3850_v1, %v3986_v26  ;;  %v3990_v63 = vsel %vm15324_vm1, %v3851_v56, %v3989_v7  ;;  %v3853_v58 = vshrl.u32 %v11746_v61, 16  ;;  %v3856_v40 = vshll.u32 %v11746_v61, 16  ;;  %v3962_v37 = vld [vmem:[#allocation2 + $0x40] sm:$0xf]  ;;  %v3965_v31 = vld [vmem:[#allocation2 + $0x44] sm:$0x1] }
 0x28b   :  { %3988 = vst [vmem:[#allocation2 + $0x70] sm:$0xf] %v3987_v8  ;;  %3991 = vst [vmem:[#allocation2 + $0x74] sm:$0x1] %v3990_v63  ;;  %v11747_v35 = vpack.c.bf16 %v3689_v36, %v3689_v36  ;;  %v11748_v14 = vpack.c.bf16 %v3690_v55, %v3690_v55  ;;  %v3683_v15 = vmax.f32 %v3667_v29, 0.0  ;;  %v3691_v33 = vmax.f32 %v3675_v3, 0.0 }
 0x28c   :  { %v4082_v10 = vrot.slane %v4080_v34, 4  ;;  %v4083_v4 = vshll.u32 %v15397_v9, 16  ;;  %v3855_v25 = vrot.slane %v3853_v58, 7  ;;  %v4010_v59 = vld [vmem:[#allocation2 + $0x90] sm:$0xf]  ;;  %v4089_v29 = vshll.u32 %v15411_v30, 16 }
 0x28d   :  { %v3861_v41 = vshrl.u32 %v11747_v35, 16  ;;  %v3864_v51 = vshll.u32 %v11747_v35, 16  ;;  %v3869_v19 = vshrl.u32 %v11748_v14, 16  ;;  %v3872_v62 = vshll.u32 %v11748_v14, 16  ;;  %v4013_v1 = vld [vmem:[#allocation2 + $0x94] sm:$0x1] }
 0x28e   :  { %v11741_v47 = vpack.c.bf16 %v3683_v15, %v3683_v15  ;;  %v11749_v43 = vpack.c.bf16 %v3691_v33, %v3691_v33  ;;  %v4085_v0 = vrot.slane %v4083_v4, 5  ;;  %v3858_v57 = vor.u32 %v3856_v40, %v3855_v25  ;;  %v15422_v8 = vld [vmem:[#allocation2 + $0x10] sm:$0xf]  ;;  %v15424_v63 = vld [vmem:[#allocation2 + $0x18] sm:$0xf] }
 0x28f   :  { %v3859_v53 = vrot.slane %v3855_v25, 4  ;;  %v3863_v13 = vrot.slane %v3861_v41, 7  ;;  %v3871_v27 = vrot.slane %v3869_v19, 7  ;;  %v15426_v3 = vld [vmem:[#allocation2 + $0x14] sm:$0x1]  ;;  %v4094_v25 = vshrl.u32 %v15422_v8, 16 }
 0x290   :  { %v3813_v20 = vshrl.u32 %v11741_v47, 16  ;;  %v3816_v50 = vshll.u32 %v11741_v47, 16  ;;  %v3877_v12 = vshrl.u32 %v11749_v43, 16  ;;  %v3880_v6 = vshll.u32 %v11749_v43, 16  ;;  %v15432_v14 = vld [vmem:[#allocation2 + $0x1c] sm:$0x1] }
 0x291   :  { %v3993_v26 = vsel %vm15318_vm0, %v3858_v57, %v3992_v22  ;;  %v3996_v18 = vsel %vm15324_vm1, %v3859_v53, %v3995_v60  ;;  %v3866_v11 = vor.u32 %v3864_v51, %v3863_v13  ;;  %v3867_v7 = vrot.slane %v3863_v13, 4  ;;  %v15440_v51 = vld [vmem:[#allocation2 + $0x20] sm:$0xf]  ;;  %v15449_v47 = vld [vmem:[#allocation2 + $0x24] sm:$0x1] }
 0x292   :  { %3994 = vst [vmem:[#allocation2 + $0x78] sm:$0xf] %v3993_v26  ;;  %3997 = vst [vmem:[#allocation2 + $0x7c] sm:$0x1] %v3996_v18  ;;  %v3874_v16 = vor.u32 %v3872_v62, %v3871_v27  ;;  %v3875_v5 = vrot.slane %v3871_v27, 4  ;;  %v3815_v17 = vrot.slane %v3813_v20, 7  ;;  %v4086_v55 = vor.u32 %v4085_v0, %v4082_v10 }
 0x293   :  { %v3879_v56 = vrot.slane %v3877_v12, 7  ;;  %v3999_v61 = vsel %vm15318_vm0, %v3866_v11, %v3998_v23  ;;  %v4002_v36 = vsel %vm15324_vm1, %v3867_v7, %v4001_v46  ;;  %v4091_v10 = vrot.slane %v4089_v29, 5  ;;  %v15457_v57 = vld [vmem:[#allocation2 + $0x28] sm:$0xf]  ;;  %v15473_v11 = vld [vmem:[#allocation2 + $0x34] sm:$0x1] }
 0x294   :  { %4000 = vst [vmem:[#allocation2 + $0x80] sm:$0xf] %v3999_v61  ;;  %4003 = vst [vmem:[#allocation2 + $0x84] sm:$0x1] %v4002_v36  ;;  %v4005_v34 = vsel %vm15318_vm0, %v3874_v16, %v4004_v44  ;;  %v4008_v58 = vsel %vm15324_vm1, %v3875_v5, %v4007_v49  ;;  %v3818_v40 = vor.u32 %v3816_v50, %v3815_v17  ;;  %v3819_v35 = vrot.slane %v3815_v17, 4 }
 0x295   :  { %4006 = vst [vmem:[#allocation2 + $0x88] sm:$0xf] %v4005_v34  ;;  %4009 = vst [vmem:[#allocation2 + $0x8c] sm:$0x1] %v4008_v58  ;;  %v3882_v22 = vor.u32 %v3880_v6, %v3879_v56  ;;  %v3883_v15 = vrot.slane %v3879_v56, 4  ;;  %v4087_v33 = vrot.slane %v4086_v55, 4 }
 0x296   :  { %v3963_v4 = vsel %vm15318_vm0, %v3818_v40, %v3962_v37  ;;  %v3966_v60 = vsel %vm15324_vm1, %v3819_v35, %v3965_v31  ;;  %v4097_v41 = vshll.u32 %v15422_v8, 16  ;;  %v4103_v62 = vshll.u32 %v15426_v3, 16  ;;  %v15461_v44 = vld [vmem:[#allocation2 + $0x2c] sm:$0x1]  ;;  %v15470_v50 = vld [vmem:[#allocation2 + $0x30] sm:$0xf] }
 0x297   :  { %3964 = vst [vmem:[#allocation2 + $0x40] sm:$0xf] %v3963_v4  ;;  %3967 = vst [vmem:[#allocation2 + $0x44] sm:$0x1] %v3966_v60  ;;  %v4011_v19 = vsel %vm15318_vm0, %v3882_v22, %v4010_v59  ;;  %v4014_v23 = vsel %vm15324_vm1, %v3883_v15, %v4013_v1  ;;  %v4092_v46 = vsel %vm13981_vm9, %v4087_v33, %v4091_v10  ;;  %v4096_v2 = vrot.slane %v4094_v25, 4 }
 0x298   :  { %4012 = vst [vmem:[#allocation2 + $0x90] sm:$0xf] %v4011_v19  ;;  %4015 = vst [vmem:[#allocation2 + $0x94] sm:$0x1] %v4014_v23  ;;  %v11061_v43 = vcombine.low %v4078_v52, %v4092_v46  ;;  %v4099_v0 = vrot.slane %v4097_v41, 5  ;;  %v4108_v32 = vshrl.u32 %v15424_v63, 16 }
 0x299   :  { %v4111_v53 = vshll.u32 %v15424_v63, 16  ;;  %v4117_v13 = vshll.u32 %v15432_v14, 16  ;;  %v4122_v49 = vshrl.u32 %v15440_v51, 16  ;;  %v4125_v27 = vshll.u32 %v15440_v51, 16  ;;  %v15476_v5 = vld [vmem:[#allocation2 + $0x38] sm:$0xf] }
 0x29a   :  { %12502 = vmatprep.mubr.bf16.mxu1 %v11061_v43  ;;  %v4100_v48 = vor.u32 %v4099_v0, %v4096_v2  ;;  %v4110_v52 = vrot.slane %v4108_v32, 4  ;;  %v4131_v20 = vshll.u32 %v15449_v47, 16  ;;  %v4105_v12 = vrot.slane %v4103_v62, 5  ;;  %v15479_v56 = vld [vmem:[#allocation2 + $0x3c] sm:$0x1]  ;;  %v13565_v23 = vld [vmem:[%s17047_s2 + $0x248] sm:$0xff]  }
 0x29b   :  { %v4113_v6 = vrot.slane %v4111_v53, 5  ;;  %v4124_v26 = vrot.slane %v4122_v49, 4  ;;  %v4136_v18 = vshrl.u32 %v15457_v57, 16  ;;  %v4119_v37 = vrot.slane %v4117_v13, 5  ;;  %v15483_v58 = vld [vmem:[#allocation2 + $0x58] sm:$0xf] }
 0x29c   :  { %v4101_v7 = vrot.slane %v4100_v48, 4  ;;  %v4127_v31 = vrot.slane %v4125_v27, 5  ;;  %v4139_v16 = vshll.u32 %v15457_v57, 16  ;;  %v4145_v1 = vshll.u32 %v15461_v44, 16  ;;  %v15488_v33 = vld [vmem:[#allocation2 + $0x5c] sm:$0x1] }
 0x29d   :  { %v4114_v17 = vor.u32 %v4113_v6, %v4110_v52  ;;  %v4138_v59 = vrot.slane %v4136_v18, 4  ;;  %v4150_v61 = vshrl.u32 %v15470_v50, 16  ;;  %v4133_v55 = vrot.slane %v4131_v20, 5  ;;  %v15491_v41 = vld [vmem:[#allocation2 + $0x60] sm:$0xf] }
 0x29e   :  { %v4128_v36 = vor.u32 %v4127_v31, %v4124_v26  ;;  %v4141_v29 = vrot.slane %v4139_v16, 5  ;;  %v4153_v34 = vshll.u32 %v15470_v50, 16  ;;  %v4106_v40 = vsel %vm13981_vm9, %v4101_v7, %v4105_v12  ;;  %v15500_v13 = vld [vmem:[#allocation2 + $0x68] sm:$0xf]  ;;  %v15502_v49 = vld [vmem:[#allocation2 + $0x64] sm:$0x1] }
 0x29f   :  { %v4115_v35 = vrot.slane %v4114_v17, 4  ;;  %v4152_v22 = vrot.slane %v4150_v61, 4  ;;  %v4159_v15 = vshll.u32 %v15473_v11, 16  ;;  %v4164_v25 = vshrl.u32 %v15476_v5, 16  ;;  %v15511_v7 = vld [vmem:[#allocation2 + $0x6c] sm:$0x1] }
 0x2a0   :  { %v4129_v10 = vrot.slane %v4128_v36, 4  ;;  %v4142_v4 = vor.u32 %v4141_v29, %v4138_v59  ;;  %v4155_v60 = vrot.slane %v4153_v34, 5  ;;  %v4147_v46 = vrot.slane %v4145_v1, 5  ;;  %v13566_v59 = vld [vmem:[%s17047_s2 + $0x250] sm:$0xff]  }
 0x2a1   :  { %v4120_v19 = vsel %vm13981_vm9, %v4115_v35, %v4119_v37  ;;  %v4161_v62 = vrot.slane %v4159_v15, 5  ;;  %v4167_v43 = vshll.u32 %v15476_v5, 16  ;;  %v4173_v53 = vshll.u32 %v15479_v56, 16  ;;  %v15521_v29 = vld [vmem:[#allocation2 + $0x70] sm:$0xf] }
 0x2a2   :  { %v11062_v2 = vcombine.low %v4106_v40, %v4120_v19  ;;  %v4143_v0 = vrot.slane %v4142_v4, 4  ;;  %v4156_v32 = vor.u32 %v4155_v60, %v4152_v22  ;;  %v4134_v48 = vsel %vm13981_vm9, %v4129_v10, %v4133_v55 }
 0x2a3   :  { %v4166_v52 = vrot.slane %v4164_v25, 4  ;;  %v4169_v27 = vrot.slane %v4167_v43, 5  ;;  %v4192_v20 = vshrl.u32 %v15483_v58, 16  ;;  %v4195_v26 = vshll.u32 %v15483_v58, 16 }
 0x2a4   :  { %12503 = vmatmul.mubr.bf16.vlgmr.msra.gmra.mrb[16].mxu1 %v11062_v2  ;;  %v4148_v12 = vsel %vm13981_vm9, %v4143_v0, %v4147_v46  ;;  %v4157_v6 = vrot.slane %v4156_v32, 4  ;;  %v4201_v18 = vshll.u32 %v15488_v33, 16  ;;  %v4206_v17 = vshrl.u32 %v15491_v41, 16  ;;  %v15529_v46 = vld [vmem:[#allocation2 + $0x78] sm:$0xf] }
 0x2a5   :  { %12519 = vmatpush3.bf16.msra.mxu1 %v15274_v45  ;;  %v11063_v37 = vcombine.low %v4134_v48, %v4148_v12  ;;  %v4170_v31 = vor.u32 %v4169_v27, %v4166_v52  ;;  %v4194_v16 = vrot.slane %v4192_v20, 4  ;;  %v4175_v61 = vrot.slane %v4173_v53, 5  ;;  %v13567_v2 = vld [vmem:[%s17047_s2 + $0x258] sm:$0xff]  }
 0x2a6   :  { %12520 = vmatprep.subr.bf16.mxu1 %v13565_v23  ;;  %v4162_v1 = vsel %vm13981_vm9, %v4157_v6, %v4161_v62  ;;  %v4197_v36 = vrot.slane %v4195_v26, 5  ;;  %v4209_v55 = vshll.u32 %v15491_v41, 16  ;;  %v4208_v34 = vrot.slane %v4206_v17, 4  ;;  %v15537_v52 = vld [vmem:[#allocation2 + $0x7c] sm:$0x1] }
 0x2a7   :  { %12506 = vmatprep.mubr.bf16.mxu1 %v11063_v37  ;;  %v4171_v45 = vrot.slane %v4170_v31, 4  ;;  %v4215_v40 = vshll.u32 %v15502_v49, 16  ;;  %v4220_v35 = vshrl.u32 %v15500_v13, 16  ;;  %v4203_v15 = vrot.slane %v4201_v18, 5  ;;  %v15543_v37 = vld [vmem:[#allocation2 + $0x80] sm:$0xf] }
 0x2a8   :  { %v4198_v22 = vor.u32 %v4197_v36, %v4194_v16  ;;  %v4211_v10 = vrot.slane %v4209_v55, 5  ;;  %v4223_v4 = vshll.u32 %v15500_v13, 16  ;;  %v4229_v19 = vshll.u32 %v15511_v7, 16  ;;  %v13568_v36 = vld [vmem:[%s17047_s2 + $0x260] sm:$0xff]  }
 0x2a9   :  { %12521 = vmatpush3.bf16.msra.mxu1 %v13565_v23  ;;  %v4176_v60 = vsel %vm13981_vm9, %v4171_v45, %v4175_v61  ;;  %v4222_v25 = vrot.slane %v4220_v35, 4  ;;  %v4234_v62 = vshrl.u32 %v15521_v29, 16  ;;  %v15535_v23 = vld [vmem:[#allocation2 + $0x74] sm:$0x1]  ;;  %v4217_v48 = vrot.slane %v4215_v40, 5 }
 0x2aa   :  { %12522 = vmatprep.subr.bf16.mxu1 %v13566_v59  ;;  %v11064_v43 = vcombine.low %v4162_v1, %v4176_v60  ;;  %v4199_v0 = vrot.slane %v4198_v22, 4  ;;  %v4212_v32 = vor.u32 %v4211_v10, %v4208_v34  ;;  %v4225_v53 = vrot.slane %v4223_v4, 5  ;;  %v15551_v61 = vld [vmem:[#allocation2 + $0x88] sm:$0xf] }
 0x2ab   :  { %v4236_v27 = vrot.slane %v4234_v62, 4  ;;  %v4237_v20 = vshll.u32 %v15521_v29, 16  ;;  %v4248_v18 = vshrl.u32 %v15529_v46, 16  ;;  %v4231_v16 = vrot.slane %v4229_v19, 5  ;;  %v15567_v19 = vld [vmem:[#allocation2 + $0x8c] sm:$0x1] }
 0x2ac   :  { %12507 = vmatmul.mubr.bf16.gmra.mrb[20].mxu1 %v11064_v43  ;;  %v4204_v12 = vsel %vm13981_vm9, %v4199_v0, %v4203_v15  ;;  %v4213_v6 = vrot.slane %v4212_v32, 4  ;;  %v4226_v26 = vor.u32 %v4225_v53, %v4222_v25  ;;  %v4251_v1 = vshll.u32 %v15529_v46, 16  ;;  %v15565_v25 = vld [vmem:[#allocation2 + $0x84] sm:$0x1]  ;;  %v13569_v43 = vld [vmem:[%s17047_s2 + $0x268] sm:$0xff]  }
 0x2ad   :  { %12523 = vmatpush3.bf16.msra.mxu1 %v13566_v59  ;;  %v11065_v31 = vcombine.low %v4190_v28, %v4204_v12  ;;  %v4239_v17 = vrot.slane %v4237_v20, 5  ;;  %v4243_v59 = vshll.u32 %v15535_v23, 16  ;;  %v4250_v45 = vrot.slane %v4248_v18, 4 }
 0x2ae   :  { %12524 = vmatprep.subr.bf16.mxu1 %v13567_v2  ;;  %v4227_v55 = vrot.slane %v4226_v26, 4  ;;  %v4257_v34 = vshll.u32 %v15537_v52, 16  ;;  %v4253_v54 = vrot.slane %v4251_v1, 5  ;;  %v4262_v28 = vshrl.u32 %v15543_v37, 16 }
 0x2af   :  { %12510 = vmatprep.mubr.bf16.mxu1 %v11065_v31  ;;  %v4240_v24 = vor.u32 %v4239_v17, %v4236_v27  ;;  %v4265_v40 = vshll.u32 %v15543_v37, 16  ;;  %v4218_v35 = vsel %vm13981_vm9, %v4213_v6, %v4217_v48  ;;  %v4276_v15 = vshrl.u32 %v15551_v61, 16  ;;  %v13570_v17 = vld [vmem:[%s17047_s2 + $0x270] sm:$0xff]  }
 0x2b0   :  { %v4232_v22 = vsel %vm13981_vm9, %v4227_v55, %v4231_v16  ;;  %v4254_v60 = vor.u32 %v4253_v54, %v4250_v45  ;;  %v4264_v62 = vrot.slane %v4262_v28, 4  ;;  %v4279_v53 = vshll.u32 %v15551_v61, 16  ;;  %v13572_v28 = vld [vmem:[%s17047_s2 + $0x278] sm:$0xff]  }
 0x2b1   :  { %12525 = vmatpush3.bf16.msra.mxu1 %v13567_v2  ;;  %v11066_v10 = vcombine.low %v4218_v35, %v4232_v22  ;;  %v4241_v4 = vrot.slane %v4240_v24, 4  ;;  %v4267_v0 = vrot.slane %v4265_v40, 5  ;;  %v4278_v32 = vrot.slane %v4276_v15, 4  ;;  %v13769_v40 = vld [vmem:[#allocation2] sm:$0xf] }
 0x2b2   :  { %12526 = vmatprep.subr.bf16.mxu1 %v13568_v36  ;;  %v4245_v48 = vrot.slane %v4243_v59, 5  ;;  %v4255_v27 = vrot.slane %v4254_v60, 4  ;;  %v4259_v2 = vrot.slane %v4257_v34, 5  ;;  %v4271_v12 = vshll.u32 %v15565_v25, 16  ;;  %v13573_v22 = vld [vmem:[%s17047_s2 + $0x2c0] sm:$0xff]  }
 0x2b3   :  { %v4268_v20 = vor.u32 %v4267_v0, %v4264_v62  ;;  %v4281_v6 = vrot.slane %v4279_v53, 5  ;;  %v4285_v26 = vshll.u32 %v15567_v19, 16  ;;  %v11077_v35 = vcombine.low %v13769_v40, %v15397_v9  ;;  %v13770_v60 = vld [vmem:[#allocation2 + $0x50] sm:$0xf]  ;;  %v4676_v62 = vld [vmem:[#allocation2] sm:$0xe] }
 0x2b4   :  { %12511 = vmatmul.mubr.bf16.gmra.mrb[24].mxu1 %v11066_v10  ;;  %v4246_v18 = vsel %vm13981_vm9, %v4241_v4, %v4245_v48  ;;  %v4260_v31 = vsel %vm13981_vm9, %v4255_v27, %v4259_v2  ;;  %v4273_v59 = vrot.slane %v4271_v12, 5  ;;  %v11078_v15 = vcombine.low %v15422_v8, %v15424_v63  ;;  %v13576_v10 = vld [vmem:[%s17047_s2 + $0x2c8] sm:$0xff]   ;;  %v13577_v4 = vld [vmem:[%s17047_s2 + $0x2d0] sm:$0xff]   ;;  %v13580_v63 = vld [vmem:[%s17047_s2 + $0x2d8] sm:$0xff]  }
 0x2b5   :  { %12527 = vmatpush3.bf16.msra.mxu1 %v13568_v36  ;;  %v11067_v16 = vcombine.low %v4246_v18, %v4260_v31  ;;  %v4269_v1 = vrot.slane %v4268_v20, 4  ;;  %v4282_v55 = vor.u32 %v4281_v6, %v4278_v32  ;;  %v4287_v34 = vrot.slane %v4285_v26, 5  ;;  %v13771_v32 = vld [vmem:[#allocation2 + $0x4] sm:$0x1]  ;;  %v4681_v2 = vld [vmem:[#allocation2 + $0x28] sm:$0xe] }
 0x2b6   :  { %12528 = vmatprep.subr.bf16.mxu1 %v13569_v43  ;;  %v11079_v9 = vcombine.low %v15440_v51, %v15457_v57  ;;  %v11080_v8 = vcombine.low %v15470_v50, %v15476_v5  ;;  %v11081_v51 = vcombine.low %v13770_v60, %v15483_v58  ;;  %v13581_v57 = vld [vmem:[%s17047_s2 + $0x2e0] sm:$0xff]   ;;  %v11082_v50 = vcombine.low %v15491_v41, %v15500_v13  ;;  %v13584_v5 = vld [vmem:[%s17047_s2 + $0x2e8] sm:$0xff]   ;;  %v13585_v41 = vld [vmem:[%s17047_s2 + $0x2f0] sm:$0xff]  }
 0x2b7   :  { %12514 = vmatprep.mubr.bf16.mxu1 %v11067_v16  ;;  %v4283_v45 = vrot.slane %v4282_v55, 4  ;;  %v4274_v36 = vsel %vm13981_vm9, %v4269_v1, %v4273_v59  ;;  %v11083_v58 = vcombine.low %v15521_v29, %v15529_v46  ;;  %v11093_v0 = vrot.slane %v4676_v62, 9  ;;  %v4678_v46 = vld [vmem:[#allocation2 + $0x10] sm:$0xe]  ;;  %v13587_v20 = vld [vmem:[%s17047_s2 + $0x2f8] sm:$0xff]  }
 0x2b8   :  { %v4726_v53 = vrot.slane %v13771_v32, 5  ;;  %v4730_v27 = vrot.slane %v15411_v30, 5  ;;  %v11084_v30 = vcombine.low %v15543_v37, %v15551_v61  ;;  %v4679_v12 = vld [vmem:[#allocation2 + $0x18] sm:$0xe]  ;;  %v11095_v26 = vrot.slane %v4678_v46, 9  ;;  %v13588_v37 = vld [vmem:[%s17047_s2 + $0x300] sm:$0xff]  }
 0x2b9   :  { %12529 = vmatpush3.bf16.msra.mxu1 %v13569_v43  ;;  %v4288_v24 = vsel %vm13981_vm9, %v4283_v45, %v4287_v34  ;;  %v4677_v43 = vld [vmem:[#allocation2 + $0x8] sm:$0xe]  ;;  %v4734_v18 = vrot.slane %v15426_v3, 5  ;;  %v4680_v31 = vld [vmem:[#allocation2 + $0x20] sm:$0xe]  ;;  %v11098_v16 = vrot.slane %v4681_v2, 9 }
 0x2ba   :  { %12530 = vmatprep.subr.bf16.mxu1 %v13570_v17  ;;  %v11068_v54 = vcombine.low %v4274_v36, %v4288_v24  ;;  %v11094_v48 = vrot.slane %v4677_v43, 9  ;;  %v4727_v13 = vsel %vm14412_vm12, %v11093_v0, %v4726_v53  ;;  %v11096_v1 = vrot.slane %v4679_v12, 9  ;;  %v4685_v36 = vld [vmem:[#allocation2 + $0x58] sm:$0xe]  ;;  %v13592_v46 = vld [vmem:[%s17047_s2 + $0x320] sm:$0xff]  }
 0x2bb   :  { %v4738_v55 = vrot.slane %v15432_v14, 5  ;;  %v11097_v61 = vrot.slane %v4680_v31, 9  ;;  %v4742_v59 = vrot.slane %v15449_v47, 5  ;;  %v4735_v3 = vsel %vm14412_vm12, %v11095_v26, %v4734_v18  ;;  %v4684_v14 = vld [vmem:[#allocation2 + $0x50] sm:$0xe]  ;;  %v13589_v47 = vld [vmem:[%s17047_s2 + $0x308] sm:$0xff]  }
 0x2bc   :  { %12515 = vmatmul.mubr.bf16.gmra.mrb[28].mxu1 %v11068_v54  ;;  %v4731_v29 = vsel %vm14412_vm12, %v11094_v48, %v4730_v27  ;;  %v4750_v60 = vrot.slane %v15473_v11, 5  ;;  %v4689_v11 = vld [vmem:[#allocation2 + $0x78] sm:$0xe]  ;;  %v4770_v53 = vrot.slane %v15511_v7, 5  ;;  %v4688_v48 = vld [vmem:[#allocation2 + $0x70] sm:$0xe] }
 0x2bd   :  { %12531 = vmatpush3.bf16.msra.mxu1 %v13570_v17  ;;  %12534 = vmatprep.mubr.bf16.mxu1 %v11077_v35  ;;  %v11125_v6 = vcombine.low %v4727_v13, %v4731_v29  ;;  %v4746_v17 = vrot.slane %v15461_v44, 5  ;;  %v4683_v44 = vld [vmem:[#allocation2 + $0x38] sm:$0xe]  ;;  %v4739_v34 = vsel %vm14412_vm12, %v11096_v1, %v4738_v55  ;;  %v4743_v54 = vsel %vm14412_vm12, %v11097_v61, %v4742_v59  ;;  %v4690_v26 = vld [vmem:[#allocation2 + $0x80] sm:$0xe]  ;;  %v13594_v55 = vld [vmem:[%s17047_s2 + $0x330] sm:$0xff]  }
 0x2be   :  { %12532 = vmatprep.subr.bf16.mxu1 %v13572_v28  ;;  %v11126_v24 = vcombine.low %v4735_v3, %v4739_v34  ;;  %v11100_v35 = vrot.slane %v4683_v44, 9  ;;  %v11106_v27 = vrot.slane %v4689_v11, 9  ;;  %v4766_v29 = vrot.slane %v15502_v49, 5  ;;  %v13596_v59 = vld [vmem:[%s17047_s2 + $0x338] sm:$0xff]   ;;  %v13595_v3 = vld [vmem:[#allocation2 + $0x8] ss:$8 sps:$4 sm:$0xff]  }
 0x2bf   :  { %v4747_v45 = vsel %vm14412_vm12, %v11098_v16, %v4746_v17  ;;  %v11105_v2 = vrot.slane %v4688_v48, 9  ;;  %v4786_v16 = vrot.slane %v15567_v19, 5  ;;  %v11107_v17 = vrot.slane %v4690_v26, 9  ;;  %v13598_v44 = vld [vmem:[#allocation2 + $0x18] ss:$8 sps:$4 sm:$0xff]   ;;  %v13600_v34 = vld [vmem:[%s17047_s2 + $0x348] sm:$0xff]  }
 0x2c0   :  { %v11127_v40 = vcombine.low %v4743_v54, %v4747_v45  ;;  %v4782_v1 = vrot.slane %v15565_v25, 5  ;;  %v13597_v25 = vld [vmem:[%s17047_s2 + $0x340] sm:$0xff]   ;;  %v5240_v45 = vld [vmem:[#allocation2 + $0x8] sm:$0xf]  ;;  %v13601_v54 = vld [vmem:[%s17047_s2 + $0x350] sm:$0xff]  }
 0x2c1   :  { %12533 = vmatpush3.bf16.msra.mxu1 %v13572_v28  ;;  %v4682_v28 = vld [vmem:[#allocation2 + $0x30] sm:$0xe]  ;;  %v15711_v11 = vld [vmem:[#allocation2 + $0x14] sm:$0x1] }
 0x2c2   :  { %12550 = vmatprep.subr.bf16.mxu1 %v13573_v22  ;;  %v4783_v61 = vsel %vm14412_vm12, %v11107_v17, %v4782_v1  ;;  %v13607_v17 = vld [vmem:[#allocation2 + $0x78] ss:$8 sps:$4 sm:$0xff]  }
 0x2c4   :  { %12535 = vmatmul.mubr.bf16.vlgmr.msra.gmra.mrb[16].mxu1 %v11078_v15  ;;  %v11101_v15 = vrot.slane %v4684_v14, 9  ;;  %v13599_v14 = vld [vmem:[#allocation2 + $0x28] ss:$8 sps:$4 sm:$0xff]  }
 0x2c5   :  { %12551 = vmatpush3.bf16.msra.mxu1 %v13573_v22  ;;  %12538 = vmatprep.mubr.bf16.mxu1 %v11079_v9  ;;  %v4754_v22 = vrot.slane %v15479_v56, 5 }
 0x2c6   :  { %12552 = vmatprep.subr.bf16.mxu1 %v13576_v10 }
 0x2c7   :  { %v4755_v56 = vsel %vm14412_vm12, %v11100_v35, %v4754_v22  ;;  %v5244_v35 = vld [vmem:[#allocation2 + $0x18] sm:$0xf]  ;;  %v5246_v22 = vld [vmem:[#allocation2 + $0x20] sm:$0xf] }
 0x2c9   :  { %12553 = vmatpush3.bf16.msra.mxu1 %v13576_v10  ;;  %v13772_v10 = vld [vmem:[#allocation2 + $0x54] sm:$0x1] }
 0x2ca   :  { %12554 = vmatprep.subr.bf16.mxu1 %v13577_v4  ;;  %v4758_v9 = vrot.slane %v13772_v10, 5 }
 0x2cc   :  { %12539 = vmatmul.mubr.bf16.gmra.mrb[20].mxu1 %v11080_v8  ;;  %v4762_v8 = vrot.slane %v15488_v33, 5  ;;  %v4687_v33 = vld [vmem:[#allocation2 + $0x68] sm:$0xe] }
 0x2cd   :  { %12555 = vmatpush3.bf16.msra.mxu1 %v13577_v4  ;;  %12542 = vmatprep.mubr.bf16.mxu1 %v11081_v51  ;;  %v11102_v4 = vrot.slane %v4685_v36, 9  ;;  %v13590_v51 = vld [vmem:[%s17047_s2 + $0x310] sm:$0xff]   ;;  %v11104_v32 = vrot.slane %v4687_v33, 9  ;;  %v5248_v33 = vld [vmem:[#allocation2 + $0x28] sm:$0xf] }
 0x2ce   :  { %12556 = vmatprep.subr.bf16.mxu1 %v13580_v63  ;;  %v5242_v36 = vld [vmem:[#allocation2 + $0x10] sm:$0xf] }
 0x2cf   :  { %v4763_v62 = vsel %vm14412_vm12, %v11102_v4, %v4762_v8  ;;  %v4771_v7 = vsel %vm14412_vm12, %v11104_v32, %v4770_v53  ;;  %v5304_v4 = vshll.u32 %v5244_v35, 16  ;;  %v5315_v8 = vshrl.u32 %v5246_v22, 16  ;;  %v5250_v32 = vld [vmem:[#allocation2 + $0x30] sm:$0xf]  ;;  %v13605_v53 = vld [vmem:[%s17047_s2 + $0x360] sm:$0xff]  }
 0x2d1   :  { %12557 = vmatpush3.bf16.msra.mxu1 %v13580_v63  ;;  %v11099_v63 = vrot.slane %v4682_v28, 9  ;;  %v5287_v28 = vshrl.u32 %v5242_v36, 16 }
 0x2d2   :  { %12558 = vmatprep.subr.bf16.mxu1 %v13581_v57 }
 0x2d3   :  { %v4751_v43 = vsel %vm14412_vm12, %v11099_v63, %v4750_v60  ;;  %v13602_v63 = vld [vmem:[#allocation2 + $0x38] ss:$8 sps:$4 sm:$0xff]  }
 0x2d4   :  { %12543 = vmatmul.mubr.bf16.gmra.mrb[24].mxu1 %v11082_v50  ;;  %v11128_v50 = vcombine.low %v4751_v43, %v4755_v56  ;;  %v13604_v60 = vld [vmem:[%s17047_s2 + $0x358] sm:$0xff]   ;;  %v15709_v43 = vld [vmem:[#allocation2 + $0xc] sm:$0x1] }
 0x2d5   :  { %12559 = vmatpush3.bf16.msra.mxu1 %v13581_v57  ;;  %12546 = vmatprep.mubr.bf16.mxu1 %v11083_v58  ;;  %v4759_v57 = vsel %vm14412_vm12, %v11101_v15, %v4758_v9  ;;  %v4686_v58 = vld [vmem:[#allocation2 + $0x60] sm:$0xe]  ;;  %v5301_v9 = vshrl.u32 %v5244_v35, 16 }
 0x2d6   :  { %12560 = vmatprep.subr.bf16.mxu1 %v13584_v5  ;;  %v11129_v0 = vcombine.low %v4759_v57, %v4763_v62  ;;  %v11103_v13 = vrot.slane %v4686_v58, 9  ;;  %v5318_v57 = vshll.u32 %v5246_v22, 16  ;;  %v13603_v62 = vld [vmem:[#allocation2 + $0x58] ss:$8 sps:$4 sm:$0xff]   ;;  %v5306_v58 = vrot.slane %v5304_v4, 5 }
 0x2d8   :  { %v4767_v12 = vsel %vm14412_vm12, %v11103_v13, %v4766_v29  ;;  %v5332_v13 = vshll.u32 %v5248_v33, 16  ;;  %v5282_v29 = vshll.u32 %v15709_v43, 16 }
 0x2d9   :  { %12561 = vmatpush3.bf16.msra.mxu1 %v13584_v5  ;;  %v13591_v5 = vld [vmem:[%s17047_s2 + $0x318] sm:$0xff]   ;;  %v11130_v49 = vcombine.low %v4767_v12, %v4771_v7  ;;  %v5346_v7 = vshll.u32 %v5250_v32, 16  ;;  %v15720_v12 = vld [vmem:[#allocation2 + $0x24] sm:$0x1] }
 0x2da   :  { %12562 = vmatprep.subr.bf16.mxu1 %v13585_v41  ;;  %v5284_v1 = vrot.slane %v5282_v29, 5 }
 0x2dc   :  { %12547 = vmatmul.mubr.bf16.gmra.mrb[28].mxu1 %v11084_v30  ;;  %v4774_v30 = vrot.slane %v15535_v23, 5  ;;  %v13593_v23 = vld [vmem:[%s17047_s2 + $0x328] sm:$0xff]  }
 0x2dd   :  { %12563 = vmatpush3.bf16.msra.mxu1 %v13585_v41  ;;  %12566 = vmatprep.mubr.bf16.mxu1 %v11125_v6  ;;  %v4778_v41 = vrot.slane %v15537_v52, 5  ;;  %v4691_v52 = vld [vmem:[#allocation2 + $0x88] sm:$0xe] }
 0x2de   :  { %12564 = vmatprep.subr.bf16.mxu1 %v13587_v20  ;;  %v4775_v6 = vsel %vm14412_vm12, %v11105_v2, %v4774_v30  ;;  %v11108_v31 = vrot.slane %v4691_v52, 9  ;;  %v5296_v2 = vshll.u32 %v15711_v11, 16  ;;  %v5343_v30 = vshrl.u32 %v5250_v32, 16  ;;  %v15718_v52 = vld [vmem:[#allocation2 + $0x1c] sm:$0x1] }
 0x2e1   :  { %12565 = vmatpush3.bf16.msra.mxu1 %v13587_v20  ;;  %v4779_v20 = vsel %vm14412_vm12, %v11106_v27, %v4778_v41  ;;  %v5320_v27 = vrot.slane %v5318_v57, 5  ;;  %v5329_v41 = vshrl.u32 %v5248_v33, 16  ;;  %v13611_v33 = vld [vmem:[%s17047_s2 + $0x378] sm:$0xff]  }
 0x2e2   :  { %12582 = vmatprep.subr.bf16.mxu1 %v13588_v37  ;;  %v11131_v18 = vcombine.low %v4775_v6, %v4779_v20  ;;  %v13608_v6 = vld [vmem:[%s17047_s2 + $0x368] sm:$0xff]  }
 0x2e4   :  { %12567 = vmatmul.mubr.bf16.vlgmr.msra.gmra.mrb[16].mxu1 %v11126_v24  ;;  %v5273_v24 = vshrl.u32 %v5240_v45, 16 }
 0x2e5   :  { %12583 = vmatpush3.bf16.msra.mxu1 %v13588_v37  ;;  %12570 = vmatprep.mubr.bf16.mxu1 %v11127_v40  ;;  %v4787_v37 = vsel %vm14412_vm12, %v11108_v31, %v4786_v16  ;;  %v5290_v40 = vshll.u32 %v5242_v36, 16  ;;  %v5331_v31 = vrot.slane %v5329_v41, 4  ;;  %v5334_v16 = vrot.slane %v5332_v13, 5 }
 0x2e6   :  { %12584 = vmatprep.subr.bf16.mxu1 %v13589_v47  ;;  %v11132_v19 = vcombine.low %v4783_v61, %v4787_v37  ;;  %v5275_v15 = vrot.slane %v5273_v24, 4  ;;  %v5298_v37 = vrot.slane %v5296_v2, 5  ;;  %v5324_v61 = vshll.u32 %v15720_v12, 16 }
 0x2e7   :  { %v5292_v56 = vrot.slane %v5290_v40, 5 }
 0x2e9   :  { %12585 = vmatpush3.bf16.msra.mxu1 %v13589_v47  ;;  %v5276_v47 = vshll.u32 %v5240_v45, 16  ;;  %v5310_v45 = vshll.u32 %v15718_v52, 16 }
 0x2ea   :  { %12586 = vmatprep.subr.bf16.mxu1 %v13590_v51 }
 0x2eb   :  { %v5278_v10 = vrot.slane %v5276_v47, 5  ;;  %v15737_v47 = vld [vmem:[#allocation2 + $0x34] sm:$0x1] }
 0x2ec   :  { %12571 = vmatmul.mubr.bf16.gmra.mrb[20].mxu1 %v11128_v50 }
 0x2ed   :  { %12587 = vmatpush3.bf16.msra.mxu1 %v13590_v51  ;;  %12574 = vmatprep.mubr.bf16.mxu1 %v11129_v0  ;;  %v5289_v51 = vrot.slane %v5287_v28, 4  ;;  %v5279_v50 = vor.u32 %v5278_v10, %v5275_v15  ;;  %v5317_v0 = vrot.slane %v5315_v8, 4  ;;  %v5335_v28 = vor.u32 %v5334_v16, %v5331_v31  ;;  %v5256_v10 = vld [vmem:[#allocation2 + $0x58] sm:$0xf]  ;;  %v13612_v31 = vld [vmem:[%s17047_s2 + $0x380] sm:$0xff]  }
 0x2ee   :  { %12588 = vmatprep.subr.bf16.mxu1 %v13591_v5  ;;  %v5388_v32 = vshll.u32 %v5256_v10, 16 }
 0x2ef   :  { %v5293_v48 = vor.u32 %v5292_v56, %v5289_v51  ;;  %v5280_v20 = vrot.slane %v5279_v50, 4  ;;  %v5321_v26 = vor.u32 %v5320_v27, %v5317_v0  ;;  %v5312_v56 = vrot.slane %v5310_v45, 5  ;;  %v5264_v45 = vld [vmem:[#allocation2 + $0x78] sm:$0xf] }
 0x2f0   :  { %v5385_v0 = vshrl.u32 %v5256_v10, 16  ;;  %v5441_v10 = vshrl.u32 %v5264_v45, 16 }
 0x2f1   :  { %12589 = vmatpush3.bf16.msra.mxu1 %v13591_v5  ;;  %v5303_v5 = vrot.slane %v5301_v9, 4  ;;  %v5326_v9 = vrot.slane %v5324_v61, 5 }
 0x2f2   :  { %12590 = vmatprep.subr.bf16.mxu1 %v13592_v46 }
 0x2f4   :  { %12575 = vmatmul.mubr.bf16.gmra.mrb[24].mxu1 %v11130_v49  ;;  %v5307_v49 = vor.u32 %v5306_v58, %v5303_v5  ;;  %v5336_v5 = vrot.slane %v5335_v28, 4  ;;  %v15745_v58 = vld [vmem:[#allocation2 + $0x3c] sm:$0x1] }
 0x2f5   :  { %12591 = vmatpush3.bf16.msra.mxu1 %v13592_v46  ;;  %12578 = vmatprep.mubr.bf16.mxu1 %v11131_v18  ;;  %v13606_v46 = vld [vmem:[#allocation2 + $0x68] ss:$8 sps:$4 sm:$0xff]   ;;  %v15725_v18 = vld [vmem:[#allocation2 + $0x2c] sm:$0x1] }
 0x2f6   :  { %12592 = vmatprep.subr.bf16.mxu1 %v13593_v23  ;;  %v5308_v24 = vrot.slane %v5307_v49, 4 }
 0x2f8   :  { %v5313_v29 = vsel %vm13981_vm9, %v5308_v24, %v5312_v56  ;;  %v13614_v56 = vld [vmem:[%s17047_s2 + $0x390] sm:$0xff]  }
 0x2f9   :  { %12593 = vmatpush3.bf16.msra.mxu1 %v13593_v23  ;;  %v5294_v23 = vrot.slane %v5293_v48, 4 }
 0x2fa   :  { %12594 = vmatprep.subr.bf16.mxu1 %v13594_v55 }
 0x2fb   :  { %v5299_v36 = vsel %vm13981_vm9, %v5294_v23, %v5298_v37  ;;  %v15752_v23 = vld [vmem:[#allocation2 + $0x5c] sm:$0x1]  ;;  %v5260_v37 = vld [vmem:[#allocation2 + $0x68] sm:$0xf] }
 0x2fc   :  { %12579 = vmatmul.mubr.bf16.gmra.mrb[28].mxu1 %v11132_v19  ;;  %v5345_v19 = vrot.slane %v5343_v30, 4  ;;  %v5413_v28 = vshrl.u32 %v5260_v37, 16 }
 0x2fd   :  { %12595 = vmatpush3.bf16.msra.mxu1 %v13594_v55  ;;  %12598 = vmatprep.mubr.bf16.mxu1 %v13595_v3  ;;  %v5252_v55 = vld [vmem:[#allocation2 + $0x38] sm:$0xf]  ;;  %v5254_v3 = vld [vmem:[#allocation2 + $0x40] sm:$0xf] }
 0x2fe   :  { %12596 = vmatprep.subr.bf16.mxu1 %v13596_v59  ;;  %v5357_v40 = vshrl.u32 %v5252_v55, 16  ;;  %v5360_v35 = vshll.u32 %v5252_v55, 16  ;;  %v5371_v22 = vshrl.u32 %v5254_v3, 16  ;;  %v5374_v15 = vshll.u32 %v5254_v3, 16 }
 0x2ff   :  { %v5390_v55 = vrot.slane %v5388_v32, 5 }
 0x300   :  { %v5359_v48 = vrot.slane %v5357_v40, 4  ;;  %v5362_v27 = vrot.slane %v5360_v35, 5  ;;  %v5373_v41 = vrot.slane %v5371_v22, 4  ;;  %v5376_v13 = vrot.slane %v5374_v15, 5  ;;  %v13613_v35 = vld [vmem:[%s17047_s2 + $0x388] sm:$0xff]  }
 0x301   :  { %12597 = vmatpush3.bf16.msra.mxu1 %v13596_v59  ;;  %v5348_v59 = vrot.slane %v5346_v7, 5  ;;  %v5262_v7 = vld [vmem:[#allocation2 + $0x70] sm:$0xf]  ;;  %v5416_v40 = vshll.u32 %v5260_v37, 16 }
 0x302   :  { %12614 = vmatprep.subr.bf16.mxu1 %v13597_v25  ;;  %v5363_v61 = vor.u32 %v5362_v27, %v5359_v48  ;;  %v5427_v3 = vshrl.u32 %v5262_v7, 16  ;;  %v15774_v48 = vld [vmem:[#allocation2 + $0x74] sm:$0x1]  ;;  %v5415_v27 = vrot.slane %v5413_v28, 4 }
 0x303   :  { %v5349_v4 = vor.u32 %v5348_v59, %v5345_v19  ;;  %v5377_v19 = vor.u32 %v5376_v13, %v5373_v41  ;;  %v15760_v59 = vld [vmem:[#allocation2 + $0x64] sm:$0x1]  ;;  %v5418_v41 = vrot.slane %v5416_v40, 5  ;;  %v5436_v37 = vshll.u32 %v15774_v48, 16 }
 0x304   :  { %12599 = vmatmul.mubr.bf16.vlgmr.msra.gmra.mrb[16].mxu1 %v13598_v44  ;;  %v5338_v44 = vshll.u32 %v15725_v18, 16  ;;  %v5408_v15 = vshll.u32 %v15760_v59, 16 }
 0x305   :  { %12615 = vmatpush3.bf16.msra.mxu1 %v13597_v25  ;;  %12602 = vmatprep.mubr.bf16.mxu1 %v13599_v14  ;;  %v5285_v25 = vsel %vm13981_vm9, %v5280_v20, %v5284_v1  ;;  %v13609_v14 = vld [vmem:[%s17047_s2 + $0x370] sm:$0xff]   ;;  %v5387_v1 = vrot.slane %v5385_v0, 4 }
 0x306   :  { %12616 = vmatprep.subr.bf16.mxu1 %v13600_v34  ;;  %v11189_v51 = vcombine.low %v5285_v25, %v5299_v36  ;;  %v5340_v57 = vrot.slane %v5338_v44, 5  ;;  %v5430_v25 = vshll.u32 %v5262_v7, 16 }
 0x307   :  { %v5391_v22 = vor.u32 %v5390_v55, %v5387_v1  ;;  %v5419_v55 = vor.u32 %v5418_v41, %v5415_v27  ;;  %v5707_v41 = vld [vmem:[#allocation2 + $0x10] sm:$0xe] }
 0x308   :  { %v5341_v16 = vsel %vm13981_vm9, %v5336_v5, %v5340_v57  ;;  %v5364_v57 = vrot.slane %v5363_v61, 4  ;;  %v5270_v5 = vld [vmem:[#allocation2 + $0x90] sm:$0xf]  ;;  %v15786_v61 = vld [vmem:[#allocation2 + $0x7c] sm:$0x1] }
 0x309   :  { %12617 = vmatpush3.bf16.msra.mxu1 %v13600_v34  ;;  %v5258_v34 = vld [vmem:[#allocation2 + $0x60] sm:$0xf]  ;;  %v5392_v13 = vrot.slane %v5391_v22, 4  ;;  %v5450_v40 = vshll.u32 %v15786_v61, 16  ;;  %v5420_v22 = vrot.slane %v5419_v55, 4  ;;  %v5756_v55 = vrot.slane %v15709_v43, 5 }
 0x30a   :  { %12618 = vmatprep.subr.bf16.mxu1 %v13601_v54  ;;  %v5399_v8 = vshrl.u32 %v5258_v34, 16  ;;  %v13619_v43 = vld [vmem:[%s17047_s2 + $0x3b8] sm:$0xff]  }
 0x30c   :  { %12603 = vmatmul.mubr.bf16.gmra.mrb[20].mxu1 %v13602_v63  ;;  %v5402_v63 = vshll.u32 %v5258_v34, 16  ;;  %v5401_v2 = vrot.slane %v5399_v8, 4  ;;  %v5378_v8 = vrot.slane %v5377_v19, 4 }
 0x30d   :  { %12619 = vmatpush3.bf16.msra.mxu1 %v13601_v54  ;;  %12606 = vmatprep.mubr.bf16.mxu1 %v13603_v62  ;;  %v5322_v54 = vrot.slane %v5321_v26, 4  ;;  %v5352_v62 = vshll.u32 %v15737_v47, 16  ;;  %v5266_v26 = vld [vmem:[#allocation2 + $0x80] sm:$0xf] }
 0x30e   :  { %12620 = vmatprep.subr.bf16.mxu1 %v13604_v60  ;;  %v5404_v30 = vrot.slane %v5402_v63, 5  ;;  %v5458_v36 = vshll.u32 %v5266_v26, 16  ;;  %v15769_v63 = vld [vmem:[#allocation2 + $0x6c] sm:$0x1] }
 0x30f   :  { %v5327_v50 = vsel %vm13981_vm9, %v5322_v54, %v5326_v9  ;;  %v5354_v49 = vrot.slane %v5352_v62, 5  ;;  %v5394_v54 = vshll.u32 %v15752_v23, 16  ;;  %v5444_v9 = vshll.u32 %v5264_v45, 16 }
 0x310   :  { %v11190_v20 = vcombine.low %v5313_v29, %v5327_v50  ;;  %v5405_v34 = vor.u32 %v5404_v30, %v5401_v2  ;;  %v5460_v50 = vrot.slane %v5458_v36, 5  ;;  %v5410_v29 = vrot.slane %v5408_v15, 5  ;;  %v5268_v30 = vld [vmem:[#allocation2 + $0x88] sm:$0xf] }
 0x311   :  { %12621 = vmatpush3.bf16.msra.mxu1 %v13604_v60  ;;  %v13610_v60 = vld [vmem:[#allocation2 + $0x88] ss:$8 sps:$4 sm:$0xff]   ;;  %v5396_v32 = vrot.slane %v5394_v54, 5  ;;  %v5446_v2 = vrot.slane %v5444_v9, 5  ;;  %v5469_v19 = vshrl.u32 %v5268_v30, 16  ;;  %v5438_v15 = vrot.slane %v5436_v37, 5 }
 0x312   :  { %12622 = vmatprep.subr.bf16.mxu1 %v13605_v53  ;;  %v5406_v62 = vrot.slane %v5405_v34, 4 }
 0x313   :  { %v5397_v45 = vsel %vm13981_vm9, %v5392_v13, %v5396_v32 }
 0x314   :  { %12607 = vmatmul.mubr.bf16.gmra.mrb[24].mxu1 %v13606_v46  ;;  %v5350_v46 = vrot.slane %v5349_v4, 4 }
 0x315   :  { %12623 = vmatpush3.bf16.msra.mxu1 %v13605_v53  ;;  %12610 = vmatprep.mubr.bf16.mxu1 %v13607_v17  ;;  %v15747_v53 = vld [vmem:[#allocation2 + $0x44] sm:$0x1] }
 0x316   :  { %12624 = vmatprep.subr.bf16.mxu1 %v13608_v6  ;;  %v5380_v17 = vshll.u32 %v15747_v53, 16  ;;  %v5355_v44 = vsel %vm13981_vm9, %v5350_v46, %v5354_v49  ;;  %v5443_v46 = vrot.slane %v5441_v10, 4  ;;  %v15778_v49 = vld [vmem:[#allocation2 + $0x84] sm:$0x1]  ;;  %v5471_v10 = vrot.slane %v5469_v19, 4 }
 0x317   :  { %v11191_v4 = vcombine.low %v5341_v16, %v5355_v44  ;;  %v5411_v16 = vsel %vm13981_vm9, %v5406_v62, %v5410_v29  ;;  %v13615_v44 = vld [vmem:[%s17047_s2 + $0x398] sm:$0xff]  }
 0x318   :  { %v5382_v0 = vrot.slane %v5380_v17, 5  ;;  %v5422_v17 = vshll.u32 %v15769_v63, 16  ;;  %v5447_v34 = vor.u32 %v5446_v2, %v5443_v46  ;;  %v11193_v36 = vcombine.low %v5397_v45, %v5411_v16  ;;  %v13617_v46 = vld [vmem:[%s17047_s2 + $0x3a8] sm:$0xff]   ;;  %v5711_v45 = vld [vmem:[#allocation2 + $0x30] sm:$0xe] }
 0x319   :  { %12625 = vmatpush3.bf16.msra.mxu1 %v13608_v6  ;;  %v5366_v6 = vshll.u32 %v15745_v58, 16 }
 0x31a   :  { %12626 = vmatprep.subr.bf16.mxu1 %v13609_v14  ;;  %v5383_v7 = vsel %vm13981_vm9, %v5378_v8, %v5382_v0  ;;  %v5448_v8 = vrot.slane %v5447_v34, 4 }
 0x31b   :  { %v5368_v24 = vrot.slane %v5366_v6, 5  ;;  %v5483_v6 = vshrl.u32 %v5270_v5, 16 }
 0x31c   :  { %12611 = vmatmul.mubr.bf16.gmra.mrb[28].mxu1 %v13610_v60  ;;  %v5429_v60 = vrot.slane %v5427_v3, 4  ;;  %v5472_v3 = vshll.u32 %v5268_v30, 16 }
 0x31d   :  { %12627 = vmatpush3.bf16.msra.mxu1 %v13609_v14  ;;  %12630 = vmatprep.mubr.bf16.mxu1 %v11189_v51  ;;  %v5455_v14 = vshrl.u32 %v5266_v26, 16  ;;  %v5432_v51 = vrot.slane %v5430_v25, 5  ;;  %v5486_v26 = vshll.u32 %v5270_v5, 16  ;;  %v5485_v54 = vrot.slane %v5483_v6, 4  ;;  %v15804_v5 = vld [vmem:[#allocation2 + $0x8c] sm:$0x1] }
 0x31e   :  { %12628 = vmatprep.subr.bf16.mxu1 %v13611_v33  ;;  %v5474_v9 = vrot.slane %v5472_v3, 5  ;;  %v5478_v30 = vshll.u32 %v15804_v5, 16  ;;  %v11206_v6 = vrot.slane %v5707_v41, 9  ;;  %v5792_v41 = vrot.slane %v15760_v59, 5  ;;  %v5717_v59 = vld [vmem:[#allocation2 + $0x70] sm:$0xe] }
 0x31f   :  { %v5488_v28 = vrot.slane %v5486_v26, 5  ;;  %v5760_v26 = vrot.slane %v15711_v11, 5  ;;  %v5709_v11 = vld [vmem:[#allocation2 + $0x20] sm:$0xe] }
 0x320   :  { %v5475_v32 = vor.u32 %v5474_v9, %v5471_v10  ;;  %v5480_v37 = vrot.slane %v5478_v30, 5  ;;  %v13620_v10 = vld [vmem:[%s17047_s2 + $0x3c0] sm:$0xff]   ;;  %v5788_v30 = vrot.slane %v15752_v23, 5  ;;  %v13623_v23 = vld [vmem:[%s17047_s2 + $0x3d8] sm:$0xff]  }
 0x321   :  { %12629 = vmatpush3.bf16.msra.mxu1 %v13611_v33  ;;  %v5457_v33 = vrot.slane %v5455_v14, 4  ;;  %v5464_v14 = vshll.u32 %v15778_v49, 16  ;;  %v5761_v3 = vsel %vm14412_vm12, %v11206_v6, %v5760_v26 }
 0x322   :  { %12646 = vmatprep.subr.bf16.mxu1 %v13612_v31 }
 0x323   :  { %v5461_v1 = vor.u32 %v5460_v50, %v5457_v33  ;;  %v5489_v33 = vor.u32 %v5488_v28, %v5485_v54  ;;  %v5768_v54 = vrot.slane %v15720_v12, 5  ;;  %v5710_v28 = vld [vmem:[#allocation2 + $0x28] sm:$0xe] }
 0x324   :  { %12631 = vmatmul.mubr.bf16.vlgmr.msra.gmra.mrb[16].mxu1 %v11190_v20  ;;  %v5433_v20 = vor.u32 %v5432_v51, %v5429_v60  ;;  %v5466_v60 = vrot.slane %v5464_v14, 5  ;;  %v15798_v51 = vld [vmem:[#allocation2 + $0x94] sm:$0x1]  ;;  %v5708_v14 = vld [vmem:[#allocation2 + $0x18] sm:$0xe]  ;;  %v11209_v9 = vrot.slane %v5710_v28, 9 }
 0x325   :  { %12647 = vmatpush3.bf16.msra.mxu1 %v13612_v31  ;;  %12634 = vmatprep.mubr.bf16.mxu1 %v11191_v4  ;;  %v5369_v31 = vsel %vm13981_vm9, %v5364_v57, %v5368_v24  ;;  %v13616_v4 = vld [vmem:[%s17047_s2 + $0x3a0] sm:$0xff]   ;;  %v5424_v57 = vrot.slane %v5422_v17, 5  ;;  %v5492_v27 = vshll.u32 %v15798_v51, 16  ;;  %v13618_v17 = vld [vmem:[%s17047_s2 + $0x3b0] sm:$0xff]   ;;  %v5816_v28 = vrot.slane %v15798_v51, 5 }
 0x326   :  { %12648 = vmatprep.subr.bf16.mxu1 %v13613_v35  ;;  %v11192_v25 = vcombine.low %v5369_v31, %v5383_v7  ;;  %v5434_v24 = vrot.slane %v5433_v20, 4  ;;  %v5490_v7 = vrot.slane %v5489_v33, 4  ;;  %v5706_v20 = vld [vmem:[#allocation2 + $0x8] sm:$0xe]  ;;  %v5476_v31 = vrot.slane %v5475_v32, 4 }
 0x327   :  { %v5425_v0 = vsel %vm13981_vm9, %v5420_v22, %v5424_v57  ;;  %v5494_v16 = vrot.slane %v5492_v27, 5  ;;  %v11207_v22 = vrot.slane %v5708_v14, 9  ;;  %v5712_v33 = vld [vmem:[#allocation2 + $0x38] sm:$0xe] }
 0x328   :  { %v5439_v62 = vsel %vm13981_vm9, %v5434_v24, %v5438_v15  ;;  %v11208_v24 = vrot.slane %v5709_v11, 9  ;;  %v5764_v15 = vrot.slane %v15718_v52, 5  ;;  %v5715_v52 = vld [vmem:[#allocation2 + $0x60] sm:$0xe]  ;;  %v5714_v32 = vld [vmem:[#allocation2 + $0x58] sm:$0xe] }
 0x329   :  { %12649 = vmatpush3.bf16.msra.mxu1 %v13613_v35  ;;  %v5462_v35 = vrot.slane %v5461_v1, 4  ;;  %v11194_v13 = vcombine.low %v5425_v0, %v5439_v62  ;;  %v11205_v1 = vrot.slane %v5706_v20, 9  ;;  %v5495_v19 = vsel %vm13981_vm9, %v5490_v7, %v5494_v16 }
 0x32a   :  { %12650 = vmatprep.subr.bf16.mxu1 %v13614_v56  ;;  %v5769_v12 = vsel %vm14412_vm12, %v11208_v24, %v5768_v54  ;;  %v5784_v0 = vrot.slane %v15747_v53, 5  ;;  %v11214_v27 = vrot.slane %v5715_v52, 9  ;;  %v5796_v11 = vrot.slane %v15769_v63, 5  ;;  %v6272_v52 = vld [vmem:[#allocation2 + $0x18] sm:$0xf] }
 0x32b   :  { %v5467_v50 = vsel %vm13981_vm9, %v5462_v35, %v5466_v60  ;;  %v5757_v34 = vsel %vm14412_vm12, %v11205_v1, %v5756_v55  ;;  %v5776_v35 = vrot.slane %v15737_v47, 5  ;;  %v5713_v47 = vld [vmem:[#allocation2 + $0x40] sm:$0xe]  ;;  %v5765_v60 = vsel %vm14412_vm12, %v11207_v22, %v5764_v15  ;;  %v5718_v55 = vld [vmem:[#allocation2 + $0x78] sm:$0xe]  ;;  %v13626_v22 = vld [vmem:[%s17047_s2 + $0x3f0] sm:$0xff]  }
 0x32c   :  { %12635 = vmatmul.mubr.bf16.gmra.mrb[20].mxu1 %v11192_v25  ;;  %v5481_v25 = vsel %vm13981_vm9, %v5476_v31, %v5480_v37  ;;  %v11238_v57 = vcombine.low %v5765_v60, %v5769_v12  ;;  %v5793_v7 = vsel %vm14412_vm12, %v11214_v27, %v5792_v41  ;;  %v5716_v31 = vld [vmem:[#allocation2 + $0x68] sm:$0xe]  ;;  %v5800_v1 = vrot.slane %v15774_v48, 5  ;;  %v13631_v60 = vld [vmem:[#allocation2 + $0x30] ss:$8 sps:$4 sm:$0xff]  }
 0x32d   :  { %12651 = vmatpush3.bf16.msra.mxu1 %v13614_v56  ;;  %12638 = vmatprep.mubr.bf16.mxu1 %v11193_v36  ;;  %v5452_v56 = vrot.slane %v5450_v40, 5  ;;  %v11237_v36 = vcombine.low %v5757_v34, %v5761_v3  ;;  %v11210_v40 = vrot.slane %v5711_v45, 9  ;;  %v11215_v3 = vrot.slane %v5716_v31, 9  ;;  %v13630_v12 = vld [vmem:[#allocation2 + $0x20] ss:$8 sps:$4 sm:$0xff]  }
 0x32e   :  { %12652 = vmatprep.subr.bf16.mxu1 %v13615_v44  ;;  %v11217_v45 = vrot.slane %v5718_v55, 9  ;;  %v6274_v27 = vld [vmem:[#allocation2 + $0x20] sm:$0xf]  ;;  %v15917_v55 = vld [vmem:[#allocation2 + $0x24] sm:$0x1] }
 0x32f   :  { %v5453_v29 = vsel %vm13981_vm9, %v5448_v8, %v5452_v56  ;;  %v5777_v8 = vsel %vm14412_vm12, %v11210_v40, %v5776_v35  ;;  %v5812_v35 = vrot.slane %v15804_v5, 5  ;;  %v13629_v5 = vld [vmem:[%s17047_s2 + $0x400] sm:$0xff]  }
 0x330   :  { %v11195_v2 = vcombine.low %v5453_v29, %v5467_v50  ;;  %v11212_v50 = vrot.slane %v5713_v47, 9  ;;  %v5780_v29 = vrot.slane %v15745_v58, 5  ;;  %v5719_v58 = vld [vmem:[#allocation2 + $0x80] sm:$0xe]  ;;  %v6270_v47 = vld [vmem:[#allocation2 + $0x10] sm:$0xf] }
 0x331   :  { %12653 = vmatpush3.bf16.msra.mxu1 %v13615_v44  ;;  %v11196_v44 = vcombine.low %v5481_v25, %v5495_v19  ;;  %v11218_v37 = vrot.slane %v5719_v58, 9  ;;  %v5808_v19 = vrot.slane %v15778_v49, 5  ;;  %v13624_v25 = vld [vmem:[%s17047_s2 + $0x3e0] sm:$0xff]   ;;  %v5721_v49 = vld [vmem:[#allocation2 + $0x90] sm:$0xe] }
 0x332   :  { %12654 = vmatprep.subr.bf16.mxu1 %v13616_v4  ;;  %v5785_v53 = vsel %vm14412_vm12, %v11212_v50, %v5784_v0  ;;  %v11220_v54 = vrot.slane %v5721_v49, 9  ;;  %v6320_v50 = vshll.u32 %v6272_v52, 16  ;;  %v6280_v58 = vld [vmem:[#allocation2 + $0x38] sm:$0xf]  ;;  %v6282_v49 = vld [vmem:[#allocation2 + $0x40] sm:$0xf] }
 0x333   :  { %v5809_v34 = vsel %vm14412_vm12, %v11218_v37, %v5808_v19 }
 0x334   :  { %12639 = vmatmul.mubr.bf16.gmra.mrb[24].mxu1 %v11194_v13  ;;  %v11211_v13 = vrot.slane %v5712_v33, 9  ;;  %v5817_v15 = vsel %vm14412_vm12, %v11220_v54, %v5816_v28  ;;  %v6276_v33 = vld [vmem:[#allocation2 + $0x28] sm:$0xf] }
 0x335   :  { %12655 = vmatpush3.bf16.msra.mxu1 %v13616_v4  ;;  %12642 = vmatprep.mubr.bf16.mxu1 %v11195_v2  ;;  %v5772_v4 = vrot.slane %v15725_v18, 5  ;;  %v13621_v18 = vld [vmem:[%s17047_s2 + $0x3c8] sm:$0xff]   ;;  %v11213_v2 = vrot.slane %v5714_v32, 9  ;;  %v6345_v41 = vshrl.u32 %v6276_v33, 16 }
 0x336   :  { %12656 = vmatprep.subr.bf16.mxu1 %v13617_v46  ;;  %v5781_v20 = vsel %vm14412_vm12, %v11211_v13, %v5780_v29  ;;  %v6348_v13 = vshll.u32 %v6276_v33, 16  ;;  %v13634_v29 = vld [vmem:[#allocation2 + $0x40] ss:$8 sps:$4 sm:$0xff]   ;;  %v15931_v33 = vld [vmem:[#allocation2 + $0x3c] sm:$0x1] }
 0x337   :  { %v5773_v62 = vsel %vm14412_vm12, %v11209_v9, %v5772_v4  ;;  %v11240_v6 = vcombine.low %v5781_v20, %v5785_v53  ;;  %v5789_v26 = vsel %vm14412_vm12, %v11213_v2, %v5788_v30  ;;  %v13628_v9 = vld [vmem:[%s17047_s2 + $0x3f8] sm:$0xff]   ;;  %v13635_v2 = vld [vmem:[#allocation2 + $0x60] ss:$8 sps:$4 sm:$0xff]   ;;  %v15909_v30 = vld [vmem:[#allocation2 + $0x14] sm:$0x1]  ;;  %v6334_v20 = vshll.u32 %v6274_v27, 16 }
 0x338   :  { %v11239_v56 = vcombine.low %v5773_v62, %v5777_v8  ;;  %v11241_v16 = vcombine.low %v5789_v26, %v5793_v7  ;;  %v13627_v4 = vld [vmem:[#allocation2 + $0x10] ss:$8 sps:$4 sm:$0xff]   ;;  %v13632_v8 = vld [vmem:[%s17047_s2 + $0x408] sm:$0xff]   ;;  %v6306_v62 = vshll.u32 %v6270_v47, 16  ;;  %v6347_v31 = vrot.slane %v6345_v41, 4 }
 0x339   :  { %12657 = vmatpush3.bf16.msra.mxu1 %v13617_v46  ;;  %v13622_v46 = vld [vmem:[%s17047_s2 + $0x3d0] sm:$0xff]   ;;  %v13640_v54 = vld [vmem:[%s17047_s2 + $0x428] sm:$0xff]  }
 0x33a   :  { %12658 = vmatprep.subr.bf16.mxu1 %v13618_v17  ;;  %v6308_v32 = vrot.slane %v6306_v62, 5  ;;  %v6278_v53 = vld [vmem:[#allocation2 + $0x30] sm:$0xf] }
 0x33b   :  { %v6359_v37 = vshrl.u32 %v6278_v53, 16  ;;  %v6362_v19 = vshll.u32 %v6278_v53, 16 }
 0x33c   :  { %12643 = vmatmul.mubr.bf16.gmra.mrb[28].mxu1 %v11196_v44  ;;  %v5804_v44 = vrot.slane %v15786_v61, 5  ;;  %v13625_v61 = vld [vmem:[%s17047_s2 + $0x3e8] sm:$0xff]  }
 0x33d   :  { %12659 = vmatpush3.bf16.msra.mxu1 %v13618_v17  ;;  %12662 = vmatprep.mubr.bf16.mxu1 %v11237_v36  ;;  %v11216_v17 = vrot.slane %v5717_v59, 9  ;;  %v5720_v36 = vld [vmem:[#allocation2 + $0x88] sm:$0xe]  ;;  %v6331_v59 = vshrl.u32 %v6274_v27, 16 }
 0x33e   :  { %12660 = vmatprep.subr.bf16.mxu1 %v13619_v43  ;;  %v5805_v14 = vsel %vm14412_vm12, %v11217_v45, %v5804_v44  ;;  %v11219_v40 = vrot.slane %v5720_v36, 9  ;;  %v13638_v45 = vld [vmem:[#allocation2 + $0x70] ss:$8 sps:$4 sm:$0xff]  }
 0x33f   :  { %v5801_v48 = vsel %vm14412_vm12, %v11216_v17, %v5800_v1  ;;  %v11243_v24 = vcombine.low %v5805_v14, %v5809_v34  ;;  %v13637_v17 = vld [vmem:[%s17047_s2 + $0x420] sm:$0xff]   ;;  %v6312_v1 = vshll.u32 %v15909_v30, 16  ;;  %v6336_v34 = vrot.slane %v6334_v20, 5 }
 0x340   :  { %v6382_v20 = vshll.u32 %v15931_v33, 16 }
 0x341   :  { %12661 = vmatpush3.bf16.msra.mxu1 %v13619_v43  ;;  %v5797_v43 = vsel %vm14412_vm12, %v11215_v3, %v5796_v11  ;;  %v15919_v3 = vld [vmem:[#allocation2 + $0x2c] sm:$0x1]  ;;  %v6373_v11 = vshrl.u32 %v6280_v58, 16  ;;  %v6314_v28 = vrot.slane %v6312_v1, 5 }
 0x342   :  { %12678 = vmatprep.subr.bf16.mxu1 %v13620_v10  ;;  %v11242_v63 = vcombine.low %v5797_v43, %v5801_v48  ;;  %v6333_v48 = vrot.slane %v6331_v59, 4  ;;  %v13639_v43 = vld [vmem:[#allocation2 + $0x80] ss:$8 sps:$4 sm:$0xff]  }
 0x344   :  { %12663 = vmatmul.mubr.bf16.vlgmr.msra.gmra.mrb[16].mxu1 %v11238_v57  ;;  %v6303_v57 = vshrl.u32 %v6270_v47, 16 }
 0x345   :  { %12679 = vmatpush3.bf16.msra.mxu1 %v13620_v10  ;;  %12666 = vmatprep.mubr.bf16.mxu1 %v11239_v56  ;;  %v5813_v10 = vsel %vm14412_vm12, %v11219_v40, %v5812_v35  ;;  %v6317_v56 = vshrl.u32 %v6272_v52, 16  ;;  %v6354_v40 = vshll.u32 %v15919_v3, 16  ;;  %v6361_v35 = vrot.slane %v6359_v37, 4  ;;  %v6292_v37 = vld [vmem:[#allocation2 + $0x78] sm:$0xf] }
 0x346   :  { %12680 = vmatprep.subr.bf16.mxu1 %v13621_v18  ;;  %v11244_v51 = vcombine.low %v5813_v10, %v5817_v15  ;;  %v6305_v0 = vrot.slane %v6303_v57, 4  ;;  %v6375_v15 = vrot.slane %v6373_v11, 4 }
 0x347   :  { %v6319_v7 = vrot.slane %v6317_v56, 4  ;;  %v13641_v56 = vld [vmem:[%s17047_s2 + $0x430] sm:$0xff]  }
 0x348   :  { %v6309_v26 = vor.u32 %v6308_v32, %v6305_v0  ;;  %v6286_v32 = vld [vmem:[#allocation2 + $0x60] sm:$0xf] }
 0x349   :  { %12681 = vmatpush3.bf16.msra.mxu1 %v13621_v18  ;;  %v13633_v18 = vld [vmem:[%s17047_s2 + $0x410] sm:$0xff]   ;;  %v6418_v1 = vshll.u32 %v6286_v32, 16 }
 0x34a   :  { %12682 = vmatprep.subr.bf16.mxu1 %v13622_v46 }
 0x34c   :  { %12667 = vmatmul.mubr.bf16.gmra.mrb[20].mxu1 %v11240_v6  ;;  %v15911_v6 = vld [vmem:[#allocation2 + $0x1c] sm:$0x1] }
 0x34d   :  { %12683 = vmatpush3.bf16.msra.mxu1 %v13622_v46  ;;  %12670 = vmatprep.mubr.bf16.mxu1 %v11241_v16  ;;  %v13636_v46 = vld [vmem:[%s17047_s2 + $0x418] sm:$0xff]   ;;  %v6350_v16 = vrot.slane %v6348_v13, 5  ;;  %v6326_v44 = vshll.u32 %v15911_v6, 16 }
 0x34e   :  { %12684 = vmatprep.subr.bf16.mxu1 %v13623_v23 }
 0x34f   :  { %v6351_v36 = vor.u32 %v6350_v16, %v6347_v31  ;;  %v15944_v16 = vld [vmem:[#allocation2 + $0x4c] sm:$0x1] }
 0x351   :  { %12685 = vmatpush3.bf16.msra.mxu1 %v13623_v23  ;;  %v6322_v23 = vrot.slane %v6320_v50, 5  ;;  %v6356_v50 = vrot.slane %v6354_v40, 5 }
 0x352   :  { %12686 = vmatprep.subr.bf16.mxu1 %v13624_v25 }
 0x353   :  { %v6323_v14 = vor.u32 %v6322_v23, %v6319_v7  ;;  %v13642_v7 = vld [vmem:[#allocation2 + $0x90] ss:$8 sps:$4 sm:$0xff]  }
 0x354   :  { %12671 = vmatmul.mubr.bf16.gmra.mrb[24].mxu1 %v11242_v63  ;;  %v6310_v63 = vrot.slane %v6309_v26, 4 }
 0x355   :  { %12687 = vmatpush3.bf16.msra.mxu1 %v13624_v25  ;;  %12674 = vmatprep.mubr.bf16.mxu1 %v11243_v24  ;;  %v6376_v25 = vshll.u32 %v6280_v58, 16  ;;  %v6284_v24 = vld [vmem:[#allocation2 + $0x48] sm:$0xf]  ;;  %v6324_v57 = vrot.slane %v6323_v14, 4 }
 0x356   :  { %12688 = vmatprep.subr.bf16.mxu1 %v13625_v61  ;;  %v6401_v47 = vshrl.u32 %v6284_v24, 16  ;;  %v6315_v52 = vsel %vm13981_vm9, %v6310_v63, %v6314_v28 }
 0x357   :  { %v6378_v10 = vrot.slane %v6376_v25, 5 }
 0x358   :  { %v6403_v58 = vrot.slane %v6401_v47, 4 }
 0x359   :  { %12689 = vmatpush3.bf16.msra.mxu1 %v13625_v61  ;;  %v6340_v61 = vshll.u32 %v15917_v55, 16 }
 0x35a   :  { %12690 = vmatprep.subr.bf16.mxu1 %v13626_v22 }
 0x35b   :  { %v6342_v62 = vrot.slane %v6340_v61, 5  ;;  %v6384_v61 = vrot.slane %v6382_v20, 5 }
 0x35c   :  { %12675 = vmatmul.mubr.bf16.gmra.mrb[28].mxu1 %v11244_v51  ;;  %v6387_v51 = vshrl.u32 %v6282_v49, 16 }
 0x35d   :  { %12691 = vmatpush3.bf16.msra.mxu1 %v13626_v22  ;;  %12694 = vmatprep.mubr.bf16.mxu1 %v13627_v4  ;;  %v6364_v22 = vrot.slane %v6362_v19, 5  ;;  %v6288_v4 = vld [vmem:[#allocation2 + $0x68] sm:$0xf]  ;;  %v13643_v19 = vld [vmem:[%s17047_s2 + $0x438] sm:$0xff]  }
 0x35e   :  { %12692 = vmatprep.subr.bf16.mxu1 %v13628_v9  ;;  %v6429_v27 = vshrl.u32 %v6288_v4, 16  ;;  %v6432_v41 = vshll.u32 %v6288_v4, 16 }
 0x35f   :  { %v6365_v0 = vor.u32 %v6364_v22, %v6361_v35  ;;  %v6420_v35 = vrot.slane %v6418_v1, 5  ;;  %v6457_v22 = vshrl.u32 %v6292_v37, 16 }
 0x361   :  { %12693 = vmatpush3.bf16.msra.mxu1 %v13628_v9  ;;  %v6390_v9 = vshll.u32 %v6282_v49, 16  ;;  %v6366_v11 = vrot.slane %v6365_v0, 4 }
 0x362   :  { %12710 = vmatprep.subr.bf16.mxu1 %v13629_v5 }
 0x363   :  { %v6392_v53 = vrot.slane %v6390_v9, 5 }
 0x364   :  { %12695 = vmatmul.mubr.bf16.vlgmr.msra.gmra.mrb[16].mxu1 %v13630_v12  ;;  %v6337_v12 = vor.u32 %v6336_v34, %v6333_v48 }
 0x365   :  { %12711 = vmatpush3.bf16.msra.mxu1 %v13629_v5  ;;  %12698 = vmatprep.mubr.bf16.mxu1 %v13631_v60  ;;  %v6328_v5 = vrot.slane %v6326_v44, 5  ;;  %v6404_v60 = vshll.u32 %v6284_v24, 16  ;;  %v6434_v44 = vrot.slane %v6432_v41, 5  ;;  %v15953_v24 = vld [vmem:[#allocation2 + $0x64] sm:$0x1] }
 0x366   :  { %12712 = vmatprep.subr.bf16.mxu1 %v13632_v8  ;;  %v6338_v59 = vrot.slane %v6337_v12, 4  ;;  %v6460_v12 = vshll.u32 %v6292_v37, 16  ;;  %v6300_v37 = vld [vmem:[#allocation2 + $0x98] sm:$0xf] }
 0x367   :  { %v6406_v26 = vrot.slane %v6404_v60, 5  ;;  %v6329_v23 = vsel %vm13981_vm9, %v6324_v57, %v6328_v5  ;;  %v6290_v5 = vld [vmem:[#allocation2 + $0x70] sm:$0xf]  ;;  %v6424_v57 = vshll.u32 %v15953_v24, 16 }
 0x368   :  { %v11301_v48 = vcombine.low %v6315_v52, %v6329_v23  ;;  %v6343_v63 = vsel %vm13981_vm9, %v6338_v59, %v6342_v62  ;;  %v6294_v62 = vld [vmem:[#allocation2 + $0x80] sm:$0xf]  ;;  %v6446_v41 = vshll.u32 %v6290_v5, 16 }
 0x369   :  { %12713 = vmatpush3.bf16.msra.mxu1 %v13632_v8  ;;  %v15927_v8 = vld [vmem:[#allocation2 + $0x34] sm:$0x1]  ;;  %v6474_v59 = vshll.u32 %v6294_v62, 16 }
 0x36a   :  { %12714 = vmatprep.subr.bf16.mxu1 %v13633_v18  ;;  %v6368_v13 = vshll.u32 %v15927_v8, 16 }
 0x36c   :  { %12699 = vmatmul.mubr.bf16.gmra.mrb[20].mxu1 %v13634_v29  ;;  %v6379_v29 = vor.u32 %v6378_v10, %v6375_v15  ;;  %v6370_v14 = vrot.slane %v6368_v13, 5  ;;  %v6296_v15 = vld [vmem:[#allocation2 + $0x88] sm:$0xf]  ;;  %v13644_v10 = vld [vmem:[%s17047_s2 + $0x440] sm:$0xff]   ;;  %v6459_v13 = vrot.slane %v6457_v22, 4 }
 0x36d   :  { %12715 = vmatpush3.bf16.msra.mxu1 %v13633_v18  ;;  %12702 = vmatprep.mubr.bf16.mxu1 %v13635_v2  ;;  %v6352_v18 = vrot.slane %v6351_v36, 4  ;;  %v6389_v2 = vrot.slane %v6387_v51, 4  ;;  %v6407_v36 = vor.u32 %v6406_v26, %v6403_v58  ;;  %v6488_v0 = vshll.u32 %v6296_v15, 16  ;;  %v6298_v26 = vld [vmem:[#allocation2 + $0x90] sm:$0xf] }
 0x36e   :  { %12716 = vmatprep.subr.bf16.mxu1 %v13636_v46  ;;  %v6380_v34 = vrot.slane %v6379_v29, 4  ;;  %v6371_v51 = vsel %vm13981_vm9, %v6366_v11, %v6370_v14  ;;  %v13645_v29 = vld [vmem:[%s17047_s2 + $0x448] sm:$0xff]   ;;  %v6426_v58 = vrot.slane %v6424_v57, 5  ;;  %v6476_v14 = vrot.slane %v6474_v59, 5  ;;  %v16000_v59 = vld [vmem:[#allocation2 + $0x9c] sm:$0x1] }
 0x36f   :  { %v6357_v31 = vsel %vm13981_vm9, %v6352_v18, %v6356_v50  ;;  %v6393_v49 = vor.u32 %v6392_v53, %v6389_v2  ;;  %v6408_v18 = vrot.slane %v6407_v36, 4  ;;  %v6485_v50 = vshrl.u32 %v6296_v15, 16 }
 0x370   :  { %v11302_v28 = vcombine.low %v6343_v63, %v6357_v31  ;;  %v6385_v47 = vsel %vm13981_vm9, %v6380_v34, %v6384_v61  ;;  %v6462_v53 = vrot.slane %v6460_v12, 5  ;;  %v6490_v1 = vrot.slane %v6488_v0, 5  ;;  %v15982_v61 = vld [vmem:[#allocation2 + $0x8c] sm:$0x1] }
 0x371   :  { %12717 = vmatpush3.bf16.msra.mxu1 %v13636_v46  ;;  %v15937_v46 = vld [vmem:[#allocation2 + $0x44] sm:$0x1]  ;;  %v6394_v60 = vrot.slane %v6393_v49, 4  ;;  %v11303_v20 = vcombine.low %v6371_v51, %v6385_v47  ;;  %v15980_v49 = vld [vmem:[#allocation2 + $0x7c] sm:$0x1]  ;;  %v6499_v36 = vshrl.u32 %v6298_v26, 16 }
 0x372   :  { %12718 = vmatprep.subr.bf16.mxu1 %v13637_v17  ;;  %v6396_v25 = vshll.u32 %v15937_v46, 16  ;;  %v13647_v47 = vld [vmem:[%s17047_s2 + $0x458] sm:$0xff]   ;;  %v6494_v57 = vshll.u32 %v15982_v61, 16 }
 0x374   :  { %12703 = vmatmul.mubr.bf16.gmra.mrb[24].mxu1 %v13638_v45  ;;  %v6431_v45 = vrot.slane %v6429_v27, 4  ;;  %v6398_v9 = vrot.slane %v6396_v25, 5  ;;  %v6443_v27 = vshrl.u32 %v6290_v5, 16  ;;  %v15973_v25 = vld [vmem:[#allocation2 + $0x74] sm:$0x1] }
 0x375   :  { %12719 = vmatpush3.bf16.msra.mxu1 %v13637_v17  ;;  %12706 = vmatprep.mubr.bf16.mxu1 %v13639_v43  ;;  %v6415_v17 = vshrl.u32 %v6286_v32, 16  ;;  %v6410_v43 = vshll.u32 %v15944_v16, 16  ;;  %v6452_v22 = vshll.u32 %v15973_v25, 16  ;;  %v15988_v5 = vld [vmem:[#allocation2 + $0x84] sm:$0x1] }
 0x376   :  { %12720 = vmatprep.subr.bf16.mxu1 %v13640_v54  ;;  %v6435_v4 = vor.u32 %v6434_v44, %v6431_v45  ;;  %v6399_v23 = vsel %vm13981_vm9, %v6394_v60, %v6398_v9  ;;  %v6445_v45 = vrot.slane %v6443_v27, 4  ;;  %v6448_v44 = vrot.slane %v6446_v41, 5 }
 0x377   :  { %v6417_v40 = vrot.slane %v6415_v17, 4  ;;  %v6412_v52 = vrot.slane %v6410_v43, 5  ;;  %v6487_v17 = vrot.slane %v6485_v50, 4  ;;  %v6463_v43 = vor.u32 %v6462_v53, %v6459_v13  ;;  %v15995_v13 = vld [vmem:[#allocation2 + $0x94] sm:$0x1] }
 0x378   :  { %v6436_v2 = vrot.slane %v6435_v4, 4  ;;  %v6449_v9 = vor.u32 %v6448_v44, %v6445_v45  ;;  %v6466_v4 = vshll.u32 %v15980_v49, 16  ;;  %v6480_v0 = vshll.u32 %v15988_v5, 16  ;;  %v13649_v44 = vld [vmem:[%s17047_s2 + $0x468] sm:$0xff]  }
 0x379   :  { %12721 = vmatpush3.bf16.msra.mxu1 %v13640_v54  ;;  %v15955_v54 = vld [vmem:[#allocation2 + $0x6c] sm:$0x1]  ;;  %v6421_v32 = vor.u32 %v6420_v35, %v6417_v40  ;;  %v6513_v40 = vshrl.u32 %v6300_v37, 16  ;;  %v6516_v35 = vshll.u32 %v6300_v37, 16  ;;  %v6491_v15 = vor.u32 %v6490_v1, %v6487_v17 }
 0x37a   :  { %12722 = vmatprep.subr.bf16.mxu1 %v13641_v56  ;;  %v6464_v60 = vrot.slane %v6463_v43, 4  ;;  %v6450_v27 = vrot.slane %v6449_v9, 4  ;;  %v6468_v41 = vrot.slane %v6466_v4, 5  ;;  %v6508_v37 = vshll.u32 %v15995_v13, 16  ;;  %v6739_v9 = vld [vmem:[#allocation2 + $0x28] sm:$0xe] }
 0x37b   :  { %v6422_v11 = vrot.slane %v6421_v32, 4  ;;  %v6518_v50 = vrot.slane %v6516_v35, 5  ;;  %v6492_v32 = vrot.slane %v6491_v15, 4  ;;  %v13650_v35 = vld [vmem:[%s17047_s2 + $0x470] sm:$0xff]   ;;  %v6790_v15 = vrot.slane %v15911_v6, 5  ;;  %v13651_v6 = vld [vmem:[%s17047_s2 + $0x478] sm:$0xff]  }
 0x37c   :  { %12707 = vmatmul.mubr.bf16.gmra.mrb[28].mxu1 %v13642_v7  ;;  %v6471_v7 = vshrl.u32 %v6294_v62, 16  ;;  %v6501_v62 = vrot.slane %v6499_v36, 4  ;;  %v6741_v4 = vld [vmem:[#allocation2 + $0x38] sm:$0xe] }
 0x37d   :  { %12723 = vmatpush3.bf16.msra.mxu1 %v13641_v56  ;;  %12726 = vmatprep.mubr.bf16.mxu1 %v11301_v48  ;;  %v6438_v56 = vshll.u32 %v15955_v54, 16  ;;  %v13646_v48 = vld [vmem:[%s17047_s2 + $0x450] sm:$0xff]   ;;  %v6427_v51 = vsel %vm13981_vm9, %v6422_v11, %v6426_v58 }
 0x37e   :  { %12724 = vmatprep.subr.bf16.mxu1 %v13643_v19  ;;  %v6473_v63 = vrot.slane %v6471_v7, 4  ;;  %v6496_v7 = vrot.slane %v6494_v57, 5  ;;  %v11320_v57 = vrot.slane %v6739_v9, 9 }
 0x37f   :  { %v6440_v31 = vrot.slane %v6438_v56, 5  ;;  %v6515_v56 = vrot.slane %v6513_v40, 4  ;;  %v6510_v40 = vrot.slane %v6508_v37, 5  ;;  %v6822_v37 = vrot.slane %v15955_v54, 5  ;;  %v6746_v54 = vld [vmem:[#allocation2 + $0x70] sm:$0xe] }
 0x380   :  { %v6497_v17 = vsel %vm13981_vm9, %v6492_v32, %v6496_v7  ;;  %v6794_v32 = vrot.slane %v15917_v55, 5  ;;  %v6745_v7 = vld [vmem:[#allocation2 + $0x68] sm:$0xe] }
 0x381   :  { %12725 = vmatpush3.bf16.msra.mxu1 %v13643_v19  ;;  %v6413_v19 = vsel %vm13981_vm9, %v6408_v18, %v6412_v52  ;;  %v6441_v34 = vsel %vm13981_vm9, %v6436_v2, %v6440_v31  ;;  %v6477_v52 = vor.u32 %v6476_v14, %v6473_v63  ;;  %v6454_v2 = vrot.slane %v6452_v22, 5  ;;  %v6737_v14 = vld [vmem:[#allocation2 + $0x18] sm:$0xe] }
 0x382   :  { %12742 = vmatprep.subr.bf16.mxu1 %v13644_v10  ;;  %v11305_v12 = vcombine.low %v6427_v51, %v6441_v34  ;;  %v6482_v31 = vrot.slane %v6480_v0, 5  ;;  %v11318_v22 = vrot.slane %v6737_v14, 9 }
 0x383   :  { %v6478_v53 = vrot.slane %v6477_v52, 4  ;;  %v6455_v1 = vsel %vm13981_vm9, %v6450_v27, %v6454_v2  ;;  %v6742_v2 = vld [vmem:[#allocation2 + $0x40] sm:$0xe] }
 0x384   :  { %12727 = vmatmul.mubr.bf16.vlgmr.msra.gmra.mrb[16].mxu1 %v11302_v28  ;;  %v6502_v28 = vshll.u32 %v6298_v26, 16  ;;  %v6519_v26 = vor.u32 %v6518_v50, %v6515_v56  ;;  %v11322_v56 = vrot.slane %v6741_v4, 9  ;;  %v6806_v50 = vrot.slane %v15931_v33, 5 }
 0x385   :  { %12743 = vmatpush3.bf16.msra.mxu1 %v13644_v10  ;;  %12730 = vmatprep.mubr.bf16.mxu1 %v11303_v20  ;;  %v11304_v10 = vcombine.low %v6399_v23, %v6413_v19  ;;  %v6469_v20 = vsel %vm13981_vm9, %v6464_v60, %v6468_v41  ;;  %v6522_v23 = vshll.u32 %v16000_v59, 16  ;;  %v6736_v19 = vld [vmem:[#allocation2 + $0x10] sm:$0xe]  ;;  %v6483_v45 = vsel %vm13981_vm9, %v6478_v53, %v6482_v31  ;;  %v6738_v60 = vld [vmem:[#allocation2 + $0x20] sm:$0xe] }
 0x386   :  { %12744 = vmatprep.subr.bf16.mxu1 %v13645_v29  ;;  %v6504_v18 = vrot.slane %v6502_v28, 5  ;;  %v11306_v11 = vcombine.low %v6455_v1, %v6469_v20  ;;  %v6520_v43 = vrot.slane %v6519_v26, 4  ;;  %v11317_v36 = vrot.slane %v6736_v19, 9  ;;  %v6743_v53 = vld [vmem:[#allocation2 + $0x48] sm:$0xe] }
 0x387   :  { %v6524_v63 = vrot.slane %v6522_v23, 5  ;;  %v6786_v28 = vrot.slane %v15909_v30, 5  ;;  %v11319_v0 = vrot.slane %v6738_v60, 9  ;;  %v6802_v41 = vrot.slane %v15927_v8, 5 }
 0x388   :  { %v6505_v58 = vor.u32 %v6504_v18, %v6501_v62  ;;  %v6798_v62 = vrot.slane %v15919_v3, 5  ;;  %v6740_v18 = vld [vmem:[#allocation2 + $0x30] sm:$0xe]  ;;  %v6807_v3 = vsel %vm14412_vm12, %v11322_v56, %v6806_v50  ;;  %v6810_v8 = vrot.slane %v15937_v46, 5 }
 0x389   :  { %12745 = vmatpush3.bf16.msra.mxu1 %v13645_v29  ;;  %v13648_v29 = vld [vmem:[%s17047_s2 + $0x460] sm:$0xff]   ;;  %v6525_v51 = vsel %vm13981_vm9, %v6520_v43, %v6524_v63  ;;  %v6787_v30 = vsel %vm14412_vm12, %v11317_v36, %v6786_v28  ;;  %v11321_v27 = vrot.slane %v6740_v18, 9  ;;  %v6795_v33 = vsel %vm14412_vm12, %v11319_v0, %v6794_v32 }
 0x38a   :  { %12746 = vmatprep.subr.bf16.mxu1 %v13646_v48  ;;  %v6506_v34 = vrot.slane %v6505_v58, 4  ;;  %v11323_v58 = vrot.slane %v6742_v2, 9  ;;  %v11324_v23 = vrot.slane %v6743_v53, 9  ;;  %v6814_v31 = vrot.slane %v15944_v16, 5  ;;  %v6749_v16 = vld [vmem:[#allocation2 + $0x88] sm:$0xe] }
 0x38b   :  { %v6803_v55 = vsel %vm14412_vm12, %v11321_v27, %v6802_v41  ;;  %v11326_v1 = vrot.slane %v6745_v7, 9  ;;  %v6748_v36 = vld [vmem:[#allocation2 + $0x80] sm:$0xe]  ;;  %v11330_v28 = vrot.slane %v6749_v16, 9  ;;  %v6846_v60 = vrot.slane %v16000_v59, 5  ;;  %v13668_v16 = vld [vmem:[%s17047_s2 + $0x6b0] sm:$0xff]  }
 0x38c   :  { %12731 = vmatmul.mubr.bf16.gmra.mrb[20].mxu1 %v11304_v10  ;;  %v6511_v10 = vsel %vm13981_vm9, %v6506_v34, %v6510_v40  ;;  %v11351_v26 = vcombine.low %v6803_v55, %v6807_v3  ;;  %v6838_v40 = vrot.slane %v15982_v61, 5  ;;  %v13652_v55 = vld [vmem:[%s17047_s2 + $0x4c0] sm:$0xff]  }
 0x38d   :  { %12747 = vmatpush3.bf16.msra.mxu1 %v13646_v48  ;;  %12734 = vmatprep.mubr.bf16.mxu1 %v11305_v12  ;;  %v11307_v48 = vcombine.low %v6483_v45, %v6497_v17  ;;  %v11308_v12 = vcombine.low %v6511_v10, %v6525_v51  ;;  %v6744_v17 = vld [vmem:[#allocation2 + $0x60] sm:$0xe]  ;;  %v6811_v45 = vsel %vm14412_vm12, %v11323_v58, %v6810_v8  ;;  %v6834_v10 = vrot.slane %v15988_v5, 5  ;;  %v13653_v58 = vld [vmem:[%s17047_s2 + $0x4c8] sm:$0xff]   ;;  %v13655_v8 = vld [vmem:[%s17047_s2 + $0x4d8] sm:$0xff]  }
 0x38e   :  { %12748 = vmatprep.subr.bf16.mxu1 %v13647_v47  ;;  %v11325_v19 = vrot.slane %v6744_v17, 9  ;;  %v6823_v46 = vsel %vm14412_vm12, %v11326_v1, %v6822_v37  ;;  %v6839_v9 = vsel %vm14412_vm12, %v11330_v28, %v6838_v40  ;;  %12774 = vmatprep.subr.bf16.mxu0 %v13652_v55  ;;  %v13658_v17 = vld [vmem:[%s17047_s2 + $0x688] sm:$0xff]   ;;  %v13660_v37 = vld [vmem:[%s17047_s2 + $0x690] sm:$0xff]   ;;  %v11365_v40 = vld [vmem:[%s17046_s1 + $0x4] sm:$0x3] }
 0x38f   :  { %12775 = vmatpush3.bf16.msra.mxu0 %v13652_v55  ;;  %v13659_v1 = vld [vmem:[%s17047_s2 + $0x4e8] sm:$0xff]   ;;  %v16176_v55 = vld [vmem:[#allocation2 + $0x98] sm:$0xe] }
 0x390   :  { %12776 = vmatprep.subr.bf16.mxu0 %v13653_v58 }
 0x391   :  { %12749 = vmatpush3.bf16.msra.mxu1 %v13647_v47  ;;  %v6791_v47 = vsel %vm14412_vm12, %v11318_v22, %v6790_v15  ;;  %v6826_v22 = vrot.slane %v15973_v25, 5  ;;  %v11329_v15 = vrot.slane %v6748_v36, 9 }
 0x392   :  { %12750 = vmatprep.subr.bf16.mxu1 %v13648_v29  ;;  %v11349_v52 = vcombine.low %v6787_v30, %v6791_v47  ;;  %v6750_v30 = vld [vmem:[#allocation2 + $0x90] sm:$0xe] }
 0x393   :  { %v6835_v61 = vsel %vm14412_vm12, %v11329_v15, %v6834_v10  ;;  %v11331_v47 = vrot.slane %v6750_v30, 9  ;;  %12777 = vmatpush3.bf16.msra.mxu0 %v13653_v58 }
 0x394   :  { %12735 = vmatmul.mubr.bf16.gmra.mrb[24].mxu1 %v11306_v11  ;;  %v6818_v11 = vrot.slane %v15953_v24, 5  ;;  %v6830_v24 = vrot.slane %v15980_v49, 5  ;;  %v6751_v49 = vld [vmem:[#allocation2 + $0x98] sm:$0xe]  ;;  %v11355_v25 = vcombine.low %v6835_v61, %v6839_v9  ;;  %v7578_v61 = vld [vmem:[#allocation2 + $0x54] sm:$0x1] }
 0x395   :  { %12751 = vmatpush3.bf16.msra.mxu1 %v13648_v29  ;;  %12738 = vmatprep.mubr.bf16.mxu1 %v11307_v48  ;;  %v6799_v29 = vsel %vm14412_vm12, %v11320_v57, %v6798_v62  ;;  %v6747_v48 = vld [vmem:[#allocation2 + $0x78] sm:$0xe]  ;;  %v11332_v5 = vrot.slane %v6751_v49, 9 }
 0x396   :  { %12752 = vmatprep.subr.bf16.mxu1 %v13649_v44  ;;  %v11350_v20 = vcombine.low %v6795_v33, %v6799_v29  ;;  %v6819_v43 = vsel %vm14412_vm12, %v11325_v19, %v6818_v11  ;;  %v11328_v14 = vrot.slane %v6747_v48, 9  ;;  %v13661_v19 = vld [vmem:[%s17047_s2 + $0x4f0] sm:$0xff]   ;;  %v13662_v11 = vld [vmem:[%s17047_s2 + $0x698] sm:$0xff]   ;;  %v13666_v48 = vld [vmem:[%s17047_s2 + $0x6a8] sm:$0xff]  }
 0x397   :  { %v11353_v63 = vcombine.low %v6819_v43, %v6823_v46  ;;  %v6847_v57 = vsel %vm14412_vm12, %v11332_v5, %v6846_v60  ;;  %v16131_v46 = vld [vmem:[%s17047_s2 + $0x480] sm:$0xff]   ;;  %v7708_v60 = vshll.u32 %v7578_v61, 16 }
 0x398   :  { %v6831_v51 = vsel %vm14412_vm12, %v11328_v14, %v6830_v24  ;;  %v7537_v43 = vld [vmem:[#allocation2] sm:$0xf] }
 0x399   :  { %12753 = vmatpush3.bf16.msra.mxu1 %v13649_v44  ;;  %v6815_v44 = vsel %vm14412_vm12, %v11324_v23, %v6814_v31  ;;  %v13656_v23 = vld [vmem:[%s17047_s2 + $0x680] sm:$0xff]   ;;  %v7587_v14 = vshrl.u32 %v7537_v43, 16  ;;  %v7590_v24 = vshll.u32 %v7537_v43, 16 }
 0x39a   :  { %12754 = vmatprep.subr.bf16.mxu1 %v13650_v35  ;;  %v11352_v34 = vcombine.low %v6811_v45, %v6815_v44  ;;  %v13657_v31 = vld [vmem:[%s17047_s2 + $0x4e0] sm:$0xff]   ;;  %v13663_v45 = vld [vmem:[%s17047_s2 + $0x4f8] sm:$0xff]  }
 0x39b   :  { %v13664_v44 = vld [vmem:[%s17047_s2 + $0x6a0] sm:$0xff]   ;;  %v7589_v15 = vrot.slane %v7587_v14, 4  ;;  %v7592_v10 = vrot.slane %v7590_v24, 5 }
 0x39c   :  { %12739 = vmatmul.mubr.bf16.gmra.mrb[28].mxu1 %v11308_v12 }
 0x39d   :  { %12755 = vmatpush3.bf16.msra.mxu1 %v13650_v35  ;;  %12758 = vmatprep.mubr.bf16.mxu1 %v11349_v52  ;;  %v11327_v35 = vrot.slane %v6746_v54, 9  ;;  %v7545_v54 = vld [vmem:[#allocation2 + $0x50] sm:$0xf] }
 0x39e   :  { %12756 = vmatprep.subr.bf16.mxu1 %v13651_v6  ;;  %v7699_v36 = vshrl.u32 %v7545_v54, 16  ;;  %v7702_v28 = vshll.u32 %v7545_v54, 16 }
 0x39f   :  { %v6827_v4 = vsel %vm14412_vm12, %v11327_v35, %v6826_v22 }
 0x3a0   :  { %v11354_v12 = vcombine.low %v6827_v4, %v6831_v51  ;;  %v16149_v51 = vrot.slane %v11365_v40, %v17135_v39  ;;  %v7701_v30 = vrot.slane %v7699_v36, 4  ;;  %v7704_v9 = vrot.slane %v7702_v28, 5 }
 0x3a1   :  { %12757 = vmatpush3.bf16.msra.mxu1 %v13651_v6  ;;  %v6842_v6 = vrot.slane %v15995_v13, 5  ;;  %v16153_v4 = vrot.slane %v11365_v40, %v17136_v42 }
 0x3a2   :  { %13062 = vmatprep.subr.bf16.mxu1 %v13656_v23 }
 0x3a3   :  { %v6843_v52 = vsel %vm14412_vm12, %v11331_v47, %v6842_v6  ;;  %v7593_v6 = vor.u32 %v7592_v10, %v7589_v15 }
 0x3a4   :  { %12759 = vmatmul.mubr.bf16.vlgmr.msra.gmra.mrb[16].mxu1 %v11350_v20  ;;  %v11356_v62 = vcombine.low %v6843_v52, %v6847_v57  ;;  %v7705_v52 = vor.u32 %v7704_v9, %v7701_v30 }
 0x3a5   :  { %12762 = vmatprep.mubr.bf16.mxu1 %v11351_v26  ;;  %v13654_v26 = vld [vmem:[%s17047_s2 + $0x4d0] sm:$0xff]   ;;  %13070 = vmatpush3.bf16.msra.mxu1 %v13656_v23 }
 0x3a6   :  { %12778 = vmatprep.subr.bf16.mxu0 %v13654_v26  ;;  %13063 = vmatprep.subr.bf16.mxu1 %v13658_v17 }
 0x3a7   :  { %12779 = vmatpush3.bf16.msra.mxu0 %v13654_v26 }
 0x3a8   :  { %12780 = vmatprep.subr.bf16.mxu0 %v13655_v8 }
 0x3a9   :  { %13071 = vmatpush3.bf16.msra.mxu1 %v13658_v17 }
 0x3aa   :  { %13064 = vmatprep.subr.bf16.mxu1 %v13660_v37 }
 0x3ab   :  { %12781 = vmatpush3.bf16.msra.mxu0 %v13655_v8 }
 0x3ac   :  { %12763 = vmatmul.mubr.bf16.gmra.mrb[20].mxu1 %v11352_v34  ;;  %12782 = vmatprep.subr.bf16.mxu0 %v13657_v31  ;;  %v13670_v34 = vld [vmem:[%s17047_s2 + $0x6b8] sm:$0xff]  }
 0x3ad   :  { %12766 = vmatprep.mubr.bf16.mxu1 %v11353_v63  ;;  %13072 = vmatpush3.bf16.msra.mxu1 %v13660_v37 }
 0x3ae   :  { %13065 = vmatprep.subr.bf16.mxu1 %v13662_v11 }
 0x3af   :  { %12783 = vmatpush3.bf16.msra.mxu0 %v13657_v31 }
 0x3b0   :  { %12784 = vmatprep.subr.bf16.mxu0 %v13659_v1 }
 0x3b1   :  { %13073 = vmatpush3.bf16.msra.mxu1 %v13662_v11 }
 0x3b2   :  { %13066 = vmatprep.subr.bf16.mxu1 %v13664_v44 }
 0x3b3   :  { %12785 = vmatpush3.bf16.msra.mxu0 %v13659_v1 }
 0x3b4   :  { %12767 = vmatmul.mubr.bf16.gmra.mrb[24].mxu1 %v11354_v12  ;;  %12786 = vmatprep.subr.bf16.mxu0 %v13661_v19  ;;  %v7570_v12 = vld [vmem:[#allocation2 + $0x4] sm:$0x1] }
 0x3b5   :  { %12770 = vmatprep.mubr.bf16.mxu1 %v11355_v25  ;;  %13074 = vmatpush3.bf16.msra.mxu1 %v13664_v44  ;;  %v7596_v5 = vshll.u32 %v7570_v12, 16  ;;  %v11685_v44 = vrot.slane %v16176_v55, 9 }
 0x3b6   :  { %13067 = vmatprep.subr.bf16.mxu1 %v13666_v48 }
 0x3b7   :  { %12787 = vmatpush3.bf16.msra.mxu0 %v13661_v19 }
 0x3b8   :  { %12788 = vmatprep.subr.bf16.mxu0 %v13663_v45 }
 0x3b9   :  { %13075 = vmatpush3.bf16.msra.mxu1 %v13666_v48 }
 0x3ba   :  { %13068 = vmatprep.subr.bf16.mxu1 %v13668_v16 }
 0x3bb   :  { %12789 = vmatpush3.bf16.msra.mxu0 %v13663_v45 }
 0x3bc   :  { %12771 = vmatmul.mubr.bf16.gmra.mrb[28].mxu1 %v11356_v62  ;;  %12806 = vmatprep.subr.bf16.mxu0 %v16131_v46 }
 0x3bd   :  { %13076 = vmatpush3.bf16.msra.mxu1 %v13668_v16 }
 0x3be   :  { %13069 = vmatprep.subr.bf16.mxu1 %v13670_v34 }
 0x3c1   :  { %13077 = vmatpush3.bf16.msra.mxu1 %v13670_v34 }
 0x477   :  { %v12760_v18 = vpop.f32.mrb[16].mxu1 }
 0x478   :  { %v6979_v56 = vpop.f32.mrb[17].mxu1 }
 0x479   :  { %7074 = vrot.lane.b32.xlu0 %v6979_v56, %s13819_s8  ;;  %v12761_v50 = vpop.f32.mrb[18].mxu1 }
 0x47a   :  { %v6982_v13 = vpop.f32.mrb[19].mxu1 }
 0x47b   :  { %7076 = vrot.lane.b32.xlu1 %v6982_v13, %s13819_s8  ;;  %v16161_v13 = vrot.slane %v7593_v6, 4 }
 0x47d   :  { %7078 = vrot.lane.b32.xlu0 %v12760_v18, %s13819_s8 }
 0x47f   :  { %7080 = vrot.lane.b32.xlu1 %v12761_v50, %s13819_s8  ;;  %v12764_v59 = vpop.f32.mrb[20].mxu1 }
 0x480   :  { %v6995_v0 = vpop.f32.mrb[21].mxu1 }
 0x481   :  { %7082 = vrot.lane.b32.xlu0 %v6995_v0, %s13819_s8  ;;  %v12765_v32 = vpop.f32.mrb[22].mxu1  ;;  %v16165_v0 = vrot.slane %v7708_v60, 5 }
 0x482   :  { %v6998_v27 = vpop.f32.mrb[23].mxu1 }
 0x483   :  { %7084 = vrot.lane.b32.xlu1 %v6998_v27, %s13819_s8 }
 0x485   :  { %7086 = vrot.lane.b32.xlu0 %v12764_v59, %s13819_s8  ;;  %v16163_v59 = vrot.slane %v7596_v5, 5 }
 0x487   :  { %v12768_v41 = vpop.f32.mrb[24].mxu1  ;;  %v7599_v8 = vsel %vm13981_vm9, %v16161_v13, %v16163_v59 }
 0x488   :  { %v7011_v29 = vpop.f32.mrb[25].mxu1 }
 0x489   :  { %7090 = vrot.lane.b32.xlu1 %v7011_v29, %s13819_s8  ;;  %v12769_v2 = vpop.f32.mrb[26].mxu1  ;;  %v16170_v29 = vrot.slane %v7705_v52, 4  ;;  %v7447_v52 = vld [vmem:[#allocation2 + $0x10] sm:$0xf] }
 0x48a   :  { %v7014_v3 = vpop.f32.mrb[27].mxu1 }
 0x48b   :  { %7092 = vrot.lane.b32.xlu0 %v7014_v3, %s13819_s8  ;;  %v7711_v1 = vsel %vm13981_vm9, %v16170_v29, %v16165_v0 }
 0x48d   :  { %7094 = vrot.lane.b32.xlu1 %v12768_v41, %s13819_s8 }
 0x48f   :  { %7096 = vrot.lane.b32.xlu0 %v12769_v2, %s13819_s8  ;;  %v12772_v53 = vpop.f32.mrb[28].mxu1 }
 0x490   :  { %v7027_v33 = vpop.f32.mrb[29].mxu1 }
 0x491   :  { %7098 = vrot.lane.b32.xlu1 %v7027_v33, %s13819_s8  ;;  %v12773_v7 = vpop.f32.mrb[30].mxu1 }
 0x492   :  { %v7030_v20 = vpop.f32.mrb[31].mxu1 }
 0x493   :  { %7100 = vrot.lane.b32.xlu0 %v7030_v20, %s13819_s8  ;;  %v16174_v20 = vld [vmem:[#allocation2 + $0x9c] sm:$0x1] }
 0x494   :  { %v10367_v48 = vrot.slane %v16174_v20, 5 }
 0x495   :  { %7102 = vrot.lane.b32.xlu1 %v12772_v53, %s13819_s8 }
 0x497   :  { %7088 = vrot.lane.b32.xlu0 %v12765_v32, %s13819_s8 }
 0x499   :  { %7104 = vrot.lane.b32.xlu1 %v12773_v7, %s13819_s8 }
 0x4eb   :  { %v7075_v63 = vpop.permute.xlu0 %7074 }
 0x4ec   :  { %7123 = vst.msk [vmem:[#allocation3] sm:$0xff] %vm7122_vm4, %v7075_v63 }
 0x4ed   :  { %v7077_v35 = vpop.permute.xlu1 %7076 }
 0x4ee   :  { %7124 = vst.msk [vmem:[#allocation3 + $0x8] sm:$0xff] %vm7122_vm4, %v7077_v35 }
 0x4ef   :  { %v7079_v22 = vpop.permute.xlu0 %7078 }
 0x4f0   :  { %7125 = vst.msk [vmem:[#allocation3 + $0x10] sm:$0xff] %vm7122_vm4, %v7079_v22  ;;  %v7439_v22 = vld [vmem:[#allocation2 + $0x8] sm:$0xf] }
 0x4f1   :  { %v7081_v49 = vpop.permute.xlu1 %7080 }
 0x4f2   :  { %7126 = vst.msk [vmem:[#allocation3 + $0x18] sm:$0xff] %vm7122_vm4, %v7081_v49  ;;  %v7444_v49 = vld [vmem:[#allocation2 + $0xc] sm:$0x1] }
 0x4f3   :  { %v7141_v47 = vld [vmem:[#allocation3] sm:$0xff]  ;;  %v7083_v25 = vpop.permute.xlu0 %7082 }
 0x4f4   :  { %v7161_v39 = vmul.f32 %v16149_v51, %v7141_v47  ;;  %7127 = vst.msk [vmem:[#allocation3 + $0x20] sm:$0xff] %vm7122_vm4, %v7083_v25 }
 0x4f5   :  { %v7142_v57 = vld [vmem:[#allocation3 + $0x8] sm:$0xff]  ;;  %v7085_v62 = vpop.permute.xlu1 %7084 }
 0x4f6   :  { %v7181_v18 = vadd.f32 %v16153_v4, %v7161_v39  ;;  %v7162_v42 = vmul.f32 %v16149_v51, %v7142_v57  ;;  %7128 = vst.msk [vmem:[#allocation3 + $0x28] sm:$0xff] %vm7122_vm4, %v7085_v62 }
 0x4f7   :  { %v7143_v56 = vld [vmem:[#allocation3 + $0x10] sm:$0xff]  ;;  %v7087_v50 = vpop.permute.xlu0 %7086 }
 0x4f8   :  { %v7197_v32 = vmax.f32 %v7181_v18, 0.0  ;;  %v7182_v27 = vadd.f32 %v16153_v4, %v7162_v42  ;;  %v7163_v41 = vmul.f32 %v16149_v51, %v7143_v56  ;;  %7129 = vst.msk [vmem:[#allocation3 + $0x30] sm:$0xff] %vm7122_vm4, %v7087_v50  ;;  %v7450_v18 = vld [vmem:[#allocation2 + $0x14] sm:$0x1] }
 0x4f9   :  { %v7144_v2 = vld [vmem:[#allocation3 + $0x18] sm:$0xff] }
 0x4fa   :  { %v11750_v3 = vpack.c.bf16 %v7197_v32, %v7197_v32  ;;  %v7198_v53 = vmax.f32 %v7182_v27, 0.0  ;;  %v7183_v33 = vadd.f32 %v16153_v4, %v7163_v41  ;;  %v7164_v7 = vmul.f32 %v16149_v51, %v7144_v2 }
 0x4fb   :  { %v7145_v58 = vld [vmem:[#allocation3 + $0x20] sm:$0xff]  ;;  %v7091_v26 = vpop.permute.xlu1 %7090 }
 0x4fc   :  { %v7278_v23 = vshrl.u32 %v11750_v3, 16  ;;  %v11751_v31 = vpack.c.bf16 %v7198_v53, %v7198_v53  ;;  %v7199_v17 = vmax.f32 %v7183_v33, 0.0  ;;  %7131 = vst.msk [vmem:[#allocation3 + $0x40] sm:$0xff] %vm7122_vm4, %v7091_v26  ;;  %v7184_v37 = vadd.f32 %v16153_v4, %v7164_v7 }
 0x4fd   :  { %v7165_v19 = vmul.f32 %v16149_v51, %v7145_v58  ;;  %v7146_v11 = vld [vmem:[#allocation3 + $0x28] sm:$0xff]  ;;  %v7093_v45 = vpop.permute.xlu0 %7092  ;;  %v7281_v43 = vshll.u32 %v11750_v3, 16 }
 0x4fe   :  { %v7280_v34 = vrot.slane %v7278_v23, 7  ;;  %v7286_v54 = vshrl.u32 %v11751_v31, 16  ;;  %v11752_v63 = vpack.c.bf16 %v7199_v17, %v7199_v17  ;;  %7132 = vst.msk [vmem:[#allocation3 + $0x48] sm:$0xff] %vm7122_vm4, %v7093_v45  ;;  %v7289_v24 = vshll.u32 %v11751_v31, 16  ;;  %v7453_v17 = vld [vmem:[#allocation2 + $0x18] sm:$0xf] }
 0x4ff   :  { %v7200_v36 = vmax.f32 %v7184_v37, 0.0  ;;  %v7185_v28 = vadd.f32 %v16153_v4, %v7165_v19  ;;  %v7166_v40 = vmul.f32 %v16149_v51, %v7146_v11  ;;  %v7095_v35 = vpop.permute.xlu1 %7094  ;;  %v7147_v6 = vld [vmem:[#allocation3 + $0x30] sm:$0xff]  ;;  %v7456_v37 = vld [vmem:[#allocation2 + $0x1c] sm:$0x1] }
 0x500   :  { %v7283_v15 = vor.u32 %v7281_v43, %v7280_v34  ;;  %v7284_v10 = vrot.slane %v7280_v34, 4  ;;  %v7288_v30 = vrot.slane %v7286_v54, 7  ;;  %v7294_v9 = vshrl.u32 %v11752_v63, 16  ;;  %7133 = vst.msk [vmem:[#allocation3 + $0x50] sm:$0xff] %vm7122_vm4, %v7095_v35 }
 0x501   :  { %v7297_v12 = vshll.u32 %v11752_v63, 16  ;;  %v11753_v61 = vpack.c.bf16 %v7200_v36, %v7200_v36  ;;  %v7201_v47 = vmax.f32 %v7185_v28, 0.0  ;;  %v7186_v25 = vadd.f32 %v16153_v4, %v7166_v40  ;;  %v7097_v5 = vpop.permute.xlu0 %7096  ;;  %v7462_v36 = vld [vmem:[#allocation2 + $0x24] sm:$0x1] }
 0x502   :  { %v7440_v60 = vsel %vm16193_vm7, %v7283_v15, %v7439_v22  ;;  %v7445_v39 = vsel %vm16200_vm8, %v7284_v10, %v7444_v49  ;;  %v7291_v57 = vor.u32 %v7289_v24, %v7288_v30  ;;  %v7292_v62 = vrot.slane %v7288_v30, 4  ;;  %7134 = vst.msk [vmem:[#allocation3 + $0x58] sm:$0xff] %vm7122_vm4, %v7097_v5  ;;  %v7459_v24 = vld [vmem:[#allocation2 + $0x20] sm:$0xf] }
 0x503   :  { %7441 = vst [vmem:[#allocation2 + $0x8] sm:$0xf] %v7440_v60  ;;  %7446 = vst [vmem:[#allocation2 + $0xc] sm:$0x1] %v7445_v39  ;;  %v7296_v42 = vrot.slane %v7294_v9, 7  ;;  %v7302_v56 = vshrl.u32 %v11753_v61, 16  ;;  %v11754_v32 = vpack.c.bf16 %v7201_v47, %v7201_v47  ;;  %v7099_v41 = vpop.permute.xlu1 %7098  ;;  %v7167_v33 = vmul.f32 %v16149_v51, %v7147_v6 }
 0x504   :  { %v7305_v50 = vshll.u32 %v11753_v61, 16  ;;  %v7149_v27 = vld [vmem:[#allocation3 + $0x40] sm:$0xff]  ;;  %v7448_v2 = vsel %vm16193_vm7, %v7291_v57, %v7447_v52  ;;  %v7451_v3 = vsel %vm16200_vm8, %v7292_v62, %v7450_v18  ;;  %v7202_v53 = vmax.f32 %v7186_v25, 0.0  ;;  %7135 = vst.msk [vmem:[#allocation3 + $0x60] sm:$0xff] %vm7122_vm4, %v7099_v41  ;;  %v7465_v57 = vld [vmem:[#allocation2 + $0x28] sm:$0xf] }
 0x505   :  { %7449 = vst [vmem:[#allocation2 + $0x10] sm:$0xf] %v7448_v2  ;;  %7452 = vst [vmem:[#allocation2 + $0x14] sm:$0x1] %v7451_v3  ;;  %v7299_v7 = vor.u32 %v7297_v12, %v7296_v42  ;;  %v7300_v58 = vrot.slane %v7296_v42, 4  ;;  %v7304_v26 = vrot.slane %v7302_v56, 7  ;;  %v7101_v31 = vpop.permute.xlu0 %7100  ;;  %v7187_v45 = vadd.f32 %v16153_v4, %v7167_v33 }
 0x506   :  { %v7310_v23 = vshrl.u32 %v11754_v32, 16  ;;  %v7313_v19 = vshll.u32 %v11754_v32, 16  ;;  %v11755_v11 = vpack.c.bf16 %v7202_v53, %v7202_v53  ;;  %v7169_v34 = vmul.f32 %v16149_v51, %v7149_v27  ;;  %v7150_v43 = vld [vmem:[#allocation3 + $0x48] sm:$0xff]  ;;  %7136 = vst.msk [vmem:[#allocation3 + $0x68] sm:$0xff] %vm7122_vm4, %v7101_v31  ;;  %v7471_v2 = vld [vmem:[#allocation2 + $0x30] sm:$0xf] }
 0x507   :  { %v7454_v54 = vsel %vm16193_vm7, %v7299_v7, %v7453_v17  ;;  %v7457_v63 = vsel %vm16200_vm8, %v7300_v58, %v7456_v37  ;;  %v7307_v28 = vor.u32 %v7305_v50, %v7304_v26  ;;  %v7308_v40 = vrot.slane %v7304_v26, 4  ;;  %v7103_v35 = vpop.permute.xlu1 %7102  ;;  %v7151_v9 = vld [vmem:[#allocation3 + $0x50] sm:$0xff]  ;;  %v7468_v62 = vld [vmem:[#allocation2 + $0x2c] sm:$0x1] }
 0x508   :  { %7455 = vst [vmem:[#allocation2 + $0x18] sm:$0xf] %v7454_v54  ;;  %7458 = vst [vmem:[#allocation2 + $0x1c] sm:$0x1] %v7457_v63  ;;  %v7312_v22 = vrot.slane %v7310_v23, 7  ;;  %v7318_v15 = vshrl.u32 %v11755_v11, 16  ;;  %v7189_v61 = vadd.f32 %v16153_v4, %v7169_v34  ;;  %v7170_v47 = vmul.f32 %v16149_v51, %v7150_v43 }
 0x509   :  { %v7321_v10 = vshll.u32 %v11755_v11, 16  ;;  %v7203_v30 = vmax.f32 %v7187_v45, 0.0  ;;  %7137 = vst.msk [vmem:[#allocation3 + $0x70] sm:$0xff] %vm7122_vm4, %v7103_v35  ;;  %v7460_v49 = vsel %vm16193_vm7, %v7307_v28, %v7459_v24  ;;  %v7463_v12 = vsel %vm16200_vm8, %v7308_v40, %v7462_v36  ;;  %v7152_v25 = vld [vmem:[#allocation3 + $0x58] sm:$0xff]  ;;  %v7089_v6 = vpop.permute.xlu0 %7088  ;;  %v7474_v3 = vld [vmem:[#allocation2 + $0x34] sm:$0x1] }
 0x50a   :  { %7461 = vst [vmem:[#allocation2 + $0x20] sm:$0xf] %v7460_v49  ;;  %7464 = vst [vmem:[#allocation2 + $0x24] sm:$0x1] %v7463_v12  ;;  %v7315_v5 = vor.u32 %v7313_v19, %v7312_v22  ;;  %v7316_v60 = vrot.slane %v7312_v22, 4  ;;  %v7320_v39 = vrot.slane %v7318_v15, 7  ;;  %v7190_v42 = vadd.f32 %v16153_v4, %v7170_v47 }
 0x50b   :  { %v11756_v52 = vpack.c.bf16 %v7203_v30, %v7203_v30  ;;  %7130 = vst.msk [vmem:[#allocation3 + $0x38] sm:$0xff] %vm7122_vm4, %v7089_v6  ;;  %v7205_v18 = vmax.f32 %v7189_v61, 0.0  ;;  %v7171_v56 = vmul.f32 %v16149_v51, %v7151_v9  ;;  %v7172_v50 = vmul.f32 %v16149_v51, %v7152_v25  ;;  %v7105_v32 = vpop.permute.xlu1 %7104  ;;  %v7153_v31 = vld [vmem:[#allocation3 + $0x60] sm:$0xff]  ;;  %v7477_v24 = vld [vmem:[#allocation2 + $0x38] sm:$0xf] }
 0x50c   :  { %v7466_v27 = vsel %vm16193_vm7, %v7315_v5, %v7465_v57  ;;  %v7469_v41 = vsel %vm16200_vm8, %v7316_v60, %v7468_v62  ;;  %v7323_v53 = vor.u32 %v7321_v10, %v7320_v39  ;;  %v7324_v33 = vrot.slane %v7320_v39, 4  ;;  %7138 = vst.msk [vmem:[#allocation3 + $0x78] sm:$0xff] %vm7122_vm4, %v7105_v32  ;;  %v7480_v22 = vld [vmem:[#allocation2 + $0x3c] sm:$0x1]  ;;  %v7489_v49 = vld [vmem:[#allocation2 + $0x58] sm:$0xf] }
 0x50d   :  { %7467 = vst [vmem:[#allocation2 + $0x28] sm:$0xf] %v7466_v27  ;;  %7470 = vst [vmem:[#allocation2 + $0x2c] sm:$0x1] %v7469_v41  ;;  %v7326_v7 = vshrl.u32 %v11756_v52, 16  ;;  %v7329_v58 = vshll.u32 %v11756_v52, 16  ;;  %v11758_v26 = vpack.c.bf16 %v7205_v18, %v7205_v18  ;;  %v7191_v11 = vadd.f32 %v16153_v4, %v7171_v56 }
 0x50e   :  { %v7206_v23 = vmax.f32 %v7190_v42, 0.0  ;;  %v7154_v17 = vld [vmem:[#allocation3 + $0x68] sm:$0xff]  ;;  %v7472_v37 = vsel %vm16193_vm7, %v7323_v53, %v7471_v2  ;;  %v7475_v19 = vsel %vm16200_vm8, %v7324_v33, %v7474_v3  ;;  %v7192_v45 = vadd.f32 %v16153_v4, %v7172_v50  ;;  %v7492_v12 = vld [vmem:[#allocation2 + $0x5c] sm:$0x1]  ;;  %v7495_v3 = vld [vmem:[#allocation2 + $0x60] sm:$0xf] }
 0x50f   :  { %7473 = vst [vmem:[#allocation2 + $0x30] sm:$0xf] %v7472_v37  ;;  %7476 = vst [vmem:[#allocation2 + $0x34] sm:$0x1] %v7475_v19  ;;  %v7328_v34 = vrot.slane %v7326_v7, 7  ;;  %v7342_v43 = vshrl.u32 %v11758_v26, 16  ;;  %v7173_v40 = vmul.f32 %v16149_v51, %v7153_v31  ;;  %v7174_v35 = vmul.f32 %v16149_v51, %v7154_v17 }
 0x510   :  { %v7345_v54 = vshll.u32 %v11758_v26, 16  ;;  %v11759_v63 = vpack.c.bf16 %v7206_v23, %v7206_v23  ;;  %v7207_v36 = vmax.f32 %v7191_v11, 0.0  ;;  %v7208_v28 = vmax.f32 %v7192_v45, 0.0  ;;  %v7155_v56 = vld [vmem:[#allocation3 + $0x70] sm:$0xff]  ;;  %v7498_v26 = vld [vmem:[#allocation2 + $0x64] sm:$0x1] }
 0x511   :  { %v7331_v15 = vor.u32 %v7329_v58, %v7328_v34  ;;  %v7332_v10 = vrot.slane %v7328_v34, 4  ;;  %v7344_v30 = vrot.slane %v7342_v43, 7  ;;  %v7193_v6 = vadd.f32 %v16153_v4, %v7173_v40  ;;  %v7501_v23 = vld [vmem:[#allocation2 + $0x68] sm:$0xf]  ;;  %v7504_v31 = vld [vmem:[#allocation2 + $0x6c] sm:$0x1] }
 0x512   :  { %v7350_v9 = vshrl.u32 %v11759_v63, 16  ;;  %v7353_v61 = vshll.u32 %v11759_v63, 16  ;;  %v11760_v47 = vpack.c.bf16 %v7207_v36, %v7207_v36  ;;  %v11761_v25 = vpack.c.bf16 %v7208_v28, %v7208_v28  ;;  %v7148_v50 = vld [vmem:[#allocation3 + $0x38] sm:$0xff]  ;;  %v16266_v63 = vld [vmem:[#allocation2 + $0x8] sm:$0xf] }
 0x513   :  { %v7478_v5 = vsel %vm16193_vm7, %v7331_v15, %v7477_v24  ;;  %v7481_v60 = vsel %vm16200_vm8, %v7332_v10, %v7480_v22  ;;  %v7347_v39 = vor.u32 %v7345_v54, %v7344_v30  ;;  %v7348_v52 = vrot.slane %v7344_v30, 4  ;;  %v7507_v10 = vld [vmem:[#allocation2 + $0x70] sm:$0xf]  ;;  %v7510_v30 = vld [vmem:[#allocation2 + $0x74] sm:$0x1] }
 0x514   :  { %7479 = vst [vmem:[#allocation2 + $0x38] sm:$0xf] %v7478_v5  ;;  %7482 = vst [vmem:[#allocation2 + $0x3c] sm:$0x1] %v7481_v60  ;;  %v7352_v57 = vrot.slane %v7350_v9, 7  ;;  %v7358_v62 = vshrl.u32 %v11760_v47, 16  ;;  %v7194_v37 = vadd.f32 %v16153_v4, %v7174_v35  ;;  %v7175_v19 = vmul.f32 %v16149_v51, %v7155_v56 }
 0x515   :  { %v7361_v18 = vshll.u32 %v11760_v47, 16  ;;  %v7366_v42 = vshrl.u32 %v11761_v25, 16  ;;  %v7490_v32 = vsel %vm16193_vm7, %v7347_v39, %v7489_v49  ;;  %v7493_v27 = vsel %vm16200_vm8, %v7348_v52, %v7492_v12  ;;  %v7156_v35 = vld [vmem:[#allocation3 + $0x78] sm:$0xff]  ;;  %v16332_v13 = vld [vmem:[#allocation2 + $0x2c] sm:$0x1] }
 0x516   :  { %v7369_v41 = vshll.u32 %v11761_v25, 16  ;;  %v7209_v2 = vmax.f32 %v7193_v6, 0.0  ;;  %7491 = vst [vmem:[#allocation2 + $0x58] sm:$0xf] %v7490_v32  ;;  %7494 = vst [vmem:[#allocation2 + $0x5c] sm:$0x1] %v7493_v27  ;;  %v7355_v53 = vor.u32 %v7353_v61, %v7352_v57  ;;  %v7168_v11 = vmul.f32 %v16149_v51, %v7148_v50 }
 0x517   :  { %v7356_v33 = vrot.slane %v7352_v57, 4  ;;  %v7360_v7 = vrot.slane %v7358_v62, 7  ;;  %v7368_v58 = vrot.slane %v7366_v42, 7  ;;  %v7210_v9 = vmax.f32 %v7194_v37, 0.0  ;;  %v7513_v52 = vld [vmem:[#allocation2 + $0x78] sm:$0xf] }
 0x518   :  { %v11762_v17 = vpack.c.bf16 %v7209_v2, %v7209_v2  ;;  %v7496_v45 = vsel %vm16193_vm7, %v7355_v53, %v7495_v3  ;;  %v7195_v49 = vadd.f32 %v16153_v4, %v7175_v19  ;;  %v7188_v25 = vadd.f32 %v16153_v4, %v7168_v11  ;;  %v7516_v56 = vld [vmem:[#allocation2 + $0x7c] sm:$0x1]  ;;  %v16282_v2 = vld [vmem:[#allocation2 + $0xc] sm:$0x1]  ;;  %v7519_v11 = vld [vmem:[#allocation2 + $0x80] sm:$0xf] }
 0x519   :  { %v7499_v34 = vsel %vm16200_vm8, %v7356_v33, %v7498_v26  ;;  %v7363_v43 = vor.u32 %v7361_v18, %v7360_v7  ;;  %v7364_v54 = vrot.slane %v7360_v7, 4  ;;  %7497 = vst [vmem:[#allocation2 + $0x60] sm:$0xf] %v7496_v45  ;;  %v7371_v24 = vor.u32 %v7369_v41, %v7368_v58  ;;  %v7522_v45 = vld [vmem:[#allocation2 + $0x84] sm:$0x1] }
 0x51a   :  { %7500 = vst [vmem:[#allocation2 + $0x64] sm:$0x1] %v7499_v34  ;;  %v7372_v36 = vrot.slane %v7368_v58, 4  ;;  %v7374_v28 = vshrl.u32 %v11762_v17, 16  ;;  %v7377_v40 = vshll.u32 %v11762_v17, 16  ;;  %v11763_v6 = vpack.c.bf16 %v7210_v9, %v7210_v9 }
 0x51b   :  { %v7502_v22 = vsel %vm16193_vm7, %v7363_v43, %v7501_v23  ;;  %v7505_v15 = vsel %vm16200_vm8, %v7364_v54, %v7504_v31  ;;  %v7508_v12 = vsel %vm16193_vm7, %v7371_v24, %v7507_v10  ;;  %v7211_v5 = vmax.f32 %v7195_v49, 0.0  ;;  %v16288_v31 = vld [vmem:[#allocation2 + $0x10] sm:$0xf] }
 0x51c   :  { %7503 = vst [vmem:[#allocation2 + $0x68] sm:$0xf] %v7502_v22  ;;  %7506 = vst [vmem:[#allocation2 + $0x6c] sm:$0x1] %v7505_v15  ;;  %v7511_v61 = vsel %vm16200_vm8, %v7372_v36, %v7510_v30  ;;  %v7376_v47 = vrot.slane %v7374_v28, 7  ;;  %v7176_v60 = vmul.f32 %v16149_v51, %v7156_v35  ;;  %v7601_v39 = vshrl.u32 %v16266_v63, 16 }
 0x51d   :  { %7509 = vst [vmem:[#allocation2 + $0x70] sm:$0xf] %v7508_v12  ;;  %7512 = vst [vmem:[#allocation2 + $0x74] sm:$0x1] %v7511_v61  ;;  %v7204_v18 = vmax.f32 %v7188_v25, 0.0  ;;  %v7604_v42 = vshll.u32 %v16266_v63, 16  ;;  %v11764_v27 = vpack.c.bf16 %v7211_v5, %v7211_v5 }
 0x51e   :  { %v7379_v57 = vor.u32 %v7377_v40, %v7376_v47  ;;  %v7380_v62 = vrot.slane %v7376_v47, 4  ;;  %v7382_v50 = vshrl.u32 %v11763_v6, 16  ;;  %v7385_v32 = vshll.u32 %v11763_v6, 16  ;;  %v7525_v36 = vld [vmem:[#allocation2 + $0x88] sm:$0xf] }
 0x51f   :  { %v7196_v41 = vadd.f32 %v16153_v4, %v7176_v60  ;;  %v11757_v53 = vpack.c.bf16 %v7204_v18, %v7204_v18  ;;  %v7603_v33 = vrot.slane %v7601_v39, 4  ;;  %v7390_v58 = vshrl.u32 %v11764_v27, 16  ;;  %v7528_v30 = vld [vmem:[#allocation2 + $0x8c] sm:$0x1]  ;;  %v16296_v12 = vld [vmem:[#allocation2 + $0x14] sm:$0x1] }
 0x520   :  { %v7514_v3 = vsel %vm16193_vm7, %v7379_v57, %v7513_v52  ;;  %v7517_v51 = vsel %vm16200_vm8, %v7380_v62, %v7516_v56  ;;  %v7384_v7 = vrot.slane %v7382_v50, 7  ;;  %v7393_v26 = vshll.u32 %v11764_v27, 16  ;;  %v16298_v5 = vld [vmem:[#allocation2 + $0x18] sm:$0xf]  ;;  %v7483_v52 = vld [vmem:[#allocation2 + $0x40] sm:$0xf] }
 0x521   :  { %7515 = vst [vmem:[#allocation2 + $0x78] sm:$0xf] %v7514_v3  ;;  %7518 = vst [vmem:[#allocation2 + $0x7c] sm:$0x1] %v7517_v51  ;;  %v7212_v23 = vmax.f32 %v7196_v41, 0.0  ;;  %v7334_v17 = vshrl.u32 %v11757_v53, 16 }
 0x522   :  { %v7337_v4 = vshll.u32 %v11757_v53, 16  ;;  %v7606_v37 = vrot.slane %v7604_v42, 5  ;;  %v7610_v19 = vshll.u32 %v16282_v2, 16  ;;  %v7387_v34 = vor.u32 %v7385_v32, %v7384_v7  ;;  %v7486_v57 = vld [vmem:[#allocation2 + $0x44] sm:$0x1] }
 0x523   :  { %v7388_v43 = vrot.slane %v7384_v7, 4  ;;  %v7392_v54 = vrot.slane %v7390_v58, 7  ;;  %v11765_v24 = vpack.c.bf16 %v7212_v23, %v7212_v23  ;;  %v7336_v28 = vrot.slane %v7334_v17, 7  ;;  %v16308_v32 = vld [vmem:[#allocation2 + $0x1c] sm:$0x1] }
 0x524   :  { %v7607_v40 = vor.u32 %v7606_v37, %v7603_v33  ;;  %v7612_v35 = vrot.slane %v7610_v19, 5  ;;  %v7615_v22 = vshrl.u32 %v16288_v31, 16  ;;  %v7520_v15 = vsel %vm16193_vm7, %v7387_v34, %v7519_v11  ;;  %v7531_v41 = vld [vmem:[#allocation2 + $0x90] sm:$0xf]  ;;  %v16316_v7 = vld [vmem:[#allocation2 + $0x20] sm:$0xf] }
 0x525   :  { %v7523_v10 = vsel %vm16200_vm8, %v7388_v43, %v7522_v45  ;;  %v7395_v9 = vor.u32 %v7393_v26, %v7392_v54  ;;  %v7396_v49 = vrot.slane %v7392_v54, 4  ;;  %7521 = vst [vmem:[#allocation2 + $0x80] sm:$0xf] %v7520_v15  ;;  %v7339_v61 = vor.u32 %v7337_v4, %v7336_v28  ;;  %v7534_v58 = vld [vmem:[#allocation2 + $0x94] sm:$0x1] }
 0x526   :  { %7524 = vst [vmem:[#allocation2 + $0x84] sm:$0x1] %v7523_v10  ;;  %v7340_v47 = vrot.slane %v7336_v28, 4  ;;  %v7398_v25 = vshrl.u32 %v11765_v24, 16  ;;  %v7401_v6 = vshll.u32 %v11765_v24, 16  ;;  %v7608_v62 = vrot.slane %v7607_v40, 4 }
 0x527   :  { %v7526_v60 = vsel %vm16193_vm7, %v7395_v9, %v7525_v36  ;;  %v7529_v39 = vsel %vm16200_vm8, %v7396_v49, %v7528_v30  ;;  %v7617_v18 = vrot.slane %v7615_v22, 4  ;;  %v7484_v42 = vsel %vm16193_vm7, %v7339_v61, %v7483_v52  ;;  %v16323_v37 = vld [vmem:[#allocation2 + $0x24] sm:$0x1]  ;;  %v16326_v43 = vld [vmem:[#allocation2 + $0x28] sm:$0xf] }
 0x528   :  { %7527 = vst [vmem:[#allocation2 + $0x88] sm:$0xf] %v7526_v60  ;;  %7530 = vst [vmem:[#allocation2 + $0x8c] sm:$0x1] %v7529_v39  ;;  %v7487_v56 = vsel %vm16200_vm8, %v7340_v47, %v7486_v57  ;;  %v7400_v50 = vrot.slane %v7398_v25, 7  ;;  %v7618_v27 = vshll.u32 %v16288_v31, 16  ;;  %v7613_v3 = vsel %vm13981_vm9, %v7608_v62, %v7612_v35 }
 0x529   :  { %7485 = vst [vmem:[#allocation2 + $0x40] sm:$0xf] %v7484_v42  ;;  %7488 = vst [vmem:[#allocation2 + $0x44] sm:$0x1] %v7487_v56  ;;  %v7624_v51 = vshll.u32 %v16296_v12, 16  ;;  %v7629_v53 = vshrl.u32 %v16298_v5, 16  ;;  %v11414_v17 = vcombine.low %v7599_v8, %v7613_v3 }
 0x52a   :  { %v7632_v33 = vshll.u32 %v16298_v5, 16  ;;  %v7403_v26 = vor.u32 %v7401_v6, %v7400_v50  ;;  %v7404_v23 = vrot.slane %v7400_v50, 4  ;;  %v7620_v4 = vrot.slane %v7618_v27, 5  ;;  %v16337_v22 = vld [vmem:[#allocation2 + $0x30] sm:$0xf] }
 0x52b   :  { %v7626_v19 = vrot.slane %v7624_v51, 5  ;;  %v7631_v11 = vrot.slane %v7629_v53, 4  ;;  %v7638_v34 = vshll.u32 %v16308_v32, 16  ;;  %12790 = vmatprep.mubr.bf16.mxu0 %v11414_v17  ;;  %v7643_v59 = vshrl.u32 %v16316_v7, 16  ;;  %v16342_v47 = vld [vmem:[#allocation2 + $0x34] sm:$0x1] }
 0x52c   :  { %v7634_v45 = vrot.slane %v7632_v33, 5  ;;  %v7532_v54 = vsel %vm16193_vm7, %v7403_v26, %v7531_v41  ;;  %v7535_v24 = vsel %vm16200_vm8, %v7404_v23, %v7534_v58  ;;  %v7621_v36 = vor.u32 %v7620_v4, %v7617_v18  ;;  %v16346_v39 = vld [vmem:[#allocation2 + $0x38] sm:$0xf]  ;;  %v16351_v42 = vld [vmem:[#allocation2 + $0x3c] sm:$0x1]  ;;  %v13667_v41 = vld [vmem:[%s17047_s2 + $0x488] sm:$0xff]  }
 0x52d   :  { %7533 = vst [vmem:[#allocation2 + $0x90] sm:$0xf] %v7532_v54  ;;  %7536 = vst [vmem:[#allocation2 + $0x94] sm:$0x1] %v7535_v24  ;;  %v7640_v28 = vrot.slane %v7638_v34, 5  ;;  %v7646_v40 = vshll.u32 %v16316_v7, 16 }
 0x52e   :  { %v7635_v8 = vor.u32 %v7634_v45, %v7631_v11  ;;  %v7652_v35 = vshll.u32 %v16323_v37, 16  ;;  %v7622_v16 = vrot.slane %v7621_v36, 4  ;;  %v7645_v15 = vrot.slane %v7643_v59, 4  ;;  %v10265_v50 = vld [vmem:[#allocation2 + $0x60] sm:$0xe] }
 0x52f   :  { %v7657_v14 = vshrl.u32 %v16326_v43, 16  ;;  %v7660_v10 = vshll.u32 %v16326_v43, 16  ;;  %v7648_v9 = vrot.slane %v7646_v40, 5  ;;  %v7666_v61 = vshll.u32 %v16332_v13, 16  ;;  %v9808_v33 = vld [vmem:[#allocation2 + $0x64] sm:$0x1] }
 0x530   :  { %v7636_v30 = vrot.slane %v7635_v8, 4  ;;  %v7654_v49 = vrot.slane %v7652_v35, 5  ;;  %v7627_v25 = vsel %vm13981_vm9, %v7622_v16, %v7626_v19  ;;  %v7671_v52 = vshrl.u32 %v16337_v22, 16  ;;  %v10266_v4 = vld [vmem:[#allocation2 + $0x68] sm:$0xe]  ;;  %v13669_v16 = vld [vmem:[%s17047_s2 + $0x490] sm:$0xff]  }
 0x531   :  { %v7659_v6 = vrot.slane %v7657_v14, 4  ;;  %v7662_v60 = vrot.slane %v7660_v10, 5  ;;  %v7649_v62 = vor.u32 %v7648_v9, %v7645_v15  ;;  %v7668_v18 = vrot.slane %v7666_v61, 5  ;;  %v9810_v34 = vld [vmem:[#allocation2 + $0x6c] sm:$0x1] }
 0x532   :  { %v7641_v57 = vsel %vm13981_vm9, %v7636_v30, %v7640_v28  ;;  %v7674_v56 = vshll.u32 %v16337_v22, 16  ;;  %v7673_v51 = vrot.slane %v7671_v52, 4  ;;  %v7680_v53 = vshll.u32 %v16342_v47, 16  ;;  %v16364_v28 = vld [vmem:[#allocation2 + $0x58] sm:$0xf] }
 0x533   :  { %v11415_v27 = vcombine.low %v7627_v25, %v7641_v57  ;;  %v7663_v3 = vor.u32 %v7662_v60, %v7659_v6  ;;  %v7650_v58 = vrot.slane %v7649_v62, 4  ;;  %v7685_v23 = vshrl.u32 %v16346_v39, 16  ;;  %v16366_v40 = vld [vmem:[#allocation2 + $0x5c] sm:$0x1]  ;;  %v9812_v10 = vld [vmem:[#allocation2 + $0x74] sm:$0x1] }
 0x534   :  { %v7676_v26 = vrot.slane %v7674_v56, 5  ;;  %v7688_v17 = vshll.u32 %v16346_v39, 16  ;;  %v7682_v11 = vrot.slane %v7680_v53, 5  ;;  %v7694_v45 = vshll.u32 %v16351_v42, 16  ;;  %v10267_v30 = vld [vmem:[#allocation2 + $0x70] sm:$0xe] }
 0x535   :  { %12791 = vmatmul.mubr.bf16.vlgmr.msra.gmra.mrb[16].mxu0 %v11415_v27  ;;  %v7664_v19 = vrot.slane %v7663_v3, 4  ;;  %v11678_v54 = vrot.slane %v10265_v50, 9  ;;  %v7655_v24 = vsel %vm13981_vm9, %v7650_v58, %v7654_v49  ;;  %v7687_v59 = vrot.slane %v7685_v23, 4  ;;  %v9814_v6 = vld [vmem:[#allocation2 + $0x7c] sm:$0x1] }
 0x536   :  { %12807 = vmatpush3.bf16.msra.mxu0 %v16131_v46  ;;  %v7677_v36 = vor.u32 %v7676_v26, %v7673_v51  ;;  %v7690_v8 = vrot.slane %v7688_v17, 5  ;;  %v7696_v15 = vrot.slane %v7694_v45, 5  ;;  %v10339_v46 = vrot.slane %v9808_v33, 5  ;;  %v16373_v60 = vld [vmem:[#allocation2 + $0x60] sm:$0xf]  ;;  %v13671_v26 = vld [vmem:[%s17047_s2 + $0x498] sm:$0xff]  }
 0x537   :  { %12808 = vmatprep.subr.bf16.mxu0 %v13667_v41  ;;  %v7669_v35 = vsel %vm13981_vm9, %v7664_v19, %v7668_v18  ;;  %v11679_v14 = vrot.slane %v10266_v4, 9  ;;  %v10343_v25 = vrot.slane %v9810_v34, 5  ;;  %v7713_v57 = vshrl.u32 %v16364_v28, 16  ;;  %v10268_v56 = vld [vmem:[#allocation2 + $0x78] sm:$0xe] }
 0x538   :  { %v11416_v9 = vcombine.low %v7655_v24, %v7669_v35  ;;  %v7678_v49 = vrot.slane %v7677_v36, 4  ;;  %v7691_v61 = vor.u32 %v7690_v8, %v7687_v59  ;;  %v10340_v52 = vsel %vm14412_vm12, %v11678_v54, %v10339_v46  ;;  %v16380_v50 = vld [vmem:[#allocation2 + $0x68] sm:$0xf]  ;;  %v16386_v33 = vld [vmem:[#allocation2 + $0x64] sm:$0x1] }
 0x539   :  { %v7716_v62 = vshll.u32 %v16364_v28, 16  ;;  %v7722_v18 = vshll.u32 %v16366_v40, 16  ;;  %v10344_v51 = vsel %vm14412_vm12, %v11679_v14, %v10343_v25  ;;  %v11680_v53 = vrot.slane %v10267_v30, 9  ;;  %v9816_v54 = vld [vmem:[#allocation2 + $0x84] sm:$0x1] }
 0x53a   :  { %12794 = vmatprep.mubr.bf16.mxu0 %v11416_v9  ;;  %12809 = vmatpush3.bf16.msra.mxu0 %v13667_v41  ;;  %v7683_v27 = vsel %vm13981_vm9, %v7678_v49, %v7682_v11  ;;  %v7692_v3 = vrot.slane %v7691_v61, 4  ;;  %v11706_v58 = vcombine.low %v10340_v52, %v10344_v51  ;;  %v7715_v23 = vrot.slane %v7713_v57, 4  ;;  %v16391_v41 = vld [vmem:[#allocation2 + $0x6c] sm:$0x1]  ;;  %v10269_v35 = vld [vmem:[#allocation2 + $0x80] sm:$0xe] }
 0x53b   :  { %12810 = vmatprep.subr.bf16.mxu0 %v13669_v16  ;;  %v7718_v17 = vrot.slane %v7716_v62, 5  ;;  %v7724_v4 = vrot.slane %v7722_v18, 5  ;;  %v10347_v11 = vrot.slane %v9812_v10, 5  ;;  %v11681_v45 = vrot.slane %v10268_v56, 9  ;;  %v9818_v30 = vld [vmem:[#allocation2 + $0x8c] sm:$0x1] }
 0x53c   :  { %v7697_v19 = vsel %vm13981_vm9, %v7692_v3, %v7696_v15  ;;  %v10351_v34 = vrot.slane %v9814_v6, 5  ;;  %13054 = vmatprep.mubr.bf16.mxu1 %v11706_v58  ;;  %v7727_v59 = vshrl.u32 %v16373_v60, 16  ;;  %v7730_v8 = vshll.u32 %v16373_v60, 16  ;;  %v10270_v9 = vld [vmem:[#allocation2 + $0x88] sm:$0xe] }
 0x53d   :  { %v11417_v24 = vcombine.low %v7683_v27, %v7697_v19  ;;  %v7719_v36 = vor.u32 %v7718_v17, %v7715_v23  ;;  %v10348_v46 = vsel %vm14412_vm12, %v11680_v53, %v10347_v11  ;;  %v7736_v15 = vshll.u32 %v16386_v33, 16  ;;  %v16403_v49 = vld [vmem:[#allocation2 + $0x70] sm:$0xf]  ;;  %v16420_v58 = vld [vmem:[#allocation2 + $0x78] sm:$0xf] }
 0x53e   :  { %12811 = vmatpush3.bf16.msra.mxu0 %v13669_v16  ;;  %v10352_v14 = vsel %vm14412_vm12, %v11681_v45, %v10351_v34  ;;  %v7741_v10 = vshrl.u32 %v16380_v50, 16  ;;  %v13672_v16 = vld [vmem:[%s17047_s2 + $0x4a0] sm:$0xff]   ;;  %v7729_v6 = vrot.slane %v7727_v59, 4  ;;  %v7732_v52 = vrot.slane %v7730_v8, 5  ;;  %v16430_v17 = vld [vmem:[#allocation2 + $0x74] sm:$0x1] }
 0x53f   :  { %12795 = vmatmul.mubr.bf16.gmra.mrb[20].mxu0 %v11417_v24  ;;  %12812 = vmatprep.subr.bf16.mxu0 %v13671_v26  ;;  %v7720_v61 = vrot.slane %v7719_v36, 4  ;;  %v11707_v25 = vcombine.low %v10348_v46, %v10352_v14  ;;  %v7744_v62 = vshll.u32 %v16380_v50, 16  ;;  %v7750_v18 = vshll.u32 %v16391_v41, 16  ;;  %v16432_v45 = vld [vmem:[#allocation2 + $0x7c] sm:$0x1] }
 0x540   :  { %v7743_v57 = vrot.slane %v7741_v10, 4  ;;  %v16416_v56 = vsel %vm14412_vm12, %v11685_v44, %v10367_v48  ;;  %v7733_v3 = vor.u32 %v7732_v52, %v7729_v6  ;;  %v11682_v51 = vrot.slane %v10269_v35, 9  ;;  %v13673_v48 = vld [vmem:[%s17047_s2 + $0x4a8] sm:$0xff]   ;;  %v16439_v24 = vld [vmem:[#allocation2 + $0x80] sm:$0xf]  ;;  %v13674_v52 = vld [vmem:[%s17047_s2 + $0x4b0] sm:$0xff]  }
 0x541   :  { %v7725_v27 = vsel %vm13981_vm9, %v7720_v61, %v7724_v4  ;;  %13055 = vmatmul.mubr.bf16.vlgmr.msra.gmra.mrb[32].mxu1 %v11707_v25  ;;  %v10355_v53 = vrot.slane %v9816_v54, 5  ;;  %v7738_v55 = vrot.slane %v7736_v15, 5  ;;  %v7746_v23 = vrot.slane %v7744_v62, 5  ;;  %v10271_v54 = vld [vmem:[#allocation2 + $0x90] sm:$0xe] }
 0x542   :  { %v11418_v20 = vcombine.low %v7711_v1, %v7725_v27  ;;  %12813 = vmatpush3.bf16.msra.mxu0 %v13671_v26  ;;  %v11683_v44 = vrot.slane %v10270_v9, 9  ;;  %v7734_v4 = vrot.slane %v7733_v3, 4  ;;  %v7752_v19 = vrot.slane %v7750_v18, 5  ;;  %v9820_v46 = vld [vmem:[#allocation2 + $0x94] sm:$0x1] }
 0x543   :  { %12814 = vmatprep.subr.bf16.mxu0 %v13672_v16  ;;  %v10359_v11 = vrot.slane %v9818_v30, 5  ;;  %v7755_v34 = vshrl.u32 %v16403_v49, 16  ;;  %v7747_v0 = vor.u32 %v7746_v23, %v7743_v57  ;;  %v10356_v29 = vsel %vm14412_vm12, %v11682_v51, %v10355_v53  ;;  %v16453_v27 = vld [vmem:[#allocation2 + $0x88] sm:$0xf] }
 0x544   :  { %12798 = vmatprep.mubr.bf16.mxu0 %v11418_v20  ;;  %v7758_v1 = vshll.u32 %v16403_v49, 16  ;;  %v7769_v26 = vshrl.u32 %v16420_v58, 16  ;;  %v7764_v8 = vshll.u32 %v16430_v17, 16  ;;  %v7772_v35 = vshll.u32 %v16420_v58, 16  ;;  %v16456_v20 = vld [vmem:[#allocation2 + $0x84] sm:$0x1] }
 0x545   :  { %v10360_v36 = vsel %vm14412_vm12, %v11683_v44, %v10359_v11  ;;  %v7757_v59 = vrot.slane %v7755_v34, 4  ;;  %v7739_v14 = vsel %vm13981_vm9, %v7734_v4, %v7738_v55  ;;  %v7748_v15 = vrot.slane %v7747_v0, 4 }
 0x546   :  { %12815 = vmatpush3.bf16.msra.mxu0 %v13672_v16  ;;  %v11708_v10 = vcombine.low %v10356_v29, %v10360_v36  ;;  %v7760_v30 = vrot.slane %v7758_v1, 5  ;;  %v7771_v9 = vrot.slane %v7769_v26, 4  ;;  %v7774_v61 = vrot.slane %v7772_v35, 5  ;;  %v13676_v26 = vld [vmem:[%s17047_s2 + $0x4b8] sm:$0xff]  }
 0x547   :  { %12816 = vmatprep.subr.bf16.mxu0 %v13673_v48  ;;  %v7778_v25 = vshll.u32 %v16432_v45, 16  ;;  %v11684_v6 = vrot.slane %v10271_v54, 9  ;;  %v7753_v57 = vsel %vm13981_vm9, %v7748_v15, %v7752_v19  ;;  %v10363_v18 = vrot.slane %v9820_v46, 5  ;;  %v16461_v19 = vld [vmem:[#allocation2 + $0x8c] sm:$0x1] }
 0x548   :  { %13058 = vmatprep.mubr.bf16.mxu1 %v11708_v10  ;;  %v7761_v62 = vor.u32 %v7760_v30, %v7757_v59  ;;  %v7783_v16 = vshrl.u32 %v16439_v24, 16  ;;  %v11419_v3 = vcombine.low %v7739_v14, %v7753_v57  ;;  %v7766_v51 = vrot.slane %v7764_v8, 5  ;;  %v8199_v15 = vld [vmem:[#allocation2 + $0x10] sm:$0xe]  ;;  %v16478_v10 = vld [vmem:[%s17047_s2 + $0x500] sm:$0xff]  }
 0x549   :  { %v7775_v53 = vor.u32 %v7774_v61, %v7771_v9  ;;  %v7786_v55 = vshll.u32 %v16439_v24, 16  ;;  %v7780_v44 = vrot.slane %v7778_v25, 5  ;;  %v10364_v4 = vsel %vm14412_vm12, %v11684_v6, %v10363_v18  ;;  %v8200_v30 = vld [vmem:[#allocation2 + $0x18] sm:$0xe]  ;;  %v8201_v25 = vld [vmem:[#allocation2 + $0x20] sm:$0xe] }
 0x54a   :  { %v7762_v23 = vrot.slane %v7761_v62, 4  ;;  %12817 = vmatpush3.bf16.msra.mxu0 %v13673_v48  ;;  %v7785_v11 = vrot.slane %v7783_v16, 4  ;;  %v11709_v0 = vcombine.low %v10364_v4, %v16416_v56  ;;  %v7797_v1 = vshrl.u32 %v16453_v27, 16  ;;  %v8202_v6 = vld [vmem:[#allocation2 + $0x28] sm:$0xe] }
 0x54b   :  { %12799 = vmatmul.mubr.bf16.gmra.mrb[24].mxu0 %v11419_v3  ;;  %v7776_v34 = vrot.slane %v7775_v53, 4  ;;  %12818 = vmatprep.subr.bf16.mxu0 %v13674_v52  ;;  %v7788_v29 = vrot.slane %v7786_v55, 5  ;;  %v7792_v54 = vshll.u32 %v16456_v20, 16  ;;  %v7800_v36 = vshll.u32 %v16453_v27, 16  ;;  %v8203_v53 = vld [vmem:[#allocation2 + $0x30] sm:$0xe] }
 0x54c   :  { %v7767_v48 = vsel %vm13981_vm9, %v7762_v23, %v7766_v51  ;;  %13059 = vmatmul.mubr.bf16.gmra.mrb[36].mxu1 %v11709_v0  ;;  %v7799_v8 = vrot.slane %v7797_v1, 4  ;;  %v7806_v35 = vshll.u32 %v16461_v19, 16  ;;  %v11448_v18 = vrot.slane %v8199_v15, 9  ;;  %v8204_v4 = vld [vmem:[#allocation2 + $0x38] sm:$0xe] }
 0x54d   :  { %v7781_v59 = vsel %vm13981_vm9, %v7776_v34, %v7780_v44  ;;  %v7789_v56 = vor.u32 %v7788_v29, %v7785_v11  ;;  %v7802_v14 = vrot.slane %v7800_v36, 5  ;;  %v7794_v57 = vrot.slane %v7792_v54, 5  ;;  %v13773_v29 = vld [vmem:[#allocation2] sm:$0xf] }
 0x54e   :  { %v11420_v46 = vcombine.low %v7767_v48, %v7781_v59  ;;  %12819 = vmatpush3.bf16.msra.mxu0 %v13674_v52  ;;  %v7808_v62 = vrot.slane %v7806_v35, 5  ;;  %v8255_v52 = vrot.slane %v16296_v12, 5  ;;  %v11449_v3 = vrot.slane %v8200_v30, 9  ;;  %v8208_v35 = vld [vmem:[#allocation2 + $0x68] sm:$0xe] }
 0x54f   :  { %12820 = vmatprep.subr.bf16.mxu0 %v13676_v26  ;;  %v7790_v9 = vrot.slane %v7789_v56, 4  ;;  %v7803_v61 = vor.u32 %v7802_v14, %v7799_v8  ;;  %v8259_v51 = vrot.slane %v16308_v32, 5  ;;  %v11450_v55 = vrot.slane %v8201_v25, 9  ;;  %v8207_v56 = vld [vmem:[#allocation2 + $0x60] sm:$0xe] }
 0x550   :  { %12802 = vmatprep.mubr.bf16.mxu0 %v11420_v46  ;;  %v8263_v23 = vrot.slane %v16323_v37, 5  ;;  %v11451_v44 = vrot.slane %v8202_v6, 9  ;;  %v16490_v12 = vsel %vm14412_vm12, %v11448_v18, %v8255_v52  ;;  %v11430_v37 = vcombine.low %v13773_v29, %v16266_v63  ;;  %v8209_v46 = vld [vmem:[#allocation2 + $0x70] sm:$0xe]  ;;  %v8210_v14 = vld [vmem:[#allocation2 + $0x78] sm:$0xe] }
 0x551   :  { %v7804_v16 = vrot.slane %v7803_v61, 4  ;;  %v7795_v11 = vsel %vm13981_vm9, %v7790_v9, %v7794_v57  ;;  %v16494_v32 = vsel %vm14412_vm12, %v11449_v3, %v8259_v51  ;;  %v11452_v48 = vrot.slane %v8203_v53, 9  ;;  %v8211_v61 = vld [vmem:[#allocation2 + $0x80] sm:$0xe] }
 0x552   :  { %12821 = vmatpush3.bf16.msra.mxu0 %v13676_v26  ;;  %v11479_v1 = vcombine.low %v16490_v12, %v16494_v32  ;;  %v8267_v26 = vrot.slane %v16332_v13, 5  ;;  %v8271_v54 = vrot.slane %v16342_v47, 5  ;;  %v11453_v36 = vrot.slane %v8204_v4, 9  ;;  %v13685_v29 = vld [vmem:[%s17047_s2 + $0x520] sm:$0xff]  }
 0x553   :  { %12838 = vmatprep.subr.bf16.mxu0 %v16478_v10  ;;  %v7809_v34 = vsel %vm13981_vm9, %v7804_v16, %v7808_v62  ;;  %v8275_v59 = vrot.slane %v16351_v42, 5  ;;  %v16504_v8 = vsel %vm14412_vm12, %v11450_v55, %v8263_v23  ;;  %v11456_v30 = vrot.slane %v8207_v56, 9  ;;  %v8212_v62 = vld [vmem:[#allocation2 + $0x88] sm:$0xe] }
 0x554   :  { %v11421_v0 = vcombine.low %v7795_v11, %v7809_v34  ;;  %v16508_v63 = vsel %vm14412_vm12, %v11451_v44, %v8267_v26  ;;  %v16514_v47 = vsel %vm14412_vm12, %v11452_v48, %v8271_v54  ;;  %v8287_v9 = vrot.slane %v16386_v33, 5  ;;  %v13680_v55 = vld [vmem:[%s17047_s2 + $0x508] sm:$0xff]   ;;  %v13684_v34 = vld [vmem:[%s17047_s2 + $0x518] sm:$0xff]   ;;  %v13775_v54 = vld [vmem:[#allocation2 + $0x4] sm:$0x1] }
 0x555   :  { %v11480_v13 = vcombine.low %v16504_v8, %v16508_v63  ;;  %v16518_v42 = vsel %vm14412_vm12, %v11453_v36, %v8275_v59  ;;  %v11457_v25 = vrot.slane %v8208_v35, 9  ;;  %v8291_v6 = vrot.slane %v16391_v41, 5  ;;  %v8198_v26 = vld [vmem:[#allocation2 + $0x8] sm:$0xe]  ;;  %v13696_v8 = vld [vmem:[%s17047_s2 + $0x560] sm:$0xff]  }
 0x556   :  { %12803 = vmatmul.mubr.bf16.gmra.mrb[28].mxu0 %v11421_v0  ;;  %v11481_v15 = vcombine.low %v16514_v47, %v16518_v42  ;;  %v11458_v57 = vrot.slane %v8209_v46, 9  ;;  %v16526_v18 = vsel %vm14412_vm12, %v11456_v30, %v8287_v9  ;;  %v8295_v16 = vrot.slane %v16430_v17, 5  ;;  %v13774_v0 = vld [vmem:[#allocation2 + $0x50] sm:$0xf]  ;;  %v13692_v46 = vld [vmem:[%s17047_s2 + $0x540] sm:$0xff]   ;;  %v13697_v63 = vld [vmem:[%s17047_s2 + $0x568] sm:$0xff]  }
 0x557   :  { %12822 = vmatprep.mubr.bf16.mxu0 %v11430_v37  ;;  %v11459_v52 = vrot.slane %v8210_v14, 9  ;;  %v16531_v3 = vsel %vm14412_vm12, %v11457_v25, %v8291_v6  ;;  %v8299_v51 = vrot.slane %v16432_v45, 5  ;;  %v11460_v33 = vrot.slane %v8211_v61, 9  ;;  %v8197_v37 = vld [vmem:[#allocation2] sm:$0xe]  ;;  %v13700_v47 = vld [vmem:[%s17047_s2 + $0x578] sm:$0xff]  }
 0x558   :  { %v8303_v53 = vrot.slane %v16456_v20, 5  ;;  %v11431_v41 = vcombine.low %v16288_v31, %v16298_v5  ;;  %v11483_v17 = vcombine.low %v16526_v18, %v16531_v3  ;;  %v11461_v23 = vrot.slane %v8212_v62, 9  ;;  %v8205_v14 = vld [vmem:[#allocation2 + $0x50] sm:$0xe]  ;;  %v8206_v30 = vld [vmem:[#allocation2 + $0x58] sm:$0xe] }
 0x559   :  { %v8307_v44 = vrot.slane %v16461_v19, 5  ;;  %v11432_v4 = vcombine.low %v16316_v7, %v16326_v43  ;;  %v16547_v45 = vsel %vm14412_vm12, %v11458_v57, %v8295_v16  ;;  %v16551_v31 = vsel %vm14412_vm12, %v11459_v52, %v8299_v51  ;;  %v13681_v43 = vld [vmem:[%s17047_s2 + $0x510] sm:$0xff]   ;;  %v13702_v62 = vld [vmem:[#allocation2 + $0x18] ss:$8 sps:$4 sm:$0xff]   ;;  %v13704_v18 = vld [vmem:[%s17047_s2 + $0x588] sm:$0xff]  }
 0x55a   :  { %v11484_v5 = vcombine.low %v16547_v45, %v16551_v31  ;;  %v16557_v20 = vsel %vm14412_vm12, %v11460_v33, %v8303_v53  ;;  %v11433_v11 = vcombine.low %v16337_v22, %v16346_v39  ;;  %v11435_v22 = vcombine.low %v16373_v60, %v16380_v50  ;;  %v13688_v39 = vld [vmem:[%s17047_s2 + $0x528] sm:$0xff]   ;;  %v13689_v60 = vld [vmem:[%s17047_s2 + $0x530] sm:$0xff]  }
 0x55b   :  { %v16561_v19 = vsel %vm14412_vm12, %v11461_v23, %v8307_v44  ;;  %v11446_v48 = vrot.slane %v8197_v37, 9  ;;  %v8247_v36 = vrot.slane %v13775_v54, 5  ;;  %v11447_v59 = vrot.slane %v8198_v26, 9  ;;  %v13776_v9 = vld [vmem:[#allocation2 + $0x54] sm:$0x1] }
 0x55c   :  { %v11485_v7 = vcombine.low %v16557_v20, %v16561_v19  ;;  %v8251_v56 = vrot.slane %v16282_v2, 5  ;;  %v13691_v2 = vld [vmem:[%s17047_s2 + $0x538] sm:$0xff]   ;;  %v8279_v61 = vrot.slane %v13776_v9, 5  ;;  %v11455_v25 = vrot.slane %v8206_v30, 9  ;;  %v13694_v57 = vld [vmem:[%s17047_s2 + $0x550] sm:$0xff]  }
 0x55d   :  { %v8248_v50 = vsel %vm14412_vm12, %v11446_v48, %v8247_v36  ;;  %v8283_v6 = vrot.slane %v16366_v40, 5  ;;  %v13695_v40 = vld [vmem:[%s17047_s2 + $0x558] sm:$0xff]   ;;  %v13699_v42 = vld [vmem:[#allocation2 + $0x8] ss:$8 sps:$4 sm:$0xff]  }
 0x55e   :  { %12823 = vmatmul.mubr.bf16.vlgmr.msra.gmra.mrb[16].mxu0 %v11431_v41  ;;  %v8761_v16 = vld [vmem:[#allocation2 + $0x8] sm:$0xf]  ;;  %v8763_v3 = vld [vmem:[#allocation2 + $0x10] sm:$0xf]  ;;  %v13708_v20 = vld [vmem:[%s17047_s2 + $0x598] sm:$0xff]  }
 0x55f   :  { %12839 = vmatpush3.bf16.msra.mxu0 %v16478_v10  ;;  %12826 = vmatprep.mubr.bf16.mxu0 %v11432_v4  ;;  %v11434_v10 = vcombine.low %v13774_v0, %v16364_v28  ;;  %v11436_v28 = vcombine.low %v16403_v49, %v16420_v58  ;;  %v8252_v49 = vsel %vm14412_vm12, %v11447_v59, %v8251_v56  ;;  %v13703_v52 = vld [vmem:[#allocation2 + $0x28] ss:$8 sps:$4 sm:$0xff]   ;;  %v8794_v51 = vshrl.u32 %v8761_v16, 16  ;;  %v8765_v4 = vld [vmem:[#allocation2 + $0x18] sm:$0xf] }
 0x560   :  { %12840 = vmatprep.subr.bf16.mxu0 %v13680_v55  ;;  %v11437_v58 = vcombine.low %v16439_v24, %v16453_v27  ;;  %v11478_v35 = vcombine.low %v8248_v50, %v8252_v49  ;;  %v13693_v24 = vld [vmem:[%s17047_s2 + $0x548] sm:$0xff]   ;;  %v11454_v27 = vrot.slane %v8205_v14, 9  ;;  %v8284_v32 = vsel %vm14412_vm12, %v11455_v25, %v8283_v6  ;;  %v13705_v53 = vld [vmem:[%s17047_s2 + $0x590] sm:$0xff]   ;;  %v16664_v54 = vld [vmem:[#allocation2 + $0x1c] sm:$0x1] }
 0x561   :  { %v8797_v33 = vshll.u32 %v8761_v16, 16  ;;  %v8808_v41 = vshrl.u32 %v8763_v3, 16  ;;  %v8796_v23 = vrot.slane %v8794_v51, 4  ;;  %v16659_v0 = vld [vmem:[#allocation2 + $0x14] sm:$0x1]  ;;  %v13712_v14 = vld [vmem:[%s17047_s2 + $0x5a8] sm:$0xff]  }
 0x562   :  { %v8280_v12 = vsel %vm14412_vm12, %v11454_v27, %v8279_v61  ;;  %v16668_v50 = vld [vmem:[#allocation2 + $0x24] sm:$0x1]  ;;  %v16675_v25 = vld [vmem:[#allocation2 + $0x2c] sm:$0x1]  ;;  %v13713_v16 = vld [vmem:[%s17047_s2 + $0x5b0] sm:$0xff]  }
 0x563   :  { %12841 = vmatpush3.bf16.msra.mxu0 %v13680_v55  ;;  %v8811_v55 = vshll.u32 %v8763_v3, 16  ;;  %v8799_v44 = vrot.slane %v8797_v33, 5  ;;  %v8810_v19 = vrot.slane %v8808_v41, 4  ;;  %v8845_v61 = vshll.u32 %v16668_v50, 16  ;;  %v16685_v33 = vld [vmem:[#allocation2 + $0x34] sm:$0x1] }
 0x564   :  { %12842 = vmatprep.subr.bf16.mxu0 %v13681_v43  ;;  %v16687_v41 = vld [vmem:[#allocation2 + $0x3c] sm:$0x1] }
 0x565   :  { %v8800_v37 = vor.u32 %v8799_v44, %v8796_v23  ;;  %v8847_v51 = vrot.slane %v8845_v61, 5 }
 0x566   :  { %12827 = vmatmul.mubr.bf16.gmra.mrb[20].mxu0 %v11433_v11  ;;  %v8769_v11 = vld [vmem:[#allocation2 + $0x28] sm:$0xf] }
 0x567   :  { %12843 = vmatpush3.bf16.msra.mxu0 %v13681_v43  ;;  %12830 = vmatprep.mubr.bf16.mxu0 %v11434_v10  ;;  %v13707_v43 = vld [vmem:[#allocation2 + $0x58] ss:$8 sps:$4 sm:$0xff]   ;;  %v8822_v10 = vshrl.u32 %v8765_v4, 16  ;;  %v8850_v36 = vshrl.u32 %v8769_v11, 16  ;;  %v8853_v59 = vshll.u32 %v8769_v11, 16  ;;  %v8801_v30 = vrot.slane %v8800_v37, 4 }
 0x568   :  { %12844 = vmatprep.subr.bf16.mxu0 %v13684_v34 }
 0x569   :  { %v8824_v49 = vrot.slane %v8822_v10, 4  ;;  %v8852_v6 = vrot.slane %v8850_v36, 4  ;;  %v8873_v10 = vshll.u32 %v16685_v33, 16 }
 0x56b   :  { %12845 = vmatpush3.bf16.msra.mxu0 %v13684_v34  ;;  %v16657_v34 = vld [vmem:[#allocation2 + $0xc] sm:$0x1] }
 0x56c   :  { %12846 = vmatprep.subr.bf16.mxu0 %v13685_v29  ;;  %v8803_v56 = vshll.u32 %v16657_v34, 16 }
 0x56e   :  { %12831 = vmatmul.mubr.bf16.gmra.mrb[24].mxu0 %v11435_v22 }
 0x56f   :  { %12847 = vmatpush3.bf16.msra.mxu0 %v13685_v29  ;;  %12834 = vmatprep.mubr.bf16.mxu0 %v11436_v28  ;;  %v8825_v29 = vshll.u32 %v8765_v4, 16  ;;  %v13709_v28 = vld [vmem:[%s17047_s2 + $0x5a0] sm:$0xff]   ;;  %v8777_v4 = vld [vmem:[#allocation2 + $0x58] sm:$0xf] }
 0x570   :  { %12848 = vmatprep.subr.bf16.mxu0 %v13688_v39 }
 0x573   :  { %12849 = vmatpush3.bf16.msra.mxu0 %v13688_v39  ;;  %v8771_v39 = vld [vmem:[#allocation2 + $0x30] sm:$0xf] }
 0x574   :  { %12850 = vmatprep.subr.bf16.mxu0 %v13689_v60 }
 0x576   :  { %12835 = vmatmul.mubr.bf16.gmra.mrb[28].mxu0 %v11437_v58  ;;  %v8827_v58 = vrot.slane %v8825_v29, 5  ;;  %v13714_v29 = vld [vmem:[#allocation2 + $0x88] ss:$8 sps:$4 sm:$0xff]  }
 0x577   :  { %12851 = vmatpush3.bf16.msra.mxu0 %v13689_v60  ;;  %12854 = vmatprep.mubr.bf16.mxu0 %v11478_v35  ;;  %v8817_v60 = vshll.u32 %v16659_v0, 16  ;;  %v8867_v35 = vshll.u32 %v8771_v39, 16 }
 0x578   :  { %12852 = vmatprep.subr.bf16.mxu0 %v13691_v2 }
 0x57b   :  { %12853 = vmatpush3.bf16.msra.mxu0 %v13691_v2  ;;  %v8864_v2 = vshrl.u32 %v8771_v39, 16  ;;  %v8909_v39 = vshll.u32 %v8777_v4, 16 }
 0x57c   :  { %12870 = vmatprep.subr.bf16.mxu0 %v13692_v46 }
 0x57e   :  { %12855 = vmatmul.mubr.bf16.vlgmr.msra.gmra.mrb[16].mxu0 %v11479_v1  ;;  %v11482_v1 = vcombine.low %v8280_v12, %v8284_v32  ;;  %v13711_v12 = vld [vmem:[#allocation2 + $0x78] ss:$8 sps:$4 sm:$0xff]   ;;  %v8805_v32 = vrot.slane %v8803_v56, 5 }
 0x57f   :  { %12871 = vmatpush3.bf16.msra.mxu0 %v13692_v46  ;;  %12858 = vmatprep.mubr.bf16.mxu0 %v11480_v13  ;;  %v13698_v13 = vld [vmem:[%s17047_s2 + $0x570] sm:$0xff]  }
 0x580   :  { %12872 = vmatprep.subr.bf16.mxu0 %v13693_v24  ;;  %v13710_v46 = vld [vmem:[#allocation2 + $0x68] ss:$8 sps:$4 sm:$0xff]  }
 0x583   :  { %12873 = vmatpush3.bf16.msra.mxu0 %v13693_v24  ;;  %v8831_v24 = vshll.u32 %v16664_v54, 16 }
 0x584   :  { %12874 = vmatprep.subr.bf16.mxu0 %v13694_v57 }
 0x586   :  { %12859 = vmatmul.mubr.bf16.gmra.mrb[20].mxu0 %v11481_v15  ;;  %v13701_v15 = vld [vmem:[%s17047_s2 + $0x580] sm:$0xff]  }
 0x587   :  { %12875 = vmatpush3.bf16.msra.mxu0 %v13694_v57  ;;  %12862 = vmatprep.mubr.bf16.mxu0 %v11482_v1  ;;  %v8855_v57 = vrot.slane %v8853_v59, 5  ;;  %v8819_v1 = vrot.slane %v8817_v60, 5 }
 0x588   :  { %12876 = vmatprep.subr.bf16.mxu0 %v13695_v40 }
 0x58b   :  { %12877 = vmatpush3.bf16.msra.mxu0 %v13695_v40  ;;  %v8773_v40 = vld [vmem:[#allocation2 + $0x38] sm:$0xf] }
 0x58c   :  { %12878 = vmatprep.subr.bf16.mxu0 %v13696_v8 }
 0x58e   :  { %12863 = vmatmul.mubr.bf16.gmra.mrb[24].mxu0 %v11483_v17  ;;  %v8767_v17 = vld [vmem:[#allocation2 + $0x20] sm:$0xf] }
 0x58f   :  { %12879 = vmatpush3.bf16.msra.mxu0 %v13696_v8  ;;  %12866 = vmatprep.mubr.bf16.mxu0 %v11484_v5  ;;  %v8836_v45 = vshrl.u32 %v8767_v17, 16  ;;  %v8839_v31 = vshll.u32 %v8767_v17, 16  ;;  %v13706_v5 = vld [vmem:[#allocation2 + $0x38] ss:$8 sps:$4 sm:$0xff]   ;;  %v8828_v8 = vor.u32 %v8827_v58, %v8824_v49  ;;  %v8881_v17 = vshll.u32 %v8773_v40, 16 }
 0x590   :  { %12880 = vmatprep.subr.bf16.mxu0 %v13697_v63  ;;  %v16698_v49 = vld [vmem:[#allocation2 + $0x44] sm:$0x1] }
 0x591   :  { %v8838_v26 = vrot.slane %v8836_v45, 4  ;;  %v8841_v22 = vrot.slane %v8839_v31, 5  ;;  %v8829_v45 = vrot.slane %v8828_v8, 4 }
 0x593   :  { %12881 = vmatpush3.bf16.msra.mxu0 %v13697_v63  ;;  %v8842_v27 = vor.u32 %v8841_v22, %v8838_v26  ;;  %v8866_v63 = vrot.slane %v8864_v2, 4  ;;  %v8887_v26 = vshll.u32 %v16687_v41, 16  ;;  %v8906_v22 = vshrl.u32 %v8777_v4, 16 }
 0x594   :  { %12882 = vmatprep.subr.bf16.mxu0 %v13698_v13 }
 0x595   :  { %v16707_v61 = vrot.slane %v8887_v26, 5  ;;  %v16724_v26 = vld [vmem:[#allocation2 + $0x74] sm:$0x1] }
 0x596   :  { %12867 = vmatmul.mubr.bf16.gmra.mrb[28].mxu0 %v11485_v7  ;;  %v8813_v7 = vrot.slane %v8811_v55, 5  ;;  %v8878_v55 = vshrl.u32 %v8773_v40, 16 }
 0x597   :  { %12883 = vmatpush3.bf16.msra.mxu0 %v13698_v13  ;;  %12886 = vmatprep.mubr.bf16.mxu0 %v13699_v42  ;;  %v8869_v13 = vrot.slane %v8867_v35, 5  ;;  %v8833_v42 = vrot.slane %v8831_v24, 5  ;;  %v8783_v35 = vld [vmem:[#allocation2 + $0x70] sm:$0xf]  ;;  %v8787_v24 = vld [vmem:[#allocation2 + $0x80] sm:$0xf] }
 0x598   :  { %12884 = vmatprep.subr.bf16.mxu0 %v13700_v47  ;;  %v8814_v48 = vor.u32 %v8813_v7, %v8810_v19  ;;  %v13715_v7 = vld [vmem:[%s17047_s2 + $0x5b8] sm:$0xff]   ;;  %v8948_v8 = vshrl.u32 %v8783_v35, 16 }
 0x599   :  { %v8870_v31 = vor.u32 %v8869_v13, %v8866_v63  ;;  %v8834_v56 = vsel %vm13981_vm9, %v8829_v45, %v8833_v42  ;;  %v8951_v63 = vshll.u32 %v8783_v35, 16  ;;  %v8785_v13 = vld [vmem:[#allocation2 + $0x78] sm:$0xf]  ;;  %v16719_v45 = vld [vmem:[#allocation2 + $0x6c] sm:$0x1] }
 0x59a   :  { %v8815_v9 = vrot.slane %v8814_v48, 4  ;;  %v8883_v48 = vrot.slane %v8881_v17, 5  ;;  %v8962_v17 = vshrl.u32 %v8785_v13, 16 }
 0x59b   :  { %12885 = vmatpush3.bf16.msra.mxu0 %v13700_v47  ;;  %v8775_v47 = vld [vmem:[#allocation2 + $0x40] sm:$0xf]  ;;  %v8871_v60 = vrot.slane %v8870_v31, 4  ;;  %v8950_v31 = vrot.slane %v8948_v8, 4 }
 0x59c   :  { %12902 = vmatprep.subr.bf16.mxu0 %v13701_v15  ;;  %v8820_v3 = vsel %vm13981_vm9, %v8815_v9, %v8819_v1  ;;  %v8892_v23 = vshrl.u32 %v8775_v47, 16  ;;  %v8895_v44 = vshll.u32 %v8775_v47, 16  ;;  %v16709_v1 = vld [vmem:[#allocation2 + $0x64] sm:$0x1] }
 0x59e   :  { %12887 = vmatmul.mubr.bf16.vlgmr.msra.gmra.mrb[16].mxu0 %v13702_v62  ;;  %v8859_v62 = vshll.u32 %v16675_v25, 16  ;;  %v8894_v36 = vrot.slane %v8892_v23, 4  ;;  %v8897_v59 = vrot.slane %v8895_v44, 5  ;;  %v8965_v23 = vshll.u32 %v8785_v13, 16 }
 0x59f   :  { %12903 = vmatpush3.bf16.msra.mxu0 %v13701_v15  ;;  %12890 = vmatprep.mubr.bf16.mxu0 %v13703_v52  ;;  %v8843_v15 = vrot.slane %v8842_v27, 4  ;;  %v8806_v52 = vsel %vm13981_vm9, %v8801_v30, %v8805_v32  ;;  %v16700_v30 = vld [vmem:[#allocation2 + $0x5c] sm:$0x1]  ;;  %v13716_v27 = vld [vmem:[%s17047_s2 + $0x5c0] sm:$0xff]  }
 0x5a0   :  { %12904 = vmatprep.subr.bf16.mxu0 %v13704_v18  ;;  %v11542_v19 = vcombine.low %v8806_v52, %v8820_v3  ;;  %v8861_v11 = vrot.slane %v8859_v62, 5  ;;  %v8898_v40 = vor.u32 %v8897_v59, %v8894_v36  ;;  %v8979_v62 = vshll.u32 %v8787_v24, 16 }
 0x5a1   :  { %v8964_v36 = vrot.slane %v8962_v17, 4  ;;  %v8967_v59 = vrot.slane %v8965_v23, 5  ;;  %v13720_v17 = vld [vmem:[%s17047_s2 + $0x5e0] sm:$0xff]  }
 0x5a2   :  { %v8899_v4 = vrot.slane %v8898_v40, 4 }
 0x5a3   :  { %12905 = vmatpush3.bf16.msra.mxu0 %v13704_v18  ;;  %v8779_v18 = vld [vmem:[#allocation2 + $0x60] sm:$0xf]  ;;  %v8968_v13 = vor.u32 %v8967_v59, %v8964_v36 }
 0x5a4   :  { %12906 = vmatprep.subr.bf16.mxu0 %v13705_v53 }
 0x5a5   :  { %v8969_v23 = vrot.slane %v8968_v13, 4 }
 0x5a6   :  { %12891 = vmatmul.mubr.bf16.gmra.mrb[20].mxu0 %v13706_v5  ;;  %v8920_v5 = vshrl.u32 %v8779_v18, 16 }
 0x5a7   :  { %12907 = vmatpush3.bf16.msra.mxu0 %v13705_v53  ;;  %12894 = vmatprep.mubr.bf16.mxu0 %v13707_v43  ;;  %v8856_v53 = vor.u32 %v8855_v57, %v8852_v6  ;;  %v8848_v43 = vsel %vm13981_vm9, %v8843_v15, %v8847_v51  ;;  %v8908_v6 = vrot.slane %v8906_v22, 4  ;;  %v8911_v57 = vrot.slane %v8909_v39, 5  ;;  %v13717_v51 = vld [vmem:[%s17047_s2 + $0x5c8] sm:$0xff]  }
 0x5a8   :  { %12908 = vmatprep.subr.bf16.mxu0 %v13708_v20  ;;  %v8922_v58 = vrot.slane %v8920_v5, 4  ;;  %v8976_v15 = vshrl.u32 %v8787_v24, 16  ;;  %v8953_v5 = vrot.slane %v8951_v63, 5 }
 0x5a9   :  { %v8857_v37 = vrot.slane %v8856_v53, 4  ;;  %v8912_v53 = vor.u32 %v8911_v57, %v8908_v6  ;;  %v8957_v57 = vshll.u32 %v16724_v26, 16 }
 0x5ab   :  { %12909 = vmatpush3.bf16.msra.mxu0 %v13708_v20  ;;  %v8923_v20 = vshll.u32 %v8779_v18, 16  ;;  %v8862_v9 = vsel %vm13981_vm9, %v8857_v37, %v8861_v11  ;;  %v8901_v18 = vshll.u32 %v16698_v49, 16  ;;  %v8981_v11 = vrot.slane %v8979_v62, 5 }
 0x5ac   :  { %12910 = vmatprep.subr.bf16.mxu0 %v13709_v28 }
 0x5ad   :  { %v8925_v2 = vrot.slane %v8923_v20, 5  ;;  %v13718_v20 = vld [vmem:[%s17047_s2 + $0x5d0] sm:$0xff]  }
 0x5ae   :  { %12895 = vmatmul.mubr.bf16.gmra.mrb[24].mxu0 %v13710_v46  ;;  %v11543_v46 = vcombine.low %v8834_v56, %v8848_v43  ;;  %v8978_v43 = vrot.slane %v8976_v15, 4  ;;  %v8789_v56 = vld [vmem:[#allocation2 + $0x88] sm:$0xf] }
 0x5af   :  { %12911 = vmatpush3.bf16.msra.mxu0 %v13709_v28  ;;  %12898 = vmatprep.mubr.bf16.mxu0 %v13711_v12  ;;  %v8880_v28 = vrot.slane %v8878_v55, 4  ;;  %v8781_v12 = vld [vmem:[#allocation2 + $0x68] sm:$0xf]  ;;  %v8926_v42 = vor.u32 %v8925_v2, %v8922_v58  ;;  %v8929_v55 = vshll.u32 %v16709_v1, 16  ;;  %v8954_v58 = vor.u32 %v8953_v5, %v8950_v31  ;;  %v16728_v2 = vld [vmem:[#allocation2 + $0x84] sm:$0x1] }
 0x5b0   :  { %12912 = vmatprep.subr.bf16.mxu0 %v13712_v14  ;;  %v8934_v52 = vshrl.u32 %v8781_v12, 16  ;;  %v8937_v3 = vshll.u32 %v8781_v12, 16  ;;  %v16737_v12 = vld [vmem:[#allocation2 + $0x7c] sm:$0x1]  ;;  %v8993_v40 = vshll.u32 %v8789_v56, 16 }
 0x5b1   :  { %v8884_v32 = vor.u32 %v8883_v48, %v8880_v28  ;;  %v8913_v28 = vrot.slane %v8912_v53, 4  ;;  %v8931_v48 = vrot.slane %v8929_v55, 5  ;;  %v8955_v15 = vrot.slane %v8954_v58, 4 }
 0x5b2   :  { %v8936_v22 = vrot.slane %v8934_v52, 4  ;;  %v8939_v39 = vrot.slane %v8937_v3, 5  ;;  %v8995_v55 = vrot.slane %v8993_v40, 5  ;;  %v9281_v58 = vrot.slane %v16659_v0, 5  ;;  %v9230_v0 = vld [vmem:[#allocation2 + $0x20] sm:$0xe] }
 0x5b3   :  { %12913 = vmatpush3.bf16.msra.mxu0 %v13712_v14  ;;  %v8875_v14 = vrot.slane %v8873_v10, 5  ;;  %v8791_v10 = vld [vmem:[#allocation2 + $0x90] sm:$0xf] }
 0x5b4   :  { %12914 = vmatprep.subr.bf16.mxu0 %v13713_v16  ;;  %v9004_v35 = vshrl.u32 %v8791_v10, 16  ;;  %v8940_v6 = vor.u32 %v8939_v39, %v8936_v22  ;;  %v9232_v40 = vld [vmem:[#allocation2 + $0x30] sm:$0xe] }
 0x5b5   :  { %v8876_v47 = vsel %vm13981_vm9, %v8871_v60, %v8875_v14 }
 0x5b6   :  { %12899 = vmatmul.mubr.bf16.gmra.mrb[28].mxu0 %v13714_v29  ;;  %v11544_v44 = vcombine.low %v8862_v9, %v8876_v47  ;;  %v8903_v29 = vrot.slane %v8901_v18, 5  ;;  %v8982_v9 = vor.u32 %v8981_v11, %v8978_v43  ;;  %v8985_v47 = vshll.u32 %v16728_v2, 16  ;;  %v16755_v43 = vld [vmem:[#allocation2 + $0x8c] sm:$0x1] }
 0x5b7   :  { %12915 = vmatpush3.bf16.msra.mxu0 %v13713_v16  ;;  %12918 = vmatprep.mubr.bf16.mxu0 %v11542_v19  ;;  %v8915_v16 = vshll.u32 %v16700_v30, 16  ;;  %v8885_v19 = vrot.slane %v8884_v32, 4  ;;  %v8990_v32 = vshrl.u32 %v8789_v56, 16  ;;  %v9006_v62 = vrot.slane %v9004_v35, 4  ;;  %v9227_v56 = vld [vmem:[#allocation2 + $0x8] sm:$0xe] }
 0x5b8   :  { %12916 = vmatprep.subr.bf16.mxu0 %v13715_v7  ;;  %v8904_v60 = vsel %vm13981_vm9, %v8899_v4, %v8903_v29  ;;  %v8983_v52 = vrot.slane %v8982_v9, 4  ;;  %v8941_v3 = vrot.slane %v8940_v6, 4  ;;  %v16749_v4 = vld [vmem:[#allocation2 + $0x94] sm:$0x1]  ;;  %v8999_v36 = vshll.u32 %v16755_v43, 16 }
 0x5b9   :  { %v8917_v37 = vrot.slane %v8915_v16, 5  ;;  %v8890_v14 = vsel %vm13981_vm9, %v8885_v19, %v16707_v61  ;;  %v13719_v61 = vld [vmem:[%s17047_s2 + $0x5d8] sm:$0xff]   ;;  %v8971_v16 = vshll.u32 %v16737_v12, 16  ;;  %v8992_v53 = vrot.slane %v8990_v32, 4 }
 0x5ba   :  { %v11545_v8 = vcombine.low %v8890_v14, %v8904_v60  ;;  %v9013_v29 = vshll.u32 %v16749_v4, 16  ;;  %v13722_v14 = vld [vmem:[%s17047_s2 + $0x5f0] sm:$0xff]   ;;  %v9001_v9 = vrot.slane %v8999_v36, 5 }
 0x5bb   :  { %12917 = vmatpush3.bf16.msra.mxu0 %v13715_v7  ;;  %v8927_v7 = vrot.slane %v8926_v42, 4  ;;  %v8918_v63 = vsel %vm13981_vm9, %v8913_v28, %v8917_v37  ;;  %v9228_v37 = vld [vmem:[#allocation2 + $0x10] sm:$0xe]  ;;  %v13721_v28 = vld [vmem:[%s17047_s2 + $0x5e8] sm:$0xff]  }
 0x5bc   :  { %12934 = vmatprep.subr.bf16.mxu0 %v13716_v27  ;;  %v11559_v60 = vrot.slane %v9228_v37, 9  ;;  %v9301_v37 = vrot.slane %v16687_v41, 5  ;;  %v9240_v41 = vld [vmem:[#allocation2 + $0x80] sm:$0xe] }
 0x5bd   :  { %v8932_v24 = vsel %vm13981_vm9, %v8927_v7, %v8931_v48 }
 0x5be   :  { %12919 = vmatmul.mubr.bf16.vlgmr.msra.gmra.mrb[16].mxu0 %v11543_v46  ;;  %v9007_v46 = vshll.u32 %v8791_v10, 16  ;;  %v11546_v42 = vcombine.low %v8918_v63, %v8932_v24  ;;  %v8996_v10 = vor.u32 %v8995_v55, %v8992_v53  ;;  %v11558_v24 = vrot.slane %v9227_v56, 9 }
 0x5bf   :  { %12935 = vmatpush3.bf16.msra.mxu0 %v13716_v27  ;;  %12922 = vmatprep.mubr.bf16.mxu0 %v11544_v44  ;;  %v8943_v27 = vshll.u32 %v16719_v45, 16  ;;  %v8987_v44 = vrot.slane %v8985_v47, 5  ;;  %v11561_v47 = vrot.slane %v9230_v0, 9  ;;  %v9293_v53 = vrot.slane %v16675_v25, 5  ;;  %v13725_v25 = vld [vmem:[%s17047_s2 + $0x608] sm:$0xff]  }
 0x5c0   :  { %12936 = vmatprep.subr.bf16.mxu0 %v13717_v51  ;;  %v9009_v18 = vrot.slane %v9007_v46, 5  ;;  %v8997_v35 = vrot.slane %v8996_v10, 4  ;;  %v9015_v46 = vrot.slane %v9013_v29, 5  ;;  %v9313_v10 = vrot.slane %v16709_v1, 5  ;;  %v9238_v1 = vld [vmem:[#allocation2 + $0x70] sm:$0xe] }
 0x5c1   :  { %v8945_v31 = vrot.slane %v8943_v27, 5  ;;  %v8988_v7 = vsel %vm13981_vm9, %v8983_v52, %v8987_v44  ;;  %v9277_v27 = vrot.slane %v16657_v34, 5  ;;  %v13723_v34 = vld [vmem:[%s17047_s2 + $0x5f8] sm:$0xff]   ;;  %v9285_v52 = vrot.slane %v16664_v54, 5  ;;  %v9236_v54 = vld [vmem:[#allocation2 + $0x60] sm:$0xe] }
 0x5c2   :  { %v9010_v19 = vor.u32 %v9009_v18, %v9006_v62  ;;  %v9002_v32 = vsel %vm13981_vm9, %v8997_v35, %v9001_v9  ;;  %v11563_v62 = vrot.slane %v9232_v40, 9  ;;  %v9297_v18 = vrot.slane %v16685_v33, 5  ;;  %v9234_v33 = vld [vmem:[#allocation2 + $0x40] sm:$0xe] }
 0x5c3   :  { %12937 = vmatpush3.bf16.msra.mxu0 %v13717_v51  ;;  %v8959_v51 = vrot.slane %v8957_v57, 5  ;;  %v8946_v11 = vsel %vm13981_vm9, %v8941_v3, %v8945_v31  ;;  %v9282_v57 = vsel %vm14412_vm12, %v11559_v60, %v9281_v58  ;;  %v9278_v63 = vsel %vm14412_vm12, %v11558_v24, %v9277_v27  ;;  %v13724_v3 = vld [vmem:[%s17047_s2 + $0x600] sm:$0xff]   ;;  %v9233_v31 = vld [vmem:[#allocation2 + $0x38] sm:$0xe]  ;;  %v9237_v60 = vld [vmem:[#allocation2 + $0x68] sm:$0xe] }
 0x5c4   :  { %12938 = vmatprep.subr.bf16.mxu0 %v13718_v20  ;;  %v9011_v59 = vrot.slane %v9010_v19, 4  ;;  %v11590_v13 = vcombine.low %v9278_v63, %v9282_v57  ;;  %v9298_v55 = vsel %vm14412_vm12, %v11563_v62, %v9297_v18  ;;  %v11565_v19 = vrot.slane %v9234_v33, 9  ;;  %v13728_v57 = vld [vmem:[%s17047_s2 + $0x620] sm:$0xff]   ;;  %v13730_v62 = vld [vmem:[%s17047_s2 + $0x630] sm:$0xff]   ;;  %v9793_v33 = vld [vmem:[#allocation2 + $0x18] sm:$0xf] }
 0x5c5   :  { %v8960_v5 = vsel %vm13981_vm9, %v8955_v15, %v8959_v51  ;;  %v9231_v15 = vld [vmem:[#allocation2 + $0x28] sm:$0xe]  ;;  %v11564_v29 = vrot.slane %v9233_v31, 9  ;;  %v11569_v35 = vrot.slane %v9238_v1, 9  ;;  %v11571_v24 = vrot.slane %v9240_v41, 9 }
 0x5c6   :  { %12923 = vmatmul.mubr.bf16.gmra.mrb[20].mxu0 %v11545_v8  ;;  %v11547_v22 = vcombine.low %v8946_v11, %v8960_v5  ;;  %v9016_v6 = vsel %vm13981_vm9, %v9011_v59, %v9015_v46  ;;  %v11562_v51 = vrot.slane %v9231_v15, 9  ;;  %v11567_v11 = vrot.slane %v9236_v54, 9  ;;  %v13738_v31 = vld [vmem:[#allocation2 + $0x40] ss:$8 sps:$4 sm:$0xff]   ;;  %v9801_v41 = vld [vmem:[#allocation2 + $0x38] sm:$0xf] }
 0x5c7   :  { %12939 = vmatpush3.bf16.msra.mxu0 %v13718_v20  ;;  %12926 = vmatprep.mubr.bf16.mxu0 %v11546_v42  ;;  %v8973_v20 = vrot.slane %v8971_v16, 5  ;;  %v11549_v8 = vcombine.low %v9002_v32, %v9016_v6  ;;  %v9289_v42 = vrot.slane %v16668_v50, 5  ;;  %v9302_v36 = vsel %vm14412_vm12, %v11564_v29, %v9301_v37  ;;  %v13740_v29 = vld [vmem:[%s17047_s2 + $0x658] sm:$0xff]  }
 0x5c8   :  { %12940 = vmatprep.subr.bf16.mxu0 %v13719_v61  ;;  %v9294_v44 = vsel %vm14412_vm12, %v11562_v51, %v9293_v53  ;;  %v9321_v46 = vrot.slane %v16724_v26, 5  ;;  %v9329_v27 = vrot.slane %v16728_v2, 5  ;;  %v11568_v9 = vrot.slane %v9237_v60, 9  ;;  %v9242_v2 = vld [vmem:[#allocation2 + $0x90] sm:$0xe]  ;;  %v13736_v53 = vld [vmem:[%s17047_s2 + $0x648] sm:$0xff]  }
 0x5c9   :  { %v8974_v39 = vsel %vm13981_vm9, %v8969_v23, %v8973_v20  ;;  %v9290_v50 = vsel %vm14412_vm12, %v11561_v47, %v9289_v42  ;;  %v11592_v5 = vcombine.low %v9294_v44, %v9298_v55  ;;  %v9305_v20 = vrot.slane %v16698_v49, 5  ;;  %v13734_v51 = vld [vmem:[#allocation2 + $0x20] ss:$8 sps:$4 sm:$0xff]   ;;  %v13735_v55 = vld [vmem:[#allocation2 + $0x30] ss:$8 sps:$4 sm:$0xff]  }
 0x5ca   :  { %v11548_v48 = vcombine.low %v8974_v39, %v8988_v7  ;;  %v9235_v7 = vld [vmem:[#allocation2 + $0x58] sm:$0xe]  ;;  %v9317_v6 = vrot.slane %v16719_v45, 5  ;;  %v9325_v32 = vrot.slane %v16737_v12, 5  ;;  %v9322_v26 = vsel %vm14412_vm12, %v11569_v35, %v9321_v46  ;;  %v13729_v12 = vld [vmem:[%s17047_s2 + $0x628] sm:$0xff]   ;;  %v13741_v35 = vld [vmem:[%s17047_s2 + $0x660] sm:$0xff]  }
 0x5cb   :  { %12941 = vmatpush3.bf16.msra.mxu0 %v13719_v61  ;;  %v9229_v61 = vld [vmem:[#allocation2 + $0x18] sm:$0xe]  ;;  %v11566_v39 = vrot.slane %v9235_v7, 9  ;;  %v9306_v49 = vsel %vm14412_vm12, %v11565_v19, %v9305_v20  ;;  %v9330_v40 = vsel %vm14412_vm12, %v11571_v24, %v9329_v27  ;;  %v9337_v47 = vrot.slane %v16749_v4, 5  ;;  %v9795_v44 = vld [vmem:[#allocation2 + $0x20] sm:$0xf] }
 0x5cc   :  { %12942 = vmatprep.subr.bf16.mxu0 %v13720_v17  ;;  %v11560_v16 = vrot.slane %v9229_v61, 9  ;;  %v11593_v59 = vcombine.low %v9302_v36, %v9306_v49  ;;  %v9333_v15 = vrot.slane %v16755_v43, 5  ;;  %v13733_v43 = vld [vmem:[%s17047_s2 + $0x640] sm:$0xff]   ;;  %v9841_v19 = vshll.u32 %v9793_v33, 16  ;;  %v16857_v20 = vld [vmem:[#allocation2 + $0x14] sm:$0x1] }
 0x5cd   :  { %v9852_v37 = vshrl.u32 %v9795_v44, 16  ;;  %v13739_v49 = vld [vmem:[#allocation2 + $0x60] ss:$8 sps:$4 sm:$0xff]  }
 0x5ce   :  { %12927 = vmatmul.mubr.bf16.gmra.mrb[24].mxu0 %v11547_v22  ;;  %v13726_v22 = vld [vmem:[%s17047_s2 + $0x610] sm:$0xff]   ;;  %v9843_v36 = vrot.slane %v9841_v19, 5 }
 0x5cf   :  { %12943 = vmatpush3.bf16.msra.mxu0 %v13720_v17  ;;  %12930 = vmatprep.mubr.bf16.mxu0 %v11548_v48  ;;  %v9286_v17 = vsel %vm14412_vm12, %v11560_v16, %v9285_v52  ;;  %v9314_v48 = vsel %vm14412_vm12, %v11567_v11, %v9313_v10  ;;  %v13732_v52 = vld [vmem:[%s17047_s2 + $0x638] sm:$0xff]   ;;  %v9799_v10 = vld [vmem:[#allocation2 + $0x30] sm:$0xf]  ;;  %v9854_v46 = vrot.slane %v9852_v37, 4 }
 0x5d0   :  { %12944 = vmatprep.subr.bf16.mxu0 %v13721_v28  ;;  %v11591_v23 = vcombine.low %v9286_v17, %v9290_v50  ;;  %v9791_v50 = vld [vmem:[#allocation2 + $0x10] sm:$0xf]  ;;  %v9880_v60 = vshrl.u32 %v9799_v10, 16 }
 0x5d1   :  { %v9824_v17 = vshrl.u32 %v9791_v50, 16  ;;  %v9827_v54 = vshll.u32 %v9791_v50, 16 }
 0x5d3   :  { %12945 = vmatpush3.bf16.msra.mxu0 %v13721_v28  ;;  %v9309_v28 = vrot.slane %v16700_v30, 5  ;;  %v13727_v30 = vld [vmem:[%s17047_s2 + $0x618] sm:$0xff]   ;;  %v9826_v7 = vrot.slane %v9824_v17, 4  ;;  %v9829_v11 = vrot.slane %v9827_v54, 5 }
 0x5d4   :  { %12946 = vmatprep.subr.bf16.mxu0 %v13722_v14  ;;  %v16882_v17 = vld [vmem:[#allocation2 + $0x3c] sm:$0x1] }
 0x5d5   :  { %v9310_v56 = vsel %vm14412_vm12, %v11566_v39, %v9309_v28 }
 0x5d6   :  { %12931 = vmatmul.mubr.bf16.gmra.mrb[28].mxu0 %v11549_v8  ;;  %v11594_v58 = vcombine.low %v9310_v56, %v9314_v48  ;;  %v9318_v8 = vsel %vm14412_vm12, %v11568_v9, %v9317_v6  ;;  %v16862_v48 = vld [vmem:[#allocation2 + $0x1c] sm:$0x1]  ;;  %v9833_v56 = vshll.u32 %v16857_v20, 16  ;;  %v16870_v9 = vld [vmem:[#allocation2 + $0x2c] sm:$0x1]  ;;  %v9894_v6 = vshrl.u32 %v9801_v41, 16 }
 0x5d7   :  { %12947 = vmatpush3.bf16.msra.mxu0 %v13722_v14  ;;  %12950 = vmatprep.mubr.bf16.mxu0 %v11590_v13  ;;  %v9239_v14 = vld [vmem:[#allocation2 + $0x78] sm:$0xe]  ;;  %v11595_v45 = vcombine.low %v9318_v8, %v9322_v26  ;;  %v11573_v13 = vrot.slane %v9242_v2, 9  ;;  %v9847_v26 = vshll.u32 %v16862_v48, 16  ;;  %v13743_v2 = vld [vmem:[#allocation2 + $0x80] ss:$8 sps:$4 sm:$0xff]  }
 0x5d8   :  { %12948 = vmatprep.subr.bf16.mxu0 %v13723_v34  ;;  %v11570_v0 = vrot.slane %v9239_v14, 9  ;;  %v10319_v21 = vrot.slane %v16870_v9, 5 }
 0x5d9   :  { %v9338_v18 = vsel %vm14412_vm12, %v11573_v13, %v9337_v47  ;;  %v9835_v13 = vrot.slane %v9833_v56, 5 }
 0x5da   :  { %v9326_v63 = vsel %vm14412_vm12, %v11570_v0, %v9325_v32  ;;  %v13742_v0 = vld [vmem:[#allocation2 + $0x70] ss:$8 sps:$4 sm:$0xff]  }
 0x5db   :  { %12949 = vmatpush3.bf16.msra.mxu0 %v13723_v34  ;;  %v9241_v34 = vld [vmem:[#allocation2 + $0x88] sm:$0xe]  ;;  %v11596_v61 = vcombine.low %v9326_v63, %v9330_v40  ;;  %v9803_v40 = vld [vmem:[#allocation2 + $0x40] sm:$0xf]  ;;  %v9882_v63 = vrot.slane %v9880_v60, 4 }
 0x5dc   :  { %12966 = vmatprep.subr.bf16.mxu0 %v13724_v3  ;;  %v11572_v42 = vrot.slane %v9241_v34, 9  ;;  %v9805_v34 = vld [vmem:[#allocation2 + $0x48] sm:$0xf] }
 0x5dd   :  { %v9925_v50 = vshll.u32 %v9805_v34, 16 }
 0x5de   :  { %12951 = vmatmul.mubr.bf16.vlgmr.msra.gmra.mrb[16].mxu0 %v11591_v23  ;;  %v9334_v16 = vsel %vm14412_vm12, %v11572_v42, %v9333_v15  ;;  %v13737_v23 = vld [vmem:[%s17047_s2 + $0x650] sm:$0xff]   ;;  %v9875_v15 = vshll.u32 %v16870_v9, 16 }
 0x5df   :  { %12967 = vmatpush3.bf16.msra.mxu0 %v13724_v3  ;;  %12954 = vmatprep.mubr.bf16.mxu0 %v11592_v5  ;;  %v11597_v4 = vcombine.low %v9334_v16, %v9338_v18  ;;  %v13731_v3 = vld [vmem:[#allocation2 + $0x10] ss:$8 sps:$4 sm:$0xff]   ;;  %v9838_v5 = vshrl.u32 %v9793_v33, 16  ;;  %v9896_v18 = vrot.slane %v9894_v6, 4 }
 0x5e0   :  { %12968 = vmatprep.subr.bf16.mxu0 %v13725_v25 }
 0x5e1   :  { %v9840_v1 = vrot.slane %v9838_v5, 4  ;;  %v9877_v5 = vrot.slane %v9875_v15, 5  ;;  %v9811_v15 = vld [vmem:[#allocation2 + $0x70] sm:$0xf] }
 0x5e3   :  { %12969 = vmatpush3.bf16.msra.mxu0 %v13725_v25  ;;  %v9797_v25 = vld [vmem:[#allocation2 + $0x28] sm:$0xf]  ;;  %v9844_v32 = vor.u32 %v9843_v36, %v9840_v1  ;;  %v16893_v1 = vld [vmem:[#allocation2 + $0x4c] sm:$0x1] }
 0x5e4   :  { %12970 = vmatprep.subr.bf16.mxu0 %v13726_v22  ;;  %v9866_v39 = vshrl.u32 %v9797_v25, 16  ;;  %v9869_v28 = vshll.u32 %v9797_v25, 16  ;;  %v13745_v25 = vld [vmem:[%s17047_s2 + $0x670] sm:$0xff]  }
 0x5e6   :  { %12955 = vmatmul.mubr.bf16.gmra.mrb[20].mxu0 %v11593_v59  ;;  %v9830_v59 = vor.u32 %v9829_v11, %v9826_v7  ;;  %v9868_v24 = vrot.slane %v9866_v39, 4  ;;  %v9871_v27 = vrot.slane %v9869_v28, 5  ;;  %v13746_v39 = vld [vmem:[#allocation2 + $0x90] ss:$8 sps:$4 sm:$0xff]  }
 0x5e7   :  { %12971 = vmatpush3.bf16.msra.mxu0 %v13726_v22  ;;  %12958 = vmatprep.mubr.bf16.mxu0 %v11594_v58  ;;  %v9855_v22 = vshll.u32 %v9795_v44, 16  ;;  %v9883_v58 = vshll.u32 %v9799_v10, 16  ;;  %v9807_v44 = vld [vmem:[#allocation2 + $0x60] sm:$0xf] }
 0x5e8   :  { %12972 = vmatprep.subr.bf16.mxu0 %v13727_v30  ;;  %v9831_v8 = vrot.slane %v9830_v59, 4  ;;  %v9872_v42 = vor.u32 %v9871_v27, %v9868_v24 }
 0x5e9   :  { %v9857_v14 = vrot.slane %v9855_v22, 5 }
 0x5eb   :  { %12973 = vmatpush3.bf16.msra.mxu0 %v13727_v30  ;;  %v16865_v30 = vld [vmem:[#allocation2 + $0x24] sm:$0x1]  ;;  %v9858_v47 = vor.u32 %v9857_v14, %v9854_v46  ;;  %v13747_v46 = vld [vmem:[%s17047_s2 + $0x678] sm:$0xff]  }
 0x5ec   :  { %12974 = vmatprep.subr.bf16.mxu0 %v13728_v57 }
 0x5ed   :  { %v9859_v11 = vrot.slane %v9858_v47, 4 }
 0x5ee   :  { %12959 = vmatmul.mubr.bf16.gmra.mrb[24].mxu0 %v11595_v45  ;;  %v9861_v45 = vshll.u32 %v16865_v30, 16 }
 0x5ef   :  { %12975 = vmatpush3.bf16.msra.mxu0 %v13728_v57  ;;  %12962 = vmatprep.mubr.bf16.mxu0 %v11596_v61  ;;  %v9897_v57 = vshll.u32 %v9801_v41, 16  ;;  %v13744_v61 = vld [vmem:[%s17047_s2 + $0x668] sm:$0xff]   ;;  %v9927_v41 = vrot.slane %v9925_v50, 5 }
 0x5f0   :  { %12976 = vmatprep.subr.bf16.mxu0 %v13729_v12  ;;  %v9863_v33 = vrot.slane %v9861_v45, 5 }
 0x5f1   :  { %v9899_v16 = vrot.slane %v9897_v57, 5 }
 0x5f2   :  { %v9864_v45 = vsel %vm13981_vm9, %v9859_v11, %v9863_v33 }
 0x5f3   :  { %12977 = vmatpush3.bf16.msra.mxu0 %v13729_v12  ;;  %v9885_v12 = vrot.slane %v9883_v58, 5  ;;  %v9900_v10 = vor.u32 %v9899_v16, %v9896_v18  ;;  %v9936_v58 = vshrl.u32 %v9807_v44, 16  ;;  %v9817_v18 = vld [vmem:[#allocation2 + $0x88] sm:$0xf] }
 0x5f4   :  { %12978 = vmatprep.subr.bf16.mxu0 %v13730_v62 }
 0x5f5   :  { %v9886_v54 = vor.u32 %v9885_v12, %v9882_v63  ;;  %v9938_v47 = vrot.slane %v9936_v58, 4 }
 0x5f6   :  { %12963 = vmatmul.mubr.bf16.gmra.mrb[28].mxu0 %v11597_v4  ;;  %v9908_v4 = vshrl.u32 %v9803_v40, 16 }
 0x5f7   :  { %12979 = vmatpush3.bf16.msra.mxu0 %v13730_v62  ;;  %12982 = vmatprep.mubr.bf16.mxu0 %v13731_v3  ;;  %v16878_v62 = vld [vmem:[#allocation2 + $0x34] sm:$0x1]  ;;  %v9809_v3 = vld [vmem:[#allocation2 + $0x68] sm:$0xf]  ;;  %v9887_v59 = vrot.slane %v9886_v54, 4 }
 0x5f8   :  { %12980 = vmatprep.subr.bf16.mxu0 %v13732_v52  ;;  %v9950_v19 = vshrl.u32 %v9809_v3, 16  ;;  %v9953_v7 = vshll.u32 %v9809_v3, 16  ;;  %v9910_v37 = vrot.slane %v9908_v4, 4 }
 0x5fa   :  { %v9952_v6 = vrot.slane %v9950_v19, 4  ;;  %v9955_v57 = vrot.slane %v9953_v7, 5  ;;  %v9964_v19 = vshrl.u32 %v9811_v15, 16  ;;  %v9967_v7 = vshll.u32 %v9811_v15, 16 }
 0x5fb   :  { %12981 = vmatpush3.bf16.msra.mxu0 %v13732_v52  ;;  %v9911_v52 = vshll.u32 %v9803_v40, 16 }
 0x5fc   :  { %12998 = vmatprep.subr.bf16.mxu0 %v13733_v43  ;;  %v9956_v4 = vor.u32 %v9955_v57, %v9952_v6  ;;  %v9966_v57 = vrot.slane %v9964_v19, 4 }
 0x5fd   :  { %v9913_v22 = vrot.slane %v9911_v52, 5 }
 0x5fe   :  { %12983 = vmatmul.mubr.bf16.vlgmr.msra.gmra.mrb[16].mxu0 %v13734_v51  ;;  %v9849_v51 = vrot.slane %v9847_v26, 5 }
 0x5ff   :  { %12999 = vmatpush3.bf16.msra.mxu0 %v13733_v43  ;;  %12986 = vmatprep.mubr.bf16.mxu0 %v13735_v55  ;;  %v9845_v43 = vrot.slane %v9844_v32, 4  ;;  %v9836_v55 = vsel %vm13981_vm9, %v9831_v8, %v9835_v13  ;;  %v9901_v32 = vrot.slane %v9900_v10, 4  ;;  %v9914_v40 = vor.u32 %v9913_v22, %v9910_v37  ;;  %v9813_v8 = vld [vmem:[#allocation2 + $0x78] sm:$0xf]  ;;  %v13779_v10 = vld [vmem:[%s17047_s2 + $0x680] sm:$0xff]  }
 0x600   :  { %13000 = vmatprep.subr.bf16.mxu0 %v13736_v53  ;;  %v9978_v52 = vshrl.u32 %v9813_v8, 16  ;;  %v9981_v3 = vshll.u32 %v9813_v8, 16  ;;  %v9957_v37 = vrot.slane %v9956_v4, 4 }
 0x601   :  { %v9850_v28 = vsel %vm13981_vm9, %v9845_v43, %v9849_v51  ;;  %v9815_v43 = vld [vmem:[#allocation2 + $0x80] sm:$0xf] }
 0x602   :  { %v9992_v11 = vshrl.u32 %v9815_v43, 16  ;;  %v9980_v22 = vrot.slane %v9978_v52, 4 }
 0x603   :  { %13001 = vmatpush3.bf16.msra.mxu0 %v13736_v53  ;;  %v9922_v53 = vshrl.u32 %v9805_v34, 16 }
 0x604   :  { %13002 = vmatprep.subr.bf16.mxu0 %v13737_v23 }
 0x605   :  { %v9924_v36 = vrot.slane %v9922_v53, 4  ;;  %v9915_v53 = vrot.slane %v9914_v40, 4 }
 0x606   :  { %12987 = vmatmul.mubr.bf16.gmra.mrb[20].mxu0 %v13738_v31  ;;  %v9873_v31 = vrot.slane %v9872_v42, 4 }
 0x607   :  { %13003 = vmatpush3.bf16.msra.mxu0 %v13737_v23  ;;  %12990 = vmatprep.mubr.bf16.mxu0 %v13739_v49  ;;  %v9889_v23 = vshll.u32 %v16878_v62, 16  ;;  %v9903_v49 = vshll.u32 %v16882_v17, 16  ;;  %v9928_v34 = vor.u32 %v9927_v41, %v9924_v36  ;;  %v9819_v41 = vld [vmem:[#allocation2 + $0x90] sm:$0xf] }
 0x608   :  { %13004 = vmatprep.subr.bf16.mxu0 %v13740_v29  ;;  %v9878_v14 = vsel %vm13981_vm9, %v9873_v31, %v9877_v5  ;;  %v10009_v31 = vshll.u32 %v9817_v18, 16 }
 0x609   :  { %v9891_v56 = vrot.slane %v9889_v23, 5  ;;  %v9905_v63 = vrot.slane %v9903_v49, 5  ;;  %v9929_v54 = vrot.slane %v9928_v34, 4  ;;  %v13778_v23 = vld [vmem:[#allocation2 + $0x6c] sm:$0x1] }
 0x60b   :  { %13005 = vmatpush3.bf16.msra.mxu0 %v13740_v29  ;;  %v16888_v29 = vld [vmem:[#allocation2 + $0x44] sm:$0x1]  ;;  %v9892_v13 = vsel %vm13981_vm9, %v9887_v59, %v9891_v56  ;;  %v9906_v51 = vsel %vm13981_vm9, %v9901_v32, %v9905_v63  ;;  %v13780_v32 = vld [vmem:[%s17047_s2 + $0x688] sm:$0xff]  }
 0x60c   :  { %13006 = vmatprep.subr.bf16.mxu0 %v13741_v35  ;;  %v9917_v27 = vshll.u32 %v16888_v29, 16  ;;  %v11656_v49 = vcombine.low %v9892_v13, %v9906_v51  ;;  %v10023_v13 = vshll.u32 %v9819_v41, 16  ;;  %v13782_v51 = vld [vmem:[#allocation2 + $0x7c] sm:$0x1] }
 0x60e   :  { %12991 = vmatmul.mubr.bf16.gmra.mrb[24].mxu0 %v13742_v0  ;;  %v11654_v0 = vcombine.low %v9836_v55, %v9850_v28  ;;  %v9919_v16 = vrot.slane %v9917_v27, 5  ;;  %v13777_v55 = vld [vmem:[#allocation2 + $0x64] sm:$0x1]  ;;  %v9995_v28 = vshll.u32 %v9815_v43, 16 }
 0x60f   :  { %13007 = vmatpush3.bf16.msra.mxu0 %v13741_v35  ;;  %12994 = vmatprep.mubr.bf16.mxu0 %v13743_v2  ;;  %v9939_v35 = vshll.u32 %v9807_v44, 16  ;;  %v9931_v2 = vshll.u32 %v16893_v1, 16  ;;  %v9945_v33 = vshll.u32 %v13777_v55, 16  ;;  %v9959_v44 = vshll.u32 %v13778_v23, 16  ;;  %v13784_v23 = vld [vmem:[#allocation2 + $0x8c] sm:$0x1] }
 0x610   :  { %13008 = vmatprep.subr.bf16.mxu0 %v13744_v61  ;;  %v9920_v59 = vsel %vm13981_vm9, %v9915_v53, %v9919_v16  ;;  %v9997_v63 = vrot.slane %v9995_v28, 5  ;;  %v9987_v53 = vshll.u32 %v13782_v51, 16 }
 0x611   :  { %v9941_v42 = vrot.slane %v9939_v35, 5  ;;  %v9933_v50 = vrot.slane %v9931_v2, 5  ;;  %v9947_v36 = vrot.slane %v9945_v33, 5  ;;  %v9961_v56 = vrot.slane %v9959_v44, 5 }
 0x612   :  { %v10011_v35 = vrot.slane %v10009_v31, 5  ;;  %v10015_v44 = vshll.u32 %v13784_v23, 16  ;;  %v10025_v31 = vrot.slane %v10023_v13, 5  ;;  %v10259_v23 = vld [vmem:[#allocation2 + $0x20] sm:$0xe] }
 0x613   :  { %13009 = vmatpush3.bf16.msra.mxu0 %v13744_v61  ;;  %v11655_v61 = vcombine.low %v9864_v45, %v9878_v14  ;;  %v9942_v5 = vor.u32 %v9941_v42, %v9938_v47  ;;  %v9934_v14 = vsel %vm13981_vm9, %v9929_v54, %v9933_v50  ;;  %v9962_v40 = vsel %vm13981_vm9, %v9957_v37, %v9961_v56  ;;  %v13783_v50 = vld [vmem:[%s17047_s2 + $0x690] sm:$0xff]  }
 0x614   :  { %v16895_v60 = vpop.f32.mrb[32].mxu1  ;;  %13010 = vmatprep.subr.bf16.mxu0 %v13745_v25  ;;  %v9994_v45 = vrot.slane %v9992_v11, 4  ;;  %v11657_v52 = vcombine.low %v9920_v59, %v9934_v14 }
 0x615   :  { %v16902_v24 = vpop.f32.mrb[33].mxu1  ;;  %v9943_v27 = vrot.slane %v9942_v5, 4 }
 0x616   :  { %v16905_v26 = vpop.f32.mrb[34].mxu1  ;;  %12995 = vmatmul.mubr.bf16.gmra.mrb[28].mxu0 %v13746_v39  ;;  %v9983_v39 = vrot.slane %v9981_v3, 5  ;;  %v9998_v54 = vor.u32 %v9997_v63, %v9994_v45 }
 0x617   :  { %v16910_v12 = vpop.f32.mrb[35].mxu1  ;;  %13011 = vmatpush3.bf16.msra.mxu0 %v13745_v25  ;;  %13014 = vmatprep.mubr.bf16.mxu0 %v11654_v0  ;;  %v10006_v25 = vshrl.u32 %v9817_v18, 16  ;;  %v9969_v0 = vrot.slane %v9967_v7, 5  ;;  %v13781_v18 = vld [vmem:[#allocation2 + $0x74] sm:$0x1]  ;;  %v9948_v3 = vsel %vm13981_vm9, %v9943_v27, %v9947_v36  ;;  %v10017_v36 = vrot.slane %v10015_v44, 5 }
 0x618   :  { %13012 = vmatprep.subr.bf16.mxu0 %v13747_v46  ;;  %v9984_v8 = vor.u32 %v9983_v39, %v9980_v22  ;;  %v9973_v16 = vshll.u32 %v13781_v18, 16  ;;  %v11658_v55 = vcombine.low %v9948_v3, %v9962_v40  ;;  %v13785_v7 = vld [vmem:[#allocation2 + $0x84] sm:$0x1]  ;;  %v9989_v22 = vrot.slane %v9987_v53, 5  ;;  %v13786_v39 = vld [vmem:[%s17047_s2 + $0x698] sm:$0xff]  }
 0x619   :  { %v10008_v58 = vrot.slane %v10006_v25, 4  ;;  %v9970_v43 = vor.u32 %v9969_v0, %v9966_v57  ;;  %v10001_v11 = vshll.u32 %v13785_v7, 16  ;;  %v13788_v57 = vld [vmem:[#allocation2 + $0x94] sm:$0x1]  ;;  %v13789_v40 = vld [vmem:[%s17047_s2 + $0x6a0] sm:$0xff]   ;;  %v11672_v7 = vrot.slane %v10259_v23, 9 }
 0x61a   :  { %v9985_v33 = vrot.slane %v9984_v8, 4  ;;  %v9975_v28 = vrot.slane %v9973_v16, 5  ;;  %v10029_v0 = vshll.u32 %v13788_v57, 16  ;;  %v10311_v16 = vrot.slane %v16862_v48, 5 }
 0x61b   :  { %13013 = vmatpush3.bf16.msra.mxu0 %v13747_v46  ;;  %v9821_v46 = vld [vmem:[#allocation2 + $0x98] sm:$0xf]  ;;  %v10012_v4 = vor.u32 %v10011_v35, %v10008_v58  ;;  %v9971_v37 = vrot.slane %v9970_v43, 4  ;;  %v13787_v58 = vld [vmem:[#allocation2 + $0x9c] sm:$0x1]  ;;  %v10307_v43 = vrot.slane %v16857_v20, 5 }
 0x61c   :  { %13030 = vmatprep.subr.bf16.mxu0 %v13779_v10  ;;  %v10034_v47 = vshrl.u32 %v9821_v46, 16  ;;  %v10037_v42 = vshll.u32 %v9821_v46, 16  ;;  %v10043_v35 = vshll.u32 %v13787_v58, 16  ;;  %v10003_v46 = vrot.slane %v10001_v11, 5 }
 0x61d   :  { %v9976_v27 = vsel %vm13981_vm9, %v9971_v37, %v9975_v28  ;;  %v10315_v11 = vrot.slane %v16865_v30, 5  ;;  %v10264_v28 = vld [vmem:[#allocation2 + $0x48] sm:$0xe]  ;;  %v10335_v58 = vrot.slane %v16893_v1, 5 }
 0x61e   :  { %13015 = vmatmul.mubr.bf16.vlgmr.msra.gmra.mrb[16].mxu0 %v11655_v61  ;;  %v10020_v61 = vshrl.u32 %v9819_v41, 16  ;;  %v10036_v5 = vrot.slane %v10034_v47, 4  ;;  %v10039_v19 = vrot.slane %v10037_v42, 5  ;;  %v9990_v41 = vsel %vm13981_vm9, %v9985_v33, %v9989_v22  ;;  %v10257_v42 = vld [vmem:[#allocation2 + $0x10] sm:$0xe] }
 0x61f   :  { %13031 = vmatpush3.bf16.msra.mxu0 %v13779_v10  ;;  %13018 = vmatprep.mubr.bf16.mxu0 %v11656_v49  ;;  %v16923_v6 = vpop.f32.mrb[36].mxu1  ;;  %v10013_v10 = vrot.slane %v10012_v4, 4  ;;  %v9999_v49 = vrot.slane %v9998_v54, 4  ;;  %v11659_v8 = vcombine.low %v9976_v27, %v9990_v41  ;;  %v10045_v47 = vrot.slane %v10043_v35, 5  ;;  %v13791_v33 = vld [vmem:[%s17047_s2 + $0x6b0] sm:$0xff]  }
 0x620   :  { %13032 = vmatprep.subr.bf16.mxu0 %v13780_v32  ;;  %v16930_v2 = vpop.f32.mrb[37].mxu1  ;;  %v10022_v25 = vrot.slane %v10020_v61, 4  ;;  %v10040_v56 = vor.u32 %v10039_v19, %v10036_v5  ;;  %v10031_v4 = vrot.slane %v10029_v0, 5  ;;  %v11670_v3 = vrot.slane %v10257_v42, 9 }
 0x621   :  { %v16932_v34 = vpop.f32.mrb[38].mxu1  ;;  %v10018_v14 = vsel %vm13981_vm9, %v10013_v10, %v10017_v36  ;;  %v10004_v45 = vsel %vm13981_vm9, %v9999_v49, %v10003_v46  ;;  %v10327_v19 = vrot.slane %v16882_v17, 5  ;;  %v13792_v10 = vld [vmem:[%s17047_s2 + $0x6b8] sm:$0xff]   ;;  %v10323_v22 = vrot.slane %v16878_v62, 5 }
 0x622   :  { %v16934_v15 = vpop.f32.mrb[39].mxu1  ;;  %v10026_v59 = vor.u32 %v10025_v31, %v10022_v25  ;;  %v11660_v63 = vcombine.low %v10004_v45, %v10018_v14  ;;  %v10041_v13 = vrot.slane %v10040_v56, 4  ;;  %v10308_v20 = vsel %vm14412_vm12, %v11670_v3, %v10307_v43  ;;  %v10261_v31 = vld [vmem:[#allocation2 + $0x30] sm:$0xe] }
 0x623   :  { %13033 = vmatpush3.bf16.msra.mxu0 %v13780_v32  ;;  %v10258_v32 = vld [vmem:[#allocation2 + $0x18] sm:$0xe]  ;;  %v11674_v37 = vrot.slane %v10261_v31, 9  ;;  %v10316_v30 = vsel %vm14412_vm12, %v11672_v7, %v10315_v11  ;;  %v10331_v62 = vrot.slane %v16888_v29, 5  ;;  %v11677_v56 = vrot.slane %v10264_v28, 9 }
 0x624   :  { %13034 = vmatprep.subr.bf16.mxu0 %v13783_v50  ;;  %v10027_v61 = vrot.slane %v10026_v59, 4  ;;  %v11671_v18 = vrot.slane %v10258_v32, 9  ;;  %v10046_v53 = vsel %vm13981_vm9, %v10041_v13, %v10045_v47 }
 0x625   :  { %v10324_v36 = vsel %vm14412_vm12, %v11674_v37, %v10323_v22  ;;  %v10336_v46 = vsel %vm14412_vm12, %v11677_v56, %v10335_v58 }
 0x626   :  { %13019 = vmatmul.mubr.bf16.gmra.mrb[20].mxu0 %v11657_v52  ;;  %v13790_v52 = vld [vmem:[%s17047_s2 + $0x6a8] sm:$0xff]   ;;  %v10032_v51 = vsel %vm13981_vm9, %v10027_v61, %v10031_v4  ;;  %v10312_v48 = vsel %vm14412_vm12, %v11671_v18, %v10311_v16  ;;  %s13820_s2 = smov 16  }
 0x627   :  { %13035 = vmatpush3.bf16.msra.mxu0 %v13783_v50  ;;  %13022 = vmatprep.mubr.bf16.mxu0 %v11658_v55  ;;  %v10260_v50 = vld [vmem:[#allocation2 + $0x28] sm:$0xe]  ;;  %v10262_v55 = vld [vmem:[#allocation2 + $0x38] sm:$0xe]  ;;  %v11661_v54 = vcombine.low %v10032_v51, %v10046_v53  ;;  %v11702_v44 = vcombine.low %v10308_v20, %v10312_v48 }
 0x628   :  { %13036 = vmatprep.subr.bf16.mxu0 %v13786_v39  ;;  %v11673_v25 = vrot.slane %v10260_v50, 9  ;;  %v11675_v5 = vrot.slane %v10262_v55, 9 }
 0x62a   :  { %v10320_v9 = vsel %vm14412_vm12, %v11673_v25, %v10319_v21  ;;  %v10328_v17 = vsel %vm14412_vm12, %v11675_v5, %v10327_v19 }
 0x62b   :  { %13037 = vmatpush3.bf16.msra.mxu0 %v13786_v39  ;;  %v10263_v39 = vld [vmem:[#allocation2 + $0x40] sm:$0xe]  ;;  %v11703_v49 = vcombine.low %v10316_v30, %v10320_v9  ;;  %v11704_v59 = vcombine.low %v10324_v36, %v10328_v17 }
 0x62c   :  { %13038 = vmatprep.subr.bf16.mxu0 %v13789_v40  ;;  %v11676_v41 = vrot.slane %v10263_v39, 9 }
 0x62e   :  { %13023 = vmatmul.mubr.bf16.gmra.mrb[24].mxu0 %v11659_v8  ;;  %v10332_v35 = vsel %vm14412_vm12, %v11676_v41, %v10331_v62 }
 0x62f   :  { %13039 = vmatpush3.bf16.msra.mxu0 %v13789_v40  ;;  %13026 = vmatprep.mubr.bf16.mxu0 %v11660_v63  ;;  %v11705_v14 = vcombine.low %v10332_v35, %v10336_v46 }
 0x630   :  { %13040 = vmatprep.subr.bf16.mxu0 %v13790_v52 }
 0x633   :  { %13041 = vmatpush3.bf16.msra.mxu0 %v13790_v52 }
 0x634   :  { %13042 = vmatprep.subr.bf16.mxu0 %v13791_v33 }
 0x636   :  { %13027 = vmatmul.mubr.bf16.gmra.mrb[28].mxu0 %v11661_v54 }
 0x637   :  { %13043 = vmatpush3.bf16.msra.mxu0 %v13791_v33  ;;  %13046 = vmatprep.mubr.bf16.mxu0 %v11702_v44 }
 0x638   :  { %13044 = vmatprep.subr.bf16.mxu0 %v13792_v10 }
 0x63b   :  { %13045 = vmatpush3.bf16.msra.mxu0 %v13792_v10 }
 0x63e   :  { %13047 = vmatmul.mubr.bf16.vlgmr.msra.gmra.mrb[16].mxu0 %v11703_v49 }
 0x63f   :  { %13050 = vmatprep.mubr.bf16.mxu0 %v11704_v59 }
 0x646   :  { %13051 = vmatmul.mubr.bf16.gmra.mrb[20].mxu0 %v11705_v14 }
 0x701   :  { %v13024_v27 = vpop.f32.mrb[24].mxu0 }
 0x702   :  { %v13094_v57 = vadd.f32 %v16895_v60, %v13024_v27  ;;  %v10210_v0 = vpop.f32.mrb[25].mxu0 }
 0x703   :  { %v13095_v32 = vadd.f32 %v16902_v24, %v10210_v0  ;;  %v13025_v29 = vpop.f32.mrb[26].mxu0 }
 0x704   :  { %v13096_v40 = vadd.f32 %v16905_v26, %v13025_v29  ;;  %v10213_v1 = vpop.f32.mrb[27].mxu0  ;;  %10615 = vrot.lane.b32.xlu0 %v13094_v57, %s13820_s2 }
 0x705   :  { %v13097_v8 = vadd.f32 %v16910_v12, %v10213_v1 }
 0x706   :  { %10617 = vrot.lane.b32.xlu1 %v13096_v40, %s13820_s2 }
 0x708   :  { %10611 = vrot.lane.b32.xlu0 %v13095_v32, %s13820_s2 }
 0x709   :  { %v13028_v38 = vpop.f32.mrb[28].mxu0 }
 0x70a   :  { %v13098_v45 = vadd.f32 %v16923_v6, %v13028_v38  ;;  %v10226_v60 = vpop.f32.mrb[29].mxu0  ;;  %10613 = vrot.lane.b32.xlu1 %v13097_v8, %s13820_s2 }
 0x70b   :  { %v13099_v24 = vadd.f32 %v16930_v2, %v10226_v60  ;;  %v13029_v63 = vpop.f32.mrb[30].mxu0 }
 0x70c   :  { %v13100_v26 = vadd.f32 %v16932_v34, %v13029_v63  ;;  %v10229_v61 = vpop.f32.mrb[31].mxu0 }
 0x70d   :  { %v13101_v13 = vadd.f32 %v16934_v15, %v10229_v61  ;;  %10619 = vrot.lane.b32.xlu0 %v13099_v24, %s13820_s2 }
 0x70f   :  { %10621 = vrot.lane.b32.xlu1 %v13101_v13, %s13820_s2 }
 0x711   :  { %v13048_v12 = vpop.f32.mrb[16].mxu0 }
 0x712   :  { %v10500_v47 = vpop.f32.mrb[17].mxu0  ;;  %10599 = vrot.lane.b32.xlu0 %v13048_v12, %s13820_s2 }
 0x713   :  { %v13049_v6 = vpop.f32.mrb[18].mxu0 }
 0x714   :  { %v10503_v42 = vpop.f32.mrb[19].mxu0  ;;  %10601 = vrot.lane.b32.xlu1 %v13049_v6, %s13820_s2 }
 0x716   :  { %10595 = vrot.lane.b32.xlu0 %v10500_v47, %s13820_s2 }
 0x718   :  { %10597 = vrot.lane.b32.xlu1 %v10503_v42, %s13820_s2 }
 0x719   :  { %v13052_v2 = vpop.f32.mrb[20].mxu0 }
 0x71a   :  { %v10516_v34 = vpop.f32.mrb[21].mxu0  ;;  %10607 = vrot.lane.b32.xlu0 %v13052_v2, %s13820_s2 }
 0x71b   :  { %v13053_v15 = vpop.f32.mrb[22].mxu0 }
 0x71c   :  { %v10519_v18 = vpop.f32.mrb[23].mxu0  ;;  %10609 = vrot.lane.b32.xlu1 %v13053_v15, %s13820_s2 }
 0x71e   :  { %10603 = vrot.lane.b32.xlu0 %v10516_v34, %s13820_s2 }
 0x720   :  { %10605 = vrot.lane.b32.xlu1 %v10519_v18, %s13820_s2 }
 0x722   :  { %10623 = vrot.lane.b32.xlu0 %v13098_v45, %s13820_s2 }
 0x724   :  { %10625 = vrot.lane.b32.xlu1 %v13100_v26, %s13820_s2 }
 0x776   :  { %v10616_v16 = vpop.permute.xlu0 %10615 }
 0x777   :  { %10654 = vst.msk [vmem:[#allocation3 + $0x50] sm:$0xff] %vm10643_vm2, %v10616_v16 }
 0x778   :  { %v10618_v4 = vpop.permute.xlu1 %10617 }
 0x779   :  { %10655 = vst.msk [vmem:[#allocation3 + $0x58] sm:$0xff] %vm10643_vm2, %v10618_v4 }
 0x77a   :  { %v10612_v52 = vpop.permute.xlu0 %10611 }
 0x77b   :  { %10652 = vst.msk [vmem:[#allocation3 + $0x40] sm:$0xff] %vm10643_vm2, %v10612_v52 }
 0x77c   :  { %v10614_v3 = vpop.permute.xlu1 %10613 }
 0x77d   :  { %10653 = vst.msk [vmem:[#allocation3 + $0x48] sm:$0xff] %vm10643_vm2, %v10614_v3 }
 0x77f   :  { %v10620_v43 = vpop.permute.xlu0 %10619 }
 0x780   :  { %10656 = vst.msk [vmem:[#allocation3 + $0x60] sm:$0xff] %vm10643_vm2, %v10620_v43 }
 0x781   :  { %v10622_v51 = vpop.permute.xlu1 %10621 }
 0x782   :  { %10657 = vst.msk [vmem:[#allocation3 + $0x68] sm:$0xff] %vm10643_vm2, %v10622_v51 }
 0x784   :  { %v10600_v53 = vpop.permute.xlu0 %10599 }
 0x785   :  { %10646 = vst.msk [vmem:[#allocation3 + $0x10] sm:$0xff] %vm10643_vm2, %v10600_v53 }
 0x786   :  { %v10602_v48 = vpop.permute.xlu1 %10601 }
 0x787   :  { %10647 = vst.msk [vmem:[#allocation3 + $0x18] sm:$0xff] %vm10643_vm2, %v10602_v48 }
 0x788   :  { %v10596_v50 = vpop.permute.xlu0 %10595 }
 0x789   :  { %10644 = vst.msk [vmem:[#allocation3] sm:$0xff] %vm10643_vm2, %v10596_v50 }
 0x78a   :  { %v10598_v55 = vpop.permute.xlu1 %10597 }
 0x78b   :  { %10645 = vst.msk [vmem:[#allocation3 + $0x8] sm:$0xff] %vm10643_vm2, %v10598_v55 }
 0x78c   :  { %v10608_v33 = vpop.permute.xlu0 %10607 }
 0x78d   :  { %10650 = vst.msk [vmem:[#allocation3 + $0x30] sm:$0xff] %vm10643_vm2, %v10608_v33 }
 0x78e   :  { %v10610_v54 = vpop.permute.xlu1 %10609 }
 0x78f   :  { %10651 = vst.msk [vmem:[#allocation3 + $0x38] sm:$0xff] %vm10643_vm2, %v10610_v54 }
 0x790   :  { %v10604_v20 = vpop.permute.xlu0 %10603 }
 0x791   :  { %10648 = vst.msk [vmem:[#allocation3 + $0x20] sm:$0xff] %vm10643_vm2, %v10604_v20 }
 0x792   :  { %v10606_v23 = vpop.permute.xlu1 %10605 }
 0x793   :  { %10649 = vst.msk [vmem:[#allocation3 + $0x28] sm:$0xff] %vm10643_vm2, %v10606_v23 }
 0x794   :  { %v10624_v44 = vpop.permute.xlu0 %10623 }
 0x795   :  { %10658 = vst.msk [vmem:[#allocation3 + $0x70] sm:$0xff] %vm10643_vm2, %v10624_v44 }
 0x796   :  { %v10626_v25 = vpop.permute.xlu1 %10625 }
 0x797   :  { %10659 = vst.msk [vmem:[#allocation3 + $0x78] sm:$0xff] %vm10643_vm2, %v10626_v25 }
 0x798   :  { %13804 = shalt.err (!%p13801_p4)
}
 0x799   :  { %s13805_s9 = scalar_lea.hbm %s17048_s3, 2048 }
 0x79a   :  { %p13806_p5 = scmp.ne.s32.totalorder %s17048_s3, %s13805_s9  ;;  %p13809_p6 = scmp.lt.u32.totalorder %s13805_s9, %s17048_s3 }
 0x79c   :  { %p13811_p7 = pnand %p13809_p6, %p13806_p5 }
 0x79e   :  { %13814 = shalt.err (!%p13811_p7)
}
 0x79f   :  { %s13822_s14 = smov 128  }
 0x7a0   :  { %10671 = dma.vmem_to_hbm [thread:$0]  %s10666_s6, 2048, %s17048_s3, [#allocation4], %s13822_s14, %s13822_s14, %s13818_s24  }
 0x7a1   :  { %13815 = dma.done.wait [#allocation4], 2048  }
 0x7a2   :  { %13816 = vsyncadd [#allocation4], 4294965248 }
 0x7a3   :  { %10675 = vsyncpa [#allocation4], 1 }

</bundles_post_ra>
